<compile_context>
chip_gen: v7x
topology: tpu7x:2x2x1
jax: 0.10.0
libtpu: 0.0.40
codegen_flags: <defaults>
</compile_context>

<pallas_src>
import numpy as np
import jax
import jax.numpy as jnp
from jax import lax
from jax.experimental import pallas as pl
from jax.experimental.pallas import tpu as pltpu

NEG_SLOPE = 0.2
BN_EPS = 1e-5
KSIZE = 4
STRIDE = 2
PAD = 1
NUM_TAPS = KSIZE * KSIZE


# ----------------------------- Pallas kernel --------------------------------

def _bn_lrelu(y, gamma, beta):
    """Training-mode BatchNorm (batch statistics over all rows) + LeakyReLU(0.2).

    y: [M, C] f32 ; gamma/beta: [1, C] f32.  Stats over axis 0 are exact only
    because the full M rows of the layer live in this single kernel invocation.
    """
    m = y.shape[0]
    inv_m = 1.0 / m
    mean = jnp.sum(y, axis=0, keepdims=True) * inv_m
    centered = y - mean
    var = jnp.sum(centered * centered, axis=0, keepdims=True) * inv_m
    z = centered * (gamma * lax.rsqrt(var + BN_EPS)) + beta
    return jnp.maximum(z, NEG_SLOPE * z)


def _tap_conv(sel_ref, a_prev, w_ref):
    """Conv(k=4,s=2,p=1) as 16 per-tap matmuls: sum_t (Sel_t @ A_prev) @ W_t.

    sel_ref: [16, M_out, M_in] bf16 (0/1, zero rows encode padding)
    a_prev : [M_in, C_in]      bf16
    w_ref  : [16, C_in, C_out] bf16
    returns: [M_out, C_out]    f32
    """
    acc = None
    for t in range(NUM_TAPS):
        xt = jnp.dot(sel_ref[t], a_prev, preferred_element_type=jnp.float32)
        yt = jnp.dot(xt.astype(jnp.bfloat16), w_ref[t],
                     preferred_element_type=jnp.float32)
        acc = yt if acc is None else acc + yt
    return acc


def _freq_net_kernel(p1_ref, w1_ref, g1_ref, b1_ref,
                     sel2_ref, w2_ref, g2_ref, b2_ref,
                     sel3_ref, g3_ref, b3_ref,
                     sel4_ref, g4_ref, b4_ref,
                     w3_hbm_ref, w4_hbm_ref,
                     o_ref,
                     w3_vmem, w4_vmem, dma_sem):
    # Prefetch the two large weights (HBM -> VMEM) so the DMA overlaps the
    # layer-1/2 compute (P4 pattern).
    cp3 = pltpu.make_async_copy(w3_hbm_ref, w3_vmem, dma_sem.at[0])
    cp4 = pltpu.make_async_copy(w4_hbm_ref, w4_vmem, dma_sem.at[1])
    cp3.start()
    cp4.start()

    # ---- layer 1: conv(2->64) on precomputed patches + BN + LeakyReLU ----
    y1 = jnp.dot(p1_ref[...], w1_ref[...], preferred_element_type=jnp.float32)
    a1 = _bn_lrelu(y1, g1_ref[...], b1_ref[...]).astype(jnp.bfloat16)

    # ---- layer 2: conv(64->128) ----
    y2 = _tap_conv(sel2_ref, a1, w2_ref)
    a2 = _bn_lrelu(y2, g2_ref[...], b2_ref[...]).astype(jnp.bfloat16)

    # ---- layer 3: conv(128->256) ----
    cp3.wait()
    y3 = _tap_conv(sel3_ref, a2, w3_vmem)
    a3 = _bn_lrelu(y3, g3_ref[...], b3_ref[...]).astype(jnp.bfloat16)

    # ---- layer 4: conv(256->256) ----
    cp4.wait()
    y4 = _tap_conv(sel4_ref, a3, w4_vmem)
    o_ref[...] = _bn_lrelu(y4, g4_ref[...], b4_ref[...])


# --------------------------- pallas_call wrapper ------------------------------

def _full_spec(shape):
    ndim = len(shape)
    return pl.BlockSpec(shape, lambda i, _n=ndim: (0,) * _n)


def _cost(p1, pp):
    def tap_macs(sel, w):
        t, m2, m1 = sel.shape
        _, c1, c2 = w.shape
        return t * (m2 * m1 * c1 + m2 * c1 * c2)

    macs = p1.shape[0] * p1.shape[1] * pp["w1"].shape[1]
    macs += tap_macs(pp["sel2"], pp["w2"])
    macs += tap_macs(pp["sel3"], pp["w3"])
    macs += tap_macs(pp["sel4"], pp["w4"])
    arrays = [p1] + [pp[k] for k in
                     ("w1", "g1", "b1", "sel2", "w2", "g2", "b2",
                      "sel3", "w3", "g3", "b3", "sel4", "w4", "g4", "b4")]
    nbytes = sum(int(np.prod(a.shape)) * a.dtype.itemsize for a in arrays)
    nbytes += pp["sel4"].shape[1] * pp["w4"].shape[-1] * 4          # f32 output
    transc = sum(pp[k].shape[-1] for k in ("g1", "g2", "g3", "g4"))  # rsqrts
    return int(2 * macs), int(nbytes), int(transc)


def freq_net_pallas(p1, pp):
    """Fused 4-layer conv/BN/LeakyReLU stack. Returns [N*Sh*Sw, 256] f32."""
    vmem_inputs = [
        p1, pp["w1"], pp["g1"], pp["b1"],
        pp["sel2"], pp["w2"], pp["g2"], pp["b2"],
        pp["sel3"], pp["g3"], pp["b3"],
        pp["sel4"], pp["g4"], pp["b4"],
    ]
    in_specs = [_full_spec(a.shape) for a in vmem_inputs]
    in_specs += [pl.BlockSpec(memory_space=pl.ANY),   # w3: prefetched in-kernel
                 pl.BlockSpec(memory_space=pl.ANY)]   # w4: prefetched in-kernel

    m_out = pp["sel4"].shape[1]
    c_out = pp["w4"].shape[-1]
    flops, bytes_accessed, transcendentals = _cost(p1, pp)

    return pl.pallas_call(
        _freq_net_kernel,
        out_shape=jax.ShapeDtypeStruct((m_out, c_out), jnp.float32),
        grid_spec=pltpu.PrefetchScalarGridSpec(
            num_scalar_prefetch=0,
            grid=(1,),
            in_specs=in_specs,
            out_specs=_full_spec((m_out, c_out)),
            scratch_shapes=[
                pltpu.VMEM(pp["w3"].shape, jnp.bfloat16),
                pltpu.VMEM(pp["w4"].shape, jnp.bfloat16),
                pltpu.SemaphoreType.DMA((2,)),
            ],
        ),
        compiler_params=pltpu.CompilerParams(
            dimension_semantics=("arbitrary",)),
        cost_estimate=pl.CostEstimate(
            flops=flops, transcendentals=transcendentals,
            bytes_accessed=bytes_accessed),
    )(*vmem_inputs, pp["w3"], pp["w4"])


# ---------------------- one-time parameter preparation ------------------------

def _build_selection(n, h_in, w_in):
    """0/1 row-selection matrices for Conv(k=4,s=2,p=1): [16, M_out, M_in] bf16."""
    h_out, w_out = h_in // 2, w_in // 2
    m_in, m_out = n * h_in * w_in, n * h_out * w_out
    sel = np.zeros((NUM_TAPS, m_out, m_in), np.float32)
    for kh in range(KSIZE):
        for kw in range(KSIZE):
            t = kh * KSIZE + kw
            for b in range(n):
                for ho in range(h_out):
                    hi = STRIDE * ho + kh - PAD
                    if hi < 0 or hi >= h_in:
                        continue
                    for wo in range(w_out):
                        wi = STRIDE * wo + kw - PAD
                        if wi < 0 or wi >= w_in:
                            continue
                        ro = (b * h_out + ho) * w_out + wo
                        ri = (b * h_in + hi) * w_in + wi
                        sel[t, ro, ri] = 1.0
    return jnp.asarray(sel).astype(jnp.bfloat16)


def prepare_params(params, batch, height, width):
    """Fold weights / build selection matrices / cast to bf16 ONCE (outside jit)."""
    (cw1, _cb1, g1, b1), (cw2, _cb2, g2, b2), \
        (cw3, _cb3, g3, b3), (cw4, _cb4, g4, b4) = params

    def fold_first(w):            # OIHW -> [kh*kw*cin, cout], rows (kh, kw, cin)
        co, ci, kh, kw = w.shape
        return w.transpose(2, 3, 1, 0).reshape(kh * kw * ci, co).astype(jnp.bfloat16)

    def fold_taps(w):             # OIHW -> [16, cin, cout], tap index = kh*4+kw
        co, ci, kh, kw = w.shape
        return w.transpose(2, 3, 1, 0).reshape(kh * kw, ci, co).astype(jnp.bfloat16)

    def bn2d(g, b):
        return (g.reshape(1, -1).astype(jnp.float32),
                b.reshape(1, -1).astype(jnp.float32))

    s1h, s1w = height // 2, width // 2         # conv1 output spatial
    s2h, s2w = s1h // 2, s1w // 2              # conv2 output spatial
    s3h, s3w = s2h // 2, s2w // 2              # conv3 output spatial

    g1r, b1r = bn2d(g1, b1)
    g2r, b2r = bn2d(g2, b2)
    g3r, b3r = bn2d(g3, b3)
    g4r, b4r = bn2d(g4, b4)

    return dict(
        w1=fold_first(cw1), g1=g1r, b1=b1r,
        sel2=_build_selection(batch, s1h, s1w), w2=fold_taps(cw2), g2=g2r, b2=b2r,
        sel3=_build_selection(batch, s2h, s2w), w3=fold_taps(cw3), g3=g3r, b3=b3r,
        sel4=_build_selection(batch, s3h, s3w), w4=fold_taps(cw4), g4=g4r, b4=b4r,
    )


# ------------------------------ JAX glue -------------------------------------

def fft_features_nhwc(x_nchw):
    f = jnp.fft.fft2(x_nchw, axes=(-2, -1))
    mag = jnp.mean(jnp.abs(f), axis=1)                     # [N, H, W]
    ph = jnp.mean(jnp.angle(f), axis=1)                    # [N, H, W]
    return jnp.stack([mag, ph], axis=-1).astype(jnp.float32)   # [N, H, W, 2]


def first_layer_patches(feats):
    """[N,H,W,2] -> [N*Ho*Wo, 32] bf16, column order (kh, kw, cin)."""
    n, h, w, c = feats.shape
    xp = jnp.pad(feats, ((0, 0), (PAD, PAD), (PAD, PAD), (0, 0)))
    ho = (h + 2 * PAD - KSIZE) // STRIDE + 1
    wo = (w + 2 * PAD - KSIZE) // STRIDE + 1
    taps = []
    for i in range(KSIZE):
        for j in range(KSIZE):
            taps.append(xp[:, i:i + STRIDE * ho:STRIDE, j:j + STRIDE * wo:STRIDE, :])
    p = jnp.concatenate(taps, axis=-1)                     # [N, Ho, Wo, 16*C]
    return p.reshape(n * ho * wo, KSIZE * KSIZE * c).astype(jnp.bfloat16)


@jax.jit
def frequency_analysis(x_nchw, pp):
    n, _, h, w = x_nchw.shape
    feats = fft_features_nhwc(x_nchw)
    p1 = first_layer_patches(feats)
    out2d = freq_net_pallas(p1, pp)                        # [N*Sh*Sw, 256] f32
    s4h, s4w = h // 16, w // 16
    c_out = out2d.shape[-1]
    return out2d.reshape(n, s4h, s4w, c_out).transpose(0, 3, 1, 2)   # NCHW


# --------------------------- pure-JAX reference -------------------------------

def reference_forward(x_nchw, params):
    h = fft_features_nhwc(x_nchw)                          # NHWC
    for (w, b, g, be) in params:
        h = lax.conv_general_dilated(
            h, w.transpose(2, 3, 1, 0),
            window_strides=(STRIDE, STRIDE),
            padding=((PAD, PAD), (PAD, PAD)),
            dimension_numbers=("NHWC", "HWIO", "NHWC"))
        h = h + b.reshape(1, 1, 1, -1)
        mean = jnp.mean(h, axis=(0, 1, 2), keepdims=True)
        var = jnp.mean((h - mean) ** 2, axis=(0, 1, 2), keepdims=True)
        h = (h - mean) * (g.reshape(1, 1, 1, -1) * lax.rsqrt(var + BN_EPS)) \
            + be.reshape(1, 1, 1, -1)
        h = jnp.where(h > 0, h, NEG_SLOPE * h)
    return h.transpose(0, 3, 1, 2)


# ---------------------------- parameter init ---------------------------------

def init_params(key):
    # Conv2d weights (OIHW) with PyTorch-style uniform(+-1/sqrt(fan_in)) init;
    # BN gamma=1, beta=0.  Bias kept for the reference; unused by the kernel.
    shapes = [(64, 2, 4, 4), (128, 64, 4, 4), (256, 128, 4, 4), (256, 256, 4, 4)]
    params = []
    for s in shapes:
        key, k1, k2 = jax.random.split(key, 3)
        fan_in = s[1] * s[2] * s[3]
        bound = 1.0 / (fan_in ** 0.5)
        w = jax.random.uniform(k1, s, jnp.float32, -bound, bound)
        b = jax.random.uniform(k2, (s[0],), jnp.float32, -bound, bound)
        gamma = jnp.ones((s[0],), jnp.float32)
        beta = jnp.zeros((s[0],), jnp.float32)
        params.append((w, b, gamma, beta))
    return params


if __name__ == "__main__":
    key = jax.random.PRNGKey(0)
    kx, kp = jax.random.split(key)
    x = jax.random.normal(kx, (2, 4, 16, 16), dtype=jnp.float32)   # NCHW
    params = init_params(kp)
    pp = prepare_params(params, batch=2, height=16, width=16)

    out = frequency_analysis(x, pp)
    out = jax.block_until_ready(out)
    assert out.shape == (2, 256, 1, 1), out.shape
    assert out.dtype == jnp.float32

    # Loose statistical agreement check vs pure-JAX f32 reference (bf16 matmuls
    # + last-layer BN over only 2 rows can legitimately flip a few near-tie
    # channels, so require 85% of elements within tolerance, not allclose).
    ref = np.asarray(reference_forward(x, params))
    got = np.asarray(out)
    within = np.abs(got - ref) <= (0.1 + 0.05 * np.abs(ref))
    assert within.mean() >= 0.85, f"agreement too low: {within.mean():.3f}"

    print("KERNEL_OK")
</pallas_src>

<mosaic_0001>
module attributes {stable_mosaic.version = 11 : i64} {
  func.func @_freq_net_kernel(%arg0: i32, %arg1: memref<128x32xbf16, #tpu.memory_space<vmem>>, %arg2: memref<32x64xbf16, #tpu.memory_space<vmem>>, %arg3: memref<1x64xf32, #tpu.memory_space<vmem>>, %arg4: memref<1x64xf32, #tpu.memory_space<vmem>>, %arg5: memref<16x32x128xbf16, #tpu.memory_space<vmem>>, %arg6: memref<16x64x128xbf16, #tpu.memory_space<vmem>>, %arg7: memref<1x128xf32, #tpu.memory_space<vmem>>, %arg8: memref<1x128xf32, #tpu.memory_space<vmem>>, %arg9: memref<16x8x32xbf16, #tpu.memory_space<vmem>>, %arg10: memref<1x256xf32, #tpu.memory_space<vmem>>, %arg11: memref<1x256xf32, #tpu.memory_space<vmem>>, %arg12: memref<16x2x8xbf16, #tpu.memory_space<vmem>>, %arg13: memref<1x256xf32, #tpu.memory_space<vmem>>, %arg14: memref<1x256xf32, #tpu.memory_space<vmem>>, %arg15: memref<16x128x256xbf16, #tpu.memory_space<any>>, %arg16: memref<16x256x256xbf16, #tpu.memory_space<any>>, %arg17: memref<2x256xf32, #tpu.memory_space<vmem>>, %arg18: memref<16x128x256xbf16, #tpu.memory_space<vmem>>, %arg19: memref<16x256x256xbf16, #tpu.memory_space<vmem>>, %arg20: memref<2x!tpu.dma_semaphore, #tpu.memory_space<semaphore_mem>>) attributes {dimension_semantics = [#tpu.dimension_semantics<arbitrary>], iteration_bounds = array<i64: 1>, scalar_prefetch = 0 : i64, scratch_operands = 3 : i64, tpu.core_type = #tpu.core_type<tc>, window_params = [{pipeline_mode = #tpu.pipeline_mode<synchronous>, transform_indices = @transform_0, window_bounds = array<i64: 128, 32>}, {pipeline_mode = #tpu.pipeline_mode<synchronous>, transform_indices = @transform_1, window_bounds = array<i64: 32, 64>}, {pipeline_mode = #tpu.pipeline_mode<synchronous>, transform_indices = @transform_2, window_bounds = array<i64: 1, 64>}, {pipeline_mode = #tpu.pipeline_mode<synchronous>, transform_indices = @transform_3, window_bounds = array<i64: 1, 64>}, {pipeline_mode = #tpu.pipeline_mode<synchronous>, transform_indices = @transform_4, window_bounds = array<i64: 16, 32, 128>}, {pipeline_mode = #tpu.pipeline_mode<synchronous>, transform_indices = @transform_5, window_bounds = array<i64: 16, 64, 128>}, {pipeline_mode = #tpu.pipeline_mode<synchronous>, transform_indices = @transform_6, window_bounds = array<i64: 1, 128>}, {pipeline_mode = #tpu.pipeline_mode<synchronous>, transform_indices = @transform_7, window_bounds = array<i64: 1, 128>}, {pipeline_mode = #tpu.pipeline_mode<synchronous>, transform_indices = @transform_8, window_bounds = array<i64: 16, 8, 32>}, {pipeline_mode = #tpu.pipeline_mode<synchronous>, transform_indices = @transform_9, window_bounds = array<i64: 1, 256>}, {pipeline_mode = #tpu.pipeline_mode<synchronous>, transform_indices = @transform_10, window_bounds = array<i64: 1, 256>}, {pipeline_mode = #tpu.pipeline_mode<synchronous>, transform_indices = @transform_11, window_bounds = array<i64: 16, 2, 8>}, {pipeline_mode = #tpu.pipeline_mode<synchronous>, transform_indices = @transform_12, window_bounds = array<i64: 1, 256>}, {pipeline_mode = #tpu.pipeline_mode<synchronous>, transform_indices = @transform_13, window_bounds = array<i64: 1, 256>}, {}, {}, {pipeline_mode = #tpu.pipeline_mode<synchronous>, transform_indices = @transform_16, window_bounds = array<i64: 2, 256>}]} {
    %c0_i32 = arith.constant 0 : i32
    %0 = tpu.memref_slice %arg20[%c0_i32] : memref<2x!tpu.dma_semaphore, #tpu.memory_space<semaphore_mem>> -> memref<1x!tpu.dma_semaphore, #tpu.memory_space<semaphore_mem>>
    %1 = tpu.memref_squeeze %0 : memref<1x!tpu.dma_semaphore, #tpu.memory_space<semaphore_mem>> -> memref<!tpu.dma_semaphore, #tpu.memory_space<semaphore_mem>>
    tpu.enqueue_dma source(%arg15 : memref<16x128x256xbf16, #tpu.memory_space<any>>) target(%arg18 : memref<16x128x256xbf16, #tpu.memory_space<vmem>>) target_semaphore(%1 : memref<!tpu.dma_semaphore, #tpu.memory_space<semaphore_mem>>)
    %c1_i32 = arith.constant 1 : i32
    %2 = tpu.memref_slice %arg20[%c1_i32] : memref<2x!tpu.dma_semaphore, #tpu.memory_space<semaphore_mem>> -> memref<1x!tpu.dma_semaphore, #tpu.memory_space<semaphore_mem>>
    %3 = tpu.memref_squeeze %2 : memref<1x!tpu.dma_semaphore, #tpu.memory_space<semaphore_mem>> -> memref<!tpu.dma_semaphore, #tpu.memory_space<semaphore_mem>>
    tpu.enqueue_dma source(%arg16 : memref<16x256x256xbf16, #tpu.memory_space<any>>) target(%arg19 : memref<16x256x256xbf16, #tpu.memory_space<vmem>>) target_semaphore(%3 : memref<!tpu.dma_semaphore, #tpu.memory_space<semaphore_mem>>)
    %c0 = arith.constant 0 : index
    %c0_0 = arith.constant 0 : index
    %4 = vector.load %arg1[%c0, %c0_0] : memref<128x32xbf16, #tpu.memory_space<vmem>>, vector<128x32xbf16>
    %c0_1 = arith.constant 0 : index
    %c0_2 = arith.constant 0 : index
    %5 = vector.load %arg2[%c0_1, %c0_2] : memref<32x64xbf16, #tpu.memory_space<vmem>>, vector<32x64xbf16>
    %cst = arith.constant dense<0.000000e+00> : vector<128x64xf32>
    %6 = tpu.matmul %4, %5, %cst {dimension_numbers = #tpu.dot_dimension_numbers<[1], [0], [0], [1], [0, 0, 1, 1], [], []>} : vector<128x32xbf16>, vector<32x64xbf16>, vector<128x64xf32> -> vector<128x64xf32>
    %c0_3 = arith.constant 0 : index
    %c0_4 = arith.constant 0 : index
    %7 = vector.load %arg3[%c0_3, %c0_4] : memref<1x64xf32, #tpu.memory_space<vmem>>, vector<1x64xf32>
    %c0_5 = arith.constant 0 : index
    %c0_6 = arith.constant 0 : index
    %8 = vector.load %arg4[%c0_5, %c0_6] : memref<1x64xf32, #tpu.memory_space<vmem>>, vector<1x64xf32>
    %cst_7 = arith.constant dense<0.000000e+00> : vector<64xf32>
    %9 = vector.multi_reduction <add>, %6, %cst_7 [0] : vector<128x64xf32> to vector<64xf32>
    %10 = vector.shape_cast %9 : vector<64xf32> to vector<1x64xf32>
    %cst_8 = arith.constant 7.812500e-03 : f32
    %11 = vector.broadcast %cst_8 : f32 to vector<1x64xf32>
    %12 = arith.mulf %10, %11 : vector<1x64xf32>
    %13 = vector.broadcast %12 : vector<1x64xf32> to vector<128x64xf32>
    %14 = arith.subf %6, %13 : vector<128x64xf32>
    %15 = arith.mulf %14, %14 : vector<128x64xf32>
    %cst_9 = arith.constant dense<0.000000e+00> : vector<64xf32>
    %16 = vector.multi_reduction <add>, %15, %cst_9 [0] : vector<128x64xf32> to vector<64xf32>
    %17 = vector.shape_cast %16 : vector<64xf32> to vector<1x64xf32>
    %cst_10 = arith.constant 7.812500e-03 : f32
    %18 = vector.broadcast %cst_10 : f32 to vector<1x64xf32>
    %19 = arith.mulf %17, %18 : vector<1x64xf32>
    %cst_11 = arith.constant 9.99999974E-6 : f32
    %20 = vector.broadcast %cst_11 : f32 to vector<1x64xf32>
    %21 = arith.addf %19, %20 : vector<1x64xf32>
    %22 = math.rsqrt %21 : vector<1x64xf32>
    %23 = arith.mulf %7, %22 : vector<1x64xf32>
    %24 = vector.broadcast %23 : vector<1x64xf32> to vector<128x64xf32>
    %25 = arith.mulf %14, %24 : vector<128x64xf32>
    %26 = vector.broadcast %8 : vector<1x64xf32> to vector<128x64xf32>
    %27 = arith.addf %25, %26 : vector<128x64xf32>
    %cst_12 = arith.constant 2.000000e-01 : f32
    %28 = vector.broadcast %cst_12 : f32 to vector<128x64xf32>
    %29 = arith.mulf %28, %27 : vector<128x64xf32>
    %30 = arith.maximumf %27, %29 : vector<128x64xf32>
    %31 = arith.truncf %30 : vector<128x64xf32> to vector<128x64xbf16>
    %c0_13 = arith.constant 0 : index
    %c0_14 = arith.constant 0 : index
    %c0_15 = arith.constant 0 : index
    %32 = vector.load %arg5[%c0_13, %c0_14, %c0_15] : memref<16x32x128xbf16, #tpu.memory_space<vmem>>, vector<1x32x128xbf16>
    %33 = vector.shape_cast %32 : vector<1x32x128xbf16> to vector<32x128xbf16>
    %cst_16 = arith.constant dense<0.000000e+00> : vector<32x64xf32>
    %34 = tpu.matmul %33, %31, %cst_16 {dimension_numbers = #tpu.dot_dimension_numbers<[1], [0], [0], [1], [0, 0, 1, 1], [], []>} : vector<32x128xbf16>, vector<128x64xbf16>, vector<32x64xf32> -> vector<32x64xf32>
    %35 = arith.truncf %34 : vector<32x64xf32> to vector<32x64xbf16>
    %c0_17 = arith.constant 0 : index
    %c0_18 = arith.constant 0 : index
    %c0_19 = arith.constant 0 : index
    %36 = vector.load %arg6[%c0_17, %c0_18, %c0_19] : memref<16x64x128xbf16, #tpu.memory_space<vmem>>, vector<1x64x128xbf16>
    %37 = vector.shape_cast %36 : vector<1x64x128xbf16> to vector<64x128xbf16>
    %cst_20 = arith.constant dense<0.000000e+00> : vector<32x128xf32>
    %38 = tpu.matmul %35, %37, %cst_20 {dimension_numbers = #tpu.dot_dimension_numbers<[1], [0], [0], [1], [0, 0, 1, 1], [], []>} : vector<32x64xbf16>, vector<64x128xbf16>, vector<32x128xf32> -> vector<32x128xf32>
    %c1 = arith.constant 1 : index
    %c0_21 = arith.constant 0 : index
    %c0_22 = arith.constant 0 : index
    %39 = vector.load %arg5[%c1, %c0_21, %c0_22] : memref<16x32x128xbf16, #tpu.memory_space<vmem>>, vector<1x32x128xbf16>
    %40 = vector.shape_cast %39 : vector<1x32x128xbf16> to vector<32x128xbf16>
    %cst_23 = arith.constant dense<0.000000e+00> : vector<32x64xf32>
    %41 = tpu.matmul %40, %31, %cst_23 {dimension_numbers = #tpu.dot_dimension_numbers<[1], [0], [0], [1], [0, 0, 1, 1], [], []>} : vector<32x128xbf16>, vector<128x64xbf16>, vector<32x64xf32> -> vector<32x64xf32>
    %42 = arith.truncf %41 : vector<32x64xf32> to vector<32x64xbf16>
    %c1_24 = arith.constant 1 : index
    %c0_25 = arith.constant 0 : index
    %c0_26 = arith.constant 0 : index
    %43 = vector.load %arg6[%c1_24, %c0_25, %c0_26] : memref<16x64x128xbf16, #tpu.memory_space<vmem>>, vector<1x64x128xbf16>
    %44 = vector.shape_cast %43 : vector<1x64x128xbf16> to vector<64x128xbf16>
    %cst_27 = arith.constant dense<0.000000e+00> : vector<32x128xf32>
    %45 = tpu.matmul %42, %44, %cst_27 {dimension_numbers = #tpu.dot_dimension_numbers<[1], [0], [0], [1], [0, 0, 1, 1], [], []>} : vector<32x64xbf16>, vector<64x128xbf16>, vector<32x128xf32> -> vector<32x128xf32>
    %46 = arith.addf %38, %45 : vector<32x128xf32>
    %c2 = arith.constant 2 : index
    %c0_28 = arith.constant 0 : index
    %c0_29 = arith.constant 0 : index
    %47 = vector.load %arg5[%c2, %c0_28, %c0_29] : memref<16x32x128xbf16, #tpu.memory_space<vmem>>, vector<1x32x128xbf16>
    %48 = vector.shape_cast %47 : vector<1x32x128xbf16> to vector<32x128xbf16>
    %cst_30 = arith.constant dense<0.000000e+00> : vector<32x64xf32>
    %49 = tpu.matmul %48, %31, %cst_30 {dimension_numbers = #tpu.dot_dimension_numbers<[1], [0], [0], [1], [0, 0, 1, 1], [], []>} : vector<32x128xbf16>, vector<128x64xbf16>, vector<32x64xf32> -> vector<32x64xf32>
    %50 = arith.truncf %49 : vector<32x64xf32> to vector<32x64xbf16>
    %c2_31 = arith.constant 2 : index
    %c0_32 = arith.constant 0 : index
    %c0_33 = arith.constant 0 : index
    %51 = vector.load %arg6[%c2_31, %c0_32, %c0_33] : memref<16x64x128xbf16, #tpu.memory_space<vmem>>, vector<1x64x128xbf16>
    %52 = vector.shape_cast %51 : vector<1x64x128xbf16> to vector<64x128xbf16>
    %cst_34 = arith.constant dense<0.000000e+00> : vector<32x128xf32>
    %53 = tpu.matmul %50, %52, %cst_34 {dimension_numbers = #tpu.dot_dimension_numbers<[1], [0], [0], [1], [0, 0, 1, 1], [], []>} : vector<32x64xbf16>, vector<64x128xbf16>, vector<32x128xf32> -> vector<32x128xf32>
    %54 = arith.addf %46, %53 : vector<32x128xf32>
    %c3 = arith.constant 3 : index
    %c0_35 = arith.constant 0 : index
    %c0_36 = arith.constant 0 : index
    %55 = vector.load %arg5[%c3, %c0_35, %c0_36] : memref<16x32x128xbf16, #tpu.memory_space<vmem>>, vector<1x32x128xbf16>
    %56 = vector.shape_cast %55 : vector<1x32x128xbf16> to vector<32x128xbf16>
    %cst_37 = arith.constant dense<0.000000e+00> : vector<32x64xf32>
    %57 = tpu.matmul %56, %31, %cst_37 {dimension_numbers = #tpu.dot_dimension_numbers<[1], [0], [0], [1], [0, 0, 1, 1], [], []>} : vector<32x128xbf16>, vector<128x64xbf16>, vector<32x64xf32> -> vector<32x64xf32>
    %58 = arith.truncf %57 : vector<32x64xf32> to vector<32x64xbf16>
    %c3_38 = arith.constant 3 : index
    %c0_39 = arith.constant 0 : index
    %c0_40 = arith.constant 0 : index
    %59 = vector.load %arg6[%c3_38, %c0_39, %c0_40] : memref<16x64x128xbf16, #tpu.memory_space<vmem>>, vector<1x64x128xbf16>
    %60 = vector.shape_cast %59 : vector<1x64x128xbf16> to vector<64x128xbf16>
    %cst_41 = arith.constant dense<0.000000e+00> : vector<32x128xf32>
    %61 = tpu.matmul %58, %60, %cst_41 {dimension_numbers = #tpu.dot_dimension_numbers<[1], [0], [0], [1], [0, 0, 1, 1], [], []>} : vector<32x64xbf16>, vector<64x128xbf16>, vector<32x128xf32> -> vector<32x128xf32>
    %62 = arith.addf %54, %61 : vector<32x128xf32>
    %c4 = arith.constant 4 : index
    %c0_42 = arith.constant 0 : index
    %c0_43 = arith.constant 0 : index
    %63 = vector.load %arg5[%c4, %c0_42, %c0_43] : memref<16x32x128xbf16, #tpu.memory_space<vmem>>, vector<1x32x128xbf16>
    %64 = vector.shape_cast %63 : vector<1x32x128xbf16> to vector<32x128xbf16>
    %cst_44 = arith.constant dense<0.000000e+00> : vector<32x64xf32>
    %65 = tpu.matmul %64, %31, %cst_44 {dimension_numbers = #tpu.dot_dimension_numbers<[1], [0], [0], [1], [0, 0, 1, 1], [], []>} : vector<32x128xbf16>, vector<128x64xbf16>, vector<32x64xf32> -> vector<32x64xf32>
    %66 = arith.truncf %65 : vector<32x64xf32> to vector<32x64xbf16>
    %c4_45 = arith.constant 4 : index
    %c0_46 = arith.constant 0 : index
    %c0_47 = arith.constant 0 : index
    %67 = vector.load %arg6[%c4_45, %c0_46, %c0_47] : memref<16x64x128xbf16, #tpu.memory_space<vmem>>, vector<1x64x128xbf16>
    %68 = vector.shape_cast %67 : vector<1x64x128xbf16> to vector<64x128xbf16>
    %cst_48 = arith.constant dense<0.000000e+00> : vector<32x128xf32>
    %69 = tpu.matmul %66, %68, %cst_48 {dimension_numbers = #tpu.dot_dimension_numbers<[1], [0], [0], [1], [0, 0, 1, 1], [], []>} : vector<32x64xbf16>, vector<64x128xbf16>, vector<32x128xf32> -> vector<32x128xf32>
    %70 = arith.addf %62, %69 : vector<32x128xf32>
    %c5 = arith.constant 5 : index
    %c0_49 = arith.constant 0 : index
    %c0_50 = arith.constant 0 : index
    %71 = vector.load %arg5[%c5, %c0_49, %c0_50] : memref<16x32x128xbf16, #tpu.memory_space<vmem>>, vector<1x32x128xbf16>
    %72 = vector.shape_cast %71 : vector<1x32x128xbf16> to vector<32x128xbf16>
    %cst_51 = arith.constant dense<0.000000e+00> : vector<32x64xf32>
    %73 = tpu.matmul %72, %31, %cst_51 {dimension_numbers = #tpu.dot_dimension_numbers<[1], [0], [0], [1], [0, 0, 1, 1], [], []>} : vector<32x128xbf16>, vector<128x64xbf16>, vector<32x64xf32> -> vector<32x64xf32>
    %74 = arith.truncf %73 : vector<32x64xf32> to vector<32x64xbf16>
    %c5_52 = arith.constant 5 : index
    %c0_53 = arith.constant 0 : index
    %c0_54 = arith.constant 0 : index
    %75 = vector.load %arg6[%c5_52, %c0_53, %c0_54] : memref<16x64x128xbf16, #tpu.memory_space<vmem>>, vector<1x64x128xbf16>
    %76 = vector.shape_cast %75 : vector<1x64x128xbf16> to vector<64x128xbf16>
    %cst_55 = arith.constant dense<0.000000e+00> : vector<32x128xf32>
    %77 = tpu.matmul %74, %76, %cst_55 {dimension_numbers = #tpu.dot_dimension_numbers<[1], [0], [0], [1], [0, 0, 1, 1], [], []>} : vector<32x64xbf16>, vector<64x128xbf16>, vector<32x128xf32> -> vector<32x128xf32>
    %78 = arith.addf %70, %77 : vector<32x128xf32>
    %c6 = arith.constant 6 : index
    %c0_56 = arith.constant 0 : index
    %c0_57 = arith.constant 0 : index
    %79 = vector.load %arg5[%c6, %c0_56, %c0_57] : memref<16x32x128xbf16, #tpu.memory_space<vmem>>, vector<1x32x128xbf16>
    %80 = vector.shape_cast %79 : vector<1x32x128xbf16> to vector<32x128xbf16>
    %cst_58 = arith.constant dense<0.000000e+00> : vector<32x64xf32>
    %81 = tpu.matmul %80, %31, %cst_58 {dimension_numbers = #tpu.dot_dimension_numbers<[1], [0], [0], [1], [0, 0, 1, 1], [], []>} : vector<32x128xbf16>, vector<128x64xbf16>, vector<32x64xf32> -> vector<32x64xf32>
    %82 = arith.truncf %81 : vector<32x64xf32> to vector<32x64xbf16>
    %c6_59 = arith.constant 6 : index
    %c0_60 = arith.constant 0 : index
    %c0_61 = arith.constant 0 : index
    %83 = vector.load %arg6[%c6_59, %c0_60, %c0_61] : memref<16x64x128xbf16, #tpu.memory_space<vmem>>, vector<1x64x128xbf16>
    %84 = vector.shape_cast %83 : vector<1x64x128xbf16> to vector<64x128xbf16>
    %cst_62 = arith.constant dense<0.000000e+00> : vector<32x128xf32>
    %85 = tpu.matmul %82, %84, %cst_62 {dimension_numbers = #tpu.dot_dimension_numbers<[1], [0], [0], [1], [0, 0, 1, 1], [], []>} : vector<32x64xbf16>, vector<64x128xbf16>, vector<32x128xf32> -> vector<32x128xf32>
    %86 = arith.addf %78, %85 : vector<32x128xf32>
    %c7 = arith.constant 7 : index
    %c0_63 = arith.constant 0 : index
    %c0_64 = arith.constant 0 : index
    %87 = vector.load %arg5[%c7, %c0_63, %c0_64] : memref<16x32x128xbf16, #tpu.memory_space<vmem>>, vector<1x32x128xbf16>
    %88 = vector.shape_cast %87 : vector<1x32x128xbf16> to vector<32x128xbf16>
    %cst_65 = arith.constant dense<0.000000e+00> : vector<32x64xf32>
    %89 = tpu.matmul %88, %31, %cst_65 {dimension_numbers = #tpu.dot_dimension_numbers<[1], [0], [0], [1], [0, 0, 1, 1], [], []>} : vector<32x128xbf16>, vector<128x64xbf16>, vector<32x64xf32> -> vector<32x64xf32>
    %90 = arith.truncf %89 : vector<32x64xf32> to vector<32x64xbf16>
    %c7_66 = arith.constant 7 : index
    %c0_67 = arith.constant 0 : index
    %c0_68 = arith.constant 0 : index
    %91 = vector.load %arg6[%c7_66, %c0_67, %c0_68] : memref<16x64x128xbf16, #tpu.memory_space<vmem>>, vector<1x64x128xbf16>
    %92 = vector.shape_cast %91 : vector<1x64x128xbf16> to vector<64x128xbf16>
    %cst_69 = arith.constant dense<0.000000e+00> : vector<32x128xf32>
    %93 = tpu.matmul %90, %92, %cst_69 {dimension_numbers = #tpu.dot_dimension_numbers<[1], [0], [0], [1], [0, 0, 1, 1], [], []>} : vector<32x64xbf16>, vector<64x128xbf16>, vector<32x128xf32> -> vector<32x128xf32>
    %94 = arith.addf %86, %93 : vector<32x128xf32>
    %c8 = arith.constant 8 : index
    %c0_70 = arith.constant 0 : index
    %c0_71 = arith.constant 0 : index
    %95 = vector.load %arg5[%c8, %c0_70, %c0_71] : memref<16x32x128xbf16, #tpu.memory_space<vmem>>, vector<1x32x128xbf16>
    %96 = vector.shape_cast %95 : vector<1x32x128xbf16> to vector<32x128xbf16>
    %cst_72 = arith.constant dense<0.000000e+00> : vector<32x64xf32>
    %97 = tpu.matmul %96, %31, %cst_72 {dimension_numbers = #tpu.dot_dimension_numbers<[1], [0], [0], [1], [0, 0, 1, 1], [], []>} : vector<32x128xbf16>, vector<128x64xbf16>, vector<32x64xf32> -> vector<32x64xf32>
    %98 = arith.truncf %97 : vector<32x64xf32> to vector<32x64xbf16>
    %c8_73 = arith.constant 8 : index
    %c0_74 = arith.constant 0 : index
    %c0_75 = arith.constant 0 : index
    %99 = vector.load %arg6[%c8_73, %c0_74, %c0_75] : memref<16x64x128xbf16, #tpu.memory_space<vmem>>, vector<1x64x128xbf16>
    %100 = vector.shape_cast %99 : vector<1x64x128xbf16> to vector<64x128xbf16>
    %cst_76 = arith.constant dense<0.000000e+00> : vector<32x128xf32>
    %101 = tpu.matmul %98, %100, %cst_76 {dimension_numbers = #tpu.dot_dimension_numbers<[1], [0], [0], [1], [0, 0, 1, 1], [], []>} : vector<32x64xbf16>, vector<64x128xbf16>, vector<32x128xf32> -> vector<32x128xf32>
    %102 = arith.addf %94, %101 : vector<32x128xf32>
    %c9 = arith.constant 9 : index
    %c0_77 = arith.constant 0 : index
    %c0_78 = arith.constant 0 : index
    %103 = vector.load %arg5[%c9, %c0_77, %c0_78] : memref<16x32x128xbf16, #tpu.memory_space<vmem>>, vector<1x32x128xbf16>
    %104 = vector.shape_cast %103 : vector<1x32x128xbf16> to vector<32x128xbf16>
    %cst_79 = arith.constant dense<0.000000e+00> : vector<32x64xf32>
    %105 = tpu.matmul %104, %31, %cst_79 {dimension_numbers = #tpu.dot_dimension_numbers<[1], [0], [0], [1], [0, 0, 1, 1], [], []>} : vector<32x128xbf16>, vector<128x64xbf16>, vector<32x64xf32> -> vector<32x64xf32>
    %106 = arith.truncf %105 : vector<32x64xf32> to vector<32x64xbf16>
    %c9_80 = arith.constant 9 : index
    %c0_81 = arith.constant 0 : index
    %c0_82 = arith.constant 0 : index
    %107 = vector.load %arg6[%c9_80, %c0_81, %c0_82] : memref<16x64x128xbf16, #tpu.memory_space<vmem>>, vector<1x64x128xbf16>
    %108 = vector.shape_cast %107 : vector<1x64x128xbf16> to vector<64x128xbf16>
    %cst_83 = arith.constant dense<0.000000e+00> : vector<32x128xf32>
    %109 = tpu.matmul %106, %108, %cst_83 {dimension_numbers = #tpu.dot_dimension_numbers<[1], [0], [0], [1], [0, 0, 1, 1], [], []>} : vector<32x64xbf16>, vector<64x128xbf16>, vector<32x128xf32> -> vector<32x128xf32>
    %110 = arith.addf %102, %109 : vector<32x128xf32>
    %c10 = arith.constant 10 : index
    %c0_84 = arith.constant 0 : index
    %c0_85 = arith.constant 0 : index
    %111 = vector.load %arg5[%c10, %c0_84, %c0_85] : memref<16x32x128xbf16, #tpu.memory_space<vmem>>, vector<1x32x128xbf16>
    %112 = vector.shape_cast %111 : vector<1x32x128xbf16> to vector<32x128xbf16>
    %cst_86 = arith.constant dense<0.000000e+00> : vector<32x64xf32>
    %113 = tpu.matmul %112, %31, %cst_86 {dimension_numbers = #tpu.dot_dimension_numbers<[1], [0], [0], [1], [0, 0, 1, 1], [], []>} : vector<32x128xbf16>, vector<128x64xbf16>, vector<32x64xf32> -> vector<32x64xf32>
    %114 = arith.truncf %113 : vector<32x64xf32> to vector<32x64xbf16>
    %c10_87 = arith.constant 10 : index
    %c0_88 = arith.constant 0 : index
    %c0_89 = arith.constant 0 : index
    %115 = vector.load %arg6[%c10_87, %c0_88, %c0_89] : memref<16x64x128xbf16, #tpu.memory_space<vmem>>, vector<1x64x128xbf16>
    %116 = vector.shape_cast %115 : vector<1x64x128xbf16> to vector<64x128xbf16>
    %cst_90 = arith.constant dense<0.000000e+00> : vector<32x128xf32>
    %117 = tpu.matmul %114, %116, %cst_90 {dimension_numbers = #tpu.dot_dimension_numbers<[1], [0], [0], [1], [0, 0, 1, 1], [], []>} : vector<32x64xbf16>, vector<64x128xbf16>, vector<32x128xf32> -> vector<32x128xf32>
    %118 = arith.addf %110, %117 : vector<32x128xf32>
    %c11 = arith.constant 11 : index
    %c0_91 = arith.constant 0 : index
    %c0_92 = arith.constant 0 : index
    %119 = vector.load %arg5[%c11, %c0_91, %c0_92] : memref<16x32x128xbf16, #tpu.memory_space<vmem>>, vector<1x32x128xbf16>
    %120 = vector.shape_cast %119 : vector<1x32x128xbf16> to vector<32x128xbf16>
    %cst_93 = arith.constant dense<0.000000e+00> : vector<32x64xf32>
    %121 = tpu.matmul %120, %31, %cst_93 {dimension_numbers = #tpu.dot_dimension_numbers<[1], [0], [0], [1], [0, 0, 1, 1], [], []>} : vector<32x128xbf16>, vector<128x64xbf16>, vector<32x64xf32> -> vector<32x64xf32>
    %122 = arith.truncf %121 : vector<32x64xf32> to vector<32x64xbf16>
    %c11_94 = arith.constant 11 : index
    %c0_95 = arith.constant 0 : index
    %c0_96 = arith.constant 0 : index
    %123 = vector.load %arg6[%c11_94, %c0_95, %c0_96] : memref<16x64x128xbf16, #tpu.memory_space<vmem>>, vector<1x64x128xbf16>
    %124 = vector.shape_cast %123 : vector<1x64x128xbf16> to vector<64x128xbf16>
    %cst_97 = arith.constant dense<0.000000e+00> : vector<32x128xf32>
    %125 = tpu.matmul %122, %124, %cst_97 {dimension_numbers = #tpu.dot_dimension_numbers<[1], [0], [0], [1], [0, 0, 1, 1], [], []>} : vector<32x64xbf16>, vector<64x128xbf16>, vector<32x128xf32> -> vector<32x128xf32>
    %126 = arith.addf %118, %125 : vector<32x128xf32>
    %c12 = arith.constant 12 : index
    %c0_98 = arith.constant 0 : index
    %c0_99 = arith.constant 0 : index
    %127 = vector.load %arg5[%c12, %c0_98, %c0_99] : memref<16x32x128xbf16, #tpu.memory_space<vmem>>, vector<1x32x128xbf16>
    %128 = vector.shape_cast %127 : vector<1x32x128xbf16> to vector<32x128xbf16>
    %cst_100 = arith.constant dense<0.000000e+00> : vector<32x64xf32>
    %129 = tpu.matmul %128, %31, %cst_100 {dimension_numbers = #tpu.dot_dimension_numbers<[1], [0], [0], [1], [0, 0, 1, 1], [], []>} : vector<32x128xbf16>, vector<128x64xbf16>, vector<32x64xf32> -> vector<32x64xf32>
    %130 = arith.truncf %129 : vector<32x64xf32> to vector<32x64xbf16>
    %c12_101 = arith.constant 12 : index
    %c0_102 = arith.constant 0 : index
    %c0_103 = arith.constant 0 : index
    %131 = vector.load %arg6[%c12_101, %c0_102, %c0_103] : memref<16x64x128xbf16, #tpu.memory_space<vmem>>, vector<1x64x128xbf16>
    %132 = vector.shape_cast %131 : vector<1x64x128xbf16> to vector<64x128xbf16>
    %cst_104 = arith.constant dense<0.000000e+00> : vector<32x128xf32>
    %133 = tpu.matmul %130, %132, %cst_104 {dimension_numbers = #tpu.dot_dimension_numbers<[1], [0], [0], [1], [0, 0, 1, 1], [], []>} : vector<32x64xbf16>, vector<64x128xbf16>, vector<32x128xf32> -> vector<32x128xf32>
    %134 = arith.addf %126, %133 : vector<32x128xf32>
    %c13 = arith.constant 13 : index
    %c0_105 = arith.constant 0 : index
    %c0_106 = arith.constant 0 : index
    %135 = vector.load %arg5[%c13, %c0_105, %c0_106] : memref<16x32x128xbf16, #tpu.memory_space<vmem>>, vector<1x32x128xbf16>
    %136 = vector.shape_cast %135 : vector<1x32x128xbf16> to vector<32x128xbf16>
    %cst_107 = arith.constant dense<0.000000e+00> : vector<32x64xf32>
    %137 = tpu.matmul %136, %31, %cst_107 {dimension_numbers = #tpu.dot_dimension_numbers<[1], [0], [0], [1], [0, 0, 1, 1], [], []>} : vector<32x128xbf16>, vector<128x64xbf16>, vector<32x64xf32> -> vector<32x64xf32>
    %138 = arith.truncf %137 : vector<32x64xf32> to vector<32x64xbf16>
    %c13_108 = arith.constant 13 : index
    %c0_109 = arith.constant 0 : index
    %c0_110 = arith.constant 0 : index
    %139 = vector.load %arg6[%c13_108, %c0_109, %c0_110] : memref<16x64x128xbf16, #tpu.memory_space<vmem>>, vector<1x64x128xbf16>
    %140 = vector.shape_cast %139 : vector<1x64x128xbf16> to vector<64x128xbf16>
    %cst_111 = arith.constant dense<0.000000e+00> : vector<32x128xf32>
    %141 = tpu.matmul %138, %140, %cst_111 {dimension_numbers = #tpu.dot_dimension_numbers<[1], [0], [0], [1], [0, 0, 1, 1], [], []>} : vector<32x64xbf16>, vector<64x128xbf16>, vector<32x128xf32> -> vector<32x128xf32>
    %142 = arith.addf %134, %141 : vector<32x128xf32>
    %c14 = arith.constant 14 : index
    %c0_112 = arith.constant 0 : index
    %c0_113 = arith.constant 0 : index
    %143 = vector.load %arg5[%c14, %c0_112, %c0_113] : memref<16x32x128xbf16, #tpu.memory_space<vmem>>, vector<1x32x128xbf16>
    %144 = vector.shape_cast %143 : vector<1x32x128xbf16> to vector<32x128xbf16>
    %cst_114 = arith.constant dense<0.000000e+00> : vector<32x64xf32>
    %145 = tpu.matmul %144, %31, %cst_114 {dimension_numbers = #tpu.dot_dimension_numbers<[1], [0], [0], [1], [0, 0, 1, 1], [], []>} : vector<32x128xbf16>, vector<128x64xbf16>, vector<32x64xf32> -> vector<32x64xf32>
    %146 = arith.truncf %145 : vector<32x64xf32> to vector<32x64xbf16>
    %c14_115 = arith.constant 14 : index
    %c0_116 = arith.constant 0 : index
    %c0_117 = arith.constant 0 : index
    %147 = vector.load %arg6[%c14_115, %c0_116, %c0_117] : memref<16x64x128xbf16, #tpu.memory_space<vmem>>, vector<1x64x128xbf16>
    %148 = vector.shape_cast %147 : vector<1x64x128xbf16> to vector<64x128xbf16>
    %cst_118 = arith.constant dense<0.000000e+00> : vector<32x128xf32>
    %149 = tpu.matmul %146, %148, %cst_118 {dimension_numbers = #tpu.dot_dimension_numbers<[1], [0], [0], [1], [0, 0, 1, 1], [], []>} : vector<32x64xbf16>, vector<64x128xbf16>, vector<32x128xf32> -> vector<32x128xf32>
    %150 = arith.addf %142, %149 : vector<32x128xf32>
    %c15 = arith.constant 15 : index
    %c0_119 = arith.constant 0 : index
    %c0_120 = arith.constant 0 : index
    %151 = vector.load %arg5[%c15, %c0_119, %c0_120] : memref<16x32x128xbf16, #tpu.memory_space<vmem>>, vector<1x32x128xbf16>
    %152 = vector.shape_cast %151 : vector<1x32x128xbf16> to vector<32x128xbf16>
    %cst_121 = arith.constant dense<0.000000e+00> : vector<32x64xf32>
    %153 = tpu.matmul %152, %31, %cst_121 {dimension_numbers = #tpu.dot_dimension_numbers<[1], [0], [0], [1], [0, 0, 1, 1], [], []>} : vector<32x128xbf16>, vector<128x64xbf16>, vector<32x64xf32> -> vector<32x64xf32>
    %154 = arith.truncf %153 : vector<32x64xf32> to vector<32x64xbf16>
    %c15_122 = arith.constant 15 : index
    %c0_123 = arith.constant 0 : index
    %c0_124 = arith.constant 0 : index
    %155 = vector.load %arg6[%c15_122, %c0_123, %c0_124] : memref<16x64x128xbf16, #tpu.memory_space<vmem>>, vector<1x64x128xbf16>
    %156 = vector.shape_cast %155 : vector<1x64x128xbf16> to vector<64x128xbf16>
    %cst_125 = arith.constant dense<0.000000e+00> : vector<32x128xf32>
    %157 = tpu.matmul %154, %156, %cst_125 {dimension_numbers = #tpu.dot_dimension_numbers<[1], [0], [0], [1], [0, 0, 1, 1], [], []>} : vector<32x64xbf16>, vector<64x128xbf16>, vector<32x128xf32> -> vector<32x128xf32>
    %158 = arith.addf %150, %157 : vector<32x128xf32>
    %c0_126 = arith.constant 0 : index
    %c0_127 = arith.constant 0 : index
    %159 = vector.load %arg7[%c0_126, %c0_127] : memref<1x128xf32, #tpu.memory_space<vmem>>, vector<1x128xf32>
    %c0_128 = arith.constant 0 : index
    %c0_129 = arith.constant 0 : index
    %160 = vector.load %arg8[%c0_128, %c0_129] : memref<1x128xf32, #tpu.memory_space<vmem>>, vector<1x128xf32>
    %cst_130 = arith.constant dense<0.000000e+00> : vector<128xf32>
    %161 = vector.multi_reduction <add>, %158, %cst_130 [0] : vector<32x128xf32> to vector<128xf32>
    %162 = vector.shape_cast %161 : vector<128xf32> to vector<1x128xf32>
    %cst_131 = arith.constant 3.125000e-02 : f32
    %163 = vector.broadcast %cst_131 : f32 to vector<1x128xf32>
    %164 = arith.mulf %162, %163 : vector<1x128xf32>
    %165 = vector.broadcast %164 : vector<1x128xf32> to vector<32x128xf32>
    %166 = arith.subf %158, %165 : vector<32x128xf32>
    %167 = arith.mulf %166, %166 : vector<32x128xf32>
    %cst_132 = arith.constant dense<0.000000e+00> : vector<128xf32>
    %168 = vector.multi_reduction <add>, %167, %cst_132 [0] : vector<32x128xf32> to vector<128xf32>
    %169 = vector.shape_cast %168 : vector<128xf32> to vector<1x128xf32>
    %cst_133 = arith.constant 3.125000e-02 : f32
    %170 = vector.broadcast %cst_133 : f32 to vector<1x128xf32>
    %171 = arith.mulf %169, %170 : vector<1x128xf32>
    %cst_134 = arith.constant 9.99999974E-6 : f32
    %172 = vector.broadcast %cst_134 : f32 to vector<1x128xf32>
    %173 = arith.addf %171, %172 : vector<1x128xf32>
    %174 = math.rsqrt %173 : vector<1x128xf32>
    %175 = arith.mulf %159, %174 : vector<1x128xf32>
    %176 = vector.broadcast %175 : vector<1x128xf32> to vector<32x128xf32>
    %177 = arith.mulf %166, %176 : vector<32x128xf32>
    %178 = vector.broadcast %160 : vector<1x128xf32> to vector<32x128xf32>
    %179 = arith.addf %177, %178 : vector<32x128xf32>
    %cst_135 = arith.constant 2.000000e-01 : f32
    %180 = vector.broadcast %cst_135 : f32 to vector<32x128xf32>
    %181 = arith.mulf %180, %179 : vector<32x128xf32>
    %182 = arith.maximumf %179, %181 : vector<32x128xf32>
    %183 = arith.truncf %182 : vector<32x128xf32> to vector<32x128xbf16>
    %c0_i32_136 = arith.constant 0 : i32
    %184 = tpu.memref_slice %arg20[%c0_i32_136] : memref<2x!tpu.dma_semaphore, #tpu.memory_space<semaphore_mem>> -> memref<1x!tpu.dma_semaphore, #tpu.memory_space<semaphore_mem>>
    %185 = tpu.memref_squeeze %184 : memref<1x!tpu.dma_semaphore, #tpu.memory_space<semaphore_mem>> -> memref<!tpu.dma_semaphore, #tpu.memory_space<semaphore_mem>>
    tpu.wait_dma2 semaphore(%185 : memref<!tpu.dma_semaphore, #tpu.memory_space<semaphore_mem>>) src(%arg15 : memref<16x128x256xbf16, #tpu.memory_space<any>>) dst(%arg18 : memref<16x128x256xbf16, #tpu.memory_space<vmem>>)
    %c0_137 = arith.constant 0 : index
    %c0_138 = arith.constant 0 : index
    %c0_139 = arith.constant 0 : index
    %186 = vector.load %arg9[%c0_137, %c0_138, %c0_139] : memref<16x8x32xbf16, #tpu.memory_space<vmem>>, vector<1x8x32xbf16>
    %187 = vector.shape_cast %186 : vector<1x8x32xbf16> to vector<8x32xbf16>
    %cst_140 = arith.constant dense<0.000000e+00> : vector<8x128xf32>
    %188 = tpu.matmul %187, %183, %cst_140 {dimension_numbers = #tpu.dot_dimension_numbers<[1], [0], [0], [1], [0, 0, 1, 1], [], []>} : vector<8x32xbf16>, vector<32x128xbf16>, vector<8x128xf32> -> vector<8x128xf32>
    %189 = arith.truncf %188 : vector<8x128xf32> to vector<8x128xbf16>
    %c0_141 = arith.constant 0 : index
    %c0_142 = arith.constant 0 : index
    %c0_143 = arith.constant 0 : index
    %190 = vector.load %arg18[%c0_141, %c0_142, %c0_143] : memref<16x128x256xbf16, #tpu.memory_space<vmem>>, vector<1x128x256xbf16>
    %191 = vector.shape_cast %190 : vector<1x128x256xbf16> to vector<128x256xbf16>
    %cst_144 = arith.constant dense<0.000000e+00> : vector<8x256xf32>
    %192 = tpu.matmul %189, %191, %cst_144 {dimension_numbers = #tpu.dot_dimension_numbers<[1], [0], [0], [1], [0, 0, 1, 1], [], []>} : vector<8x128xbf16>, vector<128x256xbf16>, vector<8x256xf32> -> vector<8x256xf32>
    %c1_145 = arith.constant 1 : index
    %c0_146 = arith.constant 0 : index
    %c0_147 = arith.constant 0 : index
    %193 = vector.load %arg9[%c1_145, %c0_146, %c0_147] : memref<16x8x32xbf16, #tpu.memory_space<vmem>>, vector<1x8x32xbf16>
    %194 = vector.shape_cast %193 : vector<1x8x32xbf16> to vector<8x32xbf16>
    %cst_148 = arith.constant dense<0.000000e+00> : vector<8x128xf32>
    %195 = tpu.matmul %194, %183, %cst_148 {dimension_numbers = #tpu.dot_dimension_numbers<[1], [0], [0], [1], [0, 0, 1, 1], [], []>} : vector<8x32xbf16>, vector<32x128xbf16>, vector<8x128xf32> -> vector<8x128xf32>
    %196 = arith.truncf %195 : vector<8x128xf32> to vector<8x128xbf16>
    %c1_149 = arith.constant 1 : index
    %c0_150 = arith.constant 0 : index
    %c0_151 = arith.constant 0 : index
    %197 = vector.load %arg18[%c1_149, %c0_150, %c0_151] : memref<16x128x256xbf16, #tpu.memory_space<vmem>>, vector<1x128x256xbf16>
    %198 = vector.shape_cast %197 : vector<1x128x256xbf16> to vector<128x256xbf16>
    %cst_152 = arith.constant dense<0.000000e+00> : vector<8x256xf32>
    %199 = tpu.matmul %196, %198, %cst_152 {dimension_numbers = #tpu.dot_dimension_numbers<[1], [0], [0], [1], [0, 0, 1, 1], [], []>} : vector<8x128xbf16>, vector<128x256xbf16>, vector<8x256xf32> -> vector<8x256xf32>
    %200 = arith.addf %192, %199 : vector<8x256xf32>
    %c2_153 = arith.constant 2 : index
    %c0_154 = arith.constant 0 : index
    %c0_155 = arith.constant 0 : index
    %201 = vector.load %arg9[%c2_153, %c0_154, %c0_155] : memref<16x8x32xbf16, #tpu.memory_space<vmem>>, vector<1x8x32xbf16>
    %202 = vector.shape_cast %201 : vector<1x8x32xbf16> to vector<8x32xbf16>
    %cst_156 = arith.constant dense<0.000000e+00> : vector<8x128xf32>
    %203 = tpu.matmul %202, %183, %cst_156 {dimension_numbers = #tpu.dot_dimension_numbers<[1], [0], [0], [1], [0, 0, 1, 1], [], []>} : vector<8x32xbf16>, vector<32x128xbf16>, vector<8x128xf32> -> vector<8x128xf32>
    %204 = arith.truncf %203 : vector<8x128xf32> to vector<8x128xbf16>
    %c2_157 = arith.constant 2 : index
    %c0_158 = arith.constant 0 : index
    %c0_159 = arith.constant 0 : index
    %205 = vector.load %arg18[%c2_157, %c0_158, %c0_159] : memref<16x128x256xbf16, #tpu.memory_space<vmem>>, vector<1x128x256xbf16>
    %206 = vector.shape_cast %205 : vector<1x128x256xbf16> to vector<128x256xbf16>
    %cst_160 = arith.constant dense<0.000000e+00> : vector<8x256xf32>
    %207 = tpu.matmul %204, %206, %cst_160 {dimension_numbers = #tpu.dot_dimension_numbers<[1], [0], [0], [1], [0, 0, 1, 1], [], []>} : vector<8x128xbf16>, vector<128x256xbf16>, vector<8x256xf32> -> vector<8x256xf32>
    %208 = arith.addf %200, %207 : vector<8x256xf32>
    %c3_161 = arith.constant 3 : index
    %c0_162 = arith.constant 0 : index
    %c0_163 = arith.constant 0 : index
    %209 = vector.load %arg9[%c3_161, %c0_162, %c0_163] : memref<16x8x32xbf16, #tpu.memory_space<vmem>>, vector<1x8x32xbf16>
    %210 = vector.shape_cast %209 : vector<1x8x32xbf16> to vector<8x32xbf16>
    %cst_164 = arith.constant dense<0.000000e+00> : vector<8x128xf32>
    %211 = tpu.matmul %210, %183, %cst_164 {dimension_numbers = #tpu.dot_dimension_numbers<[1], [0], [0], [1], [0, 0, 1, 1], [], []>} : vector<8x32xbf16>, vector<32x128xbf16>, vector<8x128xf32> -> vector<8x128xf32>
    %212 = arith.truncf %211 : vector<8x128xf32> to vector<8x128xbf16>
    %c3_165 = arith.constant 3 : index
    %c0_166 = arith.constant 0 : index
    %c0_167 = arith.constant 0 : index
    %213 = vector.load %arg18[%c3_165, %c0_166, %c0_167] : memref<16x128x256xbf16, #tpu.memory_space<vmem>>, vector<1x128x256xbf16>
    %214 = vector.shape_cast %213 : vector<1x128x256xbf16> to vector<128x256xbf16>
    %cst_168 = arith.constant dense<0.000000e+00> : vector<8x256xf32>
    %215 = tpu.matmul %212, %214, %cst_168 {dimension_numbers = #tpu.dot_dimension_numbers<[1], [0], [0], [1], [0, 0, 1, 1], [], []>} : vector<8x128xbf16>, vector<128x256xbf16>, vector<8x256xf32> -> vector<8x256xf32>
    %216 = arith.addf %208, %215 : vector<8x256xf32>
    %c4_169 = arith.constant 4 : index
    %c0_170 = arith.constant 0 : index
    %c0_171 = arith.constant 0 : index
    %217 = vector.load %arg9[%c4_169, %c0_170, %c0_171] : memref<16x8x32xbf16, #tpu.memory_space<vmem>>, vector<1x8x32xbf16>
    %218 = vector.shape_cast %217 : vector<1x8x32xbf16> to vector<8x32xbf16>
    %cst_172 = arith.constant dense<0.000000e+00> : vector<8x128xf32>
    %219 = tpu.matmul %218, %183, %cst_172 {dimension_numbers = #tpu.dot_dimension_numbers<[1], [0], [0], [1], [0, 0, 1, 1], [], []>} : vector<8x32xbf16>, vector<32x128xbf16>, vector<8x128xf32> -> vector<8x128xf32>
    %220 = arith.truncf %219 : vector<8x128xf32> to vector<8x128xbf16>
    %c4_173 = arith.constant 4 : index
    %c0_174 = arith.constant 0 : index
    %c0_175 = arith.constant 0 : index
    %221 = vector.load %arg18[%c4_173, %c0_174, %c0_175] : memref<16x128x256xbf16, #tpu.memory_space<vmem>>, vector<1x128x256xbf16>
    %222 = vector.shape_cast %221 : vector<1x128x256xbf16> to vector<128x256xbf16>
    %cst_176 = arith.constant dense<0.000000e+00> : vector<8x256xf32>
    %223 = tpu.matmul %220, %222, %cst_176 {dimension_numbers = #tpu.dot_dimension_numbers<[1], [0], [0], [1], [0, 0, 1, 1], [], []>} : vector<8x128xbf16>, vector<128x256xbf16>, vector<8x256xf32> -> vector<8x256xf32>
    %224 = arith.addf %216, %223 : vector<8x256xf32>
    %c5_177 = arith.constant 5 : index
    %c0_178 = arith.constant 0 : index
    %c0_179 = arith.constant 0 : index
    %225 = vector.load %arg9[%c5_177, %c0_178, %c0_179] : memref<16x8x32xbf16, #tpu.memory_space<vmem>>, vector<1x8x32xbf16>
    %226 = vector.shape_cast %225 : vector<1x8x32xbf16> to vector<8x32xbf16>
    %cst_180 = arith.constant dense<0.000000e+00> : vector<8x128xf32>
    %227 = tpu.matmul %226, %183, %cst_180 {dimension_numbers = #tpu.dot_dimension_numbers<[1], [0], [0], [1], [0, 0, 1, 1], [], []>} : vector<8x32xbf16>, vector<32x128xbf16>, vector<8x128xf32> -> vector<8x128xf32>
    %228 = arith.truncf %227 : vector<8x128xf32> to vector<8x128xbf16>
    %c5_181 = arith.constant 5 : index
    %c0_182 = arith.constant 0 : index
    %c0_183 = arith.constant 0 : index
    %229 = vector.load %arg18[%c5_181, %c0_182, %c0_183] : memref<16x128x256xbf16, #tpu.memory_space<vmem>>, vector<1x128x256xbf16>
    %230 = vector.shape_cast %229 : vector<1x128x256xbf16> to vector<128x256xbf16>
    %cst_184 = arith.constant dense<0.000000e+00> : vector<8x256xf32>
    %231 = tpu.matmul %228, %230, %cst_184 {dimension_numbers = #tpu.dot_dimension_numbers<[1], [0], [0], [1], [0, 0, 1, 1], [], []>} : vector<8x128xbf16>, vector<128x256xbf16>, vector<8x256xf32> -> vector<8x256xf32>
    %232 = arith.addf %224, %231 : vector<8x256xf32>
    %c6_185 = arith.constant 6 : index
    %c0_186 = arith.constant 0 : index
    %c0_187 = arith.constant 0 : index
    %233 = vector.load %arg9[%c6_185, %c0_186, %c0_187] : memref<16x8x32xbf16, #tpu.memory_space<vmem>>, vector<1x8x32xbf16>
    %234 = vector.shape_cast %233 : vector<1x8x32xbf16> to vector<8x32xbf16>
    %cst_188 = arith.constant dense<0.000000e+00> : vector<8x128xf32>
    %235 = tpu.matmul %234, %183, %cst_188 {dimension_numbers = #tpu.dot_dimension_numbers<[1], [0], [0], [1], [0, 0, 1, 1], [], []>} : vector<8x32xbf16>, vector<32x128xbf16>, vector<8x128xf32> -> vector<8x128xf32>
    %236 = arith.truncf %235 : vector<8x128xf32> to vector<8x128xbf16>
    %c6_189 = arith.constant 6 : index
    %c0_190 = arith.constant 0 : index
    %c0_191 = arith.constant 0 : index
    %237 = vector.load %arg18[%c6_189, %c0_190, %c0_191] : memref<16x128x256xbf16, #tpu.memory_space<vmem>>, vector<1x128x256xbf16>
    %238 = vector.shape_cast %237 : vector<1x128x256xbf16> to vector<128x256xbf16>
    %cst_192 = arith.constant dense<0.000000e+00> : vector<8x256xf32>
    %239 = tpu.matmul %236, %238, %cst_192 {dimension_numbers = #tpu.dot_dimension_numbers<[1], [0], [0], [1], [0, 0, 1, 1], [], []>} : vector<8x128xbf16>, vector<128x256xbf16>, vector<8x256xf32> -> vector<8x256xf32>
    %240 = arith.addf %232, %239 : vector<8x256xf32>
    %c7_193 = arith.constant 7 : index
    %c0_194 = arith.constant 0 : index
    %c0_195 = arith.constant 0 : index
    %241 = vector.load %arg9[%c7_193, %c0_194, %c0_195] : memref<16x8x32xbf16, #tpu.memory_space<vmem>>, vector<1x8x32xbf16>
    %242 = vector.shape_cast %241 : vector<1x8x32xbf16> to vector<8x32xbf16>
    %cst_196 = arith.constant dense<0.000000e+00> : vector<8x128xf32>
    %243 = tpu.matmul %242, %183, %cst_196 {dimension_numbers = #tpu.dot_dimension_numbers<[1], [0], [0], [1], [0, 0, 1, 1], [], []>} : vector<8x32xbf16>, vector<32x128xbf16>, vector<8x128xf32> -> vector<8x128xf32>
    %244 = arith.truncf %243 : vector<8x128xf32> to vector<8x128xbf16>
    %c7_197 = arith.constant 7 : index
    %c0_198 = arith.constant 0 : index
    %c0_199 = arith.constant 0 : index
    %245 = vector.load %arg18[%c7_197, %c0_198, %c0_199] : memref<16x128x256xbf16, #tpu.memory_space<vmem>>, vector<1x128x256xbf16>
    %246 = vector.shape_cast %245 : vector<1x128x256xbf16> to vector<128x256xbf16>
    %cst_200 = arith.constant dense<0.000000e+00> : vector<8x256xf32>
    %247 = tpu.matmul %244, %246, %cst_200 {dimension_numbers = #tpu.dot_dimension_numbers<[1], [0], [0], [1], [0, 0, 1, 1], [], []>} : vector<8x128xbf16>, vector<128x256xbf16>, vector<8x256xf32> -> vector<8x256xf32>
    %248 = arith.addf %240, %247 : vector<8x256xf32>
    %c8_201 = arith.constant 8 : index
    %c0_202 = arith.constant 0 : index
    %c0_203 = arith.constant 0 : index
    %249 = vector.load %arg9[%c8_201, %c0_202, %c0_203] : memref<16x8x32xbf16, #tpu.memory_space<vmem>>, vector<1x8x32xbf16>
    %250 = vector.shape_cast %249 : vector<1x8x32xbf16> to vector<8x32xbf16>
    %cst_204 = arith.constant dense<0.000000e+00> : vector<8x128xf32>
    %251 = tpu.matmul %250, %183, %cst_204 {dimension_numbers = #tpu.dot_dimension_numbers<[1], [0], [0], [1], [0, 0, 1, 1], [], []>} : vector<8x32xbf16>, vector<32x128xbf16>, vector<8x128xf32> -> vector<8x128xf32>
    %252 = arith.truncf %251 : vector<8x128xf32> to vector<8x128xbf16>
    %c8_205 = arith.constant 8 : index
    %c0_206 = arith.constant 0 : index
    %c0_207 = arith.constant 0 : index
    %253 = vector.load %arg18[%c8_205, %c0_206, %c0_207] : memref<16x128x256xbf16, #tpu.memory_space<vmem>>, vector<1x128x256xbf16>
    %254 = vector.shape_cast %253 : vector<1x128x256xbf16> to vector<128x256xbf16>
    %cst_208 = arith.constant dense<0.000000e+00> : vector<8x256xf32>
    %255 = tpu.matmul %252, %254, %cst_208 {dimension_numbers = #tpu.dot_dimension_numbers<[1], [0], [0], [1], [0, 0, 1, 1], [], []>} : vector<8x128xbf16>, vector<128x256xbf16>, vector<8x256xf32> -> vector<8x256xf32>
    %256 = arith.addf %248, %255 : vector<8x256xf32>
    %c9_209 = arith.constant 9 : index
    %c0_210 = arith.constant 0 : index
    %c0_211 = arith.constant 0 : index
    %257 = vector.load %arg9[%c9_209, %c0_210, %c0_211] : memref<16x8x32xbf16, #tpu.memory_space<vmem>>, vector<1x8x32xbf16>
    %258 = vector.shape_cast %257 : vector<1x8x32xbf16> to vector<8x32xbf16>
    %cst_212 = arith.constant dense<0.000000e+00> : vector<8x128xf32>
    %259 = tpu.matmul %258, %183, %cst_212 {dimension_numbers = #tpu.dot_dimension_numbers<[1], [0], [0], [1], [0, 0, 1, 1], [], []>} : vector<8x32xbf16>, vector<32x128xbf16>, vector<8x128xf32> -> vector<8x128xf32>
    %260 = arith.truncf %259 : vector<8x128xf32> to vector<8x128xbf16>
    %c9_213 = arith.constant 9 : index
    %c0_214 = arith.constant 0 : index
    %c0_215 = arith.constant 0 : index
    %261 = vector.load %arg18[%c9_213, %c0_214, %c0_215] : memref<16x128x256xbf16, #tpu.memory_space<vmem>>, vector<1x128x256xbf16>
    %262 = vector.shape_cast %261 : vector<1x128x256xbf16> to vector<128x256xbf16>
    %cst_216 = arith.constant dense<0.000000e+00> : vector<8x256xf32>
    %263 = tpu.matmul %260, %262, %cst_216 {dimension_numbers = #tpu.dot_dimension_numbers<[1], [0], [0], [1], [0, 0, 1, 1], [], []>} : vector<8x128xbf16>, vector<128x256xbf16>, vector<8x256xf32> -> vector<8x256xf32>
    %264 = arith.addf %256, %263 : vector<8x256xf32>
    %c10_217 = arith.constant 10 : index
    %c0_218 = arith.constant 0 : index
    %c0_219 = arith.constant 0 : index
    %265 = vector.load %arg9[%c10_217, %c0_218, %c0_219] : memref<16x8x32xbf16, #tpu.memory_space<vmem>>, vector<1x8x32xbf16>
    %266 = vector.shape_cast %265 : vector<1x8x32xbf16> to vector<8x32xbf16>
    %cst_220 = arith.constant dense<0.000000e+00> : vector<8x128xf32>
    %267 = tpu.matmul %266, %183, %cst_220 {dimension_numbers = #tpu.dot_dimension_numbers<[1], [0], [0], [1], [0, 0, 1, 1], [], []>} : vector<8x32xbf16>, vector<32x128xbf16>, vector<8x128xf32> -> vector<8x128xf32>
    %268 = arith.truncf %267 : vector<8x128xf32> to vector<8x128xbf16>
    %c10_221 = arith.constant 10 : index
    %c0_222 = arith.constant 0 : index
    %c0_223 = arith.constant 0 : index
    %269 = vector.load %arg18[%c10_221, %c0_222, %c0_223] : memref<16x128x256xbf16, #tpu.memory_space<vmem>>, vector<1x128x256xbf16>
    %270 = vector.shape_cast %269 : vector<1x128x256xbf16> to vector<128x256xbf16>
    %cst_224 = arith.constant dense<0.000000e+00> : vector<8x256xf32>
    %271 = tpu.matmul %268, %270, %cst_224 {dimension_numbers = #tpu.dot_dimension_numbers<[1], [0], [0], [1], [0, 0, 1, 1], [], []>} : vector<8x128xbf16>, vector<128x256xbf16>, vector<8x256xf32> -> vector<8x256xf32>
    %272 = arith.addf %264, %271 : vector<8x256xf32>
    %c11_225 = arith.constant 11 : index
    %c0_226 = arith.constant 0 : index
    %c0_227 = arith.constant 0 : index
    %273 = vector.load %arg9[%c11_225, %c0_226, %c0_227] : memref<16x8x32xbf16, #tpu.memory_space<vmem>>, vector<1x8x32xbf16>
    %274 = vector.shape_cast %273 : vector<1x8x32xbf16> to vector<8x32xbf16>
    %cst_228 = arith.constant dense<0.000000e+00> : vector<8x128xf32>
    %275 = tpu.matmul %274, %183, %cst_228 {dimension_numbers = #tpu.dot_dimension_numbers<[1], [0], [0], [1], [0, 0, 1, 1], [], []>} : vector<8x32xbf16>, vector<32x128xbf16>, vector<8x128xf32> -> vector<8x128xf32>
    %276 = arith.truncf %275 : vector<8x128xf32> to vector<8x128xbf16>
    %c11_229 = arith.constant 11 : index
    %c0_230 = arith.constant 0 : index
    %c0_231 = arith.constant 0 : index
    %277 = vector.load %arg18[%c11_229, %c0_230, %c0_231] : memref<16x128x256xbf16, #tpu.memory_space<vmem>>, vector<1x128x256xbf16>
    %278 = vector.shape_cast %277 : vector<1x128x256xbf16> to vector<128x256xbf16>
    %cst_232 = arith.constant dense<0.000000e+00> : vector<8x256xf32>
    %279 = tpu.matmul %276, %278, %cst_232 {dimension_numbers = #tpu.dot_dimension_numbers<[1], [0], [0], [1], [0, 0, 1, 1], [], []>} : vector<8x128xbf16>, vector<128x256xbf16>, vector<8x256xf32> -> vector<8x256xf32>
    %280 = arith.addf %272, %279 : vector<8x256xf32>
    %c12_233 = arith.constant 12 : index
    %c0_234 = arith.constant 0 : index
    %c0_235 = arith.constant 0 : index
    %281 = vector.load %arg9[%c12_233, %c0_234, %c0_235] : memref<16x8x32xbf16, #tpu.memory_space<vmem>>, vector<1x8x32xbf16>
    %282 = vector.shape_cast %281 : vector<1x8x32xbf16> to vector<8x32xbf16>
    %cst_236 = arith.constant dense<0.000000e+00> : vector<8x128xf32>
    %283 = tpu.matmul %282, %183, %cst_236 {dimension_numbers = #tpu.dot_dimension_numbers<[1], [0], [0], [1], [0, 0, 1, 1], [], []>} : vector<8x32xbf16>, vector<32x128xbf16>, vector<8x128xf32> -> vector<8x128xf32>
    %284 = arith.truncf %283 : vector<8x128xf32> to vector<8x128xbf16>
    %c12_237 = arith.constant 12 : index
    %c0_238 = arith.constant 0 : index
    %c0_239 = arith.constant 0 : index
    %285 = vector.load %arg18[%c12_237, %c0_238, %c0_239] : memref<16x128x256xbf16, #tpu.memory_space<vmem>>, vector<1x128x256xbf16>
    %286 = vector.shape_cast %285 : vector<1x128x256xbf16> to vector<128x256xbf16>
    %cst_240 = arith.constant dense<0.000000e+00> : vector<8x256xf32>
    %287 = tpu.matmul %284, %286, %cst_240 {dimension_numbers = #tpu.dot_dimension_numbers<[1], [0], [0], [1], [0, 0, 1, 1], [], []>} : vector<8x128xbf16>, vector<128x256xbf16>, vector<8x256xf32> -> vector<8x256xf32>
    %288 = arith.addf %280, %287 : vector<8x256xf32>
    %c13_241 = arith.constant 13 : index
    %c0_242 = arith.constant 0 : index
    %c0_243 = arith.constant 0 : index
    %289 = vector.load %arg9[%c13_241, %c0_242, %c0_243] : memref<16x8x32xbf16, #tpu.memory_space<vmem>>, vector<1x8x32xbf16>
    %290 = vector.shape_cast %289 : vector<1x8x32xbf16> to vector<8x32xbf16>
    %cst_244 = arith.constant dense<0.000000e+00> : vector<8x128xf32>
    %291 = tpu.matmul %290, %183, %cst_244 {dimension_numbers = #tpu.dot_dimension_numbers<[1], [0], [0], [1], [0, 0, 1, 1], [], []>} : vector<8x32xbf16>, vector<32x128xbf16>, vector<8x128xf32> -> vector<8x128xf32>
    %292 = arith.truncf %291 : vector<8x128xf32> to vector<8x128xbf16>
    %c13_245 = arith.constant 13 : index
    %c0_246 = arith.constant 0 : index
    %c0_247 = arith.constant 0 : index
    %293 = vector.load %arg18[%c13_245, %c0_246, %c0_247] : memref<16x128x256xbf16, #tpu.memory_space<vmem>>, vector<1x128x256xbf16>
    %294 = vector.shape_cast %293 : vector<1x128x256xbf16> to vector<128x256xbf16>
    %cst_248 = arith.constant dense<0.000000e+00> : vector<8x256xf32>
    %295 = tpu.matmul %292, %294, %cst_248 {dimension_numbers = #tpu.dot_dimension_numbers<[1], [0], [0], [1], [0, 0, 1, 1], [], []>} : vector<8x128xbf16>, vector<128x256xbf16>, vector<8x256xf32> -> vector<8x256xf32>
    %296 = arith.addf %288, %295 : vector<8x256xf32>
    %c14_249 = arith.constant 14 : index
    %c0_250 = arith.constant 0 : index
    %c0_251 = arith.constant 0 : index
    %297 = vector.load %arg9[%c14_249, %c0_250, %c0_251] : memref<16x8x32xbf16, #tpu.memory_space<vmem>>, vector<1x8x32xbf16>
    %298 = vector.shape_cast %297 : vector<1x8x32xbf16> to vector<8x32xbf16>
    %cst_252 = arith.constant dense<0.000000e+00> : vector<8x128xf32>
    %299 = tpu.matmul %298, %183, %cst_252 {dimension_numbers = #tpu.dot_dimension_numbers<[1], [0], [0], [1], [0, 0, 1, 1], [], []>} : vector<8x32xbf16>, vector<32x128xbf16>, vector<8x128xf32> -> vector<8x128xf32>
    %300 = arith.truncf %299 : vector<8x128xf32> to vector<8x128xbf16>
    %c14_253 = arith.constant 14 : index
    %c0_254 = arith.constant 0 : index
    %c0_255 = arith.constant 0 : index
    %301 = vector.load %arg18[%c14_253, %c0_254, %c0_255] : memref<16x128x256xbf16, #tpu.memory_space<vmem>>, vector<1x128x256xbf16>
    %302 = vector.shape_cast %301 : vector<1x128x256xbf16> to vector<128x256xbf16>
    %cst_256 = arith.constant dense<0.000000e+00> : vector<8x256xf32>
    %303 = tpu.matmul %300, %302, %cst_256 {dimension_numbers = #tpu.dot_dimension_numbers<[1], [0], [0], [1], [0, 0, 1, 1], [], []>} : vector<8x128xbf16>, vector<128x256xbf16>, vector<8x256xf32> -> vector<8x256xf32>
    %304 = arith.addf %296, %303 : vector<8x256xf32>
    %c15_257 = arith.constant 15 : index
    %c0_258 = arith.constant 0 : index
    %c0_259 = arith.constant 0 : index
    %305 = vector.load %arg9[%c15_257, %c0_258, %c0_259] : memref<16x8x32xbf16, #tpu.memory_space<vmem>>, vector<1x8x32xbf16>
    %306 = vector.shape_cast %305 : vector<1x8x32xbf16> to vector<8x32xbf16>
    %cst_260 = arith.constant dense<0.000000e+00> : vector<8x128xf32>
    %307 = tpu.matmul %306, %183, %cst_260 {dimension_numbers = #tpu.dot_dimension_numbers<[1], [0], [0], [1], [0, 0, 1, 1], [], []>} : vector<8x32xbf16>, vector<32x128xbf16>, vector<8x128xf32> -> vector<8x128xf32>
    %308 = arith.truncf %307 : vector<8x128xf32> to vector<8x128xbf16>
    %c15_261 = arith.constant 15 : index
    %c0_262 = arith.constant 0 : index
    %c0_263 = arith.constant 0 : index
    %309 = vector.load %arg18[%c15_261, %c0_262, %c0_263] : memref<16x128x256xbf16, #tpu.memory_space<vmem>>, vector<1x128x256xbf16>
    %310 = vector.shape_cast %309 : vector<1x128x256xbf16> to vector<128x256xbf16>
    %cst_264 = arith.constant dense<0.000000e+00> : vector<8x256xf32>
    %311 = tpu.matmul %308, %310, %cst_264 {dimension_numbers = #tpu.dot_dimension_numbers<[1], [0], [0], [1], [0, 0, 1, 1], [], []>} : vector<8x128xbf16>, vector<128x256xbf16>, vector<8x256xf32> -> vector<8x256xf32>
    %312 = arith.addf %304, %311 : vector<8x256xf32>
    %c0_265 = arith.constant 0 : index
    %c0_266 = arith.constant 0 : index
    %313 = vector.load %arg10[%c0_265, %c0_266] : memref<1x256xf32, #tpu.memory_space<vmem>>, vector<1x256xf32>
    %c0_267 = arith.constant 0 : index
    %c0_268 = arith.constant 0 : index
    %314 = vector.load %arg11[%c0_267, %c0_268] : memref<1x256xf32, #tpu.memory_space<vmem>>, vector<1x256xf32>
    %cst_269 = arith.constant dense<0.000000e+00> : vector<256xf32>
    %315 = vector.multi_reduction <add>, %312, %cst_269 [0] : vector<8x256xf32> to vector<256xf32>
    %316 = vector.shape_cast %315 : vector<256xf32> to vector<1x256xf32>
    %cst_270 = arith.constant 1.250000e-01 : f32
    %317 = vector.broadcast %cst_270 : f32 to vector<1x256xf32>
    %318 = arith.mulf %316, %317 : vector<1x256xf32>
    %319 = vector.broadcast %318 : vector<1x256xf32> to vector<8x256xf32>
    %320 = arith.subf %312, %319 : vector<8x256xf32>
    %321 = arith.mulf %320, %320 : vector<8x256xf32>
    %cst_271 = arith.constant dense<0.000000e+00> : vector<256xf32>
    %322 = vector.multi_reduction <add>, %321, %cst_271 [0] : vector<8x256xf32> to vector<256xf32>
    %323 = vector.shape_cast %322 : vector<256xf32> to vector<1x256xf32>
    %cst_272 = arith.constant 1.250000e-01 : f32
    %324 = vector.broadcast %cst_272 : f32 to vector<1x256xf32>
    %325 = arith.mulf %323, %324 : vector<1x256xf32>
    %cst_273 = arith.constant 9.99999974E-6 : f32
    %326 = vector.broadcast %cst_273 : f32 to vector<1x256xf32>
    %327 = arith.addf %325, %326 : vector<1x256xf32>
    %328 = math.rsqrt %327 : vector<1x256xf32>
    %329 = arith.mulf %313, %328 : vector<1x256xf32>
    %330 = vector.broadcast %329 : vector<1x256xf32> to vector<8x256xf32>
    %331 = arith.mulf %320, %330 : vector<8x256xf32>
    %332 = vector.broadcast %314 : vector<1x256xf32> to vector<8x256xf32>
    %333 = arith.addf %331, %332 : vector<8x256xf32>
    %cst_274 = arith.constant 2.000000e-01 : f32
    %334 = vector.broadcast %cst_274 : f32 to vector<8x256xf32>
    %335 = arith.mulf %334, %333 : vector<8x256xf32>
    %336 = arith.maximumf %333, %335 : vector<8x256xf32>
    %337 = arith.truncf %336 : vector<8x256xf32> to vector<8x256xbf16>
    %c1_i32_275 = arith.constant 1 : i32
    %338 = tpu.memref_slice %arg20[%c1_i32_275] : memref<2x!tpu.dma_semaphore, #tpu.memory_space<semaphore_mem>> -> memref<1x!tpu.dma_semaphore, #tpu.memory_space<semaphore_mem>>
    %339 = tpu.memref_squeeze %338 : memref<1x!tpu.dma_semaphore, #tpu.memory_space<semaphore_mem>> -> memref<!tpu.dma_semaphore, #tpu.memory_space<semaphore_mem>>
    tpu.wait_dma2 semaphore(%339 : memref<!tpu.dma_semaphore, #tpu.memory_space<semaphore_mem>>) src(%arg16 : memref<16x256x256xbf16, #tpu.memory_space<any>>) dst(%arg19 : memref<16x256x256xbf16, #tpu.memory_space<vmem>>)
    %c0_276 = arith.constant 0 : index
    %c0_277 = arith.constant 0 : index
    %c0_278 = arith.constant 0 : index
    %340 = vector.load %arg12[%c0_276, %c0_277, %c0_278] : memref<16x2x8xbf16, #tpu.memory_space<vmem>>, vector<1x2x8xbf16>
    %341 = vector.shape_cast %340 : vector<1x2x8xbf16> to vector<2x8xbf16>
    %cst_279 = arith.constant dense<0.000000e+00> : vector<2x256xf32>
    %342 = tpu.matmul %341, %337, %cst_279 {dimension_numbers = #tpu.dot_dimension_numbers<[1], [0], [0], [1], [0, 0, 1, 1], [], []>} : vector<2x8xbf16>, vector<8x256xbf16>, vector<2x256xf32> -> vector<2x256xf32>
    %343 = arith.truncf %342 : vector<2x256xf32> to vector<2x256xbf16>
    %c0_280 = arith.constant 0 : index
    %c0_281 = arith.constant 0 : index
    %c0_282 = arith.constant 0 : index
    %344 = vector.load %arg19[%c0_280, %c0_281, %c0_282] : memref<16x256x256xbf16, #tpu.memory_space<vmem>>, vector<1x256x256xbf16>
    %345 = vector.shape_cast %344 : vector<1x256x256xbf16> to vector<256x256xbf16>
    %cst_283 = arith.constant dense<0.000000e+00> : vector<2x256xf32>
    %346 = tpu.matmul %343, %345, %cst_283 {dimension_numbers = #tpu.dot_dimension_numbers<[1], [0], [0], [1], [0, 0, 1, 1], [], []>} : vector<2x256xbf16>, vector<256x256xbf16>, vector<2x256xf32> -> vector<2x256xf32>
    %c1_284 = arith.constant 1 : index
    %c0_285 = arith.constant 0 : index
    %c0_286 = arith.constant 0 : index
    %347 = vector.load %arg12[%c1_284, %c0_285, %c0_286] : memref<16x2x8xbf16, #tpu.memory_space<vmem>>, vector<1x2x8xbf16>
    %348 = vector.shape_cast %347 : vector<1x2x8xbf16> to vector<2x8xbf16>
    %cst_287 = arith.constant dense<0.000000e+00> : vector<2x256xf32>
    %349 = tpu.matmul %348, %337, %cst_287 {dimension_numbers = #tpu.dot_dimension_numbers<[1], [0], [0], [1], [0, 0, 1, 1], [], []>} : vector<2x8xbf16>, vector<8x256xbf16>, vector<2x256xf32> -> vector<2x256xf32>
    %350 = arith.truncf %349 : vector<2x256xf32> to vector<2x256xbf16>
    %c1_288 = arith.constant 1 : index
    %c0_289 = arith.constant 0 : index
    %c0_290 = arith.constant 0 : index
    %351 = vector.load %arg19[%c1_288, %c0_289, %c0_290] : memref<16x256x256xbf16, #tpu.memory_space<vmem>>, vector<1x256x256xbf16>
    %352 = vector.shape_cast %351 : vector<1x256x256xbf16> to vector<256x256xbf16>
    %cst_291 = arith.constant dense<0.000000e+00> : vector<2x256xf32>
    %353 = tpu.matmul %350, %352, %cst_291 {dimension_numbers = #tpu.dot_dimension_numbers<[1], [0], [0], [1], [0, 0, 1, 1], [], []>} : vector<2x256xbf16>, vector<256x256xbf16>, vector<2x256xf32> -> vector<2x256xf32>
    %354 = arith.addf %346, %353 : vector<2x256xf32>
    %c2_292 = arith.constant 2 : index
    %c0_293 = arith.constant 0 : index
    %c0_294 = arith.constant 0 : index
    %355 = vector.load %arg12[%c2_292, %c0_293, %c0_294] : memref<16x2x8xbf16, #tpu.memory_space<vmem>>, vector<1x2x8xbf16>
    %356 = vector.shape_cast %355 : vector<1x2x8xbf16> to vector<2x8xbf16>
    %cst_295 = arith.constant dense<0.000000e+00> : vector<2x256xf32>
    %357 = tpu.matmul %356, %337, %cst_295 {dimension_numbers = #tpu.dot_dimension_numbers<[1], [0], [0], [1], [0, 0, 1, 1], [], []>} : vector<2x8xbf16>, vector<8x256xbf16>, vector<2x256xf32> -> vector<2x256xf32>
    %358 = arith.truncf %357 : vector<2x256xf32> to vector<2x256xbf16>
    %c2_296 = arith.constant 2 : index
    %c0_297 = arith.constant 0 : index
    %c0_298 = arith.constant 0 : index
    %359 = vector.load %arg19[%c2_296, %c0_297, %c0_298] : memref<16x256x256xbf16, #tpu.memory_space<vmem>>, vector<1x256x256xbf16>
    %360 = vector.shape_cast %359 : vector<1x256x256xbf16> to vector<256x256xbf16>
    %cst_299 = arith.constant dense<0.000000e+00> : vector<2x256xf32>
    %361 = tpu.matmul %358, %360, %cst_299 {dimension_numbers = #tpu.dot_dimension_numbers<[1], [0], [0], [1], [0, 0, 1, 1], [], []>} : vector<2x256xbf16>, vector<256x256xbf16>, vector<2x256xf32> -> vector<2x256xf32>
    %362 = arith.addf %354, %361 : vector<2x256xf32>
    %c3_300 = arith.constant 3 : index
    %c0_301 = arith.constant 0 : index
    %c0_302 = arith.constant 0 : index
    %363 = vector.load %arg12[%c3_300, %c0_301, %c0_302] : memref<16x2x8xbf16, #tpu.memory_space<vmem>>, vector<1x2x8xbf16>
    %364 = vector.shape_cast %363 : vector<1x2x8xbf16> to vector<2x8xbf16>
    %cst_303 = arith.constant dense<0.000000e+00> : vector<2x256xf32>
    %365 = tpu.matmul %364, %337, %cst_303 {dimension_numbers = #tpu.dot_dimension_numbers<[1], [0], [0], [1], [0, 0, 1, 1], [], []>} : vector<2x8xbf16>, vector<8x256xbf16>, vector<2x256xf32> -> vector<2x256xf32>
    %366 = arith.truncf %365 : vector<2x256xf32> to vector<2x256xbf16>
    %c3_304 = arith.constant 3 : index
    %c0_305 = arith.constant 0 : index
    %c0_306 = arith.constant 0 : index
    %367 = vector.load %arg19[%c3_304, %c0_305, %c0_306] : memref<16x256x256xbf16, #tpu.memory_space<vmem>>, vector<1x256x256xbf16>
    %368 = vector.shape_cast %367 : vector<1x256x256xbf16> to vector<256x256xbf16>
    %cst_307 = arith.constant dense<0.000000e+00> : vector<2x256xf32>
    %369 = tpu.matmul %366, %368, %cst_307 {dimension_numbers = #tpu.dot_dimension_numbers<[1], [0], [0], [1], [0, 0, 1, 1], [], []>} : vector<2x256xbf16>, vector<256x256xbf16>, vector<2x256xf32> -> vector<2x256xf32>
    %370 = arith.addf %362, %369 : vector<2x256xf32>
    %c4_308 = arith.constant 4 : index
    %c0_309 = arith.constant 0 : index
    %c0_310 = arith.constant 0 : index
    %371 = vector.load %arg12[%c4_308, %c0_309, %c0_310] : memref<16x2x8xbf16, #tpu.memory_space<vmem>>, vector<1x2x8xbf16>
    %372 = vector.shape_cast %371 : vector<1x2x8xbf16> to vector<2x8xbf16>
    %cst_311 = arith.constant dense<0.000000e+00> : vector<2x256xf32>
    %373 = tpu.matmul %372, %337, %cst_311 {dimension_numbers = #tpu.dot_dimension_numbers<[1], [0], [0], [1], [0, 0, 1, 1], [], []>} : vector<2x8xbf16>, vector<8x256xbf16>, vector<2x256xf32> -> vector<2x256xf32>
    %374 = arith.truncf %373 : vector<2x256xf32> to vector<2x256xbf16>
    %c4_312 = arith.constant 4 : index
    %c0_313 = arith.constant 0 : index
    %c0_314 = arith.constant 0 : index
    %375 = vector.load %arg19[%c4_312, %c0_313, %c0_314] : memref<16x256x256xbf16, #tpu.memory_space<vmem>>, vector<1x256x256xbf16>
    %376 = vector.shape_cast %375 : vector<1x256x256xbf16> to vector<256x256xbf16>
    %cst_315 = arith.constant dense<0.000000e+00> : vector<2x256xf32>
    %377 = tpu.matmul %374, %376, %cst_315 {dimension_numbers = #tpu.dot_dimension_numbers<[1], [0], [0], [1], [0, 0, 1, 1], [], []>} : vector<2x256xbf16>, vector<256x256xbf16>, vector<2x256xf32> -> vector<2x256xf32>
    %378 = arith.addf %370, %377 : vector<2x256xf32>
    %c5_316 = arith.constant 5 : index
    %c0_317 = arith.constant 0 : index
    %c0_318 = arith.constant 0 : index
    %379 = vector.load %arg12[%c5_316, %c0_317, %c0_318] : memref<16x2x8xbf16, #tpu.memory_space<vmem>>, vector<1x2x8xbf16>
    %380 = vector.shape_cast %379 : vector<1x2x8xbf16> to vector<2x8xbf16>
    %cst_319 = arith.constant dense<0.000000e+00> : vector<2x256xf32>
    %381 = tpu.matmul %380, %337, %cst_319 {dimension_numbers = #tpu.dot_dimension_numbers<[1], [0], [0], [1], [0, 0, 1, 1], [], []>} : vector<2x8xbf16>, vector<8x256xbf16>, vector<2x256xf32> -> vector<2x256xf32>
    %382 = arith.truncf %381 : vector<2x256xf32> to vector<2x256xbf16>
    %c5_320 = arith.constant 5 : index
    %c0_321 = arith.constant 0 : index
    %c0_322 = arith.constant 0 : index
    %383 = vector.load %arg19[%c5_320, %c0_321, %c0_322] : memref<16x256x256xbf16, #tpu.memory_space<vmem>>, vector<1x256x256xbf16>
    %384 = vector.shape_cast %383 : vector<1x256x256xbf16> to vector<256x256xbf16>
    %cst_323 = arith.constant dense<0.000000e+00> : vector<2x256xf32>
    %385 = tpu.matmul %382, %384, %cst_323 {dimension_numbers = #tpu.dot_dimension_numbers<[1], [0], [0], [1], [0, 0, 1, 1], [], []>} : vector<2x256xbf16>, vector<256x256xbf16>, vector<2x256xf32> -> vector<2x256xf32>
    %386 = arith.addf %378, %385 : vector<2x256xf32>
    %c6_324 = arith.constant 6 : index
    %c0_325 = arith.constant 0 : index
    %c0_326 = arith.constant 0 : index
    %387 = vector.load %arg12[%c6_324, %c0_325, %c0_326] : memref<16x2x8xbf16, #tpu.memory_space<vmem>>, vector<1x2x8xbf16>
    %388 = vector.shape_cast %387 : vector<1x2x8xbf16> to vector<2x8xbf16>
    %cst_327 = arith.constant dense<0.000000e+00> : vector<2x256xf32>
    %389 = tpu.matmul %388, %337, %cst_327 {dimension_numbers = #tpu.dot_dimension_numbers<[1], [0], [0], [1], [0, 0, 1, 1], [], []>} : vector<2x8xbf16>, vector<8x256xbf16>, vector<2x256xf32> -> vector<2x256xf32>
    %390 = arith.truncf %389 : vector<2x256xf32> to vector<2x256xbf16>
    %c6_328 = arith.constant 6 : index
    %c0_329 = arith.constant 0 : index
    %c0_330 = arith.constant 0 : index
    %391 = vector.load %arg19[%c6_328, %c0_329, %c0_330] : memref<16x256x256xbf16, #tpu.memory_space<vmem>>, vector<1x256x256xbf16>
    %392 = vector.shape_cast %391 : vector<1x256x256xbf16> to vector<256x256xbf16>
    %cst_331 = arith.constant dense<0.000000e+00> : vector<2x256xf32>
    %393 = tpu.matmul %390, %392, %cst_331 {dimension_numbers = #tpu.dot_dimension_numbers<[1], [0], [0], [1], [0, 0, 1, 1], [], []>} : vector<2x256xbf16>, vector<256x256xbf16>, vector<2x256xf32> -> vector<2x256xf32>
    %394 = arith.addf %386, %393 : vector<2x256xf32>
    %c7_332 = arith.constant 7 : index
    %c0_333 = arith.constant 0 : index
    %c0_334 = arith.constant 0 : index
    %395 = vector.load %arg12[%c7_332, %c0_333, %c0_334] : memref<16x2x8xbf16, #tpu.memory_space<vmem>>, vector<1x2x8xbf16>
    %396 = vector.shape_cast %395 : vector<1x2x8xbf16> to vector<2x8xbf16>
    %cst_335 = arith.constant dense<0.000000e+00> : vector<2x256xf32>
    %397 = tpu.matmul %396, %337, %cst_335 {dimension_numbers = #tpu.dot_dimension_numbers<[1], [0], [0], [1], [0, 0, 1, 1], [], []>} : vector<2x8xbf16>, vector<8x256xbf16>, vector<2x256xf32> -> vector<2x256xf32>
    %398 = arith.truncf %397 : vector<2x256xf32> to vector<2x256xbf16>
    %c7_336 = arith.constant 7 : index
    %c0_337 = arith.constant 0 : index
    %c0_338 = arith.constant 0 : index
    %399 = vector.load %arg19[%c7_336, %c0_337, %c0_338] : memref<16x256x256xbf16, #tpu.memory_space<vmem>>, vector<1x256x256xbf16>
    %400 = vector.shape_cast %399 : vector<1x256x256xbf16> to vector<256x256xbf16>
    %cst_339 = arith.constant dense<0.000000e+00> : vector<2x256xf32>
    %401 = tpu.matmul %398, %400, %cst_339 {dimension_numbers = #tpu.dot_dimension_numbers<[1], [0], [0], [1], [0, 0, 1, 1], [], []>} : vector<2x256xbf16>, vector<256x256xbf16>, vector<2x256xf32> -> vector<2x256xf32>
    %402 = arith.addf %394, %401 : vector<2x256xf32>
    %c8_340 = arith.constant 8 : index
    %c0_341 = arith.constant 0 : index
    %c0_342 = arith.constant 0 : index
    %403 = vector.load %arg12[%c8_340, %c0_341, %c0_342] : memref<16x2x8xbf16, #tpu.memory_space<vmem>>, vector<1x2x8xbf16>
    %404 = vector.shape_cast %403 : vector<1x2x8xbf16> to vector<2x8xbf16>
    %cst_343 = arith.constant dense<0.000000e+00> : vector<2x256xf32>
    %405 = tpu.matmul %404, %337, %cst_343 {dimension_numbers = #tpu.dot_dimension_numbers<[1], [0], [0], [1], [0, 0, 1, 1], [], []>} : vector<2x8xbf16>, vector<8x256xbf16>, vector<2x256xf32> -> vector<2x256xf32>
    %406 = arith.truncf %405 : vector<2x256xf32> to vector<2x256xbf16>
    %c8_344 = arith.constant 8 : index
    %c0_345 = arith.constant 0 : index
    %c0_346 = arith.constant 0 : index
    %407 = vector.load %arg19[%c8_344, %c0_345, %c0_346] : memref<16x256x256xbf16, #tpu.memory_space<vmem>>, vector<1x256x256xbf16>
    %408 = vector.shape_cast %407 : vector<1x256x256xbf16> to vector<256x256xbf16>
    %cst_347 = arith.constant dense<0.000000e+00> : vector<2x256xf32>
    %409 = tpu.matmul %406, %408, %cst_347 {dimension_numbers = #tpu.dot_dimension_numbers<[1], [0], [0], [1], [0, 0, 1, 1], [], []>} : vector<2x256xbf16>, vector<256x256xbf16>, vector<2x256xf32> -> vector<2x256xf32>
    %410 = arith.addf %402, %409 : vector<2x256xf32>
    %c9_348 = arith.constant 9 : index
    %c0_349 = arith.constant 0 : index
    %c0_350 = arith.constant 0 : index
    %411 = vector.load %arg12[%c9_348, %c0_349, %c0_350] : memref<16x2x8xbf16, #tpu.memory_space<vmem>>, vector<1x2x8xbf16>
    %412 = vector.shape_cast %411 : vector<1x2x8xbf16> to vector<2x8xbf16>
    %cst_351 = arith.constant dense<0.000000e+00> : vector<2x256xf32>
    %413 = tpu.matmul %412, %337, %cst_351 {dimension_numbers = #tpu.dot_dimension_numbers<[1], [0], [0], [1], [0, 0, 1, 1], [], []>} : vector<2x8xbf16>, vector<8x256xbf16>, vector<2x256xf32> -> vector<2x256xf32>
    %414 = arith.truncf %413 : vector<2x256xf32> to vector<2x256xbf16>
    %c9_352 = arith.constant 9 : index
    %c0_353 = arith.constant 0 : index
    %c0_354 = arith.constant 0 : index
    %415 = vector.load %arg19[%c9_352, %c0_353, %c0_354] : memref<16x256x256xbf16, #tpu.memory_space<vmem>>, vector<1x256x256xbf16>
    %416 = vector.shape_cast %415 : vector<1x256x256xbf16> to vector<256x256xbf16>
    %cst_355 = arith.constant dense<0.000000e+00> : vector<2x256xf32>
    %417 = tpu.matmul %414, %416, %cst_355 {dimension_numbers = #tpu.dot_dimension_numbers<[1], [0], [0], [1], [0, 0, 1, 1], [], []>} : vector<2x256xbf16>, vector<256x256xbf16>, vector<2x256xf32> -> vector<2x256xf32>
    %418 = arith.addf %410, %417 : vector<2x256xf32>
    %c10_356 = arith.constant 10 : index
    %c0_357 = arith.constant 0 : index
    %c0_358 = arith.constant 0 : index
    %419 = vector.load %arg12[%c10_356, %c0_357, %c0_358] : memref<16x2x8xbf16, #tpu.memory_space<vmem>>, vector<1x2x8xbf16>
    %420 = vector.shape_cast %419 : vector<1x2x8xbf16> to vector<2x8xbf16>
    %cst_359 = arith.constant dense<0.000000e+00> : vector<2x256xf32>
    %421 = tpu.matmul %420, %337, %cst_359 {dimension_numbers = #tpu.dot_dimension_numbers<[1], [0], [0], [1], [0, 0, 1, 1], [], []>} : vector<2x8xbf16>, vector<8x256xbf16>, vector<2x256xf32> -> vector<2x256xf32>
    %422 = arith.truncf %421 : vector<2x256xf32> to vector<2x256xbf16>
    %c10_360 = arith.constant 10 : index
    %c0_361 = arith.constant 0 : index
    %c0_362 = arith.constant 0 : index
    %423 = vector.load %arg19[%c10_360, %c0_361, %c0_362] : memref<16x256x256xbf16, #tpu.memory_space<vmem>>, vector<1x256x256xbf16>
    %424 = vector.shape_cast %423 : vector<1x256x256xbf16> to vector<256x256xbf16>
    %cst_363 = arith.constant dense<0.000000e+00> : vector<2x256xf32>
    %425 = tpu.matmul %422, %424, %cst_363 {dimension_numbers = #tpu.dot_dimension_numbers<[1], [0], [0], [1], [0, 0, 1, 1], [], []>} : vector<2x256xbf16>, vector<256x256xbf16>, vector<2x256xf32> -> vector<2x256xf32>
    %426 = arith.addf %418, %425 : vector<2x256xf32>
    %c11_364 = arith.constant 11 : index
    %c0_365 = arith.constant 0 : index
    %c0_366 = arith.constant 0 : index
    %427 = vector.load %arg12[%c11_364, %c0_365, %c0_366] : memref<16x2x8xbf16, #tpu.memory_space<vmem>>, vector<1x2x8xbf16>
    %428 = vector.shape_cast %427 : vector<1x2x8xbf16> to vector<2x8xbf16>
    %cst_367 = arith.constant dense<0.000000e+00> : vector<2x256xf32>
    %429 = tpu.matmul %428, %337, %cst_367 {dimension_numbers = #tpu.dot_dimension_numbers<[1], [0], [0], [1], [0, 0, 1, 1], [], []>} : vector<2x8xbf16>, vector<8x256xbf16>, vector<2x256xf32> -> vector<2x256xf32>
    %430 = arith.truncf %429 : vector<2x256xf32> to vector<2x256xbf16>
    %c11_368 = arith.constant 11 : index
    %c0_369 = arith.constant 0 : index
    %c0_370 = arith.constant 0 : index
    %431 = vector.load %arg19[%c11_368, %c0_369, %c0_370] : memref<16x256x256xbf16, #tpu.memory_space<vmem>>, vector<1x256x256xbf16>
    %432 = vector.shape_cast %431 : vector<1x256x256xbf16> to vector<256x256xbf16>
    %cst_371 = arith.constant dense<0.000000e+00> : vector<2x256xf32>
    %433 = tpu.matmul %430, %432, %cst_371 {dimension_numbers = #tpu.dot_dimension_numbers<[1], [0], [0], [1], [0, 0, 1, 1], [], []>} : vector<2x256xbf16>, vector<256x256xbf16>, vector<2x256xf32> -> vector<2x256xf32>
    %434 = arith.addf %426, %433 : vector<2x256xf32>
    %c12_372 = arith.constant 12 : index
    %c0_373 = arith.constant 0 : index
    %c0_374 = arith.constant 0 : index
    %435 = vector.load %arg12[%c12_372, %c0_373, %c0_374] : memref<16x2x8xbf16, #tpu.memory_space<vmem>>, vector<1x2x8xbf16>
    %436 = vector.shape_cast %435 : vector<1x2x8xbf16> to vector<2x8xbf16>
    %cst_375 = arith.constant dense<0.000000e+00> : vector<2x256xf32>
    %437 = tpu.matmul %436, %337, %cst_375 {dimension_numbers = #tpu.dot_dimension_numbers<[1], [0], [0], [1], [0, 0, 1, 1], [], []>} : vector<2x8xbf16>, vector<8x256xbf16>, vector<2x256xf32> -> vector<2x256xf32>
    %438 = arith.truncf %437 : vector<2x256xf32> to vector<2x256xbf16>
    %c12_376 = arith.constant 12 : index
    %c0_377 = arith.constant 0 : index
    %c0_378 = arith.constant 0 : index
    %439 = vector.load %arg19[%c12_376, %c0_377, %c0_378] : memref<16x256x256xbf16, #tpu.memory_space<vmem>>, vector<1x256x256xbf16>
    %440 = vector.shape_cast %439 : vector<1x256x256xbf16> to vector<256x256xbf16>
    %cst_379 = arith.constant dense<0.000000e+00> : vector<2x256xf32>
    %441 = tpu.matmul %438, %440, %cst_379 {dimension_numbers = #tpu.dot_dimension_numbers<[1], [0], [0], [1], [0, 0, 1, 1], [], []>} : vector<2x256xbf16>, vector<256x256xbf16>, vector<2x256xf32> -> vector<2x256xf32>
    %442 = arith.addf %434, %441 : vector<2x256xf32>
    %c13_380 = arith.constant 13 : index
    %c0_381 = arith.constant 0 : index
    %c0_382 = arith.constant 0 : index
    %443 = vector.load %arg12[%c13_380, %c0_381, %c0_382] : memref<16x2x8xbf16, #tpu.memory_space<vmem>>, vector<1x2x8xbf16>
    %444 = vector.shape_cast %443 : vector<1x2x8xbf16> to vector<2x8xbf16>
    %cst_383 = arith.constant dense<0.000000e+00> : vector<2x256xf32>
    %445 = tpu.matmul %444, %337, %cst_383 {dimension_numbers = #tpu.dot_dimension_numbers<[1], [0], [0], [1], [0, 0, 1, 1], [], []>} : vector<2x8xbf16>, vector<8x256xbf16>, vector<2x256xf32> -> vector<2x256xf32>
    %446 = arith.truncf %445 : vector<2x256xf32> to vector<2x256xbf16>
    %c13_384 = arith.constant 13 : index
    %c0_385 = arith.constant 0 : index
    %c0_386 = arith.constant 0 : index
    %447 = vector.load %arg19[%c13_384, %c0_385, %c0_386] : memref<16x256x256xbf16, #tpu.memory_space<vmem>>, vector<1x256x256xbf16>
    %448 = vector.shape_cast %447 : vector<1x256x256xbf16> to vector<256x256xbf16>
    %cst_387 = arith.constant dense<0.000000e+00> : vector<2x256xf32>
    %449 = tpu.matmul %446, %448, %cst_387 {dimension_numbers = #tpu.dot_dimension_numbers<[1], [0], [0], [1], [0, 0, 1, 1], [], []>} : vector<2x256xbf16>, vector<256x256xbf16>, vector<2x256xf32> -> vector<2x256xf32>
    %450 = arith.addf %442, %449 : vector<2x256xf32>
    %c14_388 = arith.constant 14 : index
    %c0_389 = arith.constant 0 : index
    %c0_390 = arith.constant 0 : index
    %451 = vector.load %arg12[%c14_388, %c0_389, %c0_390] : memref<16x2x8xbf16, #tpu.memory_space<vmem>>, vector<1x2x8xbf16>
    %452 = vector.shape_cast %451 : vector<1x2x8xbf16> to vector<2x8xbf16>
    %cst_391 = arith.constant dense<0.000000e+00> : vector<2x256xf32>
    %453 = tpu.matmul %452, %337, %cst_391 {dimension_numbers = #tpu.dot_dimension_numbers<[1], [0], [0], [1], [0, 0, 1, 1], [], []>} : vector<2x8xbf16>, vector<8x256xbf16>, vector<2x256xf32> -> vector<2x256xf32>
    %454 = arith.truncf %453 : vector<2x256xf32> to vector<2x256xbf16>
    %c14_392 = arith.constant 14 : index
    %c0_393 = arith.constant 0 : index
    %c0_394 = arith.constant 0 : index
    %455 = vector.load %arg19[%c14_392, %c0_393, %c0_394] : memref<16x256x256xbf16, #tpu.memory_space<vmem>>, vector<1x256x256xbf16>
    %456 = vector.shape_cast %455 : vector<1x256x256xbf16> to vector<256x256xbf16>
    %cst_395 = arith.constant dense<0.000000e+00> : vector<2x256xf32>
    %457 = tpu.matmul %454, %456, %cst_395 {dimension_numbers = #tpu.dot_dimension_numbers<[1], [0], [0], [1], [0, 0, 1, 1], [], []>} : vector<2x256xbf16>, vector<256x256xbf16>, vector<2x256xf32> -> vector<2x256xf32>
    %458 = arith.addf %450, %457 : vector<2x256xf32>
    %c15_396 = arith.constant 15 : index
    %c0_397 = arith.constant 0 : index
    %c0_398 = arith.constant 0 : index
    %459 = vector.load %arg12[%c15_396, %c0_397, %c0_398] : memref<16x2x8xbf16, #tpu.memory_space<vmem>>, vector<1x2x8xbf16>
    %460 = vector.shape_cast %459 : vector<1x2x8xbf16> to vector<2x8xbf16>
    %cst_399 = arith.constant dense<0.000000e+00> : vector<2x256xf32>
    %461 = tpu.matmul %460, %337, %cst_399 {dimension_numbers = #tpu.dot_dimension_numbers<[1], [0], [0], [1], [0, 0, 1, 1], [], []>} : vector<2x8xbf16>, vector<8x256xbf16>, vector<2x256xf32> -> vector<2x256xf32>
    %462 = arith.truncf %461 : vector<2x256xf32> to vector<2x256xbf16>
    %c15_400 = arith.constant 15 : index
    %c0_401 = arith.constant 0 : index
    %c0_402 = arith.constant 0 : index
    %463 = vector.load %arg19[%c15_400, %c0_401, %c0_402] : memref<16x256x256xbf16, #tpu.memory_space<vmem>>, vector<1x256x256xbf16>
    %464 = vector.shape_cast %463 : vector<1x256x256xbf16> to vector<256x256xbf16>
    %cst_403 = arith.constant dense<0.000000e+00> : vector<2x256xf32>
    %465 = tpu.matmul %462, %464, %cst_403 {dimension_numbers = #tpu.dot_dimension_numbers<[1], [0], [0], [1], [0, 0, 1, 1], [], []>} : vector<2x256xbf16>, vector<256x256xbf16>, vector<2x256xf32> -> vector<2x256xf32>
    %466 = arith.addf %458, %465 : vector<2x256xf32>
    %c0_404 = arith.constant 0 : index
    %c0_405 = arith.constant 0 : index
    %467 = vector.load %arg13[%c0_404, %c0_405] : memref<1x256xf32, #tpu.memory_space<vmem>>, vector<1x256xf32>
    %c0_406 = arith.constant 0 : index
    %c0_407 = arith.constant 0 : index
    %468 = vector.load %arg14[%c0_406, %c0_407] : memref<1x256xf32, #tpu.memory_space<vmem>>, vector<1x256xf32>
    %cst_408 = arith.constant dense<0.000000e+00> : vector<256xf32>
    %469 = vector.multi_reduction <add>, %466, %cst_408 [0] : vector<2x256xf32> to vector<256xf32>
    %470 = vector.shape_cast %469 : vector<256xf32> to vector<1x256xf32>
    %cst_409 = arith.constant 5.000000e-01 : f32
    %471 = vector.broadcast %cst_409 : f32 to vector<1x256xf32>
    %472 = arith.mulf %470, %471 : vector<1x256xf32>
    %473 = vector.broadcast %472 : vector<1x256xf32> to vector<2x256xf32>
    %474 = arith.subf %466, %473 : vector<2x256xf32>
    %475 = arith.mulf %474, %474 : vector<2x256xf32>
    %cst_410 = arith.constant dense<0.000000e+00> : vector<256xf32>
    %476 = vector.multi_reduction <add>, %475, %cst_410 [0] : vector<2x256xf32> to vector<256xf32>
    %477 = vector.shape_cast %476 : vector<256xf32> to vector<1x256xf32>
    %cst_411 = arith.constant 5.000000e-01 : f32
    %478 = vector.broadcast %cst_411 : f32 to vector<1x256xf32>
    %479 = arith.mulf %477, %478 : vector<1x256xf32>
    %cst_412 = arith.constant 9.99999974E-6 : f32
    %480 = vector.broadcast %cst_412 : f32 to vector<1x256xf32>
    %481 = arith.addf %479, %480 : vector<1x256xf32>
    %482 = math.rsqrt %481 : vector<1x256xf32>
    %483 = arith.mulf %467, %482 : vector<1x256xf32>
    %484 = vector.broadcast %483 : vector<1x256xf32> to vector<2x256xf32>
    %485 = arith.mulf %474, %484 : vector<2x256xf32>
    %486 = vector.broadcast %468 : vector<1x256xf32> to vector<2x256xf32>
    %487 = arith.addf %485, %486 : vector<2x256xf32>
    %cst_413 = arith.constant 2.000000e-01 : f32
    %488 = vector.broadcast %cst_413 : f32 to vector<2x256xf32>
    %489 = arith.mulf %488, %487 : vector<2x256xf32>
    %490 = arith.maximumf %487, %489 : vector<2x256xf32>
    %c0_414 = arith.constant 0 : index
    %c0_415 = arith.constant 0 : index
    %491 = vector.load %arg17[%c0_414, %c0_415] : memref<2x256xf32, #tpu.memory_space<vmem>>, vector<2x256xf32>
    tpu.vector_store %arg17[%c0_414, %c0_415], %490 {strides = array<i32>} : memref<2x256xf32, #tpu.memory_space<vmem>>, vector<2x256xf32>,
    return
  }
  func.func @transform_0(%arg0: i32) -> (i32, i32) {
    %c0_i32 = arith.constant 0 : i32
    %c0_i32_0 = arith.constant 0 : i32
    %c0_i32_1 = arith.constant 0 : i32
    return %c0_i32, %c0_i32_0 : i32, i32
  }
  func.func @transform_1(%arg0: i32) -> (i32, i32) {
    %c0_i32 = arith.constant 0 : i32
    %c0_i32_0 = arith.constant 0 : i32
    %c0_i32_1 = arith.constant 0 : i32
    return %c0_i32, %c0_i32_0 : i32, i32
  }
  func.func @transform_2(%arg0: i32) -> (i32, i32) {
    %c0_i32 = arith.constant 0 : i32
    %c0_i32_0 = arith.constant 0 : i32
    %c0_i32_1 = arith.constant 0 : i32
    return %c0_i32, %c0_i32_0 : i32, i32
  }
  func.func @transform_3(%arg0: i32) -> (i32, i32) {
    %c0_i32 = arith.constant 0 : i32
    %c0_i32_0 = arith.constant 0 : i32
    %c0_i32_1 = arith.constant 0 : i32
    return %c0_i32, %c0_i32_0 : i32, i32
  }
  func.func @transform_4(%arg0: i32) -> (i32, i32, i32) {
    %c0_i32 = arith.constant 0 : i32
    %c0_i32_0 = arith.constant 0 : i32
    %c0_i32_1 = arith.constant 0 : i32
    %c0_i32_2 = arith.constant 0 : i32
    return %c0_i32, %c0_i32_0, %c0_i32_1 : i32, i32, i32
  }
  func.func @transform_5(%arg0: i32) -> (i32, i32, i32) {
    %c0_i32 = arith.constant 0 : i32
    %c0_i32_0 = arith.constant 0 : i32
    %c0_i32_1 = arith.constant 0 : i32
    %c0_i32_2 = arith.constant 0 : i32
    return %c0_i32, %c0_i32_0, %c0_i32_1 : i32, i32, i32
  }
  func.func @transform_6(%arg0: i32) -> (i32, i32) {
    %c0_i32 = arith.constant 0 : i32
    %c0_i32_0 = arith.constant 0 : i32
    %c0_i32_1 = arith.constant 0 : i32
    return %c0_i32, %c0_i32_0 : i32, i32
  }
  func.func @transform_7(%arg0: i32) -> (i32, i32) {
    %c0_i32 = arith.constant 0 : i32
    %c0_i32_0 = arith.constant 0 : i32
    %c0_i32_1 = arith.constant 0 : i32
    return %c0_i32, %c0_i32_0 : i32, i32
  }
  func.func @transform_8(%arg0: i32) -> (i32, i32, i32) {
    %c0_i32 = arith.constant 0 : i32
    %c0_i32_0 = arith.constant 0 : i32
    %c0_i32_1 = arith.constant 0 : i32
    %c0_i32_2 = arith.constant 0 : i32
    return %c0_i32, %c0_i32_0, %c0_i32_1 : i32, i32, i32
  }
  func.func @transform_9(%arg0: i32) -> (i32, i32) {
    %c0_i32 = arith.constant 0 : i32
    %c0_i32_0 = arith.constant 0 : i32
    %c0_i32_1 = arith.constant 0 : i32
    return %c0_i32, %c0_i32_0 : i32, i32
  }
  func.func @transform_10(%arg0: i32) -> (i32, i32) {
    %c0_i32 = arith.constant 0 : i32
    %c0_i32_0 = arith.constant 0 : i32
    %c0_i32_1 = arith.constant 0 : i32
    return %c0_i32, %c0_i32_0 : i32, i32
  }
  func.func @transform_11(%arg0: i32) -> (i32, i32, i32) {
    %c0_i32 = arith.constant 0 : i32
    %c0_i32_0 = arith.constant 0 : i32
    %c0_i32_1 = arith.constant 0 : i32
    %c0_i32_2 = arith.constant 0 : i32
    return %c0_i32, %c0_i32_0, %c0_i32_1 : i32, i32, i32
  }
  func.func @transform_12(%arg0: i32) -> (i32, i32) {
    %c0_i32 = arith.constant 0 : i32
    %c0_i32_0 = arith.constant 0 : i32
    %c0_i32_1 = arith.constant 0 : i32
    return %c0_i32, %c0_i32_0 : i32, i32
  }
  func.func @transform_13(%arg0: i32) -> (i32, i32) {
    %c0_i32 = arith.constant 0 : i32
    %c0_i32_0 = arith.constant 0 : i32
    %c0_i32_1 = arith.constant 0 : i32
    return %c0_i32, %c0_i32_0 : i32, i32
  }
  func.func @transform_16(%arg0: i32) -> (i32, i32) {
    %c0_i32 = arith.constant 0 : i32
    %c0_i32_0 = arith.constant 0 : i32
    %c0_i32_1 = arith.constant 0 : i32
    return %c0_i32, %c0_i32_0 : i32, i32
  }
}

</mosaic_0001>

<bundles_post_ra>
// kernel: frequency_analysis.1
= control target key start
LH: loop header
LB: loop body
LE: loop exit
PB: predicated region body
PF: predicated region fallthrough
CT: control target
= control target key end

     0   :  { %s15599_s0 = inlined_call_operand.vmem [shape: bf16[128,32], index: 0, kind: input, shape index: {}]   ;;  %s15600_s1 = inlined_call_operand.vmem [shape: bf16[32,64], index: 1, kind: input, shape index: {}]   ;;  %s15601_s2 = inlined_call_operand.vmem [shape: f32[1,64], index: 2, kind: input, shape index: {}]   ;;  %s15602_s3 = inlined_call_operand.vmem [shape: f32[1,64], index: 3, kind: input, shape index: {}]   ;;  %s15603_s4 = inlined_call_operand.vmem [shape: bf16[16,32,128], index: 4, kind: input, shape index: {}]   ;;  %s15604_s5 = inlined_call_operand.vmem [shape: bf16[16,64,128], index: 5, kind: input, shape index: {}]   ;;  %s15605_s6 = inlined_call_operand.vmem [shape: f32[1,128], index: 6, kind: input, shape index: {}]   ;;  %s15606_s7 = inlined_call_operand.vmem [shape: f32[1,128], index: 7, kind: input, shape index: {}]   ;;  %s15607_s8 = inlined_call_operand.vmem [shape: bf16[16,8,32], index: 8, kind: input, shape index: {}]   ;;  %s15608_s9 = inlined_call_operand.vmem [shape: f32[1,256], index: 9, kind: input, shape index: {}]   ;;  %s15609_s10 = inlined_call_operand.vmem [shape: f32[1,256], index: 10, kind: input, shape index: {}]   ;;  %s15610_s11 = inlined_call_operand.vmem [shape: bf16[16,2,8], index: 11, kind: input, shape index: {}]   ;;  %s15611_s12 = inlined_call_operand.vmem [shape: f32[1,256], index: 12, kind: input, shape index: {}]   ;;  %s15612_s13 = inlined_call_operand.vmem [shape: f32[1,256], index: 13, kind: input, shape index: {}]   ;;  %s15613_s14 = inlined_call_operand.hbm [shape: bf16[16,128,256], index: 14, kind: input, shape index: {}]   ;;  %s15614_s15 = inlined_call_operand.vmem [shape: bf16[16,256,256], index: 15, kind: input, shape index: {}]   ;;  %s15615_s16 = inlined_call_operand.vmem [shape: f32[2,256], index: 16, kind: output, shape index: {}]  }
   0x1   :  { %15617 = sst [smem:[#allocation10_spill]] %s15599_s0 }
   0x2   :  { %15618 = sst [smem:[#allocation11_spill]] %s15615_s16 }
   0x3   :  { %s54_s21 = sld [smem:[#allocation0]]   ;;  %s13068_s22 = smov [#allocation2]  }
   0x4   :  { %s62_s23 = sshll.u32 %s13068_s22, 4  ;;  %s13069_s24 = smov 256   ;;  %s63_s23 = int_to_ptr.vmem [resolvable:$true] %s62_s23 }
   0x5   :  { %66 = sst [smem:[#allocation6]] %s13069_s24  ;;  %s13070_s25 = smov 2  }
   0x6   :  { %68 = sst [smem:[#allocation6 + $0x1]] %s13069_s24  ;;  %s13071_s26 = smov 64  }
   0x7   :  { %70 = sst [smem:[#allocation6 + $0x2]] %s13070_s25  ;;  %s13072_s28 = smov 128  }
   0x8   :  { %72 = sst [smem:[#allocation6 + $0x3]] %s13071_s26  ;;  %s13073_s30 = smov 4  }
   0x9   :  { %s11295_s27 = sshll.u32 %s54_s21, 26  ;;  %74 = sst [smem:[#allocation6 + $0x4]] %s13072_s28 }
   0xa   :  { %s11296_s29 = sadd.s32 134217728, %s11295_s27  ;;  %76 = sst [smem:[#allocation6 + $0x5]] %s13070_s25 }
   0xb   :  { %78 = sst [smem:[#allocation6 + $0x6]] %s13072_s28  ;;  %s13074_s0 = smov [#allocation4]  }
   0xc   :  { %80 = sst [smem:[#allocation6 + $0x7]] %s13071_s26  ;;  %s13075_s17 = smov [#allocation5]  }
   0xd   :  { %82 = sst [smem:[#allocation6 + $0x8]] %s13073_s30  ;;  %s13168_s20 = smov [#allocation3]  }
   0xe   :  { %84 = dma.general %s15613_s14, 32768, %s63_s23, %s13074_s0, %s13075_s17, [#allocation6], %s11296_s29, 0  }
   0xf   :  { %s15619_s21 = smov %s15614_s15  ;;  %s13175_s16 = smov 0  }
  0x10   :  { %s13177_s25 = smov 0  }
  0x11 LB: > { %v106_v0 = vld [vmem:[%s13058_s21] sm:$0xf]  ;;  %v108_v1 = vld [vmem:[%s13058_s21 + $0x4] sm:$0xf]  ;;  %v110_v2 = vld [vmem:[%s13058_s21 + $0x10] sm:$0xf]  ;;  %s13066_s25 = sphi %s13177_s25, %s102_s25   ;;  %s13062_s16 = sphi %s13175_s16, %s15620_s16   ;;  %s13058_s21 = sphi %s15619_s21, %s1135_s21   ;;  %s13054_s20 = sphi %s13168_s20, %s1136_s20  }
  0x12   : > { %107 = vst [vmem:[%s13054_s20] sm:$0xf] %v106_v0  ;;  %109 = vst [vmem:[%s13054_s20 + $0x8] sm:$0xf] %v108_v1  ;;  %v112_v3 = vld [vmem:[%s13058_s21 + $0x14] sm:$0xf]  ;;  %s1130_s14 = sadd.s32 1, %s13062_s16 }
  0x13   : > { %111 = vst [vmem:[%s13054_s20 + $0x10] sm:$0xf] %v110_v2  ;;  %v114_v4 = vld [vmem:[%s13058_s21 + $0x20] sm:$0xf]  ;;  %v116_v5 = vld [vmem:[%s13058_s21 + $0x24] sm:$0xf] }
  0x14   : > { %113 = vst [vmem:[%s13054_s20 + $0x18] sm:$0xf] %v112_v3  ;;  %115 = vst [vmem:[%s13054_s20 + $0x20] sm:$0xf] %v114_v4  ;;  %v118_v6 = vld [vmem:[%s13058_s21 + $0x30] sm:$0xf] }
  0x15   : > { %117 = vst [vmem:[%s13054_s20 + $0x28] sm:$0xf] %v116_v5  ;;  %v120_v7 = vld [vmem:[%s13058_s21 + $0x34] sm:$0xf]  ;;  %v122_v8 = vld [vmem:[%s13058_s21 + $0x40] sm:$0xf] }
  0x16   : > { %119 = vst [vmem:[%s13054_s20 + $0x30] sm:$0xf] %v118_v6  ;;  %121 = vst [vmem:[%s13054_s20 + $0x38] sm:$0xf] %v120_v7  ;;  %v124_v9 = vld [vmem:[%s13058_s21 + $0x44] sm:$0xf] }
  0x17   : > { %123 = vst [vmem:[%s13054_s20 + $0x40] sm:$0xf] %v122_v8  ;;  %v126_v10 = vld [vmem:[%s13058_s21 + $0x50] sm:$0xf]  ;;  %v128_v11 = vld [vmem:[%s13058_s21 + $0x54] sm:$0xf] }
  0x18   : > { %125 = vst [vmem:[%s13054_s20 + $0x48] sm:$0xf] %v124_v9  ;;  %127 = vst [vmem:[%s13054_s20 + $0x50] sm:$0xf] %v126_v10  ;;  %v130_v12 = vld [vmem:[%s13058_s21 + $0x60] sm:$0xf] }
  0x19   : > { %129 = vst [vmem:[%s13054_s20 + $0x58] sm:$0xf] %v128_v11  ;;  %v132_v13 = vld [vmem:[%s13058_s21 + $0x64] sm:$0xf]  ;;  %v134_v14 = vld [vmem:[%s13058_s21 + $0x70] sm:$0xf] }
  0x1a   : > { %131 = vst [vmem:[%s13054_s20 + $0x60] sm:$0xf] %v130_v12  ;;  %133 = vst [vmem:[%s13054_s20 + $0x68] sm:$0xf] %v132_v13  ;;  %v136_v15 = vld [vmem:[%s13058_s21 + $0x74] sm:$0xf] }
  0x1b   : > { %135 = vst [vmem:[%s13054_s20 + $0x70] sm:$0xf] %v134_v14  ;;  %v138_v16 = vld [vmem:[%s13058_s21 + $0x80] sm:$0xf]  ;;  %v140_v17 = vld [vmem:[%s13058_s21 + $0x84] sm:$0xf] }
  0x1c   : > { %137 = vst [vmem:[%s13054_s20 + $0x78] sm:$0xf] %v136_v15  ;;  %139 = vst [vmem:[%s13054_s20 + $0x80] sm:$0xf] %v138_v16  ;;  %v142_v18 = vld [vmem:[%s13058_s21 + $0x90] sm:$0xf] }
  0x1d   : > { %141 = vst [vmem:[%s13054_s20 + $0x88] sm:$0xf] %v140_v17  ;;  %v144_v19 = vld [vmem:[%s13058_s21 + $0x94] sm:$0xf]  ;;  %v146_v20 = vld [vmem:[%s13058_s21 + $0xa0] sm:$0xf] }
  0x1e   : > { %143 = vst [vmem:[%s13054_s20 + $0x90] sm:$0xf] %v142_v18  ;;  %145 = vst [vmem:[%s13054_s20 + $0x98] sm:$0xf] %v144_v19  ;;  %v148_v21 = vld [vmem:[%s13058_s21 + $0xa4] sm:$0xf] }
  0x1f   : > { %147 = vst [vmem:[%s13054_s20 + $0xa0] sm:$0xf] %v146_v20  ;;  %v150_v22 = vld [vmem:[%s13058_s21 + $0xb0] sm:$0xf]  ;;  %v152_v23 = vld [vmem:[%s13058_s21 + $0xb4] sm:$0xf] }
  0x20   : > { %149 = vst [vmem:[%s13054_s20 + $0xa8] sm:$0xf] %v148_v21  ;;  %151 = vst [vmem:[%s13054_s20 + $0xb0] sm:$0xf] %v150_v22  ;;  %v154_v24 = vld [vmem:[%s13058_s21 + $0xc0] sm:$0xf] }
  0x21   : > { %153 = vst [vmem:[%s13054_s20 + $0xb8] sm:$0xf] %v152_v23  ;;  %v156_v25 = vld [vmem:[%s13058_s21 + $0xc4] sm:$0xf]  ;;  %v158_v26 = vld [vmem:[%s13058_s21 + $0xd0] sm:$0xf] }
  0x22   : > { %155 = vst [vmem:[%s13054_s20 + $0xc0] sm:$0xf] %v154_v24  ;;  %157 = vst [vmem:[%s13054_s20 + $0xc8] sm:$0xf] %v156_v25  ;;  %v160_v27 = vld [vmem:[%s13058_s21 + $0xd4] sm:$0xf] }
  0x23   : > { %159 = vst [vmem:[%s13054_s20 + $0xd0] sm:$0xf] %v158_v26  ;;  %v162_v28 = vld [vmem:[%s13058_s21 + $0xe0] sm:$0xf]  ;;  %v164_v29 = vld [vmem:[%s13058_s21 + $0xe4] sm:$0xf] }
  0x24   : > { %161 = vst [vmem:[%s13054_s20 + $0xd8] sm:$0xf] %v160_v27  ;;  %163 = vst [vmem:[%s13054_s20 + $0xe0] sm:$0xf] %v162_v28  ;;  %v166_v30 = vld [vmem:[%s13058_s21 + $0xf0] sm:$0xf] }
  0x25   : > { %165 = vst [vmem:[%s13054_s20 + $0xe8] sm:$0xf] %v164_v29  ;;  %v168_v31 = vld [vmem:[%s13058_s21 + $0xf4] sm:$0xf]  ;;  %v170_v32 = vld [vmem:[%s13058_s21 + $0x100] sm:$0xf] }
  0x26   : > { %167 = vst [vmem:[%s13054_s20 + $0xf0] sm:$0xf] %v166_v30  ;;  %169 = vst [vmem:[%s13054_s20 + $0xf8] sm:$0xf] %v168_v31  ;;  %v172_v33 = vld [vmem:[%s13058_s21 + $0x104] sm:$0xf] }
  0x27   : > { %171 = vst [vmem:[%s13054_s20 + $0x100] sm:$0xf] %v170_v32  ;;  %v174_v34 = vld [vmem:[%s13058_s21 + $0x110] sm:$0xf]  ;;  %v176_v35 = vld [vmem:[%s13058_s21 + $0x114] sm:$0xf] }
  0x28   : > { %173 = vst [vmem:[%s13054_s20 + $0x108] sm:$0xf] %v172_v33  ;;  %175 = vst [vmem:[%s13054_s20 + $0x110] sm:$0xf] %v174_v34  ;;  %v178_v36 = vld [vmem:[%s13058_s21 + $0x120] sm:$0xf] }
  0x29   : > { %177 = vst [vmem:[%s13054_s20 + $0x118] sm:$0xf] %v176_v35  ;;  %v180_v37 = vld [vmem:[%s13058_s21 + $0x124] sm:$0xf]  ;;  %v182_v38 = vld [vmem:[%s13058_s21 + $0x130] sm:$0xf] }
  0x2a   : > { %179 = vst [vmem:[%s13054_s20 + $0x120] sm:$0xf] %v178_v36  ;;  %181 = vst [vmem:[%s13054_s20 + $0x128] sm:$0xf] %v180_v37  ;;  %v184_v39 = vld [vmem:[%s13058_s21 + $0x134] sm:$0xf] }
  0x2b   : > { %183 = vst [vmem:[%s13054_s20 + $0x130] sm:$0xf] %v182_v38  ;;  %v186_v40 = vld [vmem:[%s13058_s21 + $0x140] sm:$0xf]  ;;  %v188_v41 = vld [vmem:[%s13058_s21 + $0x144] sm:$0xf] }
  0x2c   : > { %185 = vst [vmem:[%s13054_s20 + $0x138] sm:$0xf] %v184_v39  ;;  %187 = vst [vmem:[%s13054_s20 + $0x140] sm:$0xf] %v186_v40  ;;  %v190_v42 = vld [vmem:[%s13058_s21 + $0x150] sm:$0xf] }
  0x2d   : > { %189 = vst [vmem:[%s13054_s20 + $0x148] sm:$0xf] %v188_v41  ;;  %v192_v43 = vld [vmem:[%s13058_s21 + $0x154] sm:$0xf]  ;;  %v194_v44 = vld [vmem:[%s13058_s21 + $0x160] sm:$0xf] }
  0x2e   : > { %191 = vst [vmem:[%s13054_s20 + $0x150] sm:$0xf] %v190_v42  ;;  %193 = vst [vmem:[%s13054_s20 + $0x158] sm:$0xf] %v192_v43  ;;  %v196_v45 = vld [vmem:[%s13058_s21 + $0x164] sm:$0xf] }
  0x2f   : > { %195 = vst [vmem:[%s13054_s20 + $0x160] sm:$0xf] %v194_v44  ;;  %v198_v46 = vld [vmem:[%s13058_s21 + $0x170] sm:$0xf]  ;;  %v200_v47 = vld [vmem:[%s13058_s21 + $0x174] sm:$0xf] }
  0x30   : > { %197 = vst [vmem:[%s13054_s20 + $0x168] sm:$0xf] %v196_v45  ;;  %199 = vst [vmem:[%s13054_s20 + $0x170] sm:$0xf] %v198_v46  ;;  %v202_v48 = vld [vmem:[%s13058_s21 + $0x180] sm:$0xf] }
  0x31   : > { %201 = vst [vmem:[%s13054_s20 + $0x178] sm:$0xf] %v200_v47  ;;  %v204_v49 = vld [vmem:[%s13058_s21 + $0x184] sm:$0xf]  ;;  %v206_v50 = vld [vmem:[%s13058_s21 + $0x190] sm:$0xf] }
  0x32   : > { %203 = vst [vmem:[%s13054_s20 + $0x180] sm:$0xf] %v202_v48  ;;  %205 = vst [vmem:[%s13054_s20 + $0x188] sm:$0xf] %v204_v49  ;;  %v208_v51 = vld [vmem:[%s13058_s21 + $0x194] sm:$0xf] }
  0x33   : > { %207 = vst [vmem:[%s13054_s20 + $0x190] sm:$0xf] %v206_v50  ;;  %v210_v52 = vld [vmem:[%s13058_s21 + $0x1a0] sm:$0xf]  ;;  %v212_v53 = vld [vmem:[%s13058_s21 + $0x1a4] sm:$0xf] }
  0x34   : > { %209 = vst [vmem:[%s13054_s20 + $0x198] sm:$0xf] %v208_v51  ;;  %211 = vst [vmem:[%s13054_s20 + $0x1a0] sm:$0xf] %v210_v52  ;;  %v214_v54 = vld [vmem:[%s13058_s21 + $0x1b0] sm:$0xf] }
  0x35   : > { %213 = vst [vmem:[%s13054_s20 + $0x1a8] sm:$0xf] %v212_v53  ;;  %v216_v55 = vld [vmem:[%s13058_s21 + $0x1b4] sm:$0xf]  ;;  %v218_v56 = vld [vmem:[%s13058_s21 + $0x1c0] sm:$0xf] }
  0x36   : > { %215 = vst [vmem:[%s13054_s20 + $0x1b0] sm:$0xf] %v214_v54  ;;  %217 = vst [vmem:[%s13054_s20 + $0x1b8] sm:$0xf] %v216_v55  ;;  %v220_v57 = vld [vmem:[%s13058_s21 + $0x1c4] sm:$0xf] }
  0x37   : > { %219 = vst [vmem:[%s13054_s20 + $0x1c0] sm:$0xf] %v218_v56  ;;  %v222_v58 = vld [vmem:[%s13058_s21 + $0x1d0] sm:$0xf]  ;;  %v224_v59 = vld [vmem:[%s13058_s21 + $0x1d4] sm:$0xf] }
  0x38   : > { %221 = vst [vmem:[%s13054_s20 + $0x1c8] sm:$0xf] %v220_v57  ;;  %223 = vst [vmem:[%s13054_s20 + $0x1d0] sm:$0xf] %v222_v58  ;;  %v226_v60 = vld [vmem:[%s13058_s21 + $0x1e0] sm:$0xf] }
  0x39   : > { %225 = vst [vmem:[%s13054_s20 + $0x1d8] sm:$0xf] %v224_v59  ;;  %v228_v61 = vld [vmem:[%s13058_s21 + $0x1e4] sm:$0xf]  ;;  %v230_v62 = vld [vmem:[%s13058_s21 + $0x1f0] sm:$0xf] }
  0x3a   : > { %227 = vst [vmem:[%s13054_s20 + $0x1e0] sm:$0xf] %v226_v60  ;;  %229 = vst [vmem:[%s13054_s20 + $0x1e8] sm:$0xf] %v228_v61  ;;  %v232_v63 = vld [vmem:[%s13058_s21 + $0x1f4] sm:$0xf] }
  0x3b   : > { %231 = vst [vmem:[%s13054_s20 + $0x1f0] sm:$0xf] %v230_v62  ;;  %v234_v0 = vld [vmem:[%s13058_s21 + $0x200] sm:$0xf]  ;;  %v236_v1 = vld [vmem:[%s13058_s21 + $0x204] sm:$0xf] }
  0x3c   : > { %233 = vst [vmem:[%s13054_s20 + $0x1f8] sm:$0xf] %v232_v63  ;;  %235 = vst [vmem:[%s13054_s20 + $0x200] sm:$0xf] %v234_v0  ;;  %v238_v2 = vld [vmem:[%s13058_s21 + $0x210] sm:$0xf] }
  0x3d   : > { %237 = vst [vmem:[%s13054_s20 + $0x208] sm:$0xf] %v236_v1  ;;  %v240_v3 = vld [vmem:[%s13058_s21 + $0x214] sm:$0xf]  ;;  %v242_v4 = vld [vmem:[%s13058_s21 + $0x220] sm:$0xf] }
  0x3e   : > { %239 = vst [vmem:[%s13054_s20 + $0x210] sm:$0xf] %v238_v2  ;;  %241 = vst [vmem:[%s13054_s20 + $0x218] sm:$0xf] %v240_v3  ;;  %v244_v5 = vld [vmem:[%s13058_s21 + $0x224] sm:$0xf] }
  0x3f   : > { %243 = vst [vmem:[%s13054_s20 + $0x220] sm:$0xf] %v242_v4  ;;  %v246_v6 = vld [vmem:[%s13058_s21 + $0x230] sm:$0xf]  ;;  %v248_v7 = vld [vmem:[%s13058_s21 + $0x234] sm:$0xf] }
  0x40   : > { %245 = vst [vmem:[%s13054_s20 + $0x228] sm:$0xf] %v244_v5  ;;  %247 = vst [vmem:[%s13054_s20 + $0x230] sm:$0xf] %v246_v6  ;;  %v250_v8 = vld [vmem:[%s13058_s21 + $0x240] sm:$0xf] }
  0x41   : > { %249 = vst [vmem:[%s13054_s20 + $0x238] sm:$0xf] %v248_v7  ;;  %v252_v9 = vld [vmem:[%s13058_s21 + $0x244] sm:$0xf]  ;;  %v254_v10 = vld [vmem:[%s13058_s21 + $0x250] sm:$0xf] }
  0x42   : > { %251 = vst [vmem:[%s13054_s20 + $0x240] sm:$0xf] %v250_v8  ;;  %253 = vst [vmem:[%s13054_s20 + $0x248] sm:$0xf] %v252_v9  ;;  %v256_v11 = vld [vmem:[%s13058_s21 + $0x254] sm:$0xf] }
  0x43   : > { %255 = vst [vmem:[%s13054_s20 + $0x250] sm:$0xf] %v254_v10  ;;  %v258_v12 = vld [vmem:[%s13058_s21 + $0x260] sm:$0xf]  ;;  %v260_v13 = vld [vmem:[%s13058_s21 + $0x264] sm:$0xf] }
  0x44   : > { %257 = vst [vmem:[%s13054_s20 + $0x258] sm:$0xf] %v256_v11  ;;  %259 = vst [vmem:[%s13054_s20 + $0x260] sm:$0xf] %v258_v12  ;;  %v262_v14 = vld [vmem:[%s13058_s21 + $0x270] sm:$0xf] }
  0x45   : > { %261 = vst [vmem:[%s13054_s20 + $0x268] sm:$0xf] %v260_v13  ;;  %v264_v15 = vld [vmem:[%s13058_s21 + $0x274] sm:$0xf]  ;;  %v266_v16 = vld [vmem:[%s13058_s21 + $0x280] sm:$0xf] }
  0x46   : > { %263 = vst [vmem:[%s13054_s20 + $0x270] sm:$0xf] %v262_v14  ;;  %265 = vst [vmem:[%s13054_s20 + $0x278] sm:$0xf] %v264_v15  ;;  %v268_v17 = vld [vmem:[%s13058_s21 + $0x284] sm:$0xf] }
  0x47   : > { %267 = vst [vmem:[%s13054_s20 + $0x280] sm:$0xf] %v266_v16  ;;  %v270_v18 = vld [vmem:[%s13058_s21 + $0x290] sm:$0xf]  ;;  %v272_v19 = vld [vmem:[%s13058_s21 + $0x294] sm:$0xf] }
  0x48   : > { %269 = vst [vmem:[%s13054_s20 + $0x288] sm:$0xf] %v268_v17  ;;  %271 = vst [vmem:[%s13054_s20 + $0x290] sm:$0xf] %v270_v18  ;;  %v274_v20 = vld [vmem:[%s13058_s21 + $0x2a0] sm:$0xf] }
  0x49   : > { %273 = vst [vmem:[%s13054_s20 + $0x298] sm:$0xf] %v272_v19  ;;  %v276_v21 = vld [vmem:[%s13058_s21 + $0x2a4] sm:$0xf]  ;;  %v278_v22 = vld [vmem:[%s13058_s21 + $0x2b0] sm:$0xf] }
  0x4a   : > { %275 = vst [vmem:[%s13054_s20 + $0x2a0] sm:$0xf] %v274_v20  ;;  %277 = vst [vmem:[%s13054_s20 + $0x2a8] sm:$0xf] %v276_v21  ;;  %v280_v23 = vld [vmem:[%s13058_s21 + $0x2b4] sm:$0xf] }
  0x4b   : > { %279 = vst [vmem:[%s13054_s20 + $0x2b0] sm:$0xf] %v278_v22  ;;  %v282_v24 = vld [vmem:[%s13058_s21 + $0x2c0] sm:$0xf]  ;;  %v284_v25 = vld [vmem:[%s13058_s21 + $0x2c4] sm:$0xf] }
  0x4c   : > { %281 = vst [vmem:[%s13054_s20 + $0x2b8] sm:$0xf] %v280_v23  ;;  %283 = vst [vmem:[%s13054_s20 + $0x2c0] sm:$0xf] %v282_v24  ;;  %v286_v26 = vld [vmem:[%s13058_s21 + $0x2d0] sm:$0xf] }
  0x4d   : > { %285 = vst [vmem:[%s13054_s20 + $0x2c8] sm:$0xf] %v284_v25  ;;  %v288_v27 = vld [vmem:[%s13058_s21 + $0x2d4] sm:$0xf]  ;;  %v290_v28 = vld [vmem:[%s13058_s21 + $0x2e0] sm:$0xf] }
  0x4e   : > { %287 = vst [vmem:[%s13054_s20 + $0x2d0] sm:$0xf] %v286_v26  ;;  %289 = vst [vmem:[%s13054_s20 + $0x2d8] sm:$0xf] %v288_v27  ;;  %v292_v29 = vld [vmem:[%s13058_s21 + $0x2e4] sm:$0xf] }
  0x4f   : > { %291 = vst [vmem:[%s13054_s20 + $0x2e0] sm:$0xf] %v290_v28  ;;  %v294_v30 = vld [vmem:[%s13058_s21 + $0x2f0] sm:$0xf]  ;;  %v296_v31 = vld [vmem:[%s13058_s21 + $0x2f4] sm:$0xf] }
  0x50   : > { %293 = vst [vmem:[%s13054_s20 + $0x2e8] sm:$0xf] %v292_v29  ;;  %295 = vst [vmem:[%s13054_s20 + $0x2f0] sm:$0xf] %v294_v30  ;;  %v298_v32 = vld [vmem:[%s13058_s21 + $0x300] sm:$0xf] }
  0x51   : > { %297 = vst [vmem:[%s13054_s20 + $0x2f8] sm:$0xf] %v296_v31  ;;  %v300_v33 = vld [vmem:[%s13058_s21 + $0x304] sm:$0xf]  ;;  %v302_v34 = vld [vmem:[%s13058_s21 + $0x310] sm:$0xf] }
  0x52   : > { %299 = vst [vmem:[%s13054_s20 + $0x300] sm:$0xf] %v298_v32  ;;  %301 = vst [vmem:[%s13054_s20 + $0x308] sm:$0xf] %v300_v33  ;;  %v304_v35 = vld [vmem:[%s13058_s21 + $0x314] sm:$0xf] }
  0x53   : > { %303 = vst [vmem:[%s13054_s20 + $0x310] sm:$0xf] %v302_v34  ;;  %v306_v36 = vld [vmem:[%s13058_s21 + $0x320] sm:$0xf]  ;;  %v308_v37 = vld [vmem:[%s13058_s21 + $0x324] sm:$0xf] }
  0x54   : > { %305 = vst [vmem:[%s13054_s20 + $0x318] sm:$0xf] %v304_v35  ;;  %307 = vst [vmem:[%s13054_s20 + $0x320] sm:$0xf] %v306_v36  ;;  %v310_v38 = vld [vmem:[%s13058_s21 + $0x330] sm:$0xf] }
  0x55   : > { %309 = vst [vmem:[%s13054_s20 + $0x328] sm:$0xf] %v308_v37  ;;  %v312_v39 = vld [vmem:[%s13058_s21 + $0x334] sm:$0xf]  ;;  %v314_v40 = vld [vmem:[%s13058_s21 + $0x340] sm:$0xf] }
  0x56   : > { %311 = vst [vmem:[%s13054_s20 + $0x330] sm:$0xf] %v310_v38  ;;  %313 = vst [vmem:[%s13054_s20 + $0x338] sm:$0xf] %v312_v39  ;;  %v316_v41 = vld [vmem:[%s13058_s21 + $0x344] sm:$0xf] }
  0x57   : > { %315 = vst [vmem:[%s13054_s20 + $0x340] sm:$0xf] %v314_v40  ;;  %v318_v42 = vld [vmem:[%s13058_s21 + $0x350] sm:$0xf]  ;;  %v320_v43 = vld [vmem:[%s13058_s21 + $0x354] sm:$0xf] }
  0x58   : > { %317 = vst [vmem:[%s13054_s20 + $0x348] sm:$0xf] %v316_v41  ;;  %319 = vst [vmem:[%s13054_s20 + $0x350] sm:$0xf] %v318_v42  ;;  %v322_v44 = vld [vmem:[%s13058_s21 + $0x360] sm:$0xf] }
  0x59   : > { %321 = vst [vmem:[%s13054_s20 + $0x358] sm:$0xf] %v320_v43  ;;  %v324_v45 = vld [vmem:[%s13058_s21 + $0x364] sm:$0xf]  ;;  %v326_v46 = vld [vmem:[%s13058_s21 + $0x370] sm:$0xf] }
  0x5a   : > { %323 = vst [vmem:[%s13054_s20 + $0x360] sm:$0xf] %v322_v44  ;;  %325 = vst [vmem:[%s13054_s20 + $0x368] sm:$0xf] %v324_v45  ;;  %v328_v47 = vld [vmem:[%s13058_s21 + $0x374] sm:$0xf] }
  0x5b   : > { %327 = vst [vmem:[%s13054_s20 + $0x370] sm:$0xf] %v326_v46  ;;  %v330_v48 = vld [vmem:[%s13058_s21 + $0x380] sm:$0xf]  ;;  %v332_v49 = vld [vmem:[%s13058_s21 + $0x384] sm:$0xf] }
  0x5c   : > { %329 = vst [vmem:[%s13054_s20 + $0x378] sm:$0xf] %v328_v47  ;;  %331 = vst [vmem:[%s13054_s20 + $0x380] sm:$0xf] %v330_v48  ;;  %v334_v50 = vld [vmem:[%s13058_s21 + $0x390] sm:$0xf] }
  0x5d   : > { %333 = vst [vmem:[%s13054_s20 + $0x388] sm:$0xf] %v332_v49  ;;  %v336_v51 = vld [vmem:[%s13058_s21 + $0x394] sm:$0xf]  ;;  %v338_v52 = vld [vmem:[%s13058_s21 + $0x3a0] sm:$0xf] }
  0x5e   : > { %335 = vst [vmem:[%s13054_s20 + $0x390] sm:$0xf] %v334_v50  ;;  %337 = vst [vmem:[%s13054_s20 + $0x398] sm:$0xf] %v336_v51  ;;  %v340_v53 = vld [vmem:[%s13058_s21 + $0x3a4] sm:$0xf] }
  0x5f   : > { %339 = vst [vmem:[%s13054_s20 + $0x3a0] sm:$0xf] %v338_v52  ;;  %v342_v54 = vld [vmem:[%s13058_s21 + $0x3b0] sm:$0xf]  ;;  %v344_v55 = vld [vmem:[%s13058_s21 + $0x3b4] sm:$0xf] }
  0x60   : > { %341 = vst [vmem:[%s13054_s20 + $0x3a8] sm:$0xf] %v340_v53  ;;  %343 = vst [vmem:[%s13054_s20 + $0x3b0] sm:$0xf] %v342_v54  ;;  %v346_v56 = vld [vmem:[%s13058_s21 + $0x3c0] sm:$0xf] }
  0x61   : > { %345 = vst [vmem:[%s13054_s20 + $0x3b8] sm:$0xf] %v344_v55  ;;  %v348_v57 = vld [vmem:[%s13058_s21 + $0x3c4] sm:$0xf]  ;;  %v350_v58 = vld [vmem:[%s13058_s21 + $0x3d0] sm:$0xf] }
  0x62   : > { %347 = vst [vmem:[%s13054_s20 + $0x3c0] sm:$0xf] %v346_v56  ;;  %349 = vst [vmem:[%s13054_s20 + $0x3c8] sm:$0xf] %v348_v57  ;;  %v352_v59 = vld [vmem:[%s13058_s21 + $0x3d4] sm:$0xf] }
  0x63   : > { %351 = vst [vmem:[%s13054_s20 + $0x3d0] sm:$0xf] %v350_v58  ;;  %v354_v60 = vld [vmem:[%s13058_s21 + $0x3e0] sm:$0xf]  ;;  %v356_v61 = vld [vmem:[%s13058_s21 + $0x3e4] sm:$0xf] }
  0x64   : > { %353 = vst [vmem:[%s13054_s20 + $0x3d8] sm:$0xf] %v352_v59  ;;  %355 = vst [vmem:[%s13054_s20 + $0x3e0] sm:$0xf] %v354_v60  ;;  %v358_v62 = vld [vmem:[%s13058_s21 + $0x3f0] sm:$0xf] }
  0x65   : > { %357 = vst [vmem:[%s13054_s20 + $0x3e8] sm:$0xf] %v356_v61  ;;  %v360_v63 = vld [vmem:[%s13058_s21 + $0x3f4] sm:$0xf]  ;;  %v362_v0 = vld [vmem:[%s13058_s21 + $0x400] sm:$0xf] }
  0x66   : > { %359 = vst [vmem:[%s13054_s20 + $0x3f0] sm:$0xf] %v358_v62  ;;  %361 = vst [vmem:[%s13054_s20 + $0x3f8] sm:$0xf] %v360_v63  ;;  %v364_v1 = vld [vmem:[%s13058_s21 + $0x404] sm:$0xf] }
  0x67   : > { %363 = vst [vmem:[%s13054_s20 + $0x400] sm:$0xf] %v362_v0  ;;  %v366_v2 = vld [vmem:[%s13058_s21 + $0x410] sm:$0xf]  ;;  %v368_v3 = vld [vmem:[%s13058_s21 + $0x414] sm:$0xf] }
  0x68   : > { %365 = vst [vmem:[%s13054_s20 + $0x408] sm:$0xf] %v364_v1  ;;  %367 = vst [vmem:[%s13054_s20 + $0x410] sm:$0xf] %v366_v2  ;;  %v370_v4 = vld [vmem:[%s13058_s21 + $0x420] sm:$0xf] }
  0x69   : > { %369 = vst [vmem:[%s13054_s20 + $0x418] sm:$0xf] %v368_v3  ;;  %v372_v5 = vld [vmem:[%s13058_s21 + $0x424] sm:$0xf]  ;;  %v374_v6 = vld [vmem:[%s13058_s21 + $0x430] sm:$0xf] }
  0x6a   : > { %371 = vst [vmem:[%s13054_s20 + $0x420] sm:$0xf] %v370_v4  ;;  %373 = vst [vmem:[%s13054_s20 + $0x428] sm:$0xf] %v372_v5  ;;  %v376_v7 = vld [vmem:[%s13058_s21 + $0x434] sm:$0xf] }
  0x6b   : > { %375 = vst [vmem:[%s13054_s20 + $0x430] sm:$0xf] %v374_v6  ;;  %v378_v8 = vld [vmem:[%s13058_s21 + $0x440] sm:$0xf]  ;;  %v380_v9 = vld [vmem:[%s13058_s21 + $0x444] sm:$0xf] }
  0x6c   : > { %377 = vst [vmem:[%s13054_s20 + $0x438] sm:$0xf] %v376_v7  ;;  %379 = vst [vmem:[%s13054_s20 + $0x440] sm:$0xf] %v378_v8  ;;  %v382_v10 = vld [vmem:[%s13058_s21 + $0x450] sm:$0xf] }
  0x6d   : > { %381 = vst [vmem:[%s13054_s20 + $0x448] sm:$0xf] %v380_v9  ;;  %v384_v11 = vld [vmem:[%s13058_s21 + $0x454] sm:$0xf]  ;;  %v386_v12 = vld [vmem:[%s13058_s21 + $0x460] sm:$0xf] }
  0x6e   : > { %383 = vst [vmem:[%s13054_s20 + $0x450] sm:$0xf] %v382_v10  ;;  %385 = vst [vmem:[%s13054_s20 + $0x458] sm:$0xf] %v384_v11  ;;  %v388_v13 = vld [vmem:[%s13058_s21 + $0x464] sm:$0xf] }
  0x6f   : > { %387 = vst [vmem:[%s13054_s20 + $0x460] sm:$0xf] %v386_v12  ;;  %v390_v14 = vld [vmem:[%s13058_s21 + $0x470] sm:$0xf]  ;;  %v392_v15 = vld [vmem:[%s13058_s21 + $0x474] sm:$0xf] }
  0x70   : > { %389 = vst [vmem:[%s13054_s20 + $0x468] sm:$0xf] %v388_v13  ;;  %391 = vst [vmem:[%s13054_s20 + $0x470] sm:$0xf] %v390_v14  ;;  %v394_v16 = vld [vmem:[%s13058_s21 + $0x480] sm:$0xf] }
  0x71   : > { %393 = vst [vmem:[%s13054_s20 + $0x478] sm:$0xf] %v392_v15  ;;  %v396_v17 = vld [vmem:[%s13058_s21 + $0x484] sm:$0xf]  ;;  %v398_v18 = vld [vmem:[%s13058_s21 + $0x490] sm:$0xf] }
  0x72   : > { %395 = vst [vmem:[%s13054_s20 + $0x480] sm:$0xf] %v394_v16  ;;  %397 = vst [vmem:[%s13054_s20 + $0x488] sm:$0xf] %v396_v17  ;;  %v400_v19 = vld [vmem:[%s13058_s21 + $0x494] sm:$0xf] }
  0x73   : > { %399 = vst [vmem:[%s13054_s20 + $0x490] sm:$0xf] %v398_v18  ;;  %v402_v20 = vld [vmem:[%s13058_s21 + $0x4a0] sm:$0xf]  ;;  %v404_v21 = vld [vmem:[%s13058_s21 + $0x4a4] sm:$0xf] }
  0x74   : > { %401 = vst [vmem:[%s13054_s20 + $0x498] sm:$0xf] %v400_v19  ;;  %403 = vst [vmem:[%s13054_s20 + $0x4a0] sm:$0xf] %v402_v20  ;;  %v406_v22 = vld [vmem:[%s13058_s21 + $0x4b0] sm:$0xf] }
  0x75   : > { %405 = vst [vmem:[%s13054_s20 + $0x4a8] sm:$0xf] %v404_v21  ;;  %v408_v23 = vld [vmem:[%s13058_s21 + $0x4b4] sm:$0xf]  ;;  %v410_v24 = vld [vmem:[%s13058_s21 + $0x4c0] sm:$0xf] }
  0x76   : > { %407 = vst [vmem:[%s13054_s20 + $0x4b0] sm:$0xf] %v406_v22  ;;  %409 = vst [vmem:[%s13054_s20 + $0x4b8] sm:$0xf] %v408_v23  ;;  %v412_v25 = vld [vmem:[%s13058_s21 + $0x4c4] sm:$0xf] }
  0x77   : > { %411 = vst [vmem:[%s13054_s20 + $0x4c0] sm:$0xf] %v410_v24  ;;  %v414_v26 = vld [vmem:[%s13058_s21 + $0x4d0] sm:$0xf]  ;;  %v416_v27 = vld [vmem:[%s13058_s21 + $0x4d4] sm:$0xf] }
  0x78   : > { %413 = vst [vmem:[%s13054_s20 + $0x4c8] sm:$0xf] %v412_v25  ;;  %415 = vst [vmem:[%s13054_s20 + $0x4d0] sm:$0xf] %v414_v26  ;;  %v418_v28 = vld [vmem:[%s13058_s21 + $0x4e0] sm:$0xf] }
  0x79   : > { %417 = vst [vmem:[%s13054_s20 + $0x4d8] sm:$0xf] %v416_v27  ;;  %v420_v29 = vld [vmem:[%s13058_s21 + $0x4e4] sm:$0xf]  ;;  %v422_v30 = vld [vmem:[%s13058_s21 + $0x4f0] sm:$0xf] }
  0x7a   : > { %419 = vst [vmem:[%s13054_s20 + $0x4e0] sm:$0xf] %v418_v28  ;;  %421 = vst [vmem:[%s13054_s20 + $0x4e8] sm:$0xf] %v420_v29  ;;  %v424_v31 = vld [vmem:[%s13058_s21 + $0x4f4] sm:$0xf] }
  0x7b   : > { %423 = vst [vmem:[%s13054_s20 + $0x4f0] sm:$0xf] %v422_v30  ;;  %v426_v32 = vld [vmem:[%s13058_s21 + $0x500] sm:$0xf]  ;;  %v428_v33 = vld [vmem:[%s13058_s21 + $0x504] sm:$0xf] }
  0x7c   : > { %425 = vst [vmem:[%s13054_s20 + $0x4f8] sm:$0xf] %v424_v31  ;;  %427 = vst [vmem:[%s13054_s20 + $0x500] sm:$0xf] %v426_v32  ;;  %v430_v34 = vld [vmem:[%s13058_s21 + $0x510] sm:$0xf] }
  0x7d   : > { %429 = vst [vmem:[%s13054_s20 + $0x508] sm:$0xf] %v428_v33  ;;  %v432_v35 = vld [vmem:[%s13058_s21 + $0x514] sm:$0xf]  ;;  %v434_v36 = vld [vmem:[%s13058_s21 + $0x520] sm:$0xf] }
  0x7e   : > { %431 = vst [vmem:[%s13054_s20 + $0x510] sm:$0xf] %v430_v34  ;;  %433 = vst [vmem:[%s13054_s20 + $0x518] sm:$0xf] %v432_v35  ;;  %v436_v37 = vld [vmem:[%s13058_s21 + $0x524] sm:$0xf] }
  0x7f   : > { %435 = vst [vmem:[%s13054_s20 + $0x520] sm:$0xf] %v434_v36  ;;  %v438_v38 = vld [vmem:[%s13058_s21 + $0x530] sm:$0xf]  ;;  %v440_v39 = vld [vmem:[%s13058_s21 + $0x534] sm:$0xf] }
  0x80   : > { %437 = vst [vmem:[%s13054_s20 + $0x528] sm:$0xf] %v436_v37  ;;  %439 = vst [vmem:[%s13054_s20 + $0x530] sm:$0xf] %v438_v38  ;;  %v442_v40 = vld [vmem:[%s13058_s21 + $0x540] sm:$0xf] }
  0x81   : > { %441 = vst [vmem:[%s13054_s20 + $0x538] sm:$0xf] %v440_v39  ;;  %v444_v41 = vld [vmem:[%s13058_s21 + $0x544] sm:$0xf]  ;;  %v446_v42 = vld [vmem:[%s13058_s21 + $0x550] sm:$0xf] }
  0x82   : > { %443 = vst [vmem:[%s13054_s20 + $0x540] sm:$0xf] %v442_v40  ;;  %445 = vst [vmem:[%s13054_s20 + $0x548] sm:$0xf] %v444_v41  ;;  %v448_v43 = vld [vmem:[%s13058_s21 + $0x554] sm:$0xf] }
  0x83   : > { %447 = vst [vmem:[%s13054_s20 + $0x550] sm:$0xf] %v446_v42  ;;  %v450_v44 = vld [vmem:[%s13058_s21 + $0x560] sm:$0xf]  ;;  %v452_v45 = vld [vmem:[%s13058_s21 + $0x564] sm:$0xf] }
  0x84   : > { %449 = vst [vmem:[%s13054_s20 + $0x558] sm:$0xf] %v448_v43  ;;  %451 = vst [vmem:[%s13054_s20 + $0x560] sm:$0xf] %v450_v44  ;;  %v454_v46 = vld [vmem:[%s13058_s21 + $0x570] sm:$0xf] }
  0x85   : > { %453 = vst [vmem:[%s13054_s20 + $0x568] sm:$0xf] %v452_v45  ;;  %v456_v47 = vld [vmem:[%s13058_s21 + $0x574] sm:$0xf]  ;;  %v458_v48 = vld [vmem:[%s13058_s21 + $0x580] sm:$0xf] }
  0x86   : > { %455 = vst [vmem:[%s13054_s20 + $0x570] sm:$0xf] %v454_v46  ;;  %457 = vst [vmem:[%s13054_s20 + $0x578] sm:$0xf] %v456_v47  ;;  %v460_v49 = vld [vmem:[%s13058_s21 + $0x584] sm:$0xf] }
  0x87   : > { %459 = vst [vmem:[%s13054_s20 + $0x580] sm:$0xf] %v458_v48  ;;  %v462_v50 = vld [vmem:[%s13058_s21 + $0x590] sm:$0xf]  ;;  %v464_v51 = vld [vmem:[%s13058_s21 + $0x594] sm:$0xf] }
  0x88   : > { %461 = vst [vmem:[%s13054_s20 + $0x588] sm:$0xf] %v460_v49  ;;  %463 = vst [vmem:[%s13054_s20 + $0x590] sm:$0xf] %v462_v50  ;;  %v466_v52 = vld [vmem:[%s13058_s21 + $0x5a0] sm:$0xf] }
  0x89   : > { %465 = vst [vmem:[%s13054_s20 + $0x598] sm:$0xf] %v464_v51  ;;  %v468_v53 = vld [vmem:[%s13058_s21 + $0x5a4] sm:$0xf]  ;;  %v470_v54 = vld [vmem:[%s13058_s21 + $0x5b0] sm:$0xf] }
  0x8a   : > { %467 = vst [vmem:[%s13054_s20 + $0x5a0] sm:$0xf] %v466_v52  ;;  %469 = vst [vmem:[%s13054_s20 + $0x5a8] sm:$0xf] %v468_v53  ;;  %v472_v55 = vld [vmem:[%s13058_s21 + $0x5b4] sm:$0xf] }
  0x8b   : > { %471 = vst [vmem:[%s13054_s20 + $0x5b0] sm:$0xf] %v470_v54  ;;  %v474_v56 = vld [vmem:[%s13058_s21 + $0x5c0] sm:$0xf]  ;;  %v476_v57 = vld [vmem:[%s13058_s21 + $0x5c4] sm:$0xf] }
  0x8c   : > { %473 = vst [vmem:[%s13054_s20 + $0x5b8] sm:$0xf] %v472_v55  ;;  %475 = vst [vmem:[%s13054_s20 + $0x5c0] sm:$0xf] %v474_v56  ;;  %v478_v58 = vld [vmem:[%s13058_s21 + $0x5d0] sm:$0xf] }
  0x8d   : > { %477 = vst [vmem:[%s13054_s20 + $0x5c8] sm:$0xf] %v476_v57  ;;  %v480_v59 = vld [vmem:[%s13058_s21 + $0x5d4] sm:$0xf]  ;;  %v482_v60 = vld [vmem:[%s13058_s21 + $0x5e0] sm:$0xf] }
  0x8e   : > { %479 = vst [vmem:[%s13054_s20 + $0x5d0] sm:$0xf] %v478_v58  ;;  %481 = vst [vmem:[%s13054_s20 + $0x5d8] sm:$0xf] %v480_v59  ;;  %v484_v61 = vld [vmem:[%s13058_s21 + $0x5e4] sm:$0xf] }
  0x8f   : > { %483 = vst [vmem:[%s13054_s20 + $0x5e0] sm:$0xf] %v482_v60  ;;  %v486_v62 = vld [vmem:[%s13058_s21 + $0x5f0] sm:$0xf]  ;;  %v488_v63 = vld [vmem:[%s13058_s21 + $0x5f4] sm:$0xf] }
  0x90   : > { %485 = vst [vmem:[%s13054_s20 + $0x5e8] sm:$0xf] %v484_v61  ;;  %487 = vst [vmem:[%s13054_s20 + $0x5f0] sm:$0xf] %v486_v62  ;;  %v490_v0 = vld [vmem:[%s13058_s21 + $0x600] sm:$0xf] }
  0x91   : > { %489 = vst [vmem:[%s13054_s20 + $0x5f8] sm:$0xf] %v488_v63  ;;  %v492_v1 = vld [vmem:[%s13058_s21 + $0x604] sm:$0xf]  ;;  %v494_v2 = vld [vmem:[%s13058_s21 + $0x610] sm:$0xf] }
  0x92   : > { %491 = vst [vmem:[%s13054_s20 + $0x600] sm:$0xf] %v490_v0  ;;  %493 = vst [vmem:[%s13054_s20 + $0x608] sm:$0xf] %v492_v1  ;;  %v496_v3 = vld [vmem:[%s13058_s21 + $0x614] sm:$0xf] }
  0x93   : > { %495 = vst [vmem:[%s13054_s20 + $0x610] sm:$0xf] %v494_v2  ;;  %v498_v4 = vld [vmem:[%s13058_s21 + $0x620] sm:$0xf]  ;;  %v500_v5 = vld [vmem:[%s13058_s21 + $0x624] sm:$0xf] }
  0x94   : > { %497 = vst [vmem:[%s13054_s20 + $0x618] sm:$0xf] %v496_v3  ;;  %499 = vst [vmem:[%s13054_s20 + $0x620] sm:$0xf] %v498_v4  ;;  %v502_v6 = vld [vmem:[%s13058_s21 + $0x630] sm:$0xf] }
  0x95   : > { %501 = vst [vmem:[%s13054_s20 + $0x628] sm:$0xf] %v500_v5  ;;  %v504_v7 = vld [vmem:[%s13058_s21 + $0x634] sm:$0xf]  ;;  %v506_v8 = vld [vmem:[%s13058_s21 + $0x640] sm:$0xf] }
  0x96   : > { %503 = vst [vmem:[%s13054_s20 + $0x630] sm:$0xf] %v502_v6  ;;  %505 = vst [vmem:[%s13054_s20 + $0x638] sm:$0xf] %v504_v7  ;;  %v508_v9 = vld [vmem:[%s13058_s21 + $0x644] sm:$0xf] }
  0x97   : > { %507 = vst [vmem:[%s13054_s20 + $0x640] sm:$0xf] %v506_v8  ;;  %v510_v10 = vld [vmem:[%s13058_s21 + $0x650] sm:$0xf]  ;;  %v512_v11 = vld [vmem:[%s13058_s21 + $0x654] sm:$0xf] }
  0x98   : > { %509 = vst [vmem:[%s13054_s20 + $0x648] sm:$0xf] %v508_v9  ;;  %511 = vst [vmem:[%s13054_s20 + $0x650] sm:$0xf] %v510_v10  ;;  %v514_v12 = vld [vmem:[%s13058_s21 + $0x660] sm:$0xf] }
  0x99   : > { %513 = vst [vmem:[%s13054_s20 + $0x658] sm:$0xf] %v512_v11  ;;  %v516_v13 = vld [vmem:[%s13058_s21 + $0x664] sm:$0xf]  ;;  %v518_v14 = vld [vmem:[%s13058_s21 + $0x670] sm:$0xf] }
  0x9a   : > { %515 = vst [vmem:[%s13054_s20 + $0x660] sm:$0xf] %v514_v12  ;;  %517 = vst [vmem:[%s13054_s20 + $0x668] sm:$0xf] %v516_v13  ;;  %v520_v15 = vld [vmem:[%s13058_s21 + $0x674] sm:$0xf] }
  0x9b   : > { %519 = vst [vmem:[%s13054_s20 + $0x670] sm:$0xf] %v518_v14  ;;  %v522_v16 = vld [vmem:[%s13058_s21 + $0x680] sm:$0xf]  ;;  %v524_v17 = vld [vmem:[%s13058_s21 + $0x684] sm:$0xf] }
  0x9c   : > { %521 = vst [vmem:[%s13054_s20 + $0x678] sm:$0xf] %v520_v15  ;;  %523 = vst [vmem:[%s13054_s20 + $0x680] sm:$0xf] %v522_v16  ;;  %v526_v18 = vld [vmem:[%s13058_s21 + $0x690] sm:$0xf] }
  0x9d   : > { %525 = vst [vmem:[%s13054_s20 + $0x688] sm:$0xf] %v524_v17  ;;  %v528_v19 = vld [vmem:[%s13058_s21 + $0x694] sm:$0xf]  ;;  %v530_v20 = vld [vmem:[%s13058_s21 + $0x6a0] sm:$0xf] }
  0x9e   : > { %527 = vst [vmem:[%s13054_s20 + $0x690] sm:$0xf] %v526_v18  ;;  %529 = vst [vmem:[%s13054_s20 + $0x698] sm:$0xf] %v528_v19  ;;  %v532_v21 = vld [vmem:[%s13058_s21 + $0x6a4] sm:$0xf] }
  0x9f   : > { %531 = vst [vmem:[%s13054_s20 + $0x6a0] sm:$0xf] %v530_v20  ;;  %v534_v22 = vld [vmem:[%s13058_s21 + $0x6b0] sm:$0xf]  ;;  %v536_v23 = vld [vmem:[%s13058_s21 + $0x6b4] sm:$0xf] }
  0xa0   : > { %533 = vst [vmem:[%s13054_s20 + $0x6a8] sm:$0xf] %v532_v21  ;;  %535 = vst [vmem:[%s13054_s20 + $0x6b0] sm:$0xf] %v534_v22  ;;  %v538_v24 = vld [vmem:[%s13058_s21 + $0x6c0] sm:$0xf] }
  0xa1   : > { %537 = vst [vmem:[%s13054_s20 + $0x6b8] sm:$0xf] %v536_v23  ;;  %v540_v25 = vld [vmem:[%s13058_s21 + $0x6c4] sm:$0xf]  ;;  %v542_v26 = vld [vmem:[%s13058_s21 + $0x6d0] sm:$0xf] }
  0xa2   : > { %539 = vst [vmem:[%s13054_s20 + $0x6c0] sm:$0xf] %v538_v24  ;;  %541 = vst [vmem:[%s13054_s20 + $0x6c8] sm:$0xf] %v540_v25  ;;  %v544_v27 = vld [vmem:[%s13058_s21 + $0x6d4] sm:$0xf] }
  0xa3   : > { %543 = vst [vmem:[%s13054_s20 + $0x6d0] sm:$0xf] %v542_v26  ;;  %v546_v28 = vld [vmem:[%s13058_s21 + $0x6e0] sm:$0xf]  ;;  %v548_v29 = vld [vmem:[%s13058_s21 + $0x6e4] sm:$0xf] }
  0xa4   : > { %545 = vst [vmem:[%s13054_s20 + $0x6d8] sm:$0xf] %v544_v27  ;;  %547 = vst [vmem:[%s13054_s20 + $0x6e0] sm:$0xf] %v546_v28  ;;  %v550_v30 = vld [vmem:[%s13058_s21 + $0x6f0] sm:$0xf] }
  0xa5   : > { %549 = vst [vmem:[%s13054_s20 + $0x6e8] sm:$0xf] %v548_v29  ;;  %v552_v31 = vld [vmem:[%s13058_s21 + $0x6f4] sm:$0xf]  ;;  %v554_v32 = vld [vmem:[%s13058_s21 + $0x700] sm:$0xf] }
  0xa6   : > { %551 = vst [vmem:[%s13054_s20 + $0x6f0] sm:$0xf] %v550_v30  ;;  %553 = vst [vmem:[%s13054_s20 + $0x6f8] sm:$0xf] %v552_v31  ;;  %v556_v33 = vld [vmem:[%s13058_s21 + $0x704] sm:$0xf] }
  0xa7   : > { %555 = vst [vmem:[%s13054_s20 + $0x700] sm:$0xf] %v554_v32  ;;  %v558_v34 = vld [vmem:[%s13058_s21 + $0x710] sm:$0xf]  ;;  %v560_v35 = vld [vmem:[%s13058_s21 + $0x714] sm:$0xf] }
  0xa8   : > { %557 = vst [vmem:[%s13054_s20 + $0x708] sm:$0xf] %v556_v33  ;;  %559 = vst [vmem:[%s13054_s20 + $0x710] sm:$0xf] %v558_v34  ;;  %v562_v36 = vld [vmem:[%s13058_s21 + $0x720] sm:$0xf] }
  0xa9   : > { %561 = vst [vmem:[%s13054_s20 + $0x718] sm:$0xf] %v560_v35  ;;  %v564_v37 = vld [vmem:[%s13058_s21 + $0x724] sm:$0xf]  ;;  %v566_v38 = vld [vmem:[%s13058_s21 + $0x730] sm:$0xf] }
  0xaa   : > { %563 = vst [vmem:[%s13054_s20 + $0x720] sm:$0xf] %v562_v36  ;;  %565 = vst [vmem:[%s13054_s20 + $0x728] sm:$0xf] %v564_v37  ;;  %v568_v39 = vld [vmem:[%s13058_s21 + $0x734] sm:$0xf] }
  0xab   : > { %567 = vst [vmem:[%s13054_s20 + $0x730] sm:$0xf] %v566_v38  ;;  %v570_v40 = vld [vmem:[%s13058_s21 + $0x740] sm:$0xf]  ;;  %v572_v41 = vld [vmem:[%s13058_s21 + $0x744] sm:$0xf] }
  0xac   : > { %569 = vst [vmem:[%s13054_s20 + $0x738] sm:$0xf] %v568_v39  ;;  %571 = vst [vmem:[%s13054_s20 + $0x740] sm:$0xf] %v570_v40  ;;  %v574_v42 = vld [vmem:[%s13058_s21 + $0x750] sm:$0xf] }
  0xad   : > { %573 = vst [vmem:[%s13054_s20 + $0x748] sm:$0xf] %v572_v41  ;;  %v576_v43 = vld [vmem:[%s13058_s21 + $0x754] sm:$0xf]  ;;  %v578_v44 = vld [vmem:[%s13058_s21 + $0x760] sm:$0xf] }
  0xae   : > { %575 = vst [vmem:[%s13054_s20 + $0x750] sm:$0xf] %v574_v42  ;;  %577 = vst [vmem:[%s13054_s20 + $0x758] sm:$0xf] %v576_v43  ;;  %v580_v45 = vld [vmem:[%s13058_s21 + $0x764] sm:$0xf] }
  0xaf   : > { %579 = vst [vmem:[%s13054_s20 + $0x760] sm:$0xf] %v578_v44  ;;  %v582_v46 = vld [vmem:[%s13058_s21 + $0x770] sm:$0xf]  ;;  %v584_v47 = vld [vmem:[%s13058_s21 + $0x774] sm:$0xf] }
  0xb0   : > { %581 = vst [vmem:[%s13054_s20 + $0x768] sm:$0xf] %v580_v45  ;;  %583 = vst [vmem:[%s13054_s20 + $0x770] sm:$0xf] %v582_v46  ;;  %v586_v48 = vld [vmem:[%s13058_s21 + $0x780] sm:$0xf] }
  0xb1   : > { %585 = vst [vmem:[%s13054_s20 + $0x778] sm:$0xf] %v584_v47  ;;  %v588_v49 = vld [vmem:[%s13058_s21 + $0x784] sm:$0xf]  ;;  %v590_v50 = vld [vmem:[%s13058_s21 + $0x790] sm:$0xf] }
  0xb2   : > { %587 = vst [vmem:[%s13054_s20 + $0x780] sm:$0xf] %v586_v48  ;;  %589 = vst [vmem:[%s13054_s20 + $0x788] sm:$0xf] %v588_v49  ;;  %v592_v51 = vld [vmem:[%s13058_s21 + $0x794] sm:$0xf] }
  0xb3   : > { %591 = vst [vmem:[%s13054_s20 + $0x790] sm:$0xf] %v590_v50  ;;  %v594_v52 = vld [vmem:[%s13058_s21 + $0x7a0] sm:$0xf]  ;;  %v596_v53 = vld [vmem:[%s13058_s21 + $0x7a4] sm:$0xf] }
  0xb4   : > { %593 = vst [vmem:[%s13054_s20 + $0x798] sm:$0xf] %v592_v51  ;;  %595 = vst [vmem:[%s13054_s20 + $0x7a0] sm:$0xf] %v594_v52  ;;  %v598_v54 = vld [vmem:[%s13058_s21 + $0x7b0] sm:$0xf] }
  0xb5   : > { %597 = vst [vmem:[%s13054_s20 + $0x7a8] sm:$0xf] %v596_v53  ;;  %v600_v55 = vld [vmem:[%s13058_s21 + $0x7b4] sm:$0xf]  ;;  %v602_v56 = vld [vmem:[%s13058_s21 + $0x7c0] sm:$0xf] }
  0xb6   : > { %599 = vst [vmem:[%s13054_s20 + $0x7b0] sm:$0xf] %v598_v54  ;;  %601 = vst [vmem:[%s13054_s20 + $0x7b8] sm:$0xf] %v600_v55  ;;  %v604_v57 = vld [vmem:[%s13058_s21 + $0x7c4] sm:$0xf] }
  0xb7   : > { %603 = vst [vmem:[%s13054_s20 + $0x7c0] sm:$0xf] %v602_v56  ;;  %v606_v58 = vld [vmem:[%s13058_s21 + $0x7d0] sm:$0xf]  ;;  %v608_v59 = vld [vmem:[%s13058_s21 + $0x7d4] sm:$0xf] }
  0xb8   : > { %605 = vst [vmem:[%s13054_s20 + $0x7c8] sm:$0xf] %v604_v57  ;;  %607 = vst [vmem:[%s13054_s20 + $0x7d0] sm:$0xf] %v606_v58  ;;  %v610_v60 = vld [vmem:[%s13058_s21 + $0x7e0] sm:$0xf] }
  0xb9   : > { %609 = vst [vmem:[%s13054_s20 + $0x7d8] sm:$0xf] %v608_v59  ;;  %v612_v61 = vld [vmem:[%s13058_s21 + $0x7e4] sm:$0xf]  ;;  %v614_v62 = vld [vmem:[%s13058_s21 + $0x7f0] sm:$0xf] }
  0xba   : > { %611 = vst [vmem:[%s13054_s20 + $0x7e0] sm:$0xf] %v610_v60  ;;  %613 = vst [vmem:[%s13054_s20 + $0x7e8] sm:$0xf] %v612_v61  ;;  %v616_v63 = vld [vmem:[%s13058_s21 + $0x7f4] sm:$0xf] }
  0xbb   : > { %615 = vst [vmem:[%s13054_s20 + $0x7f0] sm:$0xf] %v614_v62  ;;  %v618_v0 = vld [vmem:[%s13058_s21 + $0x800] sm:$0xf]  ;;  %v620_v1 = vld [vmem:[%s13058_s21 + $0x804] sm:$0xf] }
  0xbc   : > { %617 = vst [vmem:[%s13054_s20 + $0x7f8] sm:$0xf] %v616_v63  ;;  %619 = vst [vmem:[%s13054_s20 + $0x800] sm:$0xf] %v618_v0  ;;  %v622_v2 = vld [vmem:[%s13058_s21 + $0x810] sm:$0xf] }
  0xbd   : > { %621 = vst [vmem:[%s13054_s20 + $0x808] sm:$0xf] %v620_v1  ;;  %v624_v3 = vld [vmem:[%s13058_s21 + $0x814] sm:$0xf]  ;;  %v626_v4 = vld [vmem:[%s13058_s21 + $0x820] sm:$0xf] }
  0xbe   : > { %623 = vst [vmem:[%s13054_s20 + $0x810] sm:$0xf] %v622_v2  ;;  %625 = vst [vmem:[%s13054_s20 + $0x818] sm:$0xf] %v624_v3  ;;  %v628_v5 = vld [vmem:[%s13058_s21 + $0x824] sm:$0xf] }
  0xbf   : > { %627 = vst [vmem:[%s13054_s20 + $0x820] sm:$0xf] %v626_v4  ;;  %v630_v6 = vld [vmem:[%s13058_s21 + $0x830] sm:$0xf]  ;;  %v632_v7 = vld [vmem:[%s13058_s21 + $0x834] sm:$0xf] }
  0xc0   : > { %629 = vst [vmem:[%s13054_s20 + $0x828] sm:$0xf] %v628_v5  ;;  %631 = vst [vmem:[%s13054_s20 + $0x830] sm:$0xf] %v630_v6  ;;  %v634_v8 = vld [vmem:[%s13058_s21 + $0x840] sm:$0xf] }
  0xc1   : > { %633 = vst [vmem:[%s13054_s20 + $0x838] sm:$0xf] %v632_v7  ;;  %v636_v9 = vld [vmem:[%s13058_s21 + $0x844] sm:$0xf]  ;;  %v638_v10 = vld [vmem:[%s13058_s21 + $0x850] sm:$0xf] }
  0xc2   : > { %635 = vst [vmem:[%s13054_s20 + $0x840] sm:$0xf] %v634_v8  ;;  %637 = vst [vmem:[%s13054_s20 + $0x848] sm:$0xf] %v636_v9  ;;  %v640_v11 = vld [vmem:[%s13058_s21 + $0x854] sm:$0xf] }
  0xc3   : > { %639 = vst [vmem:[%s13054_s20 + $0x850] sm:$0xf] %v638_v10  ;;  %v642_v12 = vld [vmem:[%s13058_s21 + $0x860] sm:$0xf]  ;;  %v644_v13 = vld [vmem:[%s13058_s21 + $0x864] sm:$0xf] }
  0xc4   : > { %641 = vst [vmem:[%s13054_s20 + $0x858] sm:$0xf] %v640_v11  ;;  %643 = vst [vmem:[%s13054_s20 + $0x860] sm:$0xf] %v642_v12  ;;  %v646_v14 = vld [vmem:[%s13058_s21 + $0x870] sm:$0xf] }
  0xc5   : > { %645 = vst [vmem:[%s13054_s20 + $0x868] sm:$0xf] %v644_v13  ;;  %v648_v15 = vld [vmem:[%s13058_s21 + $0x874] sm:$0xf]  ;;  %v650_v16 = vld [vmem:[%s13058_s21 + $0x880] sm:$0xf] }
  0xc6   : > { %647 = vst [vmem:[%s13054_s20 + $0x870] sm:$0xf] %v646_v14  ;;  %649 = vst [vmem:[%s13054_s20 + $0x878] sm:$0xf] %v648_v15  ;;  %v652_v17 = vld [vmem:[%s13058_s21 + $0x884] sm:$0xf] }
  0xc7   : > { %651 = vst [vmem:[%s13054_s20 + $0x880] sm:$0xf] %v650_v16  ;;  %v654_v18 = vld [vmem:[%s13058_s21 + $0x890] sm:$0xf]  ;;  %v656_v19 = vld [vmem:[%s13058_s21 + $0x894] sm:$0xf] }
  0xc8   : > { %653 = vst [vmem:[%s13054_s20 + $0x888] sm:$0xf] %v652_v17  ;;  %655 = vst [vmem:[%s13054_s20 + $0x890] sm:$0xf] %v654_v18  ;;  %v658_v20 = vld [vmem:[%s13058_s21 + $0x8a0] sm:$0xf] }
  0xc9   : > { %657 = vst [vmem:[%s13054_s20 + $0x898] sm:$0xf] %v656_v19  ;;  %v660_v21 = vld [vmem:[%s13058_s21 + $0x8a4] sm:$0xf]  ;;  %v662_v22 = vld [vmem:[%s13058_s21 + $0x8b0] sm:$0xf] }
  0xca   : > { %659 = vst [vmem:[%s13054_s20 + $0x8a0] sm:$0xf] %v658_v20  ;;  %661 = vst [vmem:[%s13054_s20 + $0x8a8] sm:$0xf] %v660_v21  ;;  %v664_v23 = vld [vmem:[%s13058_s21 + $0x8b4] sm:$0xf] }
  0xcb   : > { %663 = vst [vmem:[%s13054_s20 + $0x8b0] sm:$0xf] %v662_v22  ;;  %v666_v24 = vld [vmem:[%s13058_s21 + $0x8c0] sm:$0xf]  ;;  %v668_v25 = vld [vmem:[%s13058_s21 + $0x8c4] sm:$0xf] }
  0xcc   : > { %665 = vst [vmem:[%s13054_s20 + $0x8b8] sm:$0xf] %v664_v23  ;;  %667 = vst [vmem:[%s13054_s20 + $0x8c0] sm:$0xf] %v666_v24  ;;  %v670_v26 = vld [vmem:[%s13058_s21 + $0x8d0] sm:$0xf] }
  0xcd   : > { %669 = vst [vmem:[%s13054_s20 + $0x8c8] sm:$0xf] %v668_v25  ;;  %v672_v27 = vld [vmem:[%s13058_s21 + $0x8d4] sm:$0xf]  ;;  %v674_v28 = vld [vmem:[%s13058_s21 + $0x8e0] sm:$0xf] }
  0xce   : > { %671 = vst [vmem:[%s13054_s20 + $0x8d0] sm:$0xf] %v670_v26  ;;  %673 = vst [vmem:[%s13054_s20 + $0x8d8] sm:$0xf] %v672_v27  ;;  %v676_v29 = vld [vmem:[%s13058_s21 + $0x8e4] sm:$0xf] }
  0xcf   : > { %675 = vst [vmem:[%s13054_s20 + $0x8e0] sm:$0xf] %v674_v28  ;;  %v678_v30 = vld [vmem:[%s13058_s21 + $0x8f0] sm:$0xf]  ;;  %v680_v31 = vld [vmem:[%s13058_s21 + $0x8f4] sm:$0xf] }
  0xd0   : > { %677 = vst [vmem:[%s13054_s20 + $0x8e8] sm:$0xf] %v676_v29  ;;  %679 = vst [vmem:[%s13054_s20 + $0x8f0] sm:$0xf] %v678_v30  ;;  %v682_v32 = vld [vmem:[%s13058_s21 + $0x900] sm:$0xf] }
  0xd1   : > { %681 = vst [vmem:[%s13054_s20 + $0x8f8] sm:$0xf] %v680_v31  ;;  %v684_v33 = vld [vmem:[%s13058_s21 + $0x904] sm:$0xf]  ;;  %v686_v34 = vld [vmem:[%s13058_s21 + $0x910] sm:$0xf] }
  0xd2   : > { %683 = vst [vmem:[%s13054_s20 + $0x900] sm:$0xf] %v682_v32  ;;  %685 = vst [vmem:[%s13054_s20 + $0x908] sm:$0xf] %v684_v33  ;;  %v688_v35 = vld [vmem:[%s13058_s21 + $0x914] sm:$0xf] }
  0xd3   : > { %687 = vst [vmem:[%s13054_s20 + $0x910] sm:$0xf] %v686_v34  ;;  %v690_v36 = vld [vmem:[%s13058_s21 + $0x920] sm:$0xf]  ;;  %v692_v37 = vld [vmem:[%s13058_s21 + $0x924] sm:$0xf] }
  0xd4   : > { %689 = vst [vmem:[%s13054_s20 + $0x918] sm:$0xf] %v688_v35  ;;  %691 = vst [vmem:[%s13054_s20 + $0x920] sm:$0xf] %v690_v36  ;;  %v694_v38 = vld [vmem:[%s13058_s21 + $0x930] sm:$0xf] }
  0xd5   : > { %693 = vst [vmem:[%s13054_s20 + $0x928] sm:$0xf] %v692_v37  ;;  %v696_v39 = vld [vmem:[%s13058_s21 + $0x934] sm:$0xf]  ;;  %v698_v40 = vld [vmem:[%s13058_s21 + $0x940] sm:$0xf] }
  0xd6   : > { %695 = vst [vmem:[%s13054_s20 + $0x930] sm:$0xf] %v694_v38  ;;  %697 = vst [vmem:[%s13054_s20 + $0x938] sm:$0xf] %v696_v39  ;;  %v700_v41 = vld [vmem:[%s13058_s21 + $0x944] sm:$0xf] }
  0xd7   : > { %699 = vst [vmem:[%s13054_s20 + $0x940] sm:$0xf] %v698_v40  ;;  %v702_v42 = vld [vmem:[%s13058_s21 + $0x950] sm:$0xf]  ;;  %v704_v43 = vld [vmem:[%s13058_s21 + $0x954] sm:$0xf] }
  0xd8   : > { %701 = vst [vmem:[%s13054_s20 + $0x948] sm:$0xf] %v700_v41  ;;  %703 = vst [vmem:[%s13054_s20 + $0x950] sm:$0xf] %v702_v42  ;;  %v706_v44 = vld [vmem:[%s13058_s21 + $0x960] sm:$0xf] }
  0xd9   : > { %705 = vst [vmem:[%s13054_s20 + $0x958] sm:$0xf] %v704_v43  ;;  %v708_v45 = vld [vmem:[%s13058_s21 + $0x964] sm:$0xf]  ;;  %v710_v46 = vld [vmem:[%s13058_s21 + $0x970] sm:$0xf] }
  0xda   : > { %707 = vst [vmem:[%s13054_s20 + $0x960] sm:$0xf] %v706_v44  ;;  %709 = vst [vmem:[%s13054_s20 + $0x968] sm:$0xf] %v708_v45  ;;  %v712_v47 = vld [vmem:[%s13058_s21 + $0x974] sm:$0xf] }
  0xdb   : > { %711 = vst [vmem:[%s13054_s20 + $0x970] sm:$0xf] %v710_v46  ;;  %v714_v48 = vld [vmem:[%s13058_s21 + $0x980] sm:$0xf]  ;;  %v716_v49 = vld [vmem:[%s13058_s21 + $0x984] sm:$0xf] }
  0xdc   : > { %713 = vst [vmem:[%s13054_s20 + $0x978] sm:$0xf] %v712_v47  ;;  %715 = vst [vmem:[%s13054_s20 + $0x980] sm:$0xf] %v714_v48  ;;  %v718_v50 = vld [vmem:[%s13058_s21 + $0x990] sm:$0xf] }
  0xdd   : > { %717 = vst [vmem:[%s13054_s20 + $0x988] sm:$0xf] %v716_v49  ;;  %v720_v51 = vld [vmem:[%s13058_s21 + $0x994] sm:$0xf]  ;;  %v722_v52 = vld [vmem:[%s13058_s21 + $0x9a0] sm:$0xf] }
  0xde   : > { %719 = vst [vmem:[%s13054_s20 + $0x990] sm:$0xf] %v718_v50  ;;  %721 = vst [vmem:[%s13054_s20 + $0x998] sm:$0xf] %v720_v51  ;;  %v724_v53 = vld [vmem:[%s13058_s21 + $0x9a4] sm:$0xf] }
  0xdf   : > { %723 = vst [vmem:[%s13054_s20 + $0x9a0] sm:$0xf] %v722_v52  ;;  %v726_v54 = vld [vmem:[%s13058_s21 + $0x9b0] sm:$0xf]  ;;  %v728_v55 = vld [vmem:[%s13058_s21 + $0x9b4] sm:$0xf] }
  0xe0   : > { %725 = vst [vmem:[%s13054_s20 + $0x9a8] sm:$0xf] %v724_v53  ;;  %727 = vst [vmem:[%s13054_s20 + $0x9b0] sm:$0xf] %v726_v54  ;;  %v730_v56 = vld [vmem:[%s13058_s21 + $0x9c0] sm:$0xf] }
  0xe1   : > { %729 = vst [vmem:[%s13054_s20 + $0x9b8] sm:$0xf] %v728_v55  ;;  %v732_v57 = vld [vmem:[%s13058_s21 + $0x9c4] sm:$0xf]  ;;  %v734_v58 = vld [vmem:[%s13058_s21 + $0x9d0] sm:$0xf] }
  0xe2   : > { %731 = vst [vmem:[%s13054_s20 + $0x9c0] sm:$0xf] %v730_v56  ;;  %733 = vst [vmem:[%s13054_s20 + $0x9c8] sm:$0xf] %v732_v57  ;;  %v736_v59 = vld [vmem:[%s13058_s21 + $0x9d4] sm:$0xf] }
  0xe3   : > { %735 = vst [vmem:[%s13054_s20 + $0x9d0] sm:$0xf] %v734_v58  ;;  %v738_v60 = vld [vmem:[%s13058_s21 + $0x9e0] sm:$0xf]  ;;  %v740_v61 = vld [vmem:[%s13058_s21 + $0x9e4] sm:$0xf] }
  0xe4   : > { %737 = vst [vmem:[%s13054_s20 + $0x9d8] sm:$0xf] %v736_v59  ;;  %739 = vst [vmem:[%s13054_s20 + $0x9e0] sm:$0xf] %v738_v60  ;;  %v742_v62 = vld [vmem:[%s13058_s21 + $0x9f0] sm:$0xf] }
  0xe5   : > { %741 = vst [vmem:[%s13054_s20 + $0x9e8] sm:$0xf] %v740_v61  ;;  %v744_v63 = vld [vmem:[%s13058_s21 + $0x9f4] sm:$0xf]  ;;  %v746_v0 = vld [vmem:[%s13058_s21 + $0xa00] sm:$0xf] }
  0xe6   : > { %743 = vst [vmem:[%s13054_s20 + $0x9f0] sm:$0xf] %v742_v62  ;;  %745 = vst [vmem:[%s13054_s20 + $0x9f8] sm:$0xf] %v744_v63  ;;  %v748_v1 = vld [vmem:[%s13058_s21 + $0xa04] sm:$0xf] }
  0xe7   : > { %747 = vst [vmem:[%s13054_s20 + $0xa00] sm:$0xf] %v746_v0  ;;  %v750_v2 = vld [vmem:[%s13058_s21 + $0xa10] sm:$0xf]  ;;  %v752_v3 = vld [vmem:[%s13058_s21 + $0xa14] sm:$0xf] }
  0xe8   : > { %749 = vst [vmem:[%s13054_s20 + $0xa08] sm:$0xf] %v748_v1  ;;  %751 = vst [vmem:[%s13054_s20 + $0xa10] sm:$0xf] %v750_v2  ;;  %v754_v4 = vld [vmem:[%s13058_s21 + $0xa20] sm:$0xf] }
  0xe9   : > { %753 = vst [vmem:[%s13054_s20 + $0xa18] sm:$0xf] %v752_v3  ;;  %v756_v5 = vld [vmem:[%s13058_s21 + $0xa24] sm:$0xf]  ;;  %v758_v6 = vld [vmem:[%s13058_s21 + $0xa30] sm:$0xf] }
  0xea   : > { %755 = vst [vmem:[%s13054_s20 + $0xa20] sm:$0xf] %v754_v4  ;;  %757 = vst [vmem:[%s13054_s20 + $0xa28] sm:$0xf] %v756_v5  ;;  %v760_v7 = vld [vmem:[%s13058_s21 + $0xa34] sm:$0xf] }
  0xeb   : > { %759 = vst [vmem:[%s13054_s20 + $0xa30] sm:$0xf] %v758_v6  ;;  %v762_v8 = vld [vmem:[%s13058_s21 + $0xa40] sm:$0xf]  ;;  %v764_v9 = vld [vmem:[%s13058_s21 + $0xa44] sm:$0xf] }
  0xec   : > { %761 = vst [vmem:[%s13054_s20 + $0xa38] sm:$0xf] %v760_v7  ;;  %763 = vst [vmem:[%s13054_s20 + $0xa40] sm:$0xf] %v762_v8  ;;  %v766_v10 = vld [vmem:[%s13058_s21 + $0xa50] sm:$0xf] }
  0xed   : > { %765 = vst [vmem:[%s13054_s20 + $0xa48] sm:$0xf] %v764_v9  ;;  %v768_v11 = vld [vmem:[%s13058_s21 + $0xa54] sm:$0xf]  ;;  %v770_v12 = vld [vmem:[%s13058_s21 + $0xa60] sm:$0xf] }
  0xee   : > { %767 = vst [vmem:[%s13054_s20 + $0xa50] sm:$0xf] %v766_v10  ;;  %769 = vst [vmem:[%s13054_s20 + $0xa58] sm:$0xf] %v768_v11  ;;  %v772_v13 = vld [vmem:[%s13058_s21 + $0xa64] sm:$0xf] }
  0xef   : > { %771 = vst [vmem:[%s13054_s20 + $0xa60] sm:$0xf] %v770_v12  ;;  %v774_v14 = vld [vmem:[%s13058_s21 + $0xa70] sm:$0xf]  ;;  %v776_v15 = vld [vmem:[%s13058_s21 + $0xa74] sm:$0xf] }
  0xf0   : > { %773 = vst [vmem:[%s13054_s20 + $0xa68] sm:$0xf] %v772_v13  ;;  %775 = vst [vmem:[%s13054_s20 + $0xa70] sm:$0xf] %v774_v14  ;;  %v778_v16 = vld [vmem:[%s13058_s21 + $0xa80] sm:$0xf] }
  0xf1   : > { %777 = vst [vmem:[%s13054_s20 + $0xa78] sm:$0xf] %v776_v15  ;;  %v780_v17 = vld [vmem:[%s13058_s21 + $0xa84] sm:$0xf]  ;;  %v782_v18 = vld [vmem:[%s13058_s21 + $0xa90] sm:$0xf] }
  0xf2   : > { %779 = vst [vmem:[%s13054_s20 + $0xa80] sm:$0xf] %v778_v16  ;;  %781 = vst [vmem:[%s13054_s20 + $0xa88] sm:$0xf] %v780_v17  ;;  %v784_v19 = vld [vmem:[%s13058_s21 + $0xa94] sm:$0xf] }
  0xf3   : > { %783 = vst [vmem:[%s13054_s20 + $0xa90] sm:$0xf] %v782_v18  ;;  %v786_v20 = vld [vmem:[%s13058_s21 + $0xaa0] sm:$0xf]  ;;  %v788_v21 = vld [vmem:[%s13058_s21 + $0xaa4] sm:$0xf] }
  0xf4   : > { %785 = vst [vmem:[%s13054_s20 + $0xa98] sm:$0xf] %v784_v19  ;;  %787 = vst [vmem:[%s13054_s20 + $0xaa0] sm:$0xf] %v786_v20  ;;  %v790_v22 = vld [vmem:[%s13058_s21 + $0xab0] sm:$0xf] }
  0xf5   : > { %789 = vst [vmem:[%s13054_s20 + $0xaa8] sm:$0xf] %v788_v21  ;;  %v792_v23 = vld [vmem:[%s13058_s21 + $0xab4] sm:$0xf]  ;;  %v794_v24 = vld [vmem:[%s13058_s21 + $0xac0] sm:$0xf] }
  0xf6   : > { %791 = vst [vmem:[%s13054_s20 + $0xab0] sm:$0xf] %v790_v22  ;;  %793 = vst [vmem:[%s13054_s20 + $0xab8] sm:$0xf] %v792_v23  ;;  %v796_v25 = vld [vmem:[%s13058_s21 + $0xac4] sm:$0xf] }
  0xf7   : > { %795 = vst [vmem:[%s13054_s20 + $0xac0] sm:$0xf] %v794_v24  ;;  %v798_v26 = vld [vmem:[%s13058_s21 + $0xad0] sm:$0xf]  ;;  %v800_v27 = vld [vmem:[%s13058_s21 + $0xad4] sm:$0xf] }
  0xf8   : > { %797 = vst [vmem:[%s13054_s20 + $0xac8] sm:$0xf] %v796_v25  ;;  %799 = vst [vmem:[%s13054_s20 + $0xad0] sm:$0xf] %v798_v26  ;;  %v802_v28 = vld [vmem:[%s13058_s21 + $0xae0] sm:$0xf] }
  0xf9   : > { %801 = vst [vmem:[%s13054_s20 + $0xad8] sm:$0xf] %v800_v27  ;;  %v804_v29 = vld [vmem:[%s13058_s21 + $0xae4] sm:$0xf]  ;;  %v806_v30 = vld [vmem:[%s13058_s21 + $0xaf0] sm:$0xf] }
  0xfa   : > { %803 = vst [vmem:[%s13054_s20 + $0xae0] sm:$0xf] %v802_v28  ;;  %805 = vst [vmem:[%s13054_s20 + $0xae8] sm:$0xf] %v804_v29  ;;  %v808_v31 = vld [vmem:[%s13058_s21 + $0xaf4] sm:$0xf] }
  0xfb   : > { %807 = vst [vmem:[%s13054_s20 + $0xaf0] sm:$0xf] %v806_v30  ;;  %v810_v32 = vld [vmem:[%s13058_s21 + $0xb00] sm:$0xf]  ;;  %v812_v33 = vld [vmem:[%s13058_s21 + $0xb04] sm:$0xf] }
  0xfc   : > { %809 = vst [vmem:[%s13054_s20 + $0xaf8] sm:$0xf] %v808_v31  ;;  %811 = vst [vmem:[%s13054_s20 + $0xb00] sm:$0xf] %v810_v32  ;;  %v814_v34 = vld [vmem:[%s13058_s21 + $0xb10] sm:$0xf] }
  0xfd   : > { %813 = vst [vmem:[%s13054_s20 + $0xb08] sm:$0xf] %v812_v33  ;;  %v816_v35 = vld [vmem:[%s13058_s21 + $0xb14] sm:$0xf]  ;;  %v818_v36 = vld [vmem:[%s13058_s21 + $0xb20] sm:$0xf] }
  0xfe   : > { %815 = vst [vmem:[%s13054_s20 + $0xb10] sm:$0xf] %v814_v34  ;;  %817 = vst [vmem:[%s13054_s20 + $0xb18] sm:$0xf] %v816_v35  ;;  %v820_v37 = vld [vmem:[%s13058_s21 + $0xb24] sm:$0xf] }
  0xff   : > { %819 = vst [vmem:[%s13054_s20 + $0xb20] sm:$0xf] %v818_v36  ;;  %v822_v38 = vld [vmem:[%s13058_s21 + $0xb30] sm:$0xf]  ;;  %v824_v39 = vld [vmem:[%s13058_s21 + $0xb34] sm:$0xf] }
 0x100   : > { %821 = vst [vmem:[%s13054_s20 + $0xb28] sm:$0xf] %v820_v37  ;;  %823 = vst [vmem:[%s13054_s20 + $0xb30] sm:$0xf] %v822_v38  ;;  %v826_v40 = vld [vmem:[%s13058_s21 + $0xb40] sm:$0xf] }
 0x101   : > { %825 = vst [vmem:[%s13054_s20 + $0xb38] sm:$0xf] %v824_v39  ;;  %v828_v41 = vld [vmem:[%s13058_s21 + $0xb44] sm:$0xf]  ;;  %v830_v42 = vld [vmem:[%s13058_s21 + $0xb50] sm:$0xf] }
 0x102   : > { %827 = vst [vmem:[%s13054_s20 + $0xb40] sm:$0xf] %v826_v40  ;;  %829 = vst [vmem:[%s13054_s20 + $0xb48] sm:$0xf] %v828_v41  ;;  %v832_v43 = vld [vmem:[%s13058_s21 + $0xb54] sm:$0xf] }
 0x103   : > { %831 = vst [vmem:[%s13054_s20 + $0xb50] sm:$0xf] %v830_v42  ;;  %v834_v44 = vld [vmem:[%s13058_s21 + $0xb60] sm:$0xf]  ;;  %v836_v45 = vld [vmem:[%s13058_s21 + $0xb64] sm:$0xf] }
 0x104   : > { %833 = vst [vmem:[%s13054_s20 + $0xb58] sm:$0xf] %v832_v43  ;;  %835 = vst [vmem:[%s13054_s20 + $0xb60] sm:$0xf] %v834_v44  ;;  %v838_v46 = vld [vmem:[%s13058_s21 + $0xb70] sm:$0xf] }
 0x105   : > { %837 = vst [vmem:[%s13054_s20 + $0xb68] sm:$0xf] %v836_v45  ;;  %v840_v47 = vld [vmem:[%s13058_s21 + $0xb74] sm:$0xf]  ;;  %v842_v48 = vld [vmem:[%s13058_s21 + $0xb80] sm:$0xf] }
 0x106   : > { %839 = vst [vmem:[%s13054_s20 + $0xb70] sm:$0xf] %v838_v46  ;;  %841 = vst [vmem:[%s13054_s20 + $0xb78] sm:$0xf] %v840_v47  ;;  %v844_v49 = vld [vmem:[%s13058_s21 + $0xb84] sm:$0xf] }
 0x107   : > { %843 = vst [vmem:[%s13054_s20 + $0xb80] sm:$0xf] %v842_v48  ;;  %v846_v50 = vld [vmem:[%s13058_s21 + $0xb90] sm:$0xf]  ;;  %v848_v51 = vld [vmem:[%s13058_s21 + $0xb94] sm:$0xf] }
 0x108   : > { %845 = vst [vmem:[%s13054_s20 + $0xb88] sm:$0xf] %v844_v49  ;;  %847 = vst [vmem:[%s13054_s20 + $0xb90] sm:$0xf] %v846_v50  ;;  %v850_v52 = vld [vmem:[%s13058_s21 + $0xba0] sm:$0xf] }
 0x109   : > { %849 = vst [vmem:[%s13054_s20 + $0xb98] sm:$0xf] %v848_v51  ;;  %v852_v53 = vld [vmem:[%s13058_s21 + $0xba4] sm:$0xf]  ;;  %v854_v54 = vld [vmem:[%s13058_s21 + $0xbb0] sm:$0xf] }
 0x10a   : > { %851 = vst [vmem:[%s13054_s20 + $0xba0] sm:$0xf] %v850_v52  ;;  %853 = vst [vmem:[%s13054_s20 + $0xba8] sm:$0xf] %v852_v53  ;;  %v856_v55 = vld [vmem:[%s13058_s21 + $0xbb4] sm:$0xf] }
 0x10b   : > { %855 = vst [vmem:[%s13054_s20 + $0xbb0] sm:$0xf] %v854_v54  ;;  %v858_v56 = vld [vmem:[%s13058_s21 + $0xbc0] sm:$0xf]  ;;  %v860_v57 = vld [vmem:[%s13058_s21 + $0xbc4] sm:$0xf] }
 0x10c   : > { %857 = vst [vmem:[%s13054_s20 + $0xbb8] sm:$0xf] %v856_v55  ;;  %859 = vst [vmem:[%s13054_s20 + $0xbc0] sm:$0xf] %v858_v56  ;;  %v862_v58 = vld [vmem:[%s13058_s21 + $0xbd0] sm:$0xf] }
 0x10d   : > { %861 = vst [vmem:[%s13054_s20 + $0xbc8] sm:$0xf] %v860_v57  ;;  %v864_v59 = vld [vmem:[%s13058_s21 + $0xbd4] sm:$0xf]  ;;  %v866_v60 = vld [vmem:[%s13058_s21 + $0xbe0] sm:$0xf] }
 0x10e   : > { %863 = vst [vmem:[%s13054_s20 + $0xbd0] sm:$0xf] %v862_v58  ;;  %865 = vst [vmem:[%s13054_s20 + $0xbd8] sm:$0xf] %v864_v59  ;;  %v868_v61 = vld [vmem:[%s13058_s21 + $0xbe4] sm:$0xf] }
 0x10f   : > { %867 = vst [vmem:[%s13054_s20 + $0xbe0] sm:$0xf] %v866_v60  ;;  %v870_v62 = vld [vmem:[%s13058_s21 + $0xbf0] sm:$0xf]  ;;  %v872_v63 = vld [vmem:[%s13058_s21 + $0xbf4] sm:$0xf] }
 0x110   : > { %869 = vst [vmem:[%s13054_s20 + $0xbe8] sm:$0xf] %v868_v61  ;;  %871 = vst [vmem:[%s13054_s20 + $0xbf0] sm:$0xf] %v870_v62  ;;  %v874_v0 = vld [vmem:[%s13058_s21 + $0xc00] sm:$0xf] }
 0x111   : > { %873 = vst [vmem:[%s13054_s20 + $0xbf8] sm:$0xf] %v872_v63  ;;  %v876_v1 = vld [vmem:[%s13058_s21 + $0xc04] sm:$0xf]  ;;  %v878_v2 = vld [vmem:[%s13058_s21 + $0xc10] sm:$0xf] }
 0x112   : > { %875 = vst [vmem:[%s13054_s20 + $0xc00] sm:$0xf] %v874_v0  ;;  %877 = vst [vmem:[%s13054_s20 + $0xc08] sm:$0xf] %v876_v1  ;;  %v880_v3 = vld [vmem:[%s13058_s21 + $0xc14] sm:$0xf] }
 0x113   : > { %879 = vst [vmem:[%s13054_s20 + $0xc10] sm:$0xf] %v878_v2  ;;  %v882_v4 = vld [vmem:[%s13058_s21 + $0xc20] sm:$0xf]  ;;  %v884_v5 = vld [vmem:[%s13058_s21 + $0xc24] sm:$0xf] }
 0x114   : > { %881 = vst [vmem:[%s13054_s20 + $0xc18] sm:$0xf] %v880_v3  ;;  %883 = vst [vmem:[%s13054_s20 + $0xc20] sm:$0xf] %v882_v4  ;;  %v886_v6 = vld [vmem:[%s13058_s21 + $0xc30] sm:$0xf] }
 0x115   : > { %885 = vst [vmem:[%s13054_s20 + $0xc28] sm:$0xf] %v884_v5  ;;  %v888_v7 = vld [vmem:[%s13058_s21 + $0xc34] sm:$0xf]  ;;  %v890_v8 = vld [vmem:[%s13058_s21 + $0xc40] sm:$0xf] }
 0x116   : > { %887 = vst [vmem:[%s13054_s20 + $0xc30] sm:$0xf] %v886_v6  ;;  %889 = vst [vmem:[%s13054_s20 + $0xc38] sm:$0xf] %v888_v7  ;;  %v892_v9 = vld [vmem:[%s13058_s21 + $0xc44] sm:$0xf] }
 0x117   : > { %891 = vst [vmem:[%s13054_s20 + $0xc40] sm:$0xf] %v890_v8  ;;  %v894_v10 = vld [vmem:[%s13058_s21 + $0xc50] sm:$0xf]  ;;  %v896_v11 = vld [vmem:[%s13058_s21 + $0xc54] sm:$0xf] }
 0x118   : > { %893 = vst [vmem:[%s13054_s20 + $0xc48] sm:$0xf] %v892_v9  ;;  %895 = vst [vmem:[%s13054_s20 + $0xc50] sm:$0xf] %v894_v10  ;;  %v898_v12 = vld [vmem:[%s13058_s21 + $0xc60] sm:$0xf] }
 0x119   : > { %897 = vst [vmem:[%s13054_s20 + $0xc58] sm:$0xf] %v896_v11  ;;  %v900_v13 = vld [vmem:[%s13058_s21 + $0xc64] sm:$0xf]  ;;  %v902_v14 = vld [vmem:[%s13058_s21 + $0xc70] sm:$0xf] }
 0x11a   : > { %899 = vst [vmem:[%s13054_s20 + $0xc60] sm:$0xf] %v898_v12  ;;  %901 = vst [vmem:[%s13054_s20 + $0xc68] sm:$0xf] %v900_v13  ;;  %v904_v15 = vld [vmem:[%s13058_s21 + $0xc74] sm:$0xf] }
 0x11b   : > { %903 = vst [vmem:[%s13054_s20 + $0xc70] sm:$0xf] %v902_v14  ;;  %v906_v16 = vld [vmem:[%s13058_s21 + $0xc80] sm:$0xf]  ;;  %v908_v17 = vld [vmem:[%s13058_s21 + $0xc84] sm:$0xf] }
 0x11c   : > { %905 = vst [vmem:[%s13054_s20 + $0xc78] sm:$0xf] %v904_v15  ;;  %907 = vst [vmem:[%s13054_s20 + $0xc80] sm:$0xf] %v906_v16  ;;  %v910_v18 = vld [vmem:[%s13058_s21 + $0xc90] sm:$0xf] }
 0x11d   : > { %909 = vst [vmem:[%s13054_s20 + $0xc88] sm:$0xf] %v908_v17  ;;  %v912_v19 = vld [vmem:[%s13058_s21 + $0xc94] sm:$0xf]  ;;  %v914_v20 = vld [vmem:[%s13058_s21 + $0xca0] sm:$0xf] }
 0x11e   : > { %911 = vst [vmem:[%s13054_s20 + $0xc90] sm:$0xf] %v910_v18  ;;  %913 = vst [vmem:[%s13054_s20 + $0xc98] sm:$0xf] %v912_v19  ;;  %v916_v21 = vld [vmem:[%s13058_s21 + $0xca4] sm:$0xf] }
 0x11f   : > { %915 = vst [vmem:[%s13054_s20 + $0xca0] sm:$0xf] %v914_v20  ;;  %v918_v22 = vld [vmem:[%s13058_s21 + $0xcb0] sm:$0xf]  ;;  %v920_v23 = vld [vmem:[%s13058_s21 + $0xcb4] sm:$0xf] }
 0x120   : > { %917 = vst [vmem:[%s13054_s20 + $0xca8] sm:$0xf] %v916_v21  ;;  %919 = vst [vmem:[%s13054_s20 + $0xcb0] sm:$0xf] %v918_v22  ;;  %v922_v24 = vld [vmem:[%s13058_s21 + $0xcc0] sm:$0xf] }
 0x121   : > { %921 = vst [vmem:[%s13054_s20 + $0xcb8] sm:$0xf] %v920_v23  ;;  %v924_v25 = vld [vmem:[%s13058_s21 + $0xcc4] sm:$0xf]  ;;  %v926_v26 = vld [vmem:[%s13058_s21 + $0xcd0] sm:$0xf] }
 0x122   : > { %923 = vst [vmem:[%s13054_s20 + $0xcc0] sm:$0xf] %v922_v24  ;;  %925 = vst [vmem:[%s13054_s20 + $0xcc8] sm:$0xf] %v924_v25  ;;  %v928_v27 = vld [vmem:[%s13058_s21 + $0xcd4] sm:$0xf] }
 0x123   : > { %927 = vst [vmem:[%s13054_s20 + $0xcd0] sm:$0xf] %v926_v26  ;;  %v930_v28 = vld [vmem:[%s13058_s21 + $0xce0] sm:$0xf]  ;;  %v932_v29 = vld [vmem:[%s13058_s21 + $0xce4] sm:$0xf] }
 0x124   : > { %929 = vst [vmem:[%s13054_s20 + $0xcd8] sm:$0xf] %v928_v27  ;;  %931 = vst [vmem:[%s13054_s20 + $0xce0] sm:$0xf] %v930_v28  ;;  %v934_v30 = vld [vmem:[%s13058_s21 + $0xcf0] sm:$0xf] }
 0x125   : > { %933 = vst [vmem:[%s13054_s20 + $0xce8] sm:$0xf] %v932_v29  ;;  %v936_v31 = vld [vmem:[%s13058_s21 + $0xcf4] sm:$0xf]  ;;  %v938_v32 = vld [vmem:[%s13058_s21 + $0xd00] sm:$0xf] }
 0x126   : > { %935 = vst [vmem:[%s13054_s20 + $0xcf0] sm:$0xf] %v934_v30  ;;  %937 = vst [vmem:[%s13054_s20 + $0xcf8] sm:$0xf] %v936_v31  ;;  %v940_v33 = vld [vmem:[%s13058_s21 + $0xd04] sm:$0xf] }
 0x127   : > { %939 = vst [vmem:[%s13054_s20 + $0xd00] sm:$0xf] %v938_v32  ;;  %v942_v34 = vld [vmem:[%s13058_s21 + $0xd10] sm:$0xf]  ;;  %v944_v35 = vld [vmem:[%s13058_s21 + $0xd14] sm:$0xf] }
 0x128   : > { %941 = vst [vmem:[%s13054_s20 + $0xd08] sm:$0xf] %v940_v33  ;;  %943 = vst [vmem:[%s13054_s20 + $0xd10] sm:$0xf] %v942_v34  ;;  %v946_v36 = vld [vmem:[%s13058_s21 + $0xd20] sm:$0xf] }
 0x129   : > { %945 = vst [vmem:[%s13054_s20 + $0xd18] sm:$0xf] %v944_v35  ;;  %v948_v37 = vld [vmem:[%s13058_s21 + $0xd24] sm:$0xf]  ;;  %v950_v38 = vld [vmem:[%s13058_s21 + $0xd30] sm:$0xf] }
 0x12a   : > { %947 = vst [vmem:[%s13054_s20 + $0xd20] sm:$0xf] %v946_v36  ;;  %949 = vst [vmem:[%s13054_s20 + $0xd28] sm:$0xf] %v948_v37  ;;  %v952_v39 = vld [vmem:[%s13058_s21 + $0xd34] sm:$0xf] }
 0x12b   : > { %951 = vst [vmem:[%s13054_s20 + $0xd30] sm:$0xf] %v950_v38  ;;  %v954_v40 = vld [vmem:[%s13058_s21 + $0xd40] sm:$0xf]  ;;  %v956_v41 = vld [vmem:[%s13058_s21 + $0xd44] sm:$0xf] }
 0x12c   : > { %953 = vst [vmem:[%s13054_s20 + $0xd38] sm:$0xf] %v952_v39  ;;  %955 = vst [vmem:[%s13054_s20 + $0xd40] sm:$0xf] %v954_v40  ;;  %v958_v42 = vld [vmem:[%s13058_s21 + $0xd50] sm:$0xf] }
 0x12d   : > { %957 = vst [vmem:[%s13054_s20 + $0xd48] sm:$0xf] %v956_v41  ;;  %v960_v43 = vld [vmem:[%s13058_s21 + $0xd54] sm:$0xf]  ;;  %v962_v44 = vld [vmem:[%s13058_s21 + $0xd60] sm:$0xf] }
 0x12e   : > { %959 = vst [vmem:[%s13054_s20 + $0xd50] sm:$0xf] %v958_v42  ;;  %961 = vst [vmem:[%s13054_s20 + $0xd58] sm:$0xf] %v960_v43  ;;  %v964_v45 = vld [vmem:[%s13058_s21 + $0xd64] sm:$0xf] }
 0x12f   : > { %963 = vst [vmem:[%s13054_s20 + $0xd60] sm:$0xf] %v962_v44  ;;  %v966_v46 = vld [vmem:[%s13058_s21 + $0xd70] sm:$0xf]  ;;  %v968_v47 = vld [vmem:[%s13058_s21 + $0xd74] sm:$0xf] }
 0x130   : > { %965 = vst [vmem:[%s13054_s20 + $0xd68] sm:$0xf] %v964_v45  ;;  %967 = vst [vmem:[%s13054_s20 + $0xd70] sm:$0xf] %v966_v46  ;;  %v970_v48 = vld [vmem:[%s13058_s21 + $0xd80] sm:$0xf] }
 0x131   : > { %969 = vst [vmem:[%s13054_s20 + $0xd78] sm:$0xf] %v968_v47  ;;  %v972_v49 = vld [vmem:[%s13058_s21 + $0xd84] sm:$0xf]  ;;  %v974_v50 = vld [vmem:[%s13058_s21 + $0xd90] sm:$0xf] }
 0x132   : > { %971 = vst [vmem:[%s13054_s20 + $0xd80] sm:$0xf] %v970_v48  ;;  %973 = vst [vmem:[%s13054_s20 + $0xd88] sm:$0xf] %v972_v49  ;;  %v976_v51 = vld [vmem:[%s13058_s21 + $0xd94] sm:$0xf] }
 0x133   : > { %975 = vst [vmem:[%s13054_s20 + $0xd90] sm:$0xf] %v974_v50  ;;  %v978_v52 = vld [vmem:[%s13058_s21 + $0xda0] sm:$0xf]  ;;  %v980_v53 = vld [vmem:[%s13058_s21 + $0xda4] sm:$0xf] }
 0x134   : > { %977 = vst [vmem:[%s13054_s20 + $0xd98] sm:$0xf] %v976_v51  ;;  %979 = vst [vmem:[%s13054_s20 + $0xda0] sm:$0xf] %v978_v52  ;;  %v982_v54 = vld [vmem:[%s13058_s21 + $0xdb0] sm:$0xf] }
 0x135   : > { %981 = vst [vmem:[%s13054_s20 + $0xda8] sm:$0xf] %v980_v53  ;;  %v984_v55 = vld [vmem:[%s13058_s21 + $0xdb4] sm:$0xf]  ;;  %v986_v56 = vld [vmem:[%s13058_s21 + $0xdc0] sm:$0xf] }
 0x136   : > { %983 = vst [vmem:[%s13054_s20 + $0xdb0] sm:$0xf] %v982_v54  ;;  %985 = vst [vmem:[%s13054_s20 + $0xdb8] sm:$0xf] %v984_v55  ;;  %v988_v57 = vld [vmem:[%s13058_s21 + $0xdc4] sm:$0xf] }
 0x137   : > { %987 = vst [vmem:[%s13054_s20 + $0xdc0] sm:$0xf] %v986_v56  ;;  %v990_v58 = vld [vmem:[%s13058_s21 + $0xdd0] sm:$0xf]  ;;  %v992_v59 = vld [vmem:[%s13058_s21 + $0xdd4] sm:$0xf] }
 0x138   : > { %989 = vst [vmem:[%s13054_s20 + $0xdc8] sm:$0xf] %v988_v57  ;;  %991 = vst [vmem:[%s13054_s20 + $0xdd0] sm:$0xf] %v990_v58  ;;  %v994_v60 = vld [vmem:[%s13058_s21 + $0xde0] sm:$0xf] }
 0x139   : > { %993 = vst [vmem:[%s13054_s20 + $0xdd8] sm:$0xf] %v992_v59  ;;  %v996_v61 = vld [vmem:[%s13058_s21 + $0xde4] sm:$0xf]  ;;  %v998_v62 = vld [vmem:[%s13058_s21 + $0xdf0] sm:$0xf] }
 0x13a   : > { %995 = vst [vmem:[%s13054_s20 + $0xde0] sm:$0xf] %v994_v60  ;;  %997 = vst [vmem:[%s13054_s20 + $0xde8] sm:$0xf] %v996_v61  ;;  %v1000_v63 = vld [vmem:[%s13058_s21 + $0xdf4] sm:$0xf] }
 0x13b   : > { %999 = vst [vmem:[%s13054_s20 + $0xdf0] sm:$0xf] %v998_v62  ;;  %v1002_v0 = vld [vmem:[%s13058_s21 + $0xe00] sm:$0xf]  ;;  %v1004_v1 = vld [vmem:[%s13058_s21 + $0xe04] sm:$0xf] }
 0x13c   : > { %1001 = vst [vmem:[%s13054_s20 + $0xdf8] sm:$0xf] %v1000_v63  ;;  %1003 = vst [vmem:[%s13054_s20 + $0xe00] sm:$0xf] %v1002_v0  ;;  %v1006_v2 = vld [vmem:[%s13058_s21 + $0xe10] sm:$0xf] }
 0x13d   : > { %1005 = vst [vmem:[%s13054_s20 + $0xe08] sm:$0xf] %v1004_v1  ;;  %v1008_v3 = vld [vmem:[%s13058_s21 + $0xe14] sm:$0xf]  ;;  %v1010_v4 = vld [vmem:[%s13058_s21 + $0xe20] sm:$0xf] }
 0x13e   : > { %1007 = vst [vmem:[%s13054_s20 + $0xe10] sm:$0xf] %v1006_v2  ;;  %1009 = vst [vmem:[%s13054_s20 + $0xe18] sm:$0xf] %v1008_v3  ;;  %v1012_v5 = vld [vmem:[%s13058_s21 + $0xe24] sm:$0xf] }
 0x13f   : > { %1011 = vst [vmem:[%s13054_s20 + $0xe20] sm:$0xf] %v1010_v4  ;;  %v1014_v6 = vld [vmem:[%s13058_s21 + $0xe30] sm:$0xf]  ;;  %v1016_v7 = vld [vmem:[%s13058_s21 + $0xe34] sm:$0xf] }
 0x140   : > { %1013 = vst [vmem:[%s13054_s20 + $0xe28] sm:$0xf] %v1012_v5  ;;  %1015 = vst [vmem:[%s13054_s20 + $0xe30] sm:$0xf] %v1014_v6  ;;  %v1018_v8 = vld [vmem:[%s13058_s21 + $0xe40] sm:$0xf] }
 0x141   : > { %1017 = vst [vmem:[%s13054_s20 + $0xe38] sm:$0xf] %v1016_v7  ;;  %v1020_v9 = vld [vmem:[%s13058_s21 + $0xe44] sm:$0xf]  ;;  %v1022_v10 = vld [vmem:[%s13058_s21 + $0xe50] sm:$0xf] }
 0x142   : > { %1019 = vst [vmem:[%s13054_s20 + $0xe40] sm:$0xf] %v1018_v8  ;;  %1021 = vst [vmem:[%s13054_s20 + $0xe48] sm:$0xf] %v1020_v9  ;;  %v1024_v11 = vld [vmem:[%s13058_s21 + $0xe54] sm:$0xf] }
 0x143   : > { %1023 = vst [vmem:[%s13054_s20 + $0xe50] sm:$0xf] %v1022_v10  ;;  %v1026_v12 = vld [vmem:[%s13058_s21 + $0xe60] sm:$0xf]  ;;  %v1028_v13 = vld [vmem:[%s13058_s21 + $0xe64] sm:$0xf] }
 0x144   : > { %1025 = vst [vmem:[%s13054_s20 + $0xe58] sm:$0xf] %v1024_v11  ;;  %1027 = vst [vmem:[%s13054_s20 + $0xe60] sm:$0xf] %v1026_v12  ;;  %v1030_v14 = vld [vmem:[%s13058_s21 + $0xe70] sm:$0xf] }
 0x145   : > { %1029 = vst [vmem:[%s13054_s20 + $0xe68] sm:$0xf] %v1028_v13  ;;  %v1032_v15 = vld [vmem:[%s13058_s21 + $0xe74] sm:$0xf]  ;;  %v1034_v16 = vld [vmem:[%s13058_s21 + $0xe80] sm:$0xf] }
 0x146   : > { %1031 = vst [vmem:[%s13054_s20 + $0xe70] sm:$0xf] %v1030_v14  ;;  %1033 = vst [vmem:[%s13054_s20 + $0xe78] sm:$0xf] %v1032_v15  ;;  %v1036_v17 = vld [vmem:[%s13058_s21 + $0xe84] sm:$0xf] }
 0x147   : > { %1035 = vst [vmem:[%s13054_s20 + $0xe80] sm:$0xf] %v1034_v16  ;;  %v1038_v18 = vld [vmem:[%s13058_s21 + $0xe90] sm:$0xf]  ;;  %v1040_v19 = vld [vmem:[%s13058_s21 + $0xe94] sm:$0xf] }
 0x148   : > { %1037 = vst [vmem:[%s13054_s20 + $0xe88] sm:$0xf] %v1036_v17  ;;  %1039 = vst [vmem:[%s13054_s20 + $0xe90] sm:$0xf] %v1038_v18  ;;  %v1042_v20 = vld [vmem:[%s13058_s21 + $0xea0] sm:$0xf] }
 0x149   : > { %1041 = vst [vmem:[%s13054_s20 + $0xe98] sm:$0xf] %v1040_v19  ;;  %v1044_v21 = vld [vmem:[%s13058_s21 + $0xea4] sm:$0xf]  ;;  %v1046_v22 = vld [vmem:[%s13058_s21 + $0xeb0] sm:$0xf] }
 0x14a   : > { %1043 = vst [vmem:[%s13054_s20 + $0xea0] sm:$0xf] %v1042_v20  ;;  %1045 = vst [vmem:[%s13054_s20 + $0xea8] sm:$0xf] %v1044_v21  ;;  %v1048_v23 = vld [vmem:[%s13058_s21 + $0xeb4] sm:$0xf] }
 0x14b   : > { %1047 = vst [vmem:[%s13054_s20 + $0xeb0] sm:$0xf] %v1046_v22  ;;  %v1050_v24 = vld [vmem:[%s13058_s21 + $0xec0] sm:$0xf]  ;;  %v1052_v25 = vld [vmem:[%s13058_s21 + $0xec4] sm:$0xf] }
 0x14c   : > { %1049 = vst [vmem:[%s13054_s20 + $0xeb8] sm:$0xf] %v1048_v23  ;;  %1051 = vst [vmem:[%s13054_s20 + $0xec0] sm:$0xf] %v1050_v24  ;;  %v1054_v26 = vld [vmem:[%s13058_s21 + $0xed0] sm:$0xf] }
 0x14d   : > { %1053 = vst [vmem:[%s13054_s20 + $0xec8] sm:$0xf] %v1052_v25  ;;  %v1056_v27 = vld [vmem:[%s13058_s21 + $0xed4] sm:$0xf]  ;;  %v1058_v28 = vld [vmem:[%s13058_s21 + $0xee0] sm:$0xf] }
 0x14e   : > { %1055 = vst [vmem:[%s13054_s20 + $0xed0] sm:$0xf] %v1054_v26  ;;  %1057 = vst [vmem:[%s13054_s20 + $0xed8] sm:$0xf] %v1056_v27  ;;  %v1060_v29 = vld [vmem:[%s13058_s21 + $0xee4] sm:$0xf] }
 0x14f   : > { %1059 = vst [vmem:[%s13054_s20 + $0xee0] sm:$0xf] %v1058_v28  ;;  %v1062_v30 = vld [vmem:[%s13058_s21 + $0xef0] sm:$0xf]  ;;  %v1064_v31 = vld [vmem:[%s13058_s21 + $0xef4] sm:$0xf] }
 0x150   : > { %1061 = vst [vmem:[%s13054_s20 + $0xee8] sm:$0xf] %v1060_v29  ;;  %1063 = vst [vmem:[%s13054_s20 + $0xef0] sm:$0xf] %v1062_v30  ;;  %v1066_v32 = vld [vmem:[%s13058_s21 + $0xf00] sm:$0xf] }
 0x151   : > { %1065 = vst [vmem:[%s13054_s20 + $0xef8] sm:$0xf] %v1064_v31  ;;  %v1068_v33 = vld [vmem:[%s13058_s21 + $0xf04] sm:$0xf]  ;;  %v1070_v34 = vld [vmem:[%s13058_s21 + $0xf10] sm:$0xf] }
 0x152   : > { %1067 = vst [vmem:[%s13054_s20 + $0xf00] sm:$0xf] %v1066_v32  ;;  %1069 = vst [vmem:[%s13054_s20 + $0xf08] sm:$0xf] %v1068_v33  ;;  %v1072_v35 = vld [vmem:[%s13058_s21 + $0xf14] sm:$0xf] }
 0x153   : > { %1071 = vst [vmem:[%s13054_s20 + $0xf10] sm:$0xf] %v1070_v34  ;;  %v1074_v36 = vld [vmem:[%s13058_s21 + $0xf20] sm:$0xf]  ;;  %v1076_v37 = vld [vmem:[%s13058_s21 + $0xf24] sm:$0xf] }
 0x154   : > { %1073 = vst [vmem:[%s13054_s20 + $0xf18] sm:$0xf] %v1072_v35  ;;  %1075 = vst [vmem:[%s13054_s20 + $0xf20] sm:$0xf] %v1074_v36  ;;  %v1078_v38 = vld [vmem:[%s13058_s21 + $0xf30] sm:$0xf] }
 0x155   : > { %1077 = vst [vmem:[%s13054_s20 + $0xf28] sm:$0xf] %v1076_v37  ;;  %v1080_v39 = vld [vmem:[%s13058_s21 + $0xf34] sm:$0xf]  ;;  %v1082_v40 = vld [vmem:[%s13058_s21 + $0xf40] sm:$0xf] }
 0x156   : > { %1079 = vst [vmem:[%s13054_s20 + $0xf30] sm:$0xf] %v1078_v38  ;;  %1081 = vst [vmem:[%s13054_s20 + $0xf38] sm:$0xf] %v1080_v39  ;;  %v1084_v41 = vld [vmem:[%s13058_s21 + $0xf44] sm:$0xf] }
 0x157   : > { %1083 = vst [vmem:[%s13054_s20 + $0xf40] sm:$0xf] %v1082_v40  ;;  %v1086_v42 = vld [vmem:[%s13058_s21 + $0xf50] sm:$0xf]  ;;  %v1088_v43 = vld [vmem:[%s13058_s21 + $0xf54] sm:$0xf] }
 0x158   : > { %1085 = vst [vmem:[%s13054_s20 + $0xf48] sm:$0xf] %v1084_v41  ;;  %1087 = vst [vmem:[%s13054_s20 + $0xf50] sm:$0xf] %v1086_v42  ;;  %v1090_v44 = vld [vmem:[%s13058_s21 + $0xf60] sm:$0xf] }
 0x159   : > { %1089 = vst [vmem:[%s13054_s20 + $0xf58] sm:$0xf] %v1088_v43  ;;  %v1092_v45 = vld [vmem:[%s13058_s21 + $0xf64] sm:$0xf]  ;;  %v1094_v46 = vld [vmem:[%s13058_s21 + $0xf70] sm:$0xf] }
 0x15a   : > { %1091 = vst [vmem:[%s13054_s20 + $0xf60] sm:$0xf] %v1090_v44  ;;  %1093 = vst [vmem:[%s13054_s20 + $0xf68] sm:$0xf] %v1092_v45  ;;  %v1096_v47 = vld [vmem:[%s13058_s21 + $0xf74] sm:$0xf] }
 0x15b   : > { %1095 = vst [vmem:[%s13054_s20 + $0xf70] sm:$0xf] %v1094_v46  ;;  %v1098_v48 = vld [vmem:[%s13058_s21 + $0xf80] sm:$0xf]  ;;  %v1100_v49 = vld [vmem:[%s13058_s21 + $0xf84] sm:$0xf] }
 0x15c   : > { %1097 = vst [vmem:[%s13054_s20 + $0xf78] sm:$0xf] %v1096_v47  ;;  %1099 = vst [vmem:[%s13054_s20 + $0xf80] sm:$0xf] %v1098_v48  ;;  %v1102_v50 = vld [vmem:[%s13058_s21 + $0xf90] sm:$0xf] }
 0x15d   : > { %1101 = vst [vmem:[%s13054_s20 + $0xf88] sm:$0xf] %v1100_v49  ;;  %v1104_v51 = vld [vmem:[%s13058_s21 + $0xf94] sm:$0xf]  ;;  %v1106_v52 = vld [vmem:[%s13058_s21 + $0xfa0] sm:$0xf] }
 0x15e   : > { %1103 = vst [vmem:[%s13054_s20 + $0xf90] sm:$0xf] %v1102_v50  ;;  %1105 = vst [vmem:[%s13054_s20 + $0xf98] sm:$0xf] %v1104_v51  ;;  %v1108_v53 = vld [vmem:[%s13058_s21 + $0xfa4] sm:$0xf] }
 0x15f   : > { %1107 = vst [vmem:[%s13054_s20 + $0xfa0] sm:$0xf] %v1106_v52  ;;  %v1110_v54 = vld [vmem:[%s13058_s21 + $0xfb0] sm:$0xf]  ;;  %v1112_v55 = vld [vmem:[%s13058_s21 + $0xfb4] sm:$0xf] }
 0x160   : > { %1109 = vst [vmem:[%s13054_s20 + $0xfa8] sm:$0xf] %v1108_v53  ;;  %1111 = vst [vmem:[%s13054_s20 + $0xfb0] sm:$0xf] %v1110_v54  ;;  %v1114_v56 = vld [vmem:[%s13058_s21 + $0xfc0] sm:$0xf] }
 0x161   : > { %1113 = vst [vmem:[%s13054_s20 + $0xfb8] sm:$0xf] %v1112_v55  ;;  %v1116_v57 = vld [vmem:[%s13058_s21 + $0xfc4] sm:$0xf]  ;;  %v1118_v58 = vld [vmem:[%s13058_s21 + $0xfd0] sm:$0xf] }
 0x162   : > { %1115 = vst [vmem:[%s13054_s20 + $0xfc0] sm:$0xf] %v1114_v56  ;;  %1117 = vst [vmem:[%s13054_s20 + $0xfc8] sm:$0xf] %v1116_v57  ;;  %v1120_v59 = vld [vmem:[%s13058_s21 + $0xfd4] sm:$0xf] }
 0x163   : > { %1119 = vst [vmem:[%s13054_s20 + $0xfd0] sm:$0xf] %v1118_v58  ;;  %v1122_v60 = vld [vmem:[%s13058_s21 + $0xfe0] sm:$0xf]  ;;  %v1124_v61 = vld [vmem:[%s13058_s21 + $0xfe4] sm:$0xf] }
 0x164   : > { %1121 = vst [vmem:[%s13054_s20 + $0xfd8] sm:$0xf] %v1120_v59  ;;  %1123 = vst [vmem:[%s13054_s20 + $0xfe0] sm:$0xf] %v1122_v60  ;;  %v1126_v62 = vld [vmem:[%s13058_s21 + $0xff0] sm:$0xf] }
 0x165   : > { %1125 = vst [vmem:[%s13054_s20 + $0xfe8] sm:$0xf] %v1124_v61  ;;  %v1128_v63 = vld [vmem:[%s13058_s21 + $0xff4] sm:$0xf]  ;;  %1127 = vst [vmem:[%s13054_s20 + $0xff0] sm:$0xf] %v1126_v62 }
 0x166   : > { %1129 = vst [vmem:[%s13054_s20 + $0xff8] sm:$0xf] %v1128_v63  ;;  %p1131_p0 = scmp.ge.s32.totalorder %s1130_s14, 2  ;;  %s102_s25 = sadd.s32 1, %s13066_s25  }
 0x167   : > { %p99_p1 = scmp.ge.s32.totalorder %s102_s25, 2  }
 0x168   : > { %s15624_s14 = smov (%p1131_p0, %s1130_s14), 0 }
 0x169   : > { %s11307_s23 = sshll.u32 %s15624_s14, 3  ;;  %s11308_s26 = sshll.u32 %s15624_s14, 2 }
 0x16a   : > { %s1135_s21 = scalar_lea.vmem %s15614_s15, %s11307_s23   ;;  %s1136_s20 = scalar_lea.vmem [#allocation3], %s11308_s26  }
 0x16b   : > { %s15620_s16 = smov %s15624_s14  ;;  %101 = sbr.rel (!%p99_p1) target bundleno = 17 (0x11), region = 267 }
 0x172   :  { %4306 = vsyncadd [#allocation4 + $0x1], 65536  ;;  %v12914_v0 = vld [vmem:[%s15600_s1] sm:$0xff]   ;;  %v12915_v1 = vld [vmem:[%s15600_s1 + $0x8] sm:$0xff]   ;;  %vm4379_vm0 = vcmask 261120   ;;  %s15621_s22 = sld [smem:[#allocation10_spill]] }
 0x173   :  { %12032 = vmatprep.subr.bf16.mxu1 %v12914_v0  ;;  %vm4503_vm1 = vcmask 523264   ;;  %v12924_v60 = vld [vmem:[%s15603_s4] sm:$0xff]  }
 0x174   :  { %12033 = vmatpush3.bf16.msra.mxu1 %v12914_v0  ;;  %v12926_v62 = vld [vmem:[%s15603_s4 + $0x20] sm:$0xff]  }
 0x175   :  { %12034 = vmatprep.subr.bf16.mxu1 %v12915_v1  ;;  %12132 = vmatprep.mubr.bf16.mxu0 %v12926_v62 }
 0x178   :  { %v12916_v2 = vld [vmem:[%s15621_s22] sm:$0xff]   ;;  %v12917_v3 = vld [vmem:[%s15621_s22 + $0x8] sm:$0xff]   ;;  %12035 = vmatpush3.bf16.msra.mxu1 %v12915_v1  ;;  %v12918_v4 = vld [vmem:[%s15621_s22 + $0x10] sm:$0xff]  }
 0x179   :  { %12036 = vmatprep.mubr.msk.bf16.mxu1 %vm4379_vm0, %v12916_v2  ;;  %v12919_v5 = vld [vmem:[%s15621_s22 + $0x18] sm:$0xff]   ;;  %v12920_v6 = vld [vmem:[%s15621_s22 + $0x20] sm:$0xff]   ;;  %v12921_v7 = vld [vmem:[%s15621_s22 + $0x28] sm:$0xff]  }
 0x17a   :  { %v12922_v8 = vld [vmem:[%s15621_s22 + $0x30] sm:$0xff]   ;;  %v12923_v9 = vld [vmem:[%s15621_s22 + $0x38] sm:$0xff]  }
 0x17b   :  { %12037 = vmatmul.mubr.msk.bf16.vlgmr.msra.gmra.mrb[0].mxu1 %vm4379_vm0, %v12917_v3 }
 0x17c   :  { %12040 = vmatprep.mubr.msk.bf16.mxu1 %vm4379_vm0, %v12918_v4 }
 0x183   :  { %12041 = vmatmul.mubr.msk.bf16.gmra.mrb[4].mxu1 %vm4379_vm0, %v12919_v5 }
 0x184   :  { %12044 = vmatprep.mubr.msk.bf16.mxu1 %vm4379_vm0, %v12920_v6 }
 0x18b   :  { %12045 = vmatmul.mubr.msk.bf16.gmra.mrb[8].mxu1 %vm4379_vm0, %v12921_v7 }
 0x18c   :  { %12048 = vmatprep.mubr.msk.bf16.mxu1 %vm4379_vm0, %v12922_v8 }
 0x193   :  { %12049 = vmatmul.mubr.msk.bf16.gmra.mrb[12].mxu1 %vm4379_vm0, %v12923_v9 }
 0x194   :  { %12068 = vmatprep.mubr.bf16.mxu1 %v12924_v60 }
 0x24e   :  { %v12038_v10 = vpop.f32.mrb[0].mxu1 }
 0x24f   :  { %v4438_v11 = vpop.f32.mrb[1].mxu1  ;;  %v4507_v17 = vsel %vm4503_vm1, %v12038_v10, 0.0 }
 0x250   :  { %v12039_v12 = vpop.f32.mrb[2].mxu1  ;;  %v4504_v14 = vsel %vm4503_vm1, %v4438_v11, 0.0 }
 0x251   :  { %v4441_v13 = vpop.f32.mrb[3].mxu1  ;;  %v4509_v19 = vsel %vm4503_vm1, %v12039_v12, 0.0 }
 0x252   :  { %v4505_v15 = vsel %vm4503_vm1, %v4441_v13, 0.0 }
 0x253   :  { %v4506_v16 = vadd.f32 %v4505_v15, %v4504_v14 }
 0x255   :  { %v4508_v18 = vadd.f32 %v4507_v17, %v4506_v16 }
 0x256   :  { %v12042_v20 = vpop.f32.mrb[4].mxu1 }
 0x257   :  { %v4454_v21 = vpop.f32.mrb[5].mxu1  ;;  %v4510_v22 = vadd.f32 %v4509_v19, %v4508_v18  ;;  %v4515_v29 = vsel %vm4503_vm1, %v12042_v20, 0.0 }
 0x258   :  { %v4511_v23 = vsel %vm4503_vm1, %v4454_v21, 0.0  ;;  %v12043_v24 = vpop.f32.mrb[6].mxu1 }
 0x259   :  { %v4512_v25 = vadd.f32 %v4511_v23, %v4510_v22  ;;  %v4457_v26 = vpop.f32.mrb[7].mxu1  ;;  %v4517_v31 = vsel %vm4503_vm1, %v12043_v24, 0.0 }
 0x25a   :  { %v4513_v27 = vsel %vm4503_vm1, %v4457_v26, 0.0 }
 0x25b   :  { %v4514_v28 = vadd.f32 %v4513_v27, %v4512_v25 }
 0x25d   :  { %v4516_v30 = vadd.f32 %v4515_v29, %v4514_v28 }
 0x25e   :  { %v12046_v32 = vpop.f32.mrb[8].mxu1 }
 0x25f   :  { %v4470_v33 = vpop.f32.mrb[9].mxu1  ;;  %v4518_v34 = vadd.f32 %v4517_v31, %v4516_v30  ;;  %v4523_v41 = vsel %vm4503_vm1, %v12046_v32, 0.0 }
 0x260   :  { %v4519_v35 = vsel %vm4503_vm1, %v4470_v33, 0.0  ;;  %v12047_v36 = vpop.f32.mrb[10].mxu1 }
 0x261   :  { %v4520_v37 = vadd.f32 %v4519_v35, %v4518_v34  ;;  %v4473_v38 = vpop.f32.mrb[11].mxu1  ;;  %v4525_v43 = vsel %vm4503_vm1, %v12047_v36, 0.0 }
 0x262   :  { %v4521_v39 = vsel %vm4503_vm1, %v4473_v38, 0.0 }
 0x263   :  { %v4522_v40 = vadd.f32 %v4521_v39, %v4520_v37 }
 0x265   :  { %v4524_v42 = vadd.f32 %v4523_v41, %v4522_v40 }
 0x266   :  { %v12050_v44 = vpop.f32.mrb[12].mxu1 }
 0x267   :  { %v4486_v45 = vpop.f32.mrb[13].mxu1  ;;  %v4526_v46 = vadd.f32 %v4525_v43, %v4524_v42  ;;  %v4531_v53 = vsel %vm4503_vm1, %v12050_v44, 0.0 }
 0x268   :  { %v4527_v47 = vsel %vm4503_vm1, %v4486_v45, 0.0  ;;  %v12051_v48 = vpop.f32.mrb[14].mxu1 }
 0x269   :  { %v4528_v49 = vadd.f32 %v4527_v47, %v4526_v46  ;;  %v4489_v50 = vpop.f32.mrb[15].mxu1  ;;  %v4533_v55 = vsel %vm4503_vm1, %v12051_v48, 0.0 }
 0x26a   :  { %v4529_v51 = vsel %vm4503_vm1, %v4489_v50, 0.0 }
 0x26b   :  { %v4530_v52 = vadd.f32 %v4529_v51, %v4528_v49 }
 0x26d   :  { %v4532_v54 = vadd.f32 %v4531_v53, %v4530_v52 }
 0x26f   :  { %v4534_v56 = vadd.f32 %v4533_v55, %v4532_v54 }
 0x271   :  { %v4535_v57 = vrot.slane %v4534_v56, 4 }
 0x273   :  { %v4536_v58 = vadd.f32 %v4535_v57, %v4534_v56 }
 0x275   :  { %v4537_v59 = vrot.slane %v4536_v58, 2 }
 0x277   :  { %v4538_v61 = vadd.f32 %v4537_v59, %v4536_v58 }
 0x279   :  { %v4539_v63 = vrot.slane %v4538_v61, 1 }
 0x27b   :  { %v4540_v0 = vadd.f32 %v4539_v63, %v4538_v61 }
 0x27d   :  { %v4541_v1 = vmul.f32 0.0078125, %v4540_v0 }
 0x27f   :  { %v14288_v2 = vsub.f32 %v4438_v11, %v4541_v1  ;;  %v14290_v3 = vsub.f32 %v4441_v13, %v4541_v1  ;;  %v14292_v4 = vsub.f32 %v12038_v10, %v4541_v1  ;;  %v14294_v5 = vsub.f32 %v12039_v12, %v4541_v1 }
 0x280   :  { %v14296_v6 = vsub.f32 %v4454_v21, %v4541_v1  ;;  %v14298_v7 = vsub.f32 %v4457_v26, %v4541_v1  ;;  %v14300_v8 = vsub.f32 %v12042_v20, %v4541_v1  ;;  %v14302_v9 = vsub.f32 %v12043_v24, %v4541_v1 }
 0x281   :  { %v14304_v14 = vsub.f32 %v4470_v33, %v4541_v1  ;;  %v14306_v15 = vsub.f32 %v4473_v38, %v4541_v1  ;;  %v14308_v11 = vsub.f32 %v12046_v32, %v4541_v1  ;;  %v14310_v13 = vsub.f32 %v12047_v36, %v4541_v1 }
 0x282   :  { %v14312_v10 = vsub.f32 %v4486_v45, %v4541_v1  ;;  %v14314_v12 = vsub.f32 %v4489_v50, %v4541_v1  ;;  %v14316_v16 = vsub.f32 %v12050_v44, %v4541_v1  ;;  %v14318_v17 = vsub.f32 %v12051_v48, %v4541_v1 }
 0x283   :  { %v4558_v18 = vmul.f32 %v14288_v2, %v14288_v2  ;;  %v4559_v19 = vmul.f32 %v14290_v3, %v14290_v3  ;;  %v4560_v20 = vmul.f32 %v14292_v4, %v14292_v4  ;;  %v4561_v21 = vmul.f32 %v14294_v5, %v14294_v5 }
 0x284   :  { %v4562_v25 = vmul.f32 %v14296_v6, %v14296_v6  ;;  %v4563_v28 = vmul.f32 %v14298_v7, %v14298_v7  ;;  %v4564_v31 = vmul.f32 %v14300_v8, %v14300_v8  ;;  %v4565_v34 = vmul.f32 %v14302_v9, %v14302_v9 }
 0x285   :  { %v4574_v22 = vsel %vm4503_vm1, %v4558_v18, 0.0  ;;  %v4575_v23 = vsel %vm4503_vm1, %v4559_v19, 0.0  ;;  %v4577_v26 = vsel %vm4503_vm1, %v4560_v20, 0.0  ;;  %v4579_v29 = vsel %vm4503_vm1, %v4561_v21, 0.0 }
 0x286   :  { %v4576_v24 = vadd.f32 %v4575_v23, %v4574_v22  ;;  %v4581_v32 = vsel %vm4503_vm1, %v4562_v25, 0.0  ;;  %v4583_v35 = vsel %vm4503_vm1, %v4563_v28, 0.0  ;;  %v4566_v37 = vmul.f32 %v14304_v14, %v14304_v14 }
 0x287   :  { %v4585_v38 = vsel %vm4503_vm1, %v4564_v31, 0.0  ;;  %v4567_v40 = vmul.f32 %v14306_v15, %v14306_v15  ;;  %v4587_v41 = vsel %vm4503_vm1, %v4565_v34, 0.0  ;;  %v4568_v43 = vmul.f32 %v14308_v11, %v14308_v11 }
 0x288   :  { %v4578_v27 = vadd.f32 %v4577_v26, %v4576_v24  ;;  %v4589_v44 = vsel %vm4503_vm1, %v4566_v37, 0.0  ;;  %v4569_v46 = vmul.f32 %v14310_v13, %v14310_v13  ;;  %v4570_v49 = vmul.f32 %v14312_v10, %v14312_v10 }
 0x289   :  { %v4591_v47 = vsel %vm4503_vm1, %v4567_v40, 0.0  ;;  %v4593_v50 = vsel %vm4503_vm1, %v4568_v43, 0.0  ;;  %v4571_v52 = vmul.f32 %v14314_v12, %v14314_v12  ;;  %v4572_v55 = vmul.f32 %v14316_v16, %v14316_v16 }
 0x28a   :  { %v4580_v30 = vadd.f32 %v4579_v29, %v4578_v27  ;;  %v4595_v53 = vsel %vm4503_vm1, %v4569_v46, 0.0  ;;  %v4597_v56 = vsel %vm4503_vm1, %v4570_v49, 0.0  ;;  %v4573_v58 = vmul.f32 %v14318_v17, %v14318_v17  ;;  %v4501_v27 = vld [vmem:[%s15601_s2] sm:$0x1] }
 0x28b   :  { %v4599_v59 = vsel %vm4503_vm1, %v4571_v52, 0.0  ;;  %v4601_v61 = vsel %vm4503_vm1, %v4572_v55, 0.0  ;;  %v4616_v25 = vlaneseq }
 0x28c   :  { %v4582_v33 = vadd.f32 %v4581_v32, %v4580_v30  ;;  %v4603_v63 = vsel %vm4503_vm1, %v4573_v58, 0.0 }
 0x28d   :  { %v14368_v26 = vshrl.u32 %v4616_v25, 7 }
 0x28e   :  { %v4584_v36 = vadd.f32 %v4583_v35, %v4582_v33 }
 0x28f   :  { %v14374_v28 = vsub.s32 0, %v14368_v26 }
 0x290   :  { %v4586_v39 = vadd.f32 %v4585_v38, %v4584_v36  ;;  %v11327_v36 = vld [vmem:[%s15602_s3] ss:$0 sm:$0xff] }
 0x292   :  { %v4588_v42 = vadd.f32 %v4587_v41, %v4586_v39 }
 0x294   :  { %v4590_v45 = vadd.f32 %v4589_v44, %v4588_v42 }
 0x296   :  { %v4592_v48 = vadd.f32 %v4591_v47, %v4590_v45 }
 0x298   :  { %v4594_v51 = vadd.f32 %v4593_v50, %v4592_v48 }
 0x29a   :  { %v4596_v54 = vadd.f32 %v4595_v53, %v4594_v51 }
 0x29c   :  { %v4598_v57 = vadd.f32 %v4597_v56, %v4596_v54 }
 0x29e   :  { %v4600_v60 = vadd.f32 %v4599_v59, %v4598_v57 }
 0x2a0   :  { %v4602_v62 = vadd.f32 %v4601_v61, %v4600_v60 }
 0x2a2   :  { %v4604_v0 = vadd.f32 %v4603_v63, %v4602_v62 }
 0x2a4   :  { %v4605_v1 = vrot.slane %v4604_v0, 4 }
 0x2a6   :  { %v4606_v18 = vadd.f32 %v4605_v1, %v4604_v0 }
 0x2a8   :  { %v4607_v19 = vrot.slane %v4606_v18, 2 }
 0x2aa   :  { %v4608_v20 = vadd.f32 %v4607_v19, %v4606_v18 }
 0x2ac   :  { %v4609_v21 = vrot.slane %v4608_v20, 1 }
 0x2ae   :  { %v4610_v22 = vadd.f32 %v4609_v21, %v4608_v20 }
 0x2b0   :  { %v4611_v23 = vmul.f32 0.0078125, %v4610_v22 }
 0x2b2   :  { %v4612_v24 = vadd.f32 1e-05, %v4611_v23 }
 0x2b4   :  { %13020 = vrsqrt.f32 %v4612_v24 }
 0x2be   :  { %v13021_v29 = vpop.eup %13020 }
 0x2bf   :  { %v4614_v30 = vmul.f32 %v13021_v29, %v4501_v27 }
 0x2c1   :  { %v4619_v31 = vrot.slane %v4614_v30, %v14374_v28 }
 0x2c3   :  { %v4621_v32 = vmul.f32 %v4619_v31, %v14288_v2  ;;  %v4622_v33 = vmul.f32 %v4619_v31, %v14290_v3  ;;  %v4623_v34 = vmul.f32 %v4619_v31, %v14292_v4  ;;  %v4624_v35 = vmul.f32 %v4619_v31, %v14294_v5 }
 0x2c4   :  { %v4625_v37 = vmul.f32 %v4619_v31, %v14296_v6  ;;  %v4626_v38 = vmul.f32 %v4619_v31, %v14298_v7  ;;  %v4627_v39 = vmul.f32 %v4619_v31, %v14300_v8  ;;  %v4628_v40 = vmul.f32 %v4619_v31, %v14302_v9 }
 0x2c5   :  { %v4629_v2 = vmul.f32 %v4619_v31, %v14304_v14  ;;  %v4630_v3 = vmul.f32 %v4619_v31, %v14306_v15  ;;  %v4631_v4 = vmul.f32 %v4619_v31, %v14308_v11  ;;  %v4632_v5 = vmul.f32 %v4619_v31, %v14310_v13 }
 0x2c6   :  { %v4633_v41 = vmul.f32 %v4619_v31, %v14312_v10  ;;  %v4634_v42 = vmul.f32 %v4619_v31, %v14314_v12  ;;  %v4635_v6 = vmul.f32 %v4619_v31, %v14316_v16  ;;  %v4636_v7 = vmul.f32 %v4619_v31, %v14318_v17 }
 0x2c7   :  { %v4643_v43 = vadd.f32 %v11327_v36, %v4621_v32  ;;  %v4644_v8 = vadd.f32 %v11327_v36, %v4622_v33  ;;  %v4645_v44 = vadd.f32 %v11327_v36, %v4623_v34  ;;  %v4646_v9 = vadd.f32 %v11327_v36, %v4624_v35 }
 0x2c8   :  { %v4647_v45 = vadd.f32 %v11327_v36, %v4625_v37  ;;  %v4648_v14 = vadd.f32 %v11327_v36, %v4626_v38  ;;  %v4649_v46 = vadd.f32 %v11327_v36, %v4627_v39  ;;  %v4650_v15 = vadd.f32 %v11327_v36, %v4628_v40 }
 0x2c9   :  { %v4651_v47 = vadd.f32 %v11327_v36, %v4629_v2  ;;  %v4652_v11 = vadd.f32 %v11327_v36, %v4630_v3  ;;  %v4653_v48 = vadd.f32 %v11327_v36, %v4631_v4  ;;  %v4654_v13 = vadd.f32 %v11327_v36, %v4632_v5  ;;  %v12925_v4 = vld [vmem:[%s15603_s4 + $0x8] sm:$0xff]  }
 0x2ca   :  { %v4655_v49 = vadd.f32 %v11327_v36, %v4633_v41  ;;  %v4656_v10 = vadd.f32 %v11327_v36, %v4634_v42  ;;  %v4657_v50 = vadd.f32 %v11327_v36, %v4635_v6  ;;  %v4659_v12 = vmul.f32 0.2, %v4643_v43  ;;  %v12927_v5 = vld [vmem:[%s15603_s4 + $0x28] sm:$0xff]   ;;  %v12928_v41 = vld [vmem:[%s15603_s4 + $0x10] sm:$0xff]   ;;  %v12929_v6 = vld [vmem:[%s15603_s4 + $0x18] sm:$0xff]  }
 0x2cb   :  { %v4660_v51 = vmul.f32 0.2, %v4644_v8  ;;  %v4661_v16 = vmul.f32 0.2, %v4645_v44  ;;  %v4658_v52 = vadd.f32 %v11327_v36, %v4636_v7  ;;  %v4662_v17 = vmul.f32 0.2, %v4646_v9 }
 0x2cc   :  { %v4663_v53 = vmul.f32 0.2, %v4647_v45  ;;  %v4664_v54 = vmul.f32 0.2, %v4648_v14  ;;  %v4665_v55 = vmul.f32 0.2, %v4649_v46  ;;  %v4675_v58 = vmax.f32 %v4643_v43, %v4659_v12 }
 0x2cd   :  { %v4666_v56 = vmul.f32 0.2, %v4650_v15  ;;  %v4667_v57 = vmul.f32 0.2, %v4651_v47  ;;  %v4668_v59 = vmul.f32 0.2, %v4652_v11  ;;  %v4676_v62 = vmax.f32 %v4644_v8, %v4660_v51 }
 0x2ce   :  { %v4669_v60 = vmul.f32 0.2, %v4653_v48  ;;  %v4670_v61 = vmul.f32 0.2, %v4654_v13  ;;  %v4671_v63 = vmul.f32 0.2, %v4655_v49  ;;  %v4677_v18 = vmax.f32 %v4645_v44, %v4661_v16 }
 0x2cf   :  { %v4672_v0 = vmul.f32 0.2, %v4656_v10  ;;  %v4673_v1 = vmul.f32 0.2, %v4657_v50  ;;  %v4674_v19 = vmul.f32 0.2, %v4658_v52  ;;  %v4678_v20 = vmax.f32 %v4646_v9, %v4662_v17 }
 0x2d0   :  { %v4679_v21 = vmax.f32 %v4647_v45, %v4663_v53  ;;  %v4680_v22 = vmax.f32 %v4648_v14, %v4664_v54  ;;  %v4681_v23 = vmax.f32 %v4649_v46, %v4665_v55  ;;  %v4682_v24 = vmax.f32 %v4650_v15, %v4666_v56  ;;  %v12930_v42 = vld [vmem:[%s15603_s4 + $0x30] sm:$0xff]   ;;  %v12931_v7 = vld [vmem:[%s15603_s4 + $0x38] sm:$0xff]   ;;  %v12934_v44 = vld [vmem:[%s15603_s4 + $0x60] sm:$0xff]  }
 0x2d1   :  { %v4683_v25 = vmax.f32 %v4651_v47, %v4667_v57  ;;  %v4684_v27 = vmax.f32 %v4652_v11, %v4668_v59  ;;  %v4685_v29 = vmax.f32 %v4653_v48, %v4669_v60  ;;  %v4686_v30 = vmax.f32 %v4654_v13, %v4670_v61  ;;  %v12932_v43 = vld [vmem:[%s15603_s4 + $0x50] sm:$0xff]   ;;  %v12933_v8 = vld [vmem:[%s15603_s4 + $0x58] sm:$0xff]   ;;  %v12935_v9 = vld [vmem:[%s15603_s4 + $0x68] sm:$0xff]  }
 0x2d2   :  { %v4687_v31 = vmax.f32 %v4655_v49, %v4671_v63  ;;  %v4688_v32 = vmax.f32 %v4656_v10, %v4672_v0  ;;  %v4689_v33 = vmax.f32 %v4657_v50, %v4673_v1  ;;  %v4690_v34 = vmax.f32 %v4658_v52, %v4674_v19  ;;  %v12936_v45 = vld [vmem:[%s15603_s4 + $0x70] sm:$0xff]   ;;  %v12944_v14 = vld [vmem:[%s15604_s5 + $0x20] sm:$0xff]   ;;  %v12945_v46 = vld [vmem:[%s15604_s5 + $0x28] sm:$0xff]  }
 0x2d3   :  { %v14396_v35 = vpack.c.bf16 %v4676_v62, %v4675_v58  ;;  %v14398_v36 = vpack.c.bf16 %v4678_v20, %v4677_v18  ;;  %v14400_v37 = vpack.c.bf16 %v4680_v22, %v4679_v21  ;;  %v14402_v38 = vpack.c.bf16 %v4682_v24, %v4681_v23  ;;  %v12946_v15 = vld [vmem:[%s15604_s5 + $0x30] sm:$0xff]   ;;  %v12947_v47 = vld [vmem:[%s15604_s5 + $0x38] sm:$0xff]   ;;  %v14570_v11 = vld [vmem:[%s15604_s5] sm:$0xff]  }
 0x2d4   :  { %v14404_v39 = vpack.c.bf16 %v4684_v27, %v4683_v25  ;;  %v14406_v40 = vpack.c.bf16 %v4686_v30, %v4685_v29  ;;  %v14408_v2 = vpack.c.bf16 %v4688_v32, %v4687_v31  ;;  %v14410_v3 = vpack.c.bf16 %v4690_v34, %v4689_v33  ;;  %v12937_v48 = vld [vmem:[%s15603_s4 + $0x78] sm:$0xff]   ;;  %v12938_v13 = vld [vmem:[%s15603_s4 + $0x90] sm:$0xff]   ;;  %v12940_v10 = vld [vmem:[%s15603_s4 + $0xa0] sm:$0xff]  }
 0x2d5   :  { %12052 = vmatprep.subr.bf16.mxu1 %v14396_v35  ;;  %12116 = vmatprep.subr.bf16.mxu0 %v14396_v35  ;;  %v12939_v49 = vld [vmem:[%s15603_s4 + $0x98] sm:$0xff]   ;;  %v12941_v50 = vld [vmem:[%s15603_s4 + $0xa8] sm:$0xff]   ;;  %v12942_v12 = vld [vmem:[%s15603_s4 + $0xb0] sm:$0xff]  }
 0x2d6   :  { %12053 = vmatpush3.bf16.msra.mxu1 %v14396_v35  ;;  %12117 = vmatpush3.bf16.msra.mxu0 %v14396_v35  ;;  %v12943_v61 = vld [vmem:[%s15603_s4 + $0xb8] sm:$0xff]   ;;  %v12950_v62 = vld [vmem:[%s15603_s4 + $0xd0] sm:$0xff]   ;;  %v12949_v29 = vld [vmem:[%s15604_s5 + $0x8] sm:$0xff]  }
 0x2d7   :  { %12054 = vmatprep.subr.bf16.mxu1 %v14398_v36  ;;  %12118 = vmatprep.subr.bf16.mxu0 %v14398_v36  ;;  %v12951_v30 = vld [vmem:[%s15604_s5 + $0x10] sm:$0xff]   ;;  %v12952_v31 = vld [vmem:[%s15603_s4 + $0xd8] sm:$0xff]   ;;  %v12960_v32 = vld [vmem:[%s15603_s4 + $0xe0] sm:$0xff]  }
 0x2d8   :  { %v12953_v33 = vld [vmem:[%s15604_s5 + $0x18] sm:$0xff]   ;;  %v12954_v34 = vld [vmem:[%s15604_s5 + $0x40] sm:$0xff]  }
 0x2da   :  { %12055 = vmatpush3.bf16.msra.mxu1 %v14398_v36  ;;  %12119 = vmatpush3.bf16.msra.mxu0 %v14398_v36 }
 0x2db   :  { %12056 = vmatprep.subr.bf16.mxu1 %v14400_v37  ;;  %12120 = vmatprep.subr.bf16.mxu0 %v14400_v37 }
 0x2de   :  { %12057 = vmatpush3.bf16.msra.mxu1 %v14400_v37  ;;  %12121 = vmatpush3.bf16.msra.mxu0 %v14400_v37 }
 0x2df   :  { %12058 = vmatprep.subr.bf16.mxu1 %v14402_v38  ;;  %12122 = vmatprep.subr.bf16.mxu0 %v14402_v38 }
 0x2e2   :  { %12059 = vmatpush3.bf16.msra.mxu1 %v14402_v38  ;;  %12123 = vmatpush3.bf16.msra.mxu0 %v14402_v38 }
 0x2e3   :  { %12060 = vmatprep.subr.bf16.mxu1 %v14404_v39  ;;  %12124 = vmatprep.subr.bf16.mxu0 %v14404_v39 }
 0x2e6   :  { %12061 = vmatpush3.bf16.msra.mxu1 %v14404_v39  ;;  %12125 = vmatpush3.bf16.msra.mxu0 %v14404_v39 }
 0x2e7   :  { %12062 = vmatprep.subr.bf16.mxu1 %v14406_v40  ;;  %12126 = vmatprep.subr.bf16.mxu0 %v14406_v40 }
 0x2ea   :  { %12063 = vmatpush3.bf16.msra.mxu1 %v14406_v40  ;;  %12127 = vmatpush3.bf16.msra.mxu0 %v14406_v40 }
 0x2eb   :  { %12064 = vmatprep.subr.bf16.mxu1 %v14408_v2  ;;  %12128 = vmatprep.subr.bf16.mxu0 %v14408_v2 }
 0x2ee   :  { %12065 = vmatpush3.bf16.msra.mxu1 %v14408_v2  ;;  %12129 = vmatpush3.bf16.msra.mxu0 %v14408_v2 }
 0x2ef   :  { %12066 = vmatprep.subr.bf16.mxu1 %v14410_v3  ;;  %12130 = vmatprep.subr.bf16.mxu0 %v14410_v3 }
 0x2f2   :  { %12067 = vmatpush3.bf16.msra.mxu1 %v14410_v3  ;;  %12131 = vmatpush3.bf16.msra.mxu0 %v14410_v3 }
 0x2f3   :  { %12072 = vmatprep.subr.bf16.mxu1 %v14396_v35  ;;  %12148 = vmatprep.subr.bf16.mxu0 %v14396_v35 }
 0x2f5   :  { %12069 = vmatmul.mubr.bf16.vlgmr.msra.gmra.mrb[16].mxu1 %v12925_v4  ;;  %12133 = vmatmul.mubr.bf16.vlgmr.msra.gmra.mrb[0].mxu0 %v12927_v5  ;;  %v12955_v4 = vld [vmem:[%s15604_s5 + $0x48] sm:$0xff]   ;;  %v12956_v5 = vld [vmem:[%s15604_s5 + $0x50] sm:$0xff]  }
 0x2f6   :  { %12073 = vmatpush3.bf16.msra.mxu1 %v14396_v35  ;;  %12149 = vmatpush3.bf16.msra.mxu0 %v14396_v35 }
 0x2f7   :  { %12074 = vmatprep.subr.bf16.mxu1 %v14398_v36  ;;  %12150 = vmatprep.subr.bf16.mxu0 %v14398_v36 }
 0x2f8   :  { %12088 = vmatprep.mubr.bf16.mxu1 %v12928_v41  ;;  %12164 = vmatprep.mubr.bf16.mxu0 %v12930_v42  ;;  %v12957_v41 = vld [vmem:[%s15604_s5 + $0x58] sm:$0xff]  }
 0x2fa   :  { %12075 = vmatpush3.bf16.msra.mxu1 %v14398_v36  ;;  %12151 = vmatpush3.bf16.msra.mxu0 %v14398_v36 }
 0x2fb   :  { %12076 = vmatprep.subr.bf16.mxu1 %v14400_v37  ;;  %12152 = vmatprep.subr.bf16.mxu0 %v14400_v37 }
 0x2fe   :  { %12077 = vmatpush3.bf16.msra.mxu1 %v14400_v37  ;;  %12153 = vmatpush3.bf16.msra.mxu0 %v14400_v37 }
 0x2ff   :  { %12078 = vmatprep.subr.bf16.mxu1 %v14402_v38  ;;  %12154 = vmatprep.subr.bf16.mxu0 %v14402_v38 }
 0x302   :  { %12079 = vmatpush3.bf16.msra.mxu1 %v14402_v38  ;;  %12155 = vmatpush3.bf16.msra.mxu0 %v14402_v38 }
 0x303   :  { %12080 = vmatprep.subr.bf16.mxu1 %v14404_v39  ;;  %12156 = vmatprep.subr.bf16.mxu0 %v14404_v39 }
 0x306   :  { %12081 = vmatpush3.bf16.msra.mxu1 %v14404_v39  ;;  %12157 = vmatpush3.bf16.msra.mxu0 %v14404_v39 }
 0x307   :  { %12082 = vmatprep.subr.bf16.mxu1 %v14406_v40  ;;  %12158 = vmatprep.subr.bf16.mxu0 %v14406_v40 }
 0x30a   :  { %12083 = vmatpush3.bf16.msra.mxu1 %v14406_v40  ;;  %12159 = vmatpush3.bf16.msra.mxu0 %v14406_v40 }
 0x30b   :  { %12084 = vmatprep.subr.bf16.mxu1 %v14408_v2  ;;  %12160 = vmatprep.subr.bf16.mxu0 %v14408_v2 }
 0x30e   :  { %12085 = vmatpush3.bf16.msra.mxu1 %v14408_v2  ;;  %12161 = vmatpush3.bf16.msra.mxu0 %v14408_v2 }
 0x30f   :  { %12086 = vmatprep.subr.bf16.mxu1 %v14410_v3  ;;  %12162 = vmatprep.subr.bf16.mxu0 %v14410_v3 }
 0x312   :  { %12087 = vmatpush3.bf16.msra.mxu1 %v14410_v3  ;;  %12163 = vmatpush3.bf16.msra.mxu0 %v14410_v3 }
 0x313   :  { %12212 = vmatprep.subr.bf16.mxu0 %v14396_v35  ;;  %12092 = vmatprep.subr.bf16.mxu1 %v12944_v14 }
 0x315   :  { %12089 = vmatmul.mubr.bf16.vlgmr.msra.gmra.mrb[20].mxu1 %v12929_v6  ;;  %12165 = vmatmul.mubr.bf16.vlgmr.msra.gmra.mrb[4].mxu0 %v12931_v7  ;;  %v12958_v6 = vld [vmem:[%s15604_s5 + $0x60] sm:$0xff]  }
 0x316   :  { %12213 = vmatpush3.bf16.msra.mxu0 %v14396_v35  ;;  %12228 = vmatprep.mubr.bf16.mxu0 %v12932_v43 }
 0x317   :  { %12214 = vmatprep.subr.bf16.mxu0 %v14398_v36  ;;  %12093 = vmatpush3.bf16.msra.mxu1 %v12944_v14  ;;  %v12961_v14 = vld [vmem:[%s15604_s5 + $0x70] sm:$0xff]  }
 0x318   :  { %12094 = vmatprep.subr.bf16.mxu1 %v12945_v46 }
 0x31a   :  { %12215 = vmatpush3.bf16.msra.mxu0 %v14398_v36 }
 0x31b   :  { %12216 = vmatprep.subr.bf16.mxu0 %v14400_v37  ;;  %12095 = vmatpush3.bf16.msra.mxu1 %v12945_v46  ;;  %v12962_v46 = vld [vmem:[%s15603_s4 + $0xe8] sm:$0xff]  }
 0x31c   :  { %12096 = vmatprep.subr.bf16.mxu1 %v12946_v15 }
 0x31e   :  { %12217 = vmatpush3.bf16.msra.mxu0 %v14400_v37 }
 0x31f   :  { %12218 = vmatprep.subr.bf16.mxu0 %v14402_v38  ;;  %12097 = vmatpush3.bf16.msra.mxu1 %v12946_v15  ;;  %v12963_v15 = vld [vmem:[%s15604_s5 + $0x78] sm:$0xff]  }
 0x320   :  { %12098 = vmatprep.subr.bf16.mxu1 %v12947_v47 }
 0x322   :  { %12219 = vmatpush3.bf16.msra.mxu0 %v14402_v38 }
 0x323   :  { %12220 = vmatprep.subr.bf16.mxu0 %v14404_v39  ;;  %12099 = vmatpush3.bf16.msra.mxu1 %v12947_v47  ;;  %v12964_v47 = vld [vmem:[%s15603_s4 + $0x40] sm:$0xff]  }
 0x324   :  { %12104 = vmatprep.subr.bf16.mxu1 %v14570_v11 }
 0x326   :  { %12221 = vmatpush3.bf16.msra.mxu0 %v14404_v39 }
 0x327   :  { %12222 = vmatprep.subr.bf16.mxu0 %v14406_v40 }
 0x32a   :  { %12223 = vmatpush3.bf16.msra.mxu0 %v14406_v40 }
 0x32b   :  { %12224 = vmatprep.subr.bf16.mxu0 %v14408_v2 }
 0x32e   :  { %12225 = vmatpush3.bf16.msra.mxu0 %v14408_v2 }
 0x32f   :  { %12226 = vmatprep.subr.bf16.mxu0 %v14410_v3 }
 0x332   :  { %12227 = vmatpush3.bf16.msra.mxu0 %v14410_v3 }
 0x333   :  { %12244 = vmatprep.subr.bf16.mxu0 %v14396_v35 }
 0x335   :  { %12229 = vmatmul.mubr.bf16.vlgmr.msra.gmra.mrb[8].mxu0 %v12933_v8 }
 0x336   :  { %12245 = vmatpush3.bf16.msra.mxu0 %v14396_v35  ;;  %12260 = vmatprep.mubr.bf16.mxu0 %v12934_v44 }
 0x337   :  { %12246 = vmatprep.subr.bf16.mxu0 %v14398_v36 }
 0x33a   :  { %12247 = vmatpush3.bf16.msra.mxu0 %v14398_v36 }
 0x33b   :  { %12248 = vmatprep.subr.bf16.mxu0 %v14400_v37 }
 0x33e   :  { %12249 = vmatpush3.bf16.msra.mxu0 %v14400_v37 }
 0x33f   :  { %12250 = vmatprep.subr.bf16.mxu0 %v14402_v38 }
 0x342   :  { %12251 = vmatpush3.bf16.msra.mxu0 %v14402_v38 }
 0x343   :  { %12252 = vmatprep.subr.bf16.mxu0 %v14404_v39 }
 0x346   :  { %12253 = vmatpush3.bf16.msra.mxu0 %v14404_v39 }
 0x347   :  { %12254 = vmatprep.subr.bf16.mxu0 %v14406_v40 }
 0x34a   :  { %12255 = vmatpush3.bf16.msra.mxu0 %v14406_v40 }
 0x34b   :  { %12256 = vmatprep.subr.bf16.mxu0 %v14408_v2 }
 0x34e   :  { %12257 = vmatpush3.bf16.msra.mxu0 %v14408_v2 }
 0x34f   :  { %12258 = vmatprep.subr.bf16.mxu0 %v14410_v3 }
 0x352   :  { %12259 = vmatpush3.bf16.msra.mxu0 %v14410_v3 }
 0x353   :  { %12276 = vmatprep.subr.bf16.mxu0 %v14396_v35 }
 0x355   :  { %12261 = vmatmul.mubr.bf16.vlgmr.msra.gmra.mrb[12].mxu0 %v12935_v9 }
 0x356   :  { %12277 = vmatpush3.bf16.msra.mxu0 %v14396_v35  ;;  %12292 = vmatprep.mubr.bf16.mxu0 %v12936_v45  ;;  %v12959_v45 = vld [vmem:[%s15604_s5 + $0x68] sm:$0xff]  }
 0x357   :  { %12278 = vmatprep.subr.bf16.mxu0 %v14398_v36 }
 0x35a   :  { %12279 = vmatpush3.bf16.msra.mxu0 %v14398_v36 }
 0x35b   :  { %12280 = vmatprep.subr.bf16.mxu0 %v14400_v37 }
 0x35e   :  { %12281 = vmatpush3.bf16.msra.mxu0 %v14400_v37 }
 0x35f   :  { %12282 = vmatprep.subr.bf16.mxu0 %v14402_v38 }
 0x362   :  { %12283 = vmatpush3.bf16.msra.mxu0 %v14402_v38 }
 0x363   :  { %12284 = vmatprep.subr.bf16.mxu0 %v14404_v39 }
 0x366   :  { %12285 = vmatpush3.bf16.msra.mxu0 %v14404_v39 }
 0x367   :  { %12286 = vmatprep.subr.bf16.mxu0 %v14406_v40 }
 0x36a   :  { %12287 = vmatpush3.bf16.msra.mxu0 %v14406_v40 }
 0x36b   :  { %12288 = vmatprep.subr.bf16.mxu0 %v14408_v2 }
 0x36e   :  { %12289 = vmatpush3.bf16.msra.mxu0 %v14408_v2 }
 0x36f   :  { %12290 = vmatprep.subr.bf16.mxu0 %v14410_v3 }
 0x372   :  { %12291 = vmatpush3.bf16.msra.mxu0 %v14410_v3 }
 0x373   :  { %12340 = vmatprep.subr.bf16.mxu0 %v14396_v35 }
 0x375   :  { %12293 = vmatmul.mubr.bf16.vlgmr.msra.gmra.mrb[16].mxu0 %v12937_v48  ;;  %v12965_v48 = vld [vmem:[%s15603_s4 + $0x48] sm:$0xff]  }
 0x376   :  { %12341 = vmatpush3.bf16.msra.mxu0 %v14396_v35  ;;  %12356 = vmatprep.mubr.bf16.mxu0 %v12938_v13  ;;  %v12967_v13 = vld [vmem:[%s15604_s5 + $0x88] sm:$0xff]  }
 0x377   :  { %12342 = vmatprep.subr.bf16.mxu0 %v14398_v36 }
 0x37a   :  { %12343 = vmatpush3.bf16.msra.mxu0 %v14398_v36 }
 0x37b   :  { %12344 = vmatprep.subr.bf16.mxu0 %v14400_v37 }
 0x37e   :  { %12345 = vmatpush3.bf16.msra.mxu0 %v14400_v37 }
 0x37f   :  { %12346 = vmatprep.subr.bf16.mxu0 %v14402_v38 }
 0x382   :  { %12347 = vmatpush3.bf16.msra.mxu0 %v14402_v38 }
 0x383   :  { %12348 = vmatprep.subr.bf16.mxu0 %v14404_v39 }
 0x386   :  { %12349 = vmatpush3.bf16.msra.mxu0 %v14404_v39 }
 0x387   :  { %12350 = vmatprep.subr.bf16.mxu0 %v14406_v40 }
 0x38a   :  { %12351 = vmatpush3.bf16.msra.mxu0 %v14406_v40 }
 0x38b   :  { %12352 = vmatprep.subr.bf16.mxu0 %v14408_v2 }
 0x38e   :  { %12353 = vmatpush3.bf16.msra.mxu0 %v14408_v2 }
 0x38f   :  { %12354 = vmatprep.subr.bf16.mxu0 %v14410_v3 }
 0x392   :  { %12355 = vmatpush3.bf16.msra.mxu0 %v14410_v3 }
 0x393   :  { %12372 = vmatprep.subr.bf16.mxu0 %v14396_v35 }
 0x395   :  { %12357 = vmatmul.mubr.bf16.vlgmr.msra.gmra.mrb[20].mxu0 %v12939_v49  ;;  %v12968_v49 = vld [vmem:[%s15604_s5 + $0x90] sm:$0xff]  }
 0x396   :  { %12373 = vmatpush3.bf16.msra.mxu0 %v14396_v35  ;;  %12388 = vmatprep.mubr.bf16.mxu0 %v12940_v10  ;;  %v12969_v10 = vld [vmem:[%s15604_s5 + $0x98] sm:$0xff]  }
 0x397   :  { %12374 = vmatprep.subr.bf16.mxu0 %v14398_v36 }
 0x39a   :  { %12375 = vmatpush3.bf16.msra.mxu0 %v14398_v36 }
 0x39b   :  { %12376 = vmatprep.subr.bf16.mxu0 %v14400_v37 }
 0x39e   :  { %12377 = vmatpush3.bf16.msra.mxu0 %v14400_v37 }
 0x39f   :  { %12378 = vmatprep.subr.bf16.mxu0 %v14402_v38 }
 0x3a2   :  { %12379 = vmatpush3.bf16.msra.mxu0 %v14402_v38 }
 0x3a3   :  { %12380 = vmatprep.subr.bf16.mxu0 %v14404_v39 }
 0x3a6   :  { %12381 = vmatpush3.bf16.msra.mxu0 %v14404_v39 }
 0x3a7   :  { %12382 = vmatprep.subr.bf16.mxu0 %v14406_v40 }
 0x3aa   :  { %12383 = vmatpush3.bf16.msra.mxu0 %v14406_v40 }
 0x3ab   :  { %12384 = vmatprep.subr.bf16.mxu0 %v14408_v2 }
 0x3ae   :  { %12385 = vmatpush3.bf16.msra.mxu0 %v14408_v2 }
 0x3af   :  { %12386 = vmatprep.subr.bf16.mxu0 %v14410_v3 }
 0x3b2   :  { %12387 = vmatpush3.bf16.msra.mxu0 %v14410_v3 }
 0x3b3   :  { %12404 = vmatprep.subr.bf16.mxu0 %v14396_v35 }
 0x3b5   :  { %12389 = vmatmul.mubr.bf16.vlgmr.msra.gmra.mrb[24].mxu0 %v12941_v50  ;;  %v12970_v50 = vld [vmem:[%s15604_s5 + $0xa0] sm:$0xff]  }
 0x3b6   :  { %12405 = vmatpush3.bf16.msra.mxu0 %v14396_v35  ;;  %12420 = vmatprep.mubr.bf16.mxu0 %v12942_v12 }
 0x3b7   :  { %12406 = vmatprep.subr.bf16.mxu0 %v14398_v36 }
 0x3ba   :  { %12407 = vmatpush3.bf16.msra.mxu0 %v14398_v36 }
 0x3bb   :  { %12408 = vmatprep.subr.bf16.mxu0 %v14400_v37 }
 0x3be   :  { %12409 = vmatpush3.bf16.msra.mxu0 %v14400_v37 }
 0x3bf   :  { %12410 = vmatprep.subr.bf16.mxu0 %v14402_v38 }
 0x3c2   :  { %12411 = vmatpush3.bf16.msra.mxu0 %v14402_v38 }
 0x3c3   :  { %12412 = vmatprep.subr.bf16.mxu0 %v14404_v39 }
 0x3c6   :  { %12413 = vmatpush3.bf16.msra.mxu0 %v14404_v39 }
 0x3c7   :  { %12414 = vmatprep.subr.bf16.mxu0 %v14406_v40 }
 0x3c8   :  { %v14636_v51 = vpop.f32.mrb[16].mxu1  ;;  %v14638_v16 = vpop.f32.mrb[0].mxu0 }
 0x3c9   :  { %v4749_v52 = vpop.f32.mrb[17].mxu1  ;;  %v14640_v17 = vpop.f32.mrb[1].mxu0 }
 0x3ca   :  { %v14642_v53 = vpop.f32.mrb[18].mxu1  ;;  %12415 = vmatpush3.bf16.msra.mxu0 %v14406_v40  ;;  %v14645_v54 = vpop.f32.mrb[2].mxu0 }
 0x3cb   :  { %v4765_v55 = vpack.c.bf16 %v14642_v53, %v14636_v51  ;;  %v4752_v56 = vpop.f32.mrb[19].mxu1  ;;  %12416 = vmatprep.subr.bf16.mxu0 %v14408_v2  ;;  %v5076_v57 = vpack.c.bf16 %v14645_v54, %v14638_v16  ;;  %v14652_v58 = vpop.f32.mrb[3].mxu0 }
 0x3cc   :  { %v4764_v59 = vpack.c.bf16 %v4752_v56, %v4749_v52  ;;  %v5075_v60 = vpack.c.bf16 %v14652_v58, %v14640_v17 }
 0x3ce   :  { %12417 = vmatpush3.bf16.msra.mxu0 %v14408_v2 }
 0x3cf   :  { %12418 = vmatprep.subr.bf16.mxu0 %v14410_v3 }
 0x3d2   :  { %12419 = vmatpush3.bf16.msra.mxu0 %v14410_v3 }
 0x3d3   :  { %12468 = vmatprep.subr.bf16.mxu0 %v14396_v35 }
 0x3d5   :  { %12421 = vmatmul.mubr.bf16.vlgmr.msra.gmra.mrb[28].mxu0 %v12943_v61 }
 0x3d6   :  { %12469 = vmatpush3.bf16.msra.mxu0 %v14396_v35  ;;  %12484 = vmatprep.mubr.bf16.mxu0 %v12950_v62 }
 0x3d7   :  { %12470 = vmatprep.subr.bf16.mxu0 %v14398_v36 }
 0x3da   :  { %12471 = vmatpush3.bf16.msra.mxu0 %v14398_v36 }
 0x3db   :  { %12472 = vmatprep.subr.bf16.mxu0 %v14400_v37 }
 0x3de   :  { %12473 = vmatpush3.bf16.msra.mxu0 %v14400_v37 }
 0x3df   :  { %12474 = vmatprep.subr.bf16.mxu0 %v14402_v38 }
 0x3e2   :  { %12475 = vmatpush3.bf16.msra.mxu0 %v14402_v38 }
 0x3e3   :  { %12476 = vmatprep.subr.bf16.mxu0 %v14404_v39 }
 0x3e6   :  { %12477 = vmatpush3.bf16.msra.mxu0 %v14404_v39 }
 0x3e7   :  { %12478 = vmatprep.subr.bf16.mxu0 %v14406_v40 }
 0x3e8   :  { %v12090_v63 = vpop.f32.mrb[20].mxu1  ;;  %v14676_v0 = vpop.f32.mrb[4].mxu0 }
 0x3e9   :  { %v4825_v1 = vpop.f32.mrb[21].mxu1  ;;  %v14678_v18 = vpop.f32.mrb[5].mxu0 }
 0x3ea   :  { %v12091_v19 = vpop.f32.mrb[22].mxu1  ;;  %12479 = vmatpush3.bf16.msra.mxu0 %v14406_v40  ;;  %v14681_v20 = vpop.f32.mrb[6].mxu0 }
 0x3eb   :  { %v4841_v21 = vpack.c.bf16 %v12091_v19, %v12090_v63  ;;  %v4828_v22 = vpop.f32.mrb[23].mxu1  ;;  %12480 = vmatprep.subr.bf16.mxu0 %v14408_v2  ;;  %v5236_v23 = vpack.c.bf16 %v14681_v20, %v14676_v0  ;;  %v14686_v24 = vpop.f32.mrb[7].mxu0 }
 0x3ec   :  { %v4840_v25 = vpack.c.bf16 %v4828_v22, %v4825_v1  ;;  %v5235_v27 = vpack.c.bf16 %v14686_v24, %v14678_v18  ;;  %v12971_v24 = vld [vmem:[%s15604_s5 + $0xa8] sm:$0xff]  }
 0x3ee   :  { %12100 = vmatprep.mubr.msk.bf16.mxu1 %vm4503_vm1, %v4840_v25  ;;  %12481 = vmatpush3.bf16.msra.mxu0 %v14408_v2  ;;  %v12972_v25 = vld [vmem:[%s15604_s5 + $0xb0] sm:$0xff]  }
 0x3ef   :  { %12101 = vmatmul.mubr.msk.bf16.vlgmr.msra.gmra.mrb[24].mxu1 %vm4503_vm1, %v4841_v21  ;;  %12482 = vmatprep.subr.bf16.mxu0 %v14410_v3 }
 0x3f0   :  { %12105 = vmatpush3.bf16.msra.mxu1 %v14570_v11  ;;  %12112 = vmatprep.mubr.msk.bf16.mxu1 %vm4503_vm1, %v4764_v59  ;;  %v12966_v11 = vld [vmem:[%s15604_s5 + $0x80] sm:$0xff]  }
 0x3f1   :  { %12106 = vmatprep.subr.bf16.mxu1 %v12949_v29 }
 0x3f2   :  { %12483 = vmatpush3.bf16.msra.mxu0 %v14410_v3 }
 0x3f3   :  { %12500 = vmatprep.subr.bf16.mxu0 %v14396_v35 }
 0x3f4   :  { %12107 = vmatpush3.bf16.msra.mxu1 %v12949_v29  ;;  %v12974_v29 = vld [vmem:[%s15604_s5 + $0xc0] sm:$0xff]  }
 0x3f5   :  { %12108 = vmatprep.subr.bf16.mxu1 %v12951_v30  ;;  %12485 = vmatmul.mubr.bf16.vlgmr.msra.gmra.mrb[32].mxu0 %v12952_v31  ;;  %v12976_v31 = vld [vmem:[%s15604_s5 + $0xd0] sm:$0xff]  }
 0x3f6   :  { %12501 = vmatpush3.bf16.msra.mxu0 %v14396_v35  ;;  %12516 = vmatprep.mubr.bf16.mxu0 %v12960_v32  ;;  %v12977_v32 = vld [vmem:[%s15604_s5 + $0xd8] sm:$0xff]  }
 0x3f7   :  { %12502 = vmatprep.subr.bf16.mxu0 %v14398_v36 }
 0x3f8   :  { %12109 = vmatpush3.bf16.msra.mxu1 %v12951_v30  ;;  %v12975_v30 = vld [vmem:[%s15604_s5 + $0xc8] sm:$0xff]  }
 0x3f9   :  { %12110 = vmatprep.subr.bf16.mxu1 %v12953_v33 }
 0x3fa   :  { %12503 = vmatpush3.bf16.msra.mxu0 %v14398_v36 }
 0x3fb   :  { %12504 = vmatprep.subr.bf16.mxu0 %v14400_v37 }
 0x3fc   :  { %12111 = vmatpush3.bf16.msra.mxu1 %v12953_v33  ;;  %v12978_v33 = vld [vmem:[%s15604_s5 + $0xe0] sm:$0xff]  }
 0x3fd   :  { %12136 = vmatprep.subr.bf16.mxu1 %v12954_v34 }
 0x3fe   :  { %12505 = vmatpush3.bf16.msra.mxu0 %v14400_v37 }
 0x3ff   :  { %12113 = vmatmul.mubr.msk.bf16.vlgmr.msra.gmra.mrb[24].mxu1 %vm4503_vm1, %v4765_v55  ;;  %12506 = vmatprep.subr.bf16.mxu0 %v14402_v38 }
 0x400   :  { %12137 = vmatpush3.bf16.msra.mxu1 %v12954_v34  ;;  %12144 = vmatprep.mubr.msk.bf16.mxu1 %vm4503_vm1, %v5075_v60  ;;  %v12979_v34 = vld [vmem:[%s15604_s5 + $0xe8] sm:$0xff]  }
 0x401   :  { %12138 = vmatprep.subr.bf16.mxu1 %v12955_v4 }
 0x402   :  { %12507 = vmatpush3.bf16.msra.mxu0 %v14402_v38 }
 0x403   :  { %12508 = vmatprep.subr.bf16.mxu0 %v14404_v39 }
 0x404   :  { %12139 = vmatpush3.bf16.msra.mxu1 %v12955_v4  ;;  %v12980_v4 = vld [vmem:[%s15604_s5 + $0xf0] sm:$0xff]  }
 0x405   :  { %12140 = vmatprep.subr.bf16.mxu1 %v12956_v5 }
 0x406   :  { %12509 = vmatpush3.bf16.msra.mxu0 %v14404_v39 }
 0x407   :  { %12510 = vmatprep.subr.bf16.mxu0 %v14406_v40 }
 0x408   :  { %12141 = vmatpush3.bf16.msra.mxu1 %v12956_v5  ;;  %v14743_v42 = vpop.f32.mrb[8].mxu0  ;;  %v12981_v5 = vld [vmem:[%s15604_s5 + $0xf8] sm:$0xff]  }
 0x409   :  { %12142 = vmatprep.subr.bf16.mxu1 %v12957_v41  ;;  %v14748_v7 = vpop.f32.mrb[9].mxu0 }
 0x40a   :  { %12511 = vmatpush3.bf16.msra.mxu0 %v14406_v40  ;;  %v14751_v43 = vpop.f32.mrb[10].mxu0 }
 0x40b   :  { %12512 = vmatprep.subr.bf16.mxu0 %v14408_v2  ;;  %v5556_v8 = vpack.c.bf16 %v14751_v43, %v14743_v42  ;;  %v14756_v44 = vpop.f32.mrb[11].mxu0  ;;  %v12984_v42 = vld [vmem:[%s15604_s5 + $0x100] sm:$0xff]   ;;  %v12986_v43 = vld [vmem:[%s15604_s5 + $0x110] sm:$0xff]  }
 0x40c   :  { %12143 = vmatpush3.bf16.msra.mxu1 %v12957_v41  ;;  %v5555_v9 = vpack.c.bf16 %v14756_v44, %v14748_v7  ;;  %v12982_v41 = vld [vmem:[%s15603_s4 + $0x80] sm:$0xff]   ;;  %v12985_v7 = vld [vmem:[%s15604_s5 + $0x108] sm:$0xff]  }
 0x40d   :  { %12168 = vmatprep.subr.bf16.mxu1 %v12958_v6  ;;  %v12988_v44 = vld [vmem:[%s15604_s5 + $0x120] sm:$0xff]  }
 0x40e   :  { %12513 = vmatpush3.bf16.msra.mxu0 %v14408_v2 }
 0x40f   :  { %12145 = vmatmul.mubr.msk.bf16.vlgmr.msra.gmra.mrb[24].mxu1 %vm4503_vm1, %v5076_v57  ;;  %12514 = vmatprep.subr.bf16.mxu0 %v14410_v3 }
 0x410   :  { %12169 = vmatpush3.bf16.msra.mxu1 %v12958_v6  ;;  %12176 = vmatprep.mubr.msk.bf16.mxu1 %vm4503_vm1, %v5235_v27  ;;  %v12973_v27 = vld [vmem:[%s15604_s5 + $0xb8] sm:$0xff]   ;;  %v12983_v6 = vld [vmem:[%s15603_s4 + $0x88] sm:$0xff]  }
 0x411   :  { %12170 = vmatprep.subr.bf16.mxu1 %v12959_v45 }
 0x412   :  { %12515 = vmatpush3.bf16.msra.mxu0 %v14410_v3 }
 0x413   :  { %12532 = vmatprep.subr.bf16.mxu0 %v14396_v35 }
 0x414   :  { %12171 = vmatpush3.bf16.msra.mxu1 %v12959_v45 }
 0x415   :  { %12172 = vmatprep.subr.bf16.mxu1 %v12961_v14  ;;  %12517 = vmatmul.mubr.bf16.vlgmr.msra.gmra.mrb[36].mxu0 %v12962_v46 }
 0x416   :  { %12533 = vmatpush3.bf16.msra.mxu0 %v14396_v35 }
 0x417   :  { %12534 = vmatprep.subr.bf16.mxu0 %v14398_v36 }
 0x418   :  { %12173 = vmatpush3.bf16.msra.mxu1 %v12961_v14 }
 0x419   :  { %12174 = vmatprep.subr.bf16.mxu1 %v12963_v15 }
 0x41a   :  { %12535 = vmatpush3.bf16.msra.mxu0 %v14398_v36 }
 0x41b   :  { %12536 = vmatprep.subr.bf16.mxu0 %v14400_v37 }
 0x41c   :  { %12175 = vmatpush3.bf16.msra.mxu1 %v12963_v15 }
 0x41d   :  { %12180 = vmatprep.subr.bf16.mxu1 %v14396_v35 }
 0x41e   :  { %12537 = vmatpush3.bf16.msra.mxu0 %v14400_v37 }
 0x41f   :  { %12177 = vmatmul.mubr.msk.bf16.vlgmr.msra.gmra.mrb[24].mxu1 %vm4503_vm1, %v5236_v23  ;;  %12538 = vmatprep.subr.bf16.mxu0 %v14402_v38 }
 0x420   :  { %12181 = vmatpush3.bf16.msra.mxu1 %v14396_v35  ;;  %12196 = vmatprep.mubr.bf16.mxu1 %v12964_v47 }
 0x421   :  { %12182 = vmatprep.subr.bf16.mxu1 %v14398_v36 }
 0x422   :  { %12539 = vmatpush3.bf16.msra.mxu0 %v14402_v38 }
 0x423   :  { %12540 = vmatprep.subr.bf16.mxu0 %v14404_v39 }
 0x424   :  { %12183 = vmatpush3.bf16.msra.mxu1 %v14398_v36 }
 0x425   :  { %12184 = vmatprep.subr.bf16.mxu1 %v14400_v37 }
 0x426   :  { %12541 = vmatpush3.bf16.msra.mxu0 %v14404_v39 }
 0x427   :  { %12542 = vmatprep.subr.bf16.mxu0 %v14406_v40 }
 0x428   :  { %12185 = vmatpush3.bf16.msra.mxu1 %v14400_v37  ;;  %v12262_v12 = vpop.f32.mrb[12].mxu0 }
 0x429   :  { %12186 = vmatprep.subr.bf16.mxu1 %v14402_v38  ;;  %v5700_v51 = vpop.f32.mrb[13].mxu0 }
 0x42a   :  { %12543 = vmatpush3.bf16.msra.mxu0 %v14406_v40  ;;  %v12263_v16 = vpop.f32.mrb[14].mxu0 }
 0x42b   :  { %12544 = vmatprep.subr.bf16.mxu0 %v14408_v2  ;;  %v5716_v52 = vpack.c.bf16 %v12263_v16, %v12262_v12  ;;  %v5703_v17 = vpop.f32.mrb[15].mxu0  ;;  %v13002_v12 = vld [vmem:[%s15603_s4 + $0xf0] sm:$0xff]  }
 0x42c   :  { %12187 = vmatpush3.bf16.msra.mxu1 %v14402_v38  ;;  %v5715_v53 = vpack.c.bf16 %v5703_v17, %v5700_v51  ;;  %v13003_v51 = vld [vmem:[%s15603_s4 + $0xf8] sm:$0xff]   ;;  %12548 = vmatprep.mubr.bf16.mxu0 %v13002_v12 }
 0x42d   :  { %12188 = vmatprep.subr.bf16.mxu1 %v14404_v39 }
 0x42e   :  { %12545 = vmatpush3.bf16.msra.mxu0 %v14408_v2 }
 0x42f   :  { %12546 = vmatprep.subr.bf16.mxu0 %v14410_v3 }
 0x430   :  { %12189 = vmatpush3.bf16.msra.mxu1 %v14404_v39 }
 0x431   :  { %12190 = vmatprep.subr.bf16.mxu1 %v14406_v40 }
 0x432   :  { %12547 = vmatpush3.bf16.msra.mxu0 %v14410_v3 }
 0x434   :  { %12191 = vmatpush3.bf16.msra.mxu1 %v14406_v40 }
 0x435   :  { %12192 = vmatprep.subr.bf16.mxu1 %v14408_v2  ;;  %12549 = vmatmul.mubr.bf16.vlgmr.msra.gmra.mrb[40].mxu0 %v13003_v51 }
 0x438   :  { %12193 = vmatpush3.bf16.msra.mxu1 %v14408_v2 }
 0x439   :  { %12194 = vmatprep.subr.bf16.mxu1 %v14410_v3 }
 0x43c   :  { %12195 = vmatpush3.bf16.msra.mxu1 %v14410_v3 }
 0x43d   :  { %12200 = vmatprep.subr.bf16.mxu1 %v12966_v11 }
 0x43f   :  { %12197 = vmatmul.mubr.bf16.vlgmr.msra.gmra.mrb[28].mxu1 %v12965_v48 }
 0x440   :  { %12201 = vmatpush3.bf16.msra.mxu1 %v12966_v11 }
 0x441   :  { %12202 = vmatprep.subr.bf16.mxu1 %v12967_v13 }
 0x444   :  { %12203 = vmatpush3.bf16.msra.mxu1 %v12967_v13 }
 0x445   :  { %12204 = vmatprep.subr.bf16.mxu1 %v12968_v49 }
 0x448   :  { %12205 = vmatpush3.bf16.msra.mxu1 %v12968_v49  ;;  %v12294_v54 = vpop.f32.mrb[16].mxu0 }
 0x449   :  { %12206 = vmatprep.subr.bf16.mxu1 %v12969_v10  ;;  %v5860_v55 = vpop.f32.mrb[17].mxu0 }
 0x44a   :  { %v12295_v56 = vpop.f32.mrb[18].mxu0 }
 0x44b   :  { %v5876_v57 = vpack.c.bf16 %v12295_v56, %v12294_v54  ;;  %v5863_v58 = vpop.f32.mrb[19].mxu0 }
 0x44c   :  { %12207 = vmatpush3.bf16.msra.mxu1 %v12969_v10  ;;  %v5875_v59 = vpack.c.bf16 %v5863_v58, %v5860_v55 }
 0x44d   :  { %12232 = vmatprep.subr.bf16.mxu1 %v12970_v50 }
 0x468   :  { %v14837_v60 = vpop.f32.mrb[20].mxu0 }
 0x469   :  { %v14839_v61 = vpop.f32.mrb[21].mxu0 }
 0x46a   :  { %v14841_v62 = vpop.f32.mrb[22].mxu0 }
 0x46b   :  { %v6196_v63 = vpack.c.bf16 %v14841_v62, %v14837_v60  ;;  %v14845_v0 = vpop.f32.mrb[23].mxu0  ;;  %v12996_v60 = vld [vmem:[%s15604_s5 + $0x160] sm:$0xff]   ;;  %v12997_v62 = vld [vmem:[%s15604_s5 + $0x168] sm:$0xff]  }
 0x46c   :  { %v6195_v1 = vpack.c.bf16 %v14845_v0, %v14839_v61  ;;  %v12993_v61 = vld [vmem:[%s15604_s5 + $0x148] sm:$0xff]   ;;  %v12994_v0 = vld [vmem:[%s15604_s5 + $0x150] sm:$0xff]  }
 0x512   :  { %v12198_v18 = vpop.f32.mrb[28].mxu1 }
 0x513   :  { %v5380_v19 = vpop.f32.mrb[29].mxu1 }
 0x514   :  { %v12199_v20 = vpop.f32.mrb[30].mxu1 }
 0x515   :  { %v5396_v21 = vpack.c.bf16 %v12199_v20, %v12198_v18  ;;  %v5383_v22 = vpop.f32.mrb[31].mxu1  ;;  %v12989_v20 = vld [vmem:[%s15604_s5 + $0x128] sm:$0xff]  }
 0x516   :  { %v5395_v23 = vpack.c.bf16 %v5383_v22, %v5380_v19  ;;  %v12991_v22 = vld [vmem:[%s15604_s5 + $0x138] sm:$0xff]  }
 0x518   :  { %12208 = vmatprep.mubr.msk.bf16.mxu1 %vm4503_vm1, %v5395_v23  ;;  %v12992_v23 = vld [vmem:[%s15604_s5 + $0x140] sm:$0xff]  }
 0x519   :  { %12209 = vmatmul.mubr.msk.bf16.vlgmr.msra.gmra.mrb[24].mxu1 %vm4503_vm1, %v5396_v21  ;;  %v12990_v21 = vld [vmem:[%s15604_s5 + $0x130] sm:$0xff]  }
 0x51a   :  { %12233 = vmatpush3.bf16.msra.mxu1 %v12970_v50  ;;  %12240 = vmatprep.mubr.msk.bf16.mxu1 %vm4503_vm1, %v5555_v9  ;;  %v12390_v9 = vpop.f32.mrb[24].mxu0 }
 0x51b   :  { %12234 = vmatprep.subr.bf16.mxu1 %v12971_v24  ;;  %v6340_v45 = vpop.f32.mrb[25].mxu0 }
 0x51c   :  { %v12391_v14 = vpop.f32.mrb[26].mxu0 }
 0x51d   :  { %v6356_v46 = vpack.c.bf16 %v12391_v14, %v12390_v9  ;;  %v6343_v15 = vpop.f32.mrb[27].mxu0  ;;  %v13009_v9 = vld [vmem:[%s15604_s5 + $0x1a8] sm:$0xff]   ;;  %v13011_v14 = vld [vmem:[%s15604_s5 + $0x1b8] sm:$0xff]  }
 0x51e   :  { %12235 = vmatpush3.bf16.msra.mxu1 %v12971_v24  ;;  %v6355_v47 = vpack.c.bf16 %v6343_v15, %v6340_v45  ;;  %v14933_v11 = vpop.f32.mrb[28].mxu0  ;;  %v12999_v24 = vld [vmem:[%s15604_s5 + $0x178] sm:$0xff]   ;;  %v13010_v45 = vld [vmem:[%s15604_s5 + $0x1b0] sm:$0xff]   ;;  %v13013_v15 = vld [vmem:[%s15604_s5 + $0x1c8] sm:$0xff]  }
 0x51f   :  { %12236 = vmatprep.subr.bf16.mxu1 %v12972_v25  ;;  %v6500_v48 = vpop.f32.mrb[29].mxu0 }
 0x520   :  { %v14935_v13 = vpop.f32.mrb[30].mxu0 }
 0x521   :  { %v6516_v49 = vpack.c.bf16 %v14935_v13, %v14933_v11  ;;  %v6503_v10 = vpop.f32.mrb[31].mxu0  ;;  %v13015_v11 = vld [vmem:[%s15604_s5 + $0x1d8] sm:$0xff]   ;;  %v13017_v13 = vld [vmem:[%s15604_s5 + $0x1e8] sm:$0xff]  }
 0x522   :  { %12237 = vmatpush3.bf16.msra.mxu1 %v12972_v25  ;;  %v6515_v50 = vpack.c.bf16 %v6503_v10, %v6500_v48  ;;  %v14945_v16 = vpop.f32.mrb[32].mxu0  ;;  %v13000_v25 = vld [vmem:[%s15603_s4 + $0xc0] sm:$0xff]   ;;  %v13019_v10 = vld [vmem:[%s15604_s5 + $0x1f8] sm:$0xff]  }
 0x523   :  { %12238 = vmatprep.subr.bf16.mxu1 %v12973_v27  ;;  %v13016_v48 = vld [vmem:[%s15604_s5 + $0x1e0] sm:$0xff]  }
 0x526   :  { %12239 = vmatpush3.bf16.msra.mxu1 %v12973_v27 }
 0x527   :  { %12264 = vmatprep.subr.bf16.mxu1 %v12974_v29 }
 0x529   :  { %12241 = vmatmul.mubr.msk.bf16.vlgmr.msra.gmra.mrb[24].mxu1 %vm4503_vm1, %v5556_v8  ;;  %v12987_v8 = vld [vmem:[%s15604_s5 + $0x118] sm:$0xff]  }
 0x52a   :  { %12265 = vmatpush3.bf16.msra.mxu1 %v12974_v29  ;;  %12272 = vmatprep.mubr.msk.bf16.mxu1 %vm4503_vm1, %v5715_v53 }
 0x52b   :  { %12266 = vmatprep.subr.bf16.mxu1 %v12975_v30 }
 0x52e   :  { %12267 = vmatpush3.bf16.msra.mxu1 %v12975_v30 }
 0x52f   :  { %12268 = vmatprep.subr.bf16.mxu1 %v12976_v31 }
 0x532   :  { %12269 = vmatpush3.bf16.msra.mxu1 %v12976_v31 }
 0x533   :  { %12270 = vmatprep.subr.bf16.mxu1 %v12977_v32 }
 0x536   :  { %12271 = vmatpush3.bf16.msra.mxu1 %v12977_v32 }
 0x537   :  { %12296 = vmatprep.subr.bf16.mxu1 %v12978_v33 }
 0x539   :  { %12273 = vmatmul.mubr.msk.bf16.vlgmr.msra.gmra.mrb[24].mxu1 %vm4503_vm1, %v5716_v52  ;;  %v14947_v52 = vpop.f32.mrb[33].mxu0 }
 0x53a   :  { %12297 = vmatpush3.bf16.msra.mxu1 %v12978_v33  ;;  %12304 = vmatprep.mubr.msk.bf16.mxu1 %vm4503_vm1, %v5875_v59  ;;  %v14949_v17 = vpop.f32.mrb[34].mxu0 }
 0x53b   :  { %12298 = vmatprep.subr.bf16.mxu1 %v12979_v34  ;;  %v6836_v53 = vpack.c.bf16 %v14949_v17, %v14945_v16  ;;  %v14953_v54 = vpop.f32.mrb[35].mxu0 }
 0x53c   :  { %v6835_v55 = vpack.c.bf16 %v14953_v54, %v14947_v52 }
 0x53e   :  { %12299 = vmatpush3.bf16.msra.mxu1 %v12979_v34 }
 0x53f   :  { %12300 = vmatprep.subr.bf16.mxu1 %v12980_v4 }
 0x542   :  { %12301 = vmatpush3.bf16.msra.mxu1 %v12980_v4 }
 0x543   :  { %12302 = vmatprep.subr.bf16.mxu1 %v12981_v5 }
 0x546   :  { %12303 = vmatpush3.bf16.msra.mxu1 %v12981_v5 }
 0x547   :  { %12308 = vmatprep.subr.bf16.mxu1 %v14396_v35 }
 0x549   :  { %12305 = vmatmul.mubr.msk.bf16.vlgmr.msra.gmra.mrb[24].mxu1 %vm4503_vm1, %v5876_v57 }
 0x54a   :  { %12309 = vmatpush3.bf16.msra.mxu1 %v14396_v35  ;;  %12324 = vmatprep.mubr.bf16.mxu1 %v12982_v41 }
 0x54b   :  { %12310 = vmatprep.subr.bf16.mxu1 %v14398_v36 }
 0x54e   :  { %12311 = vmatpush3.bf16.msra.mxu1 %v14398_v36 }
 0x54f   :  { %12312 = vmatprep.subr.bf16.mxu1 %v14400_v37 }
 0x552   :  { %12313 = vmatpush3.bf16.msra.mxu1 %v14400_v37 }
 0x553   :  { %12314 = vmatprep.subr.bf16.mxu1 %v14402_v38 }
 0x556   :  { %12315 = vmatpush3.bf16.msra.mxu1 %v14402_v38 }
 0x557   :  { %12316 = vmatprep.subr.bf16.mxu1 %v14404_v39 }
 0x55a   :  { %12317 = vmatpush3.bf16.msra.mxu1 %v14404_v39 }
 0x55b   :  { %12318 = vmatprep.subr.bf16.mxu1 %v14406_v40 }
 0x55e   :  { %12319 = vmatpush3.bf16.msra.mxu1 %v14406_v40 }
 0x55f   :  { %12320 = vmatprep.subr.bf16.mxu1 %v14408_v2 }
 0x562   :  { %12321 = vmatpush3.bf16.msra.mxu1 %v14408_v2 }
 0x563   :  { %12322 = vmatprep.subr.bf16.mxu1 %v14410_v3 }
 0x566   :  { %12323 = vmatpush3.bf16.msra.mxu1 %v14410_v3 }
 0x567   :  { %12328 = vmatprep.subr.bf16.mxu1 %v12984_v42 }
 0x569   :  { %12325 = vmatmul.mubr.bf16.vlgmr.msra.gmra.mrb[32].mxu1 %v12983_v6 }
 0x56a   :  { %12329 = vmatpush3.bf16.msra.mxu1 %v12984_v42 }
 0x56b   :  { %12330 = vmatprep.subr.bf16.mxu1 %v12985_v7 }
 0x56e   :  { %12331 = vmatpush3.bf16.msra.mxu1 %v12985_v7 }
 0x56f   :  { %12332 = vmatprep.subr.bf16.mxu1 %v12986_v43 }
 0x572   :  { %12333 = vmatpush3.bf16.msra.mxu1 %v12986_v43 }
 0x573   :  { %12334 = vmatprep.subr.bf16.mxu1 %v12987_v8 }
 0x576   :  { %12335 = vmatpush3.bf16.msra.mxu1 %v12987_v8 }
 0x577   :  { %12360 = vmatprep.subr.bf16.mxu1 %v12988_v44 }
 0x63c   :  { %v12326_v56 = vpop.f32.mrb[32].mxu1 }
 0x63d   :  { %v6020_v57 = vpop.f32.mrb[33].mxu1 }
 0x63e   :  { %v12327_v58 = vpop.f32.mrb[34].mxu1 }
 0x63f   :  { %v6036_v59 = vpack.c.bf16 %v12327_v58, %v12326_v56  ;;  %v6023_v18 = vpop.f32.mrb[35].mxu1 }
 0x640   :  { %v6035_v19 = vpack.c.bf16 %v6023_v18, %v6020_v57 }
 0x642   :  { %12336 = vmatprep.mubr.msk.bf16.mxu1 %vm4503_vm1, %v6035_v19 }
 0x643   :  { %12337 = vmatmul.mubr.msk.bf16.vlgmr.msra.gmra.mrb[24].mxu1 %vm4503_vm1, %v6036_v59 }
 0x644   :  { %12361 = vmatpush3.bf16.msra.mxu1 %v12988_v44  ;;  %12368 = vmatprep.mubr.msk.bf16.mxu1 %vm4503_vm1, %v6195_v1  ;;  %v12995_v1 = vld [vmem:[%s15604_s5 + $0x158] sm:$0xff]  }
 0x645   :  { %12362 = vmatprep.subr.bf16.mxu1 %v12989_v20 }
 0x648   :  { %12363 = vmatpush3.bf16.msra.mxu1 %v12989_v20 }
 0x649   :  { %12364 = vmatprep.subr.bf16.mxu1 %v12990_v21 }
 0x64c   :  { %12365 = vmatpush3.bf16.msra.mxu1 %v12990_v21 }
 0x64d   :  { %12366 = vmatprep.subr.bf16.mxu1 %v12991_v22 }
 0x650   :  { %12367 = vmatpush3.bf16.msra.mxu1 %v12991_v22 }
 0x651   :  { %12392 = vmatprep.subr.bf16.mxu1 %v12992_v23 }
 0x653   :  { %12369 = vmatmul.mubr.msk.bf16.vlgmr.msra.gmra.mrb[24].mxu1 %vm4503_vm1, %v6196_v63  ;;  %v12998_v63 = vld [vmem:[%s15604_s5 + $0x170] sm:$0xff]  }
 0x654   :  { %12393 = vmatpush3.bf16.msra.mxu1 %v12992_v23  ;;  %12400 = vmatprep.mubr.msk.bf16.mxu1 %vm4503_vm1, %v6355_v47  ;;  %v13014_v47 = vld [vmem:[%s15604_s5 + $0x1d0] sm:$0xff]  }
 0x655   :  { %12394 = vmatprep.subr.bf16.mxu1 %v12993_v61 }
 0x658   :  { %12395 = vmatpush3.bf16.msra.mxu1 %v12993_v61 }
 0x659   :  { %12396 = vmatprep.subr.bf16.mxu1 %v12994_v0 }
 0x65c   :  { %12397 = vmatpush3.bf16.msra.mxu1 %v12994_v0 }
 0x65d   :  { %12398 = vmatprep.subr.bf16.mxu1 %v12995_v1 }
 0x660   :  { %12399 = vmatpush3.bf16.msra.mxu1 %v12995_v1 }
 0x661   :  { %12424 = vmatprep.subr.bf16.mxu1 %v12996_v60 }
 0x663   :  { %12401 = vmatmul.mubr.msk.bf16.vlgmr.msra.gmra.mrb[24].mxu1 %vm4503_vm1, %v6356_v46  ;;  %v13012_v46 = vld [vmem:[%s15604_s5 + $0x1c0] sm:$0xff]  }
 0x664   :  { %12425 = vmatpush3.bf16.msra.mxu1 %v12996_v60  ;;  %12432 = vmatprep.mubr.msk.bf16.mxu1 %vm4503_vm1, %v6515_v50 }
 0x665   :  { %12426 = vmatprep.subr.bf16.mxu1 %v12997_v62 }
 0x668   :  { %12427 = vmatpush3.bf16.msra.mxu1 %v12997_v62 }
 0x669   :  { %12428 = vmatprep.subr.bf16.mxu1 %v12998_v63 }
 0x66c   :  { %12429 = vmatpush3.bf16.msra.mxu1 %v12998_v63 }
 0x66d   :  { %12430 = vmatprep.subr.bf16.mxu1 %v12999_v24 }
 0x670   :  { %12431 = vmatpush3.bf16.msra.mxu1 %v12999_v24 }
 0x671   :  { %12436 = vmatprep.subr.bf16.mxu1 %v14396_v35 }
 0x673   :  { %12433 = vmatmul.mubr.msk.bf16.vlgmr.msra.gmra.mrb[24].mxu1 %vm4503_vm1, %v6516_v49  ;;  %v13018_v49 = vld [vmem:[%s15604_s5 + $0x1f0] sm:$0xff]  }
 0x674   :  { %12437 = vmatpush3.bf16.msra.mxu1 %v14396_v35  ;;  %12452 = vmatprep.mubr.bf16.mxu1 %v13000_v25  ;;  %v13004_v35 = vld [vmem:[%s15604_s5 + $0x180] sm:$0xff]  }
 0x675   :  { %12438 = vmatprep.subr.bf16.mxu1 %v14398_v36 }
 0x678   :  { %12439 = vmatpush3.bf16.msra.mxu1 %v14398_v36  ;;  %v13001_v36 = vld [vmem:[%s15603_s4 + $0xc8] sm:$0xff]  }
 0x679   :  { %12440 = vmatprep.subr.bf16.mxu1 %v14400_v37 }
 0x67c   :  { %12441 = vmatpush3.bf16.msra.mxu1 %v14400_v37  ;;  %v13005_v37 = vld [vmem:[%s15604_s5 + $0x188] sm:$0xff]  }
 0x67d   :  { %12442 = vmatprep.subr.bf16.mxu1 %v14402_v38 }
 0x680   :  { %12443 = vmatpush3.bf16.msra.mxu1 %v14402_v38  ;;  %v13006_v38 = vld [vmem:[%s15604_s5 + $0x190] sm:$0xff]  }
 0x681   :  { %12444 = vmatprep.subr.bf16.mxu1 %v14404_v39 }
 0x684   :  { %12445 = vmatpush3.bf16.msra.mxu1 %v14404_v39  ;;  %v13007_v39 = vld [vmem:[%s15604_s5 + $0x198] sm:$0xff]  }
 0x685   :  { %12446 = vmatprep.subr.bf16.mxu1 %v14406_v40 }
 0x688   :  { %12447 = vmatpush3.bf16.msra.mxu1 %v14406_v40  ;;  %v13008_v40 = vld [vmem:[%s15604_s5 + $0x1a0] sm:$0xff]  }
 0x689   :  { %12448 = vmatprep.subr.bf16.mxu1 %v14408_v2 }
 0x68c   :  { %12449 = vmatpush3.bf16.msra.mxu1 %v14408_v2  ;;  %v12518_v2 = vpop.f32.mrb[36].mxu0 }
 0x68d   :  { %12450 = vmatprep.subr.bf16.mxu1 %v14410_v3 }
 0x690   :  { %12451 = vmatpush3.bf16.msra.mxu1 %v14410_v3  ;;  %v6980_v3 = vpop.f32.mrb[37].mxu0 }
 0x691   :  { %12456 = vmatprep.subr.bf16.mxu1 %v13004_v35  ;;  %v12519_v27 = vpop.f32.mrb[38].mxu0 }
 0x692   :  { %v6996_v29 = vpack.c.bf16 %v12519_v27, %v12518_v2  ;;  %v6983_v30 = vpop.f32.mrb[39].mxu0  ;;  %v7249_v2 = vld [vmem:[%s15605_s6] sm:$0x1] }
 0x693   :  { %12453 = vmatmul.mubr.bf16.vlgmr.msra.gmra.mrb[36].mxu1 %v13001_v36  ;;  %v6995_v31 = vpack.c.bf16 %v6983_v30, %v6980_v3  ;;  %v12550_v32 = vpop.f32.mrb[40].mxu0  ;;  %v11636_v30 = vld [vmem:[%s15606_s7] ss:$0 sm:$0xff] }
 0x694   :  { %12457 = vmatpush3.bf16.msra.mxu1 %v13004_v35  ;;  %v7140_v33 = vpop.f32.mrb[41].mxu0 }
 0x695   :  { %12458 = vmatprep.subr.bf16.mxu1 %v13005_v37  ;;  %v12551_v34 = vpop.f32.mrb[42].mxu0 }
 0x696   :  { %v7156_v4 = vpack.c.bf16 %v12551_v34, %v12550_v32  ;;  %v7143_v5 = vpop.f32.mrb[43].mxu0 }
 0x697   :  { %v7155_v41 = vpack.c.bf16 %v7143_v5, %v7140_v33 }
 0x698   :  { %12459 = vmatpush3.bf16.msra.mxu1 %v13005_v37 }
 0x699   :  { %12460 = vmatprep.subr.bf16.mxu1 %v13006_v38 }
 0x69c   :  { %12461 = vmatpush3.bf16.msra.mxu1 %v13006_v38 }
 0x69d   :  { %12462 = vmatprep.subr.bf16.mxu1 %v13007_v39 }
 0x6a0   :  { %12463 = vmatpush3.bf16.msra.mxu1 %v13007_v39 }
 0x6a1   :  { %12488 = vmatprep.subr.bf16.mxu1 %v13008_v40 }
 0x766   :  { %v12454_v42 = vpop.f32.mrb[36].mxu1 }
 0x767   :  { %v6660_v6 = vpop.f32.mrb[37].mxu1 }
 0x768   :  { %v12455_v7 = vpop.f32.mrb[38].mxu1 }
 0x769   :  { %v6676_v43 = vpack.c.bf16 %v12455_v7, %v12454_v42  ;;  %v6663_v8 = vpop.f32.mrb[39].mxu1 }
 0x76a   :  { %v6675_v44 = vpack.c.bf16 %v6663_v8, %v6660_v6 }
 0x76c   :  { %12464 = vmatprep.mubr.msk.bf16.mxu1 %vm4503_vm1, %v6675_v44 }
 0x76d   :  { %12465 = vmatmul.mubr.msk.bf16.vlgmr.msra.gmra.mrb[24].mxu1 %vm4503_vm1, %v6676_v43 }
 0x76e   :  { %12489 = vmatpush3.bf16.msra.mxu1 %v13008_v40  ;;  %12496 = vmatprep.mubr.msk.bf16.mxu1 %vm4503_vm1, %v6835_v55 }
 0x76f   :  { %12490 = vmatprep.subr.bf16.mxu1 %v13009_v9 }
 0x772   :  { %12491 = vmatpush3.bf16.msra.mxu1 %v13009_v9 }
 0x773   :  { %12492 = vmatprep.subr.bf16.mxu1 %v13010_v45 }
 0x776   :  { %12493 = vmatpush3.bf16.msra.mxu1 %v13010_v45 }
 0x777   :  { %12494 = vmatprep.subr.bf16.mxu1 %v13011_v14 }
 0x77a   :  { %12495 = vmatpush3.bf16.msra.mxu1 %v13011_v14 }
 0x77b   :  { %12520 = vmatprep.subr.bf16.mxu1 %v13012_v46 }
 0x77d   :  { %12497 = vmatmul.mubr.msk.bf16.vlgmr.msra.gmra.mrb[24].mxu1 %vm4503_vm1, %v6836_v53 }
 0x77e   :  { %12521 = vmatpush3.bf16.msra.mxu1 %v13012_v46  ;;  %12528 = vmatprep.mubr.msk.bf16.mxu1 %vm4503_vm1, %v6995_v31 }
 0x77f   :  { %12522 = vmatprep.subr.bf16.mxu1 %v13013_v15 }
 0x782   :  { %12523 = vmatpush3.bf16.msra.mxu1 %v13013_v15 }
 0x783   :  { %12524 = vmatprep.subr.bf16.mxu1 %v13014_v47 }
 0x786   :  { %12525 = vmatpush3.bf16.msra.mxu1 %v13014_v47 }
 0x787   :  { %12526 = vmatprep.subr.bf16.mxu1 %v13015_v11 }
 0x78a   :  { %12527 = vmatpush3.bf16.msra.mxu1 %v13015_v11 }
 0x78b   :  { %12552 = vmatprep.subr.bf16.mxu1 %v13016_v48 }
 0x78d   :  { %12529 = vmatmul.mubr.msk.bf16.vlgmr.msra.gmra.mrb[24].mxu1 %vm4503_vm1, %v6996_v29 }
 0x78e   :  { %12553 = vmatpush3.bf16.msra.mxu1 %v13016_v48  ;;  %12560 = vmatprep.mubr.msk.bf16.mxu1 %vm4503_vm1, %v7155_v41 }
 0x78f   :  { %12554 = vmatprep.subr.bf16.mxu1 %v13017_v13 }
 0x792   :  { %12555 = vmatpush3.bf16.msra.mxu1 %v13017_v13 }
 0x793   :  { %12556 = vmatprep.subr.bf16.mxu1 %v13018_v49 }
 0x796   :  { %12557 = vmatpush3.bf16.msra.mxu1 %v13018_v49 }
 0x797   :  { %12558 = vmatprep.subr.bf16.mxu1 %v13019_v10 }
 0x79a   :  { %12559 = vmatpush3.bf16.msra.mxu1 %v13019_v10 }
 0x79d   :  { %12561 = vmatmul.mubr.msk.bf16.vlgmr.msra.gmra.mrb[24].mxu1 %vm4503_vm1, %v7156_v4 }
 0x870   :  { %v12562_v50 = vpop.f32.mrb[24].mxu1 }
 0x871   :  { %v7230_v12 = vpop.f32.mrb[25].mxu1 }
 0x872   :  { %v12563_v51 = vpop.f32.mrb[26].mxu1 }
 0x873   :  { %v7233_v16 = vpop.f32.mrb[27].mxu1 }
 0x874   :  { %v7251_v52 = vadd.f32 %v7233_v16, %v7230_v12 }
 0x876   :  { %v7252_v17 = vadd.f32 %v12562_v50, %v7251_v52 }
 0x878   :  { %v7253_v53 = vadd.f32 %v12563_v51, %v7252_v17 }
 0x87a   :  { %v7254_v54 = vrot.slane %v7253_v53, 4 }
 0x87c   :  { %v7255_v55 = vadd.f32 %v7254_v54, %v7253_v53 }
 0x87e   :  { %v7256_v56 = vrot.slane %v7255_v55, 2 }
 0x880   :  { %v7257_v57 = vadd.f32 %v7256_v56, %v7255_v55 }
 0x882   :  { %v7258_v58 = vrot.slane %v7257_v57, 1 }
 0x884   :  { %v7259_v59 = vadd.f32 %v7258_v58, %v7257_v57 }
 0x886   :  { %v7260_v18 = vmul.f32 0.03125, %v7259_v59 }
 0x888   :  { %v7261_v19 = vsub.f32 %v7230_v12, %v7260_v18  ;;  %v7262_v20 = vsub.f32 %v7233_v16, %v7260_v18  ;;  %v7263_v21 = vsub.f32 %v12562_v50, %v7260_v18  ;;  %v7264_v22 = vsub.f32 %v12563_v51, %v7260_v18 }
 0x88a   :  { %v7265_v23 = vmul.f32 %v7261_v19, %v7261_v19  ;;  %v7266_v61 = vmul.f32 %v7262_v20, %v7262_v20  ;;  %v7267_v0 = vmul.f32 %v7263_v21, %v7263_v21  ;;  %v7268_v60 = vmul.f32 %v7264_v22, %v7264_v22 }
 0x88c   :  { %v7269_v1 = vadd.f32 %v7266_v61, %v7265_v23 }
 0x88e   :  { %v7270_v62 = vadd.f32 %v7269_v1, %v7267_v0 }
 0x890   :  { %v7271_v63 = vadd.f32 %v7270_v62, %v7268_v60 }
 0x892   :  { %v7272_v24 = vrot.slane %v7271_v63, 4 }
 0x894   :  { %v7273_v25 = vadd.f32 %v7272_v24, %v7271_v63 }
 0x896   :  { %v7274_v35 = vrot.slane %v7273_v25, 2 }
 0x898   :  { %v7275_v36 = vadd.f32 %v7274_v35, %v7273_v25 }
 0x89a   :  { %v7276_v37 = vrot.slane %v7275_v36, 1 }
 0x89c   :  { %v7277_v38 = vadd.f32 %v7276_v37, %v7275_v36 }
 0x89e   :  { %v7278_v39 = vmul.f32 0.03125, %v7277_v38 }
 0x8a0   :  { %v7279_v40 = vadd.f32 1e-05, %v7278_v39 }
 0x8a2   :  { %13022 = vrsqrt.f32 %v7279_v40 }
 0x8ac   :  { %v13023_v3 = vpop.eup %13022 }
 0x8ad   :  { %v7281_v27 = vmul.f32 %v13023_v3, %v7249_v2 }
 0x8af   :  { %v7286_v29 = vrot.slane %v7281_v27, %v14374_v28 }
 0x8b1   :  { %v7288_v31 = vmul.f32 %v7286_v29, %v7261_v19  ;;  %v7289_v32 = vmul.f32 %v7286_v29, %v7262_v20  ;;  %v7290_v33 = vmul.f32 %v7286_v29, %v7263_v21  ;;  %v7291_v34 = vmul.f32 %v7286_v29, %v7264_v22 }
 0x8b3   :  { %v7298_v4 = vadd.f32 %v11636_v30, %v7288_v31  ;;  %v7299_v5 = vadd.f32 %v11636_v30, %v7289_v32  ;;  %v7300_v41 = vadd.f32 %v11636_v30, %v7290_v33  ;;  %v7301_v42 = vadd.f32 %v11636_v30, %v7291_v34 }
 0x8b5   :  { %v7302_v6 = vmul.f32 0.2, %v7298_v4  ;;  %v7303_v7 = vmul.f32 0.2, %v7299_v5  ;;  %v7304_v43 = vmul.f32 0.2, %v7300_v41 }
 0x8b6   :  { %v7305_v8 = vmul.f32 0.2, %v7301_v42 }
 0x8b7   :  { %v7306_v44 = vmax.f32 %v7298_v4, %v7302_v6  ;;  %v7307_v9 = vmax.f32 %v7299_v5, %v7303_v7  ;;  %v7308_v45 = vmax.f32 %v7300_v41, %v7304_v43 }
 0x8b8   :  { %v7309_v14 = vmax.f32 %v7301_v42, %v7305_v8 }
 0x8b9   :  { %v15095_v46 = vpack.c.bf16 %v7307_v9, %v7306_v44 }
 0x8ba   :  { %v15097_v15 = vpack.c.bf16 %v7309_v14, %v7308_v45 }
 0x8bb   :  { %13048 = dma.done.wait [#allocation4], 32768 }
 0x8bc   :  { %13049 = vsyncadd [#allocation4], 4294934528  ;;  %v13076_v47 = vmov 0.0   ;;  %vm13077_vm2 = vmmov 0   ;;  %v11638_v11 = vld [vmem:[%s15607_s8 + $0x4] sm:$0xf] }
 0x8bd   :  { %12572 = vmatprep.subr.bf16.mxu0 %v13076_v47  ;;  %12576 = vmatprep.mubr.msk.bf16.mxu0 %vm13077_vm2, %v13076_v47  ;;  %v7317_v48 = vld [vmem:[%s15607_s8] sm:$0xf]  ;;  %v7426_v13 = vld [vmem:[#allocation2 + $0x88] sm:$0xff]  ;;  %v7428_v10 = vld [vmem:[#allocation2 + $0x98] sm:$0xff]  ;;  %v13078_v61 = vmov 0  }
 0x8be   :  { %12573 = vmatpush3.bf16.msra.mxu0 %v15095_v46  ;;  %12564 = vmatprep.subr.bf16.mxu1 %v13076_v47  ;;  %v7425_v49 = vld [vmem:[#allocation2 + $0x80] sm:$0xff]  ;;  %v11640_v50 = vld [vmem:[%s15607_s8 + $0x8] sm:$0xf]  ;;  %v7427_v12 = vld [vmem:[#allocation2 + $0x90] sm:$0xff] }
 0x8bf   :  { %12574 = vmatprep.subr.bf16.mxu0 %v13076_v47  ;;  %12565 = vmatpush3.bf16.msra.mxu1 %v15095_v46  ;;  %v7430_v51 = vld [vmem:[#allocation2 + $0xa8] sm:$0xff]  ;;  %v7429_v16 = vld [vmem:[#allocation2 + $0xa0] sm:$0xff]  ;;  %v7432_v52 = vld [vmem:[#allocation2 + $0xb8] sm:$0xff] }
 0x8c0   :  { %12566 = vmatprep.subr.bf16.mxu1 %v13076_v47  ;;  %12568 = vmatprep.mubr.msk.bf16.mxu1 %vm13077_vm2, %v13076_v47  ;;  %v11642_v17 = vld [vmem:[%s15607_s8 + $0xc] sm:$0xf]  ;;  %v7431_v53 = vld [vmem:[#allocation2 + $0xb0] sm:$0xff]  ;;  %v7433_v55 = vld [vmem:[#allocation2 + $0xc0] sm:$0xff] }
 0x8c1   :  { %v7434_v54 = vld [vmem:[#allocation2 + $0xc8] sm:$0xff]  ;;  %v7436_v56 = vld [vmem:[#allocation2 + $0xd8] sm:$0xff]  ;;  %v11644_v57 = vld [vmem:[%s15607_s8 + $0x10] sm:$0xf] }
 0x8c2   :  { %12575 = vmatpush3.bf16.msra.mxu0 %v15097_v15  ;;  %v7435_v58 = vld [vmem:[#allocation2 + $0xd0] sm:$0xff]  ;;  %v7438_v59 = vld [vmem:[#allocation2 + $0xe8] sm:$0xff]  ;;  %v7437_v18 = vld [vmem:[#allocation2 + $0xe0] sm:$0xff] }
 0x8c3   :  { %12567 = vmatpush3.bf16.msra.mxu1 %v15097_v15  ;;  %12580 = vmatprep.subr.bf16.mxu0 %v13076_v47  ;;  %v7440_v19 = vld [vmem:[#allocation2 + $0xf8] sm:$0xff]  ;;  %v11646_v20 = vld [vmem:[%s15607_s8 + $0x14] sm:$0xf]  ;;  %v7363_v23 = vld [vmem:[#allocation2 + $0x8] sm:$0xff] }
 0x8c4   :  { %7441 = vmatprep.subr.bf16.mxu1 %v7426_v13  ;;  %v7439_v21 = vld [vmem:[#allocation2 + $0xf0] sm:$0xff]  ;;  %v11648_v22 = vld [vmem:[%s15607_s8 + $0x18] sm:$0xf]  ;;  %v11650_v0 = vld [vmem:[%s15607_s8 + $0x1c] sm:$0xf] }
 0x8c5   :  { %12577 = vmatmul.mubr.msk.bf16.vlgmr.msra.gmra.mrb[44].mxu0 %vm4379_vm0, %v11638_v11  ;;  %v11652_v1 = vld [vmem:[%s15607_s8 + $0x20] sm:$0xf]  ;;  %v11654_v60 = vld [vmem:[%s15607_s8 + $0x24] sm:$0xf]  ;;  %v11656_v62 = vld [vmem:[%s15607_s8 + $0x28] sm:$0xf] }
 0x8c6   :  { %12569 = vmatmul.mubr.msk.bf16.vlgmr.msra.gmra.mrb[40].mxu1 %vm4379_vm0, %v7317_v48  ;;  %12581 = vmatpush3.bf16.msra.mxu0 %v15095_v46  ;;  %v7362_v35 = vld [vmem:[#allocation2] sm:$0xff]  ;;  %v7365_v38 = vld [vmem:[#allocation2 + $0x18] sm:$0xff]  ;;  %v7364_v27 = vld [vmem:[#allocation2 + $0x10] sm:$0xff] }
 0x8c7   :  { %12582 = vmatprep.subr.bf16.mxu0 %v13076_v47  ;;  %12584 = vmatprep.mubr.msk.bf16.mxu0 %vm13077_vm2, %v13076_v47  ;;  %v7367_v29 = vld [vmem:[#allocation2 + $0x28] sm:$0xff]  ;;  %v7366_v31 = vld [vmem:[#allocation2 + $0x20] sm:$0xff]  ;;  %v7369_v34 = vld [vmem:[#allocation2 + $0x38] sm:$0xff] }
 0x8c8   :  { %7442 = vmatpush1.bf16.msra.mxu1 %v7425_v49  ;;  %7473 = vmatprep.mubr.bf16.mxu1 %v13078_v61  ;;  %v11658_v33 = vld [vmem:[%s15607_s8 + $0x2c] sm:$0xf]  ;;  %v7368_v41 = vld [vmem:[#allocation2 + $0x30] sm:$0xff]  ;;  %v7370_v7 = vld [vmem:[#allocation2 + $0x40] sm:$0xff] }
 0x8c9   :  { %7443 = vmatprep.subr.bf16.mxu1 %v7428_v10  ;;  %v7371_v42 = vld [vmem:[#allocation2 + $0x48] sm:$0xff]  ;;  %v7373_v8 = vld [vmem:[#allocation2 + $0x58] sm:$0xff]  ;;  %v7372_v45 = vld [vmem:[#allocation2 + $0x50] sm:$0xff] }
 0x8ca   :  { %12583 = vmatpush3.bf16.msra.mxu0 %v15097_v15  ;;  %v7375_v14 = vld [vmem:[#allocation2 + $0x68] sm:$0xff]  ;;  %v7374_v48 = vld [vmem:[#allocation2 + $0x60] sm:$0xff]  ;;  %v7377_v49 = vld [vmem:[#allocation2 + $0x78] sm:$0xff] }
 0x8cb   :  { %12588 = vmatprep.subr.bf16.mxu0 %v13076_v47 }
 0x8cc   :  { %7444 = vmatpush1.bf16.msra.mxu1 %v7427_v12  ;;  %v7376_v12 = vld [vmem:[#allocation2 + $0x70] sm:$0xff] }
 0x8cd   :  { %12585 = vmatmul.mubr.msk.bf16.vlgmr.msra.gmra.mrb[48].mxu0 %vm4379_vm0, %v11640_v50  ;;  %7445 = vmatprep.subr.bf16.mxu1 %v7430_v51  ;;  %v7571_v51 = vld [vmem:[#allocation2 + $0x108] sm:$0xff] }
 0x8ce   :  { %12589 = vmatpush3.bf16.msra.mxu0 %v15095_v46  ;;  %12592 = vmatprep.mubr.msk.bf16.mxu0 %vm13077_vm2, %v13076_v47 }
 0x8cf   :  { %12590 = vmatprep.subr.bf16.mxu0 %v13076_v47 }
 0x8d0   :  { %7446 = vmatpush1.bf16.msra.mxu1 %v7429_v16 }
 0x8d1   :  { %7447 = vmatprep.subr.bf16.mxu1 %v7432_v52 }
 0x8d2   :  { %12591 = vmatpush3.bf16.msra.mxu0 %v15097_v15 }
 0x8d3   :  { %12596 = vmatprep.subr.bf16.mxu0 %v13076_v47 }
 0x8d4   :  { %7448 = vmatpush1.bf16.msra.mxu1 %v7431_v53 }
 0x8d5   :  { %12593 = vmatmul.mubr.msk.bf16.vlgmr.msra.gmra.mrb[52].mxu0 %vm4379_vm0, %v11642_v17  ;;  %7449 = vmatprep.subr.bf16.mxu1 %v7434_v54  ;;  %v7570_v17 = vld [vmem:[#allocation2 + $0x100] sm:$0xff]  ;;  %v7573_v54 = vld [vmem:[#allocation2 + $0x118] sm:$0xff] }
 0x8d6   :  { %12597 = vmatpush3.bf16.msra.mxu0 %v15095_v46  ;;  %12600 = vmatprep.mubr.msk.bf16.mxu0 %vm13077_vm2, %v13076_v47 }
 0x8d7   :  { %12598 = vmatprep.subr.bf16.mxu0 %v13076_v47 }
 0x8d8   :  { %7450 = vmatpush1.bf16.msra.mxu1 %v7433_v55 }
 0x8d9   :  { %7451 = vmatprep.subr.bf16.mxu1 %v7436_v56 }
 0x8da   :  { %12599 = vmatpush3.bf16.msra.mxu0 %v15097_v15 }
 0x8db   :  { %12604 = vmatprep.subr.bf16.mxu0 %v13076_v47 }
 0x8dc   :  { %7452 = vmatpush1.bf16.msra.mxu1 %v7435_v58  ;;  %v7575_v58 = vld [vmem:[#allocation2 + $0x128] sm:$0xff] }
 0x8dd   :  { %12601 = vmatmul.mubr.msk.bf16.vlgmr.msra.gmra.mrb[56].mxu0 %vm4379_vm0, %v11644_v57  ;;  %7453 = vmatprep.subr.bf16.mxu1 %v7438_v59  ;;  %v7572_v57 = vld [vmem:[#allocation2 + $0x110] sm:$0xff]  ;;  %v7574_v59 = vld [vmem:[#allocation2 + $0x120] sm:$0xff] }
 0x8de   :  { %12605 = vmatpush3.bf16.msra.mxu0 %v15095_v46  ;;  %12608 = vmatprep.mubr.msk.bf16.mxu0 %vm13077_vm2, %v13076_v47 }
 0x8df   :  { %12606 = vmatprep.subr.bf16.mxu0 %v13076_v47 }
 0x8e0   :  { %7454 = vmatpush1.bf16.msra.mxu1 %v7437_v18  ;;  %v11660_v18 = vld [vmem:[%s15607_s8 + $0x30] sm:$0xf] }
 0x8e1   :  { %7455 = vmatprep.subr.bf16.mxu1 %v7440_v19  ;;  %v7577_v19 = vld [vmem:[#allocation2 + $0x138] sm:$0xff] }
 0x8e2   :  { %12607 = vmatpush3.bf16.msra.mxu0 %v15097_v15 }
 0x8e3   :  { %12612 = vmatprep.subr.bf16.mxu0 %v13076_v47 }
 0x8e4   :  { %7456 = vmatpush1.bf16.msra.mxu1 %v7439_v21  ;;  %v7579_v21 = vld [vmem:[#allocation2 + $0x148] sm:$0xff] }
 0x8e5   :  { %12609 = vmatmul.mubr.msk.bf16.vlgmr.msra.gmra.mrb[60].mxu0 %vm4379_vm0, %v11646_v20  ;;  %7482 = vmatprep.subr.bf16.mxu1 %v7363_v23  ;;  %v7576_v20 = vld [vmem:[#allocation2 + $0x130] sm:$0xff]  ;;  %v7581_v23 = vld [vmem:[#allocation2 + $0x158] sm:$0xff] }
 0x8e6   :  { %12613 = vmatpush3.bf16.msra.mxu0 %v15095_v46  ;;  %12616 = vmatprep.mubr.msk.bf16.mxu0 %vm13077_vm2, %v13076_v47 }
 0x8e7   :  { %12614 = vmatprep.subr.bf16.mxu0 %v13076_v47 }
 0x8ea   :  { %12615 = vmatpush3.bf16.msra.mxu0 %v15097_v15 }
 0x8eb   :  { %12620 = vmatprep.subr.bf16.mxu0 %v13076_v47 }
 0x8ed   :  { %12617 = vmatmul.mubr.msk.bf16.vlgmr.msra.gmra.mrb[64].mxu0 %vm4379_vm0, %v11648_v22  ;;  %v7578_v22 = vld [vmem:[#allocation2 + $0x140] sm:$0xff] }
 0x8ee   :  { %12621 = vmatpush3.bf16.msra.mxu0 %v15095_v46  ;;  %12624 = vmatprep.mubr.msk.bf16.mxu0 %vm13077_vm2, %v13076_v47 }
 0x8ef   :  { %12622 = vmatprep.subr.bf16.mxu0 %v13076_v47 }
 0x8f2   :  { %12623 = vmatpush3.bf16.msra.mxu0 %v15097_v15 }
 0x8f3   :  { %12628 = vmatprep.subr.bf16.mxu0 %v13076_v47 }
 0x8f5   :  { %12625 = vmatmul.mubr.msk.bf16.vlgmr.msra.gmra.mrb[68].mxu0 %vm4379_vm0, %v11650_v0  ;;  %v7580_v0 = vld [vmem:[#allocation2 + $0x150] sm:$0xff] }
 0x8f6   :  { %12629 = vmatpush3.bf16.msra.mxu0 %v15095_v46  ;;  %12632 = vmatprep.mubr.msk.bf16.mxu0 %vm13077_vm2, %v13076_v47 }
 0x8f7   :  { %12630 = vmatprep.subr.bf16.mxu0 %v13076_v47 }
 0x8fa   :  { %12631 = vmatpush3.bf16.msra.mxu0 %v15097_v15 }
 0x8fb   :  { %12636 = vmatprep.subr.bf16.mxu0 %v13076_v47 }
 0x8fd   :  { %12633 = vmatmul.mubr.msk.bf16.vlgmr.msra.gmra.mrb[72].mxu0 %vm4379_vm0, %v11652_v1  ;;  %v7583_v1 = vld [vmem:[#allocation2 + $0x168] sm:$0xff] }
 0x8fe   :  { %12637 = vmatpush3.bf16.msra.mxu0 %v15095_v46  ;;  %12640 = vmatprep.mubr.msk.bf16.mxu0 %vm13077_vm2, %v13076_v47 }
 0x8ff   :  { %12638 = vmatprep.subr.bf16.mxu0 %v13076_v47 }
 0x902   :  { %12639 = vmatpush3.bf16.msra.mxu0 %v15097_v15 }
 0x903   :  { %12644 = vmatprep.subr.bf16.mxu0 %v13076_v47 }
 0x905   :  { %12641 = vmatmul.mubr.msk.bf16.vlgmr.msra.gmra.mrb[76].mxu0 %vm4379_vm0, %v11654_v60  ;;  %v7582_v60 = vld [vmem:[#allocation2 + $0x160] sm:$0xff] }
 0x906   :  { %12645 = vmatpush3.bf16.msra.mxu0 %v15095_v46  ;;  %12648 = vmatprep.mubr.msk.bf16.mxu0 %vm13077_vm2, %v13076_v47 }
 0x907   :  { %12646 = vmatprep.subr.bf16.mxu0 %v13076_v47 }
 0x90a   :  { %12647 = vmatpush3.bf16.msra.mxu0 %v15097_v15 }
 0x90b   :  { %12652 = vmatprep.subr.bf16.mxu0 %v13076_v47 }
 0x90d   :  { %12649 = vmatmul.mubr.msk.bf16.vlgmr.msra.gmra.mrb[80].mxu0 %vm4379_vm0, %v11656_v62  ;;  %v7585_v62 = vld [vmem:[#allocation2 + $0x178] sm:$0xff] }
 0x90e   :  { %12653 = vmatpush3.bf16.msra.mxu0 %v15095_v46  ;;  %12656 = vmatprep.mubr.msk.bf16.mxu0 %vm13077_vm2, %v13076_v47 }
 0x90f   :  { %12654 = vmatprep.subr.bf16.mxu0 %v13076_v47 }
 0x912   :  { %12655 = vmatpush3.bf16.msra.mxu0 %v15097_v15 }
 0x913   :  { %12660 = vmatprep.subr.bf16.mxu0 %v13076_v47 }
 0x915   :  { %12657 = vmatmul.mubr.msk.bf16.vlgmr.msra.gmra.mrb[84].mxu0 %vm4379_vm0, %v11658_v33  ;;  %v7684_v33 = vld [vmem:[#allocation2 + $0x1c0] sm:$0xff] }
 0x916   :  { %12661 = vmatpush3.bf16.msra.mxu0 %v15095_v46  ;;  %12664 = vmatprep.mubr.msk.bf16.mxu0 %vm13077_vm2, %v13076_v47 }
 0x917   :  { %12662 = vmatprep.subr.bf16.mxu0 %v13076_v47 }
 0x91a   :  { %12663 = vmatpush3.bf16.msra.mxu0 %v15097_v15 }
 0x91b   :  { %12668 = vmatprep.subr.bf16.mxu0 %v13076_v47 }
 0x91d   :  { %12665 = vmatmul.mubr.msk.bf16.vlgmr.msra.gmra.mrb[88].mxu0 %vm4379_vm0, %v11660_v18 }
 0x91e   :  { %12669 = vmatpush3.bf16.msra.mxu0 %v15095_v46  ;;  %12672 = vmatprep.mubr.msk.bf16.mxu0 %vm13077_vm2, %v13076_v47 }
 0x91f   :  { %12670 = vmatprep.subr.bf16.mxu0 %v13076_v47 }
 0x922   :  { %12671 = vmatpush3.bf16.msra.mxu0 %v15097_v15 }
 0x923   :  { %12676 = vmatprep.subr.bf16.mxu0 %v13076_v47 }
 0x998   :  { %v7417_v63 = vpop.f32.mrb[44].mxu0 }
 0x999   :  { %v7423_v24 = vpack.c.bf16 %v7417_v63, %v7417_v63  ;;  %v12578_v25 = vpop.f32.mrb[45].mxu0  ;;  %v15217_v36 = vpop.f32.mrb[40].mxu1 }
 0x99a   :  { %v7420_v37 = vpop.f32.mrb[46].mxu0  ;;  %v12570_v39 = vpop.f32.mrb[41].mxu1  ;;  %v7361_v16 = vpack.c.bf16 %v15217_v36, %v15217_v36 }
 0x99b   :  { %v12579_v40 = vpop.f32.mrb[47].mxu0  ;;  %7474 = vmatmul.mubr.bf16.vlgmr.msra.gmra.mrb[44].mxu1 %v7423_v24  ;;  %v7358_v2 = vpop.f32.mrb[42].mxu1  ;;  %v7584_v24 = vld [vmem:[#allocation2 + $0x170] sm:$0xff]  ;;  %v7676_v39 = vld [vmem:[#allocation2 + $0x180] sm:$0xff] }
 0x99c   :  { %7483 = vmatpush1.bf16.msra.mxu1 %v7362_v35  ;;  %v12571_v3 = vpop.f32.mrb[43].mxu1  ;;  %7514 = vmatprep.mubr.bf16.mxu1 %v13078_v61  ;;  %v7677_v35 = vld [vmem:[#allocation2 + $0x188] sm:$0xff]  ;;  %v7679_v40 = vld [vmem:[#allocation2 + $0x198] sm:$0xff]  ;;  %v7678_v2 = vld [vmem:[#allocation2 + $0x190] sm:$0xff] }
 0x99d   :  { %7484 = vmatprep.subr.bf16.mxu1 %v7365_v38  ;;  %v7681_v3 = vld [vmem:[#allocation2 + $0x1a8] sm:$0xff] }
 0x9a0   :  { %7485 = vmatpush1.bf16.msra.mxu1 %v7364_v27  ;;  %v15220_v30 = vpop.f32.mrb[48].mxu0  ;;  %v7680_v27 = vld [vmem:[#allocation2 + $0x1a0] sm:$0xff] }
 0x9a1   :  { %7486 = vmatprep.subr.bf16.mxu1 %v7367_v29  ;;  %v12586_v32 = vpop.f32.mrb[49].mxu0  ;;  %v7568_v37 = vpack.c.bf16 %v15220_v30, %v15220_v30  ;;  %v11662_v29 = vld [vmem:[%s15607_s8 + $0x34] sm:$0xf]  ;;  %v7683_v30 = vld [vmem:[#allocation2 + $0x1b8] sm:$0xff] }
 0x9a2   :  { %v7565_v4 = vpop.f32.mrb[50].mxu0  ;;  %12673 = vmatmul.mubr.msk.bf16.vlgmr.msra.gmra.mrb[92].mxu0 %vm4379_vm0, %v11662_v29  ;;  %v7685_v32 = vld [vmem:[#allocation2 + $0x1c8] sm:$0xff] }
 0x9a3   :  { %v12587_v5 = vpop.f32.mrb[51].mxu0  ;;  %12677 = vmatpush3.bf16.msra.mxu0 %v15095_v46  ;;  %12680 = vmatprep.mubr.msk.bf16.mxu0 %vm13077_vm2, %v13076_v47  ;;  %v7686_v4 = vld [vmem:[#allocation2 + $0x1d0] sm:$0xff] }
 0x9a4   :  { %7487 = vmatpush1.bf16.msra.mxu1 %v7366_v31  ;;  %12678 = vmatprep.subr.bf16.mxu0 %v13076_v47  ;;  %v7682_v31 = vld [vmem:[#allocation2 + $0x1b0] sm:$0xff]  ;;  %v7689_v5 = vld [vmem:[#allocation2 + $0x1e8] sm:$0xff] }
 0x9a5   :  { %7488 = vmatprep.subr.bf16.mxu1 %v7369_v34  ;;  %v7687_v34 = vld [vmem:[#allocation2 + $0x1d8] sm:$0xff] }
 0x9a7   :  { %12679 = vmatpush3.bf16.msra.mxu0 %v15097_v15 }
 0x9a8   :  { %7489 = vmatpush1.bf16.msra.mxu1 %v7368_v41  ;;  %v15231_v6 = vpop.f32.mrb[52].mxu0  ;;  %12684 = vmatprep.subr.bf16.mxu0 %v13076_v47  ;;  %v7688_v41 = vld [vmem:[#allocation2 + $0x1e0] sm:$0xff] }
 0x9a9   :  { %7490 = vmatprep.subr.bf16.mxu1 %v7371_v42  ;;  %v12594_v43 = vpop.f32.mrb[53].mxu0  ;;  %v7691_v42 = vld [vmem:[#allocation2 + $0x1f8] sm:$0xff] }
 0x9aa   :  { %v7671_v44 = vpop.f32.mrb[54].mxu0 }
 0x9ab   :  { %v12595_v9 = vpop.f32.mrb[55].mxu0 }
 0x9ac   :  { %7491 = vmatpush1.bf16.msra.mxu1 %v7370_v7  ;;  %v7690_v7 = vld [vmem:[#allocation2 + $0x1f0] sm:$0xff]  ;;  %v7674_v9 = vpack.c.bf16 %v15231_v6, %v15231_v6  ;;  %v11664_v6 = vld [vmem:[%s15607_s8 + $0x38] sm:$0xf] }
 0x9ad   :  { %7492 = vmatprep.subr.bf16.mxu1 %v7373_v8  ;;  %v7783_v8 = vld [vmem:[#allocation2 + $0x208] sm:$0xff]  ;;  %12681 = vmatmul.mubr.msk.bf16.vlgmr.msra.gmra.mrb[96].mxu0 %vm4379_vm0, %v11664_v6 }
 0x9ae   :  { %12685 = vmatpush3.bf16.msra.mxu0 %v15095_v46  ;;  %12688 = vmatprep.mubr.msk.bf16.mxu0 %vm13077_vm2, %v13076_v47  ;;  %v7794_v46 = vld [vmem:[#allocation2 + $0x260] sm:$0xff] }
 0x9af   :  { %12686 = vmatprep.subr.bf16.mxu0 %v13076_v47  ;;  %v7796_v47 = vld [vmem:[#allocation2 + $0x270] sm:$0xff] }
 0x9b0   :  { %7493 = vmatpush1.bf16.msra.mxu1 %v7372_v45  ;;  %v15234_v11 = vpop.f32.mrb[56].mxu0 }
 0x9b1   :  { %7494 = vmatprep.subr.bf16.mxu1 %v7375_v14  ;;  %v12602_v13 = vpop.f32.mrb[57].mxu0 }
 0x9b2   :  { %v7777_v10 = vpop.f32.mrb[58].mxu0  ;;  %v7785_v13 = vld [vmem:[#allocation2 + $0x218] sm:$0xff]  ;;  %12687 = vmatpush3.bf16.msra.mxu0 %v15097_v15  ;;  %v7780_v15 = vpack.c.bf16 %v15234_v11, %v15234_v11  ;;  %v7892_v11 = vld [vmem:[#allocation2 + $0x2a0] sm:$0xff] }
 0x9b3   :  { %v12603_v50 = vpop.f32.mrb[59].mxu0  ;;  %v7787_v10 = vld [vmem:[#allocation2 + $0x228] sm:$0xff] }
 0x9b4   :  { %7495 = vmatpush1.bf16.msra.mxu1 %v7374_v48  ;;  %v7782_v48 = vld [vmem:[#allocation2 + $0x200] sm:$0xff] }
 0x9b5   :  { %7496 = vmatprep.subr.bf16.mxu1 %v7377_v49  ;;  %v7784_v49 = vld [vmem:[#allocation2 + $0x210] sm:$0xff]  ;;  %v7786_v50 = vld [vmem:[#allocation2 + $0x220] sm:$0xff] }
 0x9b8   :  { %7497 = vmatpush1.bf16.msra.mxu1 %v7376_v12  ;;  %v15238_v52 = vpop.f32.mrb[60].mxu0  ;;  %v7789_v12 = vld [vmem:[#allocation2 + $0x238] sm:$0xff] }
 0x9b9   :  { %7586 = vmatprep.subr.bf16.mxu1 %v7571_v51  ;;  %v12610_v53 = vpop.f32.mrb[61].mxu0  ;;  %v7788_v51 = vld [vmem:[#allocation2 + $0x230] sm:$0xff] }
 0x9ba   :  { %v7883_v55 = vpop.f32.mrb[62].mxu0  ;;  %v7793_v53 = vld [vmem:[#allocation2 + $0x258] sm:$0xff] }
 0x9bb   :  { %7515 = vmatmul.mubr.bf16.vlgmr.msra.gmra.mrb[44].mxu1 %v7361_v16  ;;  %v12611_v56 = vpop.f32.mrb[63].mxu0  ;;  %v7791_v16 = vld [vmem:[#allocation2 + $0x248] sm:$0xff] }
 0x9bc   :  { %7587 = vmatpush1.bf16.msra.mxu1 %v7570_v17  ;;  %7618 = vmatprep.mubr.bf16.mxu1 %v13078_v61  ;;  %v7790_v17 = vld [vmem:[#allocation2 + $0x240] sm:$0xff]  ;;  %v7795_v55 = vld [vmem:[#allocation2 + $0x268] sm:$0xff]  ;;  %v7797_v56 = vld [vmem:[#allocation2 + $0x278] sm:$0xff] }
 0x9bd   :  { %7588 = vmatprep.subr.bf16.mxu1 %v7573_v54  ;;  %v7792_v54 = vld [vmem:[#allocation2 + $0x250] sm:$0xff] }
 0x9c0   :  { %7589 = vmatpush1.bf16.msra.mxu1 %v7572_v57  ;;  %v15251_v63 = vpop.f32.mrb[64].mxu0 }
 0x9c1   :  { %7590 = vmatprep.subr.bf16.mxu1 %v7575_v58  ;;  %v12618_v25 = vpop.f32.mrb[65].mxu0  ;;  %v7889_v58 = vld [vmem:[#allocation2 + $0x288] sm:$0xff] }
 0x9c2   :  { %v7989_v36 = vpop.f32.mrb[66].mxu0  ;;  %v7899_v25 = vld [vmem:[#allocation2 + $0x2d8] sm:$0xff] }
 0x9c3   :  { %v12619_v38 = vpop.f32.mrb[67].mxu0  ;;  %v7901_v36 = vld [vmem:[#allocation2 + $0x2e8] sm:$0xff] }
 0x9c4   :  { %7591 = vmatpush1.bf16.msra.mxu1 %v7574_v59  ;;  %v7903_v38 = vld [vmem:[#allocation2 + $0x2f8] sm:$0xff] }
 0x9c5   :  { %7592 = vmatprep.subr.bf16.mxu1 %v7577_v19 }
 0x9c8   :  { %7593 = vmatpush1.bf16.msra.mxu1 %v7576_v20  ;;  %v15266_v43 = vpop.f32.mrb[68].mxu0  ;;  %v7888_v20 = vld [vmem:[#allocation2 + $0x280] sm:$0xff] }
 0x9c9   :  { %7594 = vmatprep.subr.bf16.mxu1 %v7579_v21  ;;  %v12626_v44 = vpop.f32.mrb[69].mxu0  ;;  %v7891_v21 = vld [vmem:[#allocation2 + $0x298] sm:$0xff] }
 0x9ca   :  { %v8095_v45 = vpop.f32.mrb[70].mxu0  ;;  %v8007_v44 = vld [vmem:[#allocation2 + $0x368] sm:$0xff] }
 0x9cb   :  { %v12627_v14 = vpop.f32.mrb[71].mxu0  ;;  %v8009_v45 = vld [vmem:[#allocation2 + $0x378] sm:$0xff] }
 0x9cc   :  { %7595 = vmatpush1.bf16.msra.mxu1 %v7578_v22  ;;  %v7890_v22 = vld [vmem:[#allocation2 + $0x290] sm:$0xff] }
 0x9cd   :  { %7596 = vmatprep.subr.bf16.mxu1 %v7581_v23  ;;  %v7893_v23 = vld [vmem:[#allocation2 + $0x2a8] sm:$0xff]  ;;  %v8008_v14 = vld [vmem:[#allocation2 + $0x370] sm:$0xff] }
 0x9d0   :  { %7597 = vmatpush1.bf16.msra.mxu1 %v7580_v0  ;;  %v15280_v57 = vpop.f32.mrb[72].mxu0  ;;  %v11666_v0 = vld [vmem:[%s15607_s8 + $0x3c] sm:$0xf] }
 0x9d1   :  { %7598 = vmatprep.subr.bf16.mxu1 %v7583_v1  ;;  %v12634_v59 = vpop.f32.mrb[73].mxu0  ;;  %12689 = vmatmul.mubr.msk.bf16.vlgmr.msra.gmra.mrb[100].mxu0 %vm4379_vm0, %v11666_v0  ;;  %v7895_v1 = vld [vmem:[#allocation2 + $0x2b8] sm:$0xff] }
 0x9d2   :  { %v8201_v18 = vpop.f32.mrb[74].mxu0  ;;  %v8112_v59 = vld [vmem:[#allocation2 + $0x3e0] sm:$0xff] }
 0x9d3   :  { %v12635_v19 = vpop.f32.mrb[75].mxu0  ;;  %v8114_v18 = vld [vmem:[#allocation2 + $0x3f0] sm:$0xff] }
 0x9d4   :  { %7599 = vmatpush1.bf16.msra.mxu1 %v7582_v60  ;;  %v7894_v60 = vld [vmem:[#allocation2 + $0x2b0] sm:$0xff] }
 0x9d5   :  { %7600 = vmatprep.subr.bf16.mxu1 %v7585_v62  ;;  %v7897_v62 = vld [vmem:[#allocation2 + $0x2c8] sm:$0xff] }
 0x9d8   :  { %7601 = vmatpush1.bf16.msra.mxu1 %v7584_v24  ;;  %v7896_v24 = vld [vmem:[#allocation2 + $0x2c0] sm:$0xff] }
 0x9d9   :  { %7692 = vmatprep.subr.bf16.mxu1 %v7677_v35  ;;  %v7898_v35 = vld [vmem:[#allocation2 + $0x2d0] sm:$0xff] }
 0x9db   :  { %7619 = vmatmul.mubr.bf16.vlgmr.msra.gmra.mrb[44].mxu1 %v7568_v37  ;;  %v7900_v37 = vld [vmem:[#allocation2 + $0x2e0] sm:$0xff] }
 0x9dc   :  { %7693 = vmatpush1.bf16.msra.mxu1 %v7676_v39  ;;  %7724 = vmatprep.mubr.bf16.mxu1 %v13078_v61  ;;  %v7902_v39 = vld [vmem:[#allocation2 + $0x2f0] sm:$0xff] }
 0x9dd   :  { %7694 = vmatprep.subr.bf16.mxu1 %v7679_v40  ;;  %v15289_v40 = vpop.f32.mrb[76].mxu0 }
 0x9e0   :  { %7695 = vmatpush1.bf16.msra.mxu1 %v7678_v2  ;;  %v7995_v2 = vld [vmem:[#allocation2 + $0x308] sm:$0xff] }
 0x9e1   :  { %7696 = vmatprep.subr.bf16.mxu1 %v7681_v3  ;;  %v12642_v3 = vpop.f32.mrb[77].mxu0 }
 0x9e2   :  { %v8307_v29 = vpop.f32.mrb[78].mxu0  ;;  %v8221_v3 = vld [vmem:[#allocation2 + $0x478] sm:$0xff] }
 0x9e4   :  { %7697 = vmatpush1.bf16.msra.mxu1 %v7680_v27  ;;  %v7886_v27 = vpack.c.bf16 %v15238_v52, %v15238_v52  ;;  %v8000_v52 = vld [vmem:[#allocation2 + $0x330] sm:$0xff] }
 0x9e5   :  { %7698 = vmatprep.subr.bf16.mxu1 %v7683_v30  ;;  %v12643_v30 = vpop.f32.mrb[79].mxu0 }
 0x9e6   :  { %v8313_v30 = vld [vmem:[#allocation2 + $0x488] sm:$0xff] }
 0x9e8   :  { %7699 = vmatpush1.bf16.msra.mxu1 %v7682_v31  ;;  %v7994_v31 = vld [vmem:[#allocation2 + $0x300] sm:$0xff] }
 0x9e9   :  { %7700 = vmatprep.subr.bf16.mxu1 %v7685_v32  ;;  %v7997_v32 = vld [vmem:[#allocation2 + $0x318] sm:$0xff] }
 0x9ec   :  { %7701 = vmatpush1.bf16.msra.mxu1 %v7684_v33  ;;  %v7996_v33 = vld [vmem:[#allocation2 + $0x310] sm:$0xff] }
 0x9ed   :  { %7702 = vmatprep.subr.bf16.mxu1 %v7687_v34  ;;  %v7999_v34 = vld [vmem:[#allocation2 + $0x328] sm:$0xff] }
 0x9f0   :  { %7703 = vmatpush1.bf16.msra.mxu1 %v7686_v4  ;;  %v7998_v4 = vld [vmem:[#allocation2 + $0x320] sm:$0xff] }
 0x9f1   :  { %7704 = vmatprep.subr.bf16.mxu1 %v7689_v5  ;;  %v8001_v5 = vld [vmem:[#allocation2 + $0x338] sm:$0xff] }
 0x9f4   :  { %7705 = vmatpush1.bf16.msra.mxu1 %v7688_v41  ;;  %v8003_v41 = vld [vmem:[#allocation2 + $0x348] sm:$0xff] }
 0x9f5   :  { %7706 = vmatprep.subr.bf16.mxu1 %v7691_v42  ;;  %v8002_v42 = vld [vmem:[#allocation2 + $0x340] sm:$0xff] }
 0x9f8   :  { %7707 = vmatpush1.bf16.msra.mxu1 %v7690_v7  ;;  %v8005_v7 = vld [vmem:[#allocation2 + $0x358] sm:$0xff] }
 0x9f9   :  { %7798 = vmatprep.subr.bf16.mxu1 %v7783_v8  ;;  %v8004_v8 = vld [vmem:[#allocation2 + $0x350] sm:$0xff] }
 0x9fb   :  { %7725 = vmatmul.mubr.bf16.vlgmr.msra.gmra.mrb[44].mxu1 %v7674_v9  ;;  %v8006_v9 = vld [vmem:[#allocation2 + $0x360] sm:$0xff] }
 0x9fc   :  { %7799 = vmatpush1.bf16.msra.mxu1 %v7782_v48  ;;  %7830 = vmatprep.mubr.bf16.mxu1 %v13078_v61  ;;  %v15294_v48 = vpop.f32.mrb[80].mxu0 }
 0x9fd   :  { %7800 = vmatprep.subr.bf16.mxu1 %v7785_v13  ;;  %v8101_v13 = vld [vmem:[#allocation2 + $0x388] sm:$0xff] }
 0xa00   :  { %7801 = vmatpush1.bf16.msra.mxu1 %v7784_v49  ;;  %v12650_v49 = vpop.f32.mrb[81].mxu0 }
 0xa01   :  { %7802 = vmatprep.subr.bf16.mxu1 %v7787_v10  ;;  %v7992_v10 = vpack.c.bf16 %v15251_v63, %v15251_v63  ;;  %v8106_v63 = vld [vmem:[#allocation2 + $0x3b0] sm:$0xff]  ;;  %v8327_v49 = vld [vmem:[#allocation2 + $0x4f8] sm:$0xff] }
 0xa04   :  { %7803 = vmatpush1.bf16.msra.mxu1 %v7786_v50  ;;  %v8413_v50 = vpop.f32.mrb[82].mxu0 }
 0xa05   :  { %7804 = vmatprep.subr.bf16.mxu1 %v7789_v12  ;;  %v12651_v6 = vpop.f32.mrb[83].mxu0  ;;  %v8100_v12 = vld [vmem:[#allocation2 + $0x380] sm:$0xff] }
 0xa06   :  { %v15299_v19 = vpop.f32.mrb[84].mxu0  ;;  %v8419_v6 = vld [vmem:[#allocation2 + $0x508] sm:$0xff] }
 0xa08   :  { %7805 = vmatpush1.bf16.msra.mxu1 %v7788_v51  ;;  %v8103_v51 = vld [vmem:[#allocation2 + $0x398] sm:$0xff] }
 0xa09   :  { %7806 = vmatprep.subr.bf16.mxu1 %v7791_v16  ;;  %v8102_v16 = vld [vmem:[#allocation2 + $0x390] sm:$0xff] }
 0xa0c   :  { %7807 = vmatpush1.bf16.msra.mxu1 %v7790_v17  ;;  %v8105_v17 = vld [vmem:[#allocation2 + $0x3a8] sm:$0xff] }
 0xa0d   :  { %7808 = vmatprep.subr.bf16.mxu1 %v7793_v53  ;;  %v8104_v53 = vld [vmem:[#allocation2 + $0x3a0] sm:$0xff] }
 0xa10   :  { %7809 = vmatpush1.bf16.msra.mxu1 %v7792_v54  ;;  %v8107_v54 = vld [vmem:[#allocation2 + $0x3b8] sm:$0xff] }
 0xa11   :  { %7810 = vmatprep.subr.bf16.mxu1 %v7795_v55  ;;  %v8109_v55 = vld [vmem:[#allocation2 + $0x3c8] sm:$0xff] }
 0xa14   :  { %7811 = vmatpush1.bf16.msra.mxu1 %v7794_v46  ;;  %v8108_v46 = vld [vmem:[#allocation2 + $0x3c0] sm:$0xff] }
 0xa15   :  { %7812 = vmatprep.subr.bf16.mxu1 %v7797_v56  ;;  %v8111_v56 = vld [vmem:[#allocation2 + $0x3d8] sm:$0xff] }
 0xa18   :  { %7813 = vmatpush1.bf16.msra.mxu1 %v7796_v47  ;;  %v8110_v47 = vld [vmem:[#allocation2 + $0x3d0] sm:$0xff] }
 0xa19   :  { %7904 = vmatprep.subr.bf16.mxu1 %v7889_v58  ;;  %v8113_v58 = vld [vmem:[#allocation2 + $0x3e8] sm:$0xff] }
 0xa1b   :  { %7831 = vmatmul.mubr.bf16.vlgmr.msra.gmra.mrb[44].mxu1 %v7780_v15  ;;  %v8115_v15 = vld [vmem:[#allocation2 + $0x3f8] sm:$0xff] }
 0xa1c   :  { %7905 = vmatpush1.bf16.msra.mxu1 %v7888_v20  ;;  %7936 = vmatprep.mubr.bf16.mxu1 %v13078_v61  ;;  %v8207_v20 = vld [vmem:[#allocation2 + $0x408] sm:$0xff] }
 0xa1d   :  { %7906 = vmatprep.subr.bf16.mxu1 %v7891_v21  ;;  %v12658_v21 = vpop.f32.mrb[85].mxu0 }
 0xa1e   :  { %v8433_v21 = vld [vmem:[#allocation2 + $0x578] sm:$0xff] }
 0xa20   :  { %7907 = vmatpush1.bf16.msra.mxu1 %v7890_v22  ;;  %v8098_v22 = vpack.c.bf16 %v15266_v43, %v15266_v43  ;;  %v8212_v43 = vld [vmem:[#allocation2 + $0x430] sm:$0xff] }
 0xa21   :  { %7908 = vmatprep.subr.bf16.mxu1 %v7893_v23  ;;  %v8519_v23 = vpop.f32.mrb[86].mxu0 }
 0xa22   :  { %v12659_v0 = vpop.f32.mrb[87].mxu0 }
 0xa23   :  { %v15304_v29 = vpop.f32.mrb[88].mxu0  ;;  %v8525_v0 = vld [vmem:[#allocation2 + $0x588] sm:$0xff] }
 0xa24   :  { %7909 = vmatpush1.bf16.msra.mxu1 %v7892_v11  ;;  %v8206_v11 = vld [vmem:[#allocation2 + $0x400] sm:$0xff] }
 0xa25   :  { %7910 = vmatprep.subr.bf16.mxu1 %v7895_v1  ;;  %v8209_v1 = vld [vmem:[#allocation2 + $0x418] sm:$0xff] }
 0xa28   :  { %7911 = vmatpush1.bf16.msra.mxu1 %v7894_v60  ;;  %v8208_v60 = vld [vmem:[#allocation2 + $0x410] sm:$0xff] }
 0xa29   :  { %7912 = vmatprep.subr.bf16.mxu1 %v7897_v62  ;;  %v8211_v62 = vld [vmem:[#allocation2 + $0x428] sm:$0xff] }
 0xa2c   :  { %7913 = vmatpush1.bf16.msra.mxu1 %v7896_v24  ;;  %v8210_v24 = vld [vmem:[#allocation2 + $0x420] sm:$0xff] }
 0xa2d   :  { %7914 = vmatprep.subr.bf16.mxu1 %v7899_v25  ;;  %v8213_v25 = vld [vmem:[#allocation2 + $0x438] sm:$0xff] }
 0xa30   :  { %7915 = vmatpush1.bf16.msra.mxu1 %v7898_v35  ;;  %v8215_v35 = vld [vmem:[#allocation2 + $0x448] sm:$0xff] }
 0xa31   :  { %7916 = vmatprep.subr.bf16.mxu1 %v7901_v36  ;;  %v8214_v36 = vld [vmem:[#allocation2 + $0x440] sm:$0xff] }
 0xa34   :  { %7917 = vmatpush1.bf16.msra.mxu1 %v7900_v37  ;;  %v8217_v37 = vld [vmem:[#allocation2 + $0x458] sm:$0xff] }
 0xa35   :  { %7918 = vmatprep.subr.bf16.mxu1 %v7903_v38  ;;  %v8216_v38 = vld [vmem:[#allocation2 + $0x450] sm:$0xff] }
 0xa38   :  { %7919 = vmatpush1.bf16.msra.mxu1 %v7902_v39  ;;  %v8219_v39 = vld [vmem:[#allocation2 + $0x468] sm:$0xff] }
 0xa39   :  { %8010 = vmatprep.subr.bf16.mxu1 %v7995_v2  ;;  %v8218_v2 = vld [vmem:[#allocation2 + $0x460] sm:$0xff] }
 0xa3b   :  { %7937 = vmatmul.mubr.bf16.vlgmr.msra.gmra.mrb[44].mxu1 %v7886_v27  ;;  %v8220_v27 = vld [vmem:[#allocation2 + $0x470] sm:$0xff] }
 0xa3c   :  { %8011 = vmatpush1.bf16.msra.mxu1 %v7994_v31  ;;  %8042 = vmatprep.mubr.bf16.mxu1 %v13078_v61  ;;  %v12666_v31 = vpop.f32.mrb[89].mxu0 }
 0xa3d   :  { %8012 = vmatprep.subr.bf16.mxu1 %v7997_v32  ;;  %v8204_v32 = vpack.c.bf16 %v15280_v57, %v15280_v57  ;;  %v8318_v57 = vld [vmem:[#allocation2 + $0x4b0] sm:$0xff]  ;;  %v8539_v31 = vld [vmem:[#allocation2 + $0x5f8] sm:$0xff] }
 0xa40   :  { %8013 = vmatpush1.bf16.msra.mxu1 %v7996_v33  ;;  %v8625_v33 = vpop.f32.mrb[90].mxu0 }
 0xa41   :  { %8014 = vmatprep.subr.bf16.mxu1 %v7999_v34  ;;  %v12667_v34 = vpop.f32.mrb[91].mxu0  ;;  %v8538_v33 = vld [vmem:[#allocation2 + $0x5f0] sm:$0xff] }
 0xa44   :  { %8015 = vmatpush1.bf16.msra.mxu1 %v7998_v4  ;;  %v8312_v4 = vld [vmem:[#allocation2 + $0x480] sm:$0xff] }
 0xa45   :  { %8016 = vmatprep.subr.bf16.mxu1 %v8001_v5  ;;  %v8315_v5 = vld [vmem:[#allocation2 + $0x498] sm:$0xff] }
 0xa48   :  { %8017 = vmatpush1.bf16.msra.mxu1 %v8000_v52  ;;  %v8314_v52 = vld [vmem:[#allocation2 + $0x490] sm:$0xff] }
 0xa49   :  { %8018 = vmatprep.subr.bf16.mxu1 %v8003_v41  ;;  %v8317_v41 = vld [vmem:[#allocation2 + $0x4a8] sm:$0xff] }
 0xa4c   :  { %8019 = vmatpush1.bf16.msra.mxu1 %v8002_v42  ;;  %v8316_v42 = vld [vmem:[#allocation2 + $0x4a0] sm:$0xff] }
 0xa4d   :  { %8020 = vmatprep.subr.bf16.mxu1 %v8005_v7  ;;  %v8319_v7 = vld [vmem:[#allocation2 + $0x4b8] sm:$0xff] }
 0xa50   :  { %8021 = vmatpush1.bf16.msra.mxu1 %v8004_v8  ;;  %v8321_v8 = vld [vmem:[#allocation2 + $0x4c8] sm:$0xff] }
 0xa51   :  { %8022 = vmatprep.subr.bf16.mxu1 %v8007_v44  ;;  %v8320_v44 = vld [vmem:[#allocation2 + $0x4c0] sm:$0xff] }
 0xa54   :  { %8023 = vmatpush1.bf16.msra.mxu1 %v8006_v9  ;;  %v8323_v9 = vld [vmem:[#allocation2 + $0x4d8] sm:$0xff] }
 0xa55   :  { %8024 = vmatprep.subr.bf16.mxu1 %v8009_v45  ;;  %v8322_v45 = vld [vmem:[#allocation2 + $0x4d0] sm:$0xff] }
 0xa58   :  { %8025 = vmatpush1.bf16.msra.mxu1 %v8008_v14  ;;  %v8325_v14 = vld [vmem:[#allocation2 + $0x4e8] sm:$0xff] }
 0xa59   :  { %8116 = vmatprep.subr.bf16.mxu1 %v8101_v13  ;;  %v8324_v13 = vld [vmem:[#allocation2 + $0x4e0] sm:$0xff] }
 0xa5b   :  { %8043 = vmatmul.mubr.bf16.vlgmr.msra.gmra.mrb[44].mxu1 %v7992_v10  ;;  %v8326_v10 = vld [vmem:[#allocation2 + $0x4f0] sm:$0xff] }
 0xa5c   :  { %8117 = vmatpush1.bf16.msra.mxu1 %v8100_v12  ;;  %8148 = vmatprep.mubr.bf16.mxu1 %v13078_v61 }
 0xa5d   :  { %8118 = vmatprep.subr.bf16.mxu1 %v8103_v51  ;;  %v8310_v51 = vpack.c.bf16 %v15289_v40, %v15289_v40  ;;  %v8424_v40 = vld [vmem:[#allocation2 + $0x530] sm:$0xff] }
 0xa60   :  { %8119 = vmatpush1.bf16.msra.mxu1 %v8102_v16 }
 0xa61   :  { %8120 = vmatprep.subr.bf16.mxu1 %v8105_v17 }
 0xa64   :  { %8121 = vmatpush1.bf16.msra.mxu1 %v8104_v53  ;;  %v8418_v53 = vld [vmem:[#allocation2 + $0x500] sm:$0xff] }
 0xa65   :  { %8122 = vmatprep.subr.bf16.mxu1 %v8107_v54  ;;  %v8421_v54 = vld [vmem:[#allocation2 + $0x518] sm:$0xff] }
 0xa68   :  { %8123 = vmatpush1.bf16.msra.mxu1 %v8106_v63  ;;  %v8420_v63 = vld [vmem:[#allocation2 + $0x510] sm:$0xff] }
 0xa69   :  { %8124 = vmatprep.subr.bf16.mxu1 %v8109_v55  ;;  %v8423_v55 = vld [vmem:[#allocation2 + $0x528] sm:$0xff] }
 0xa6c   :  { %8125 = vmatpush1.bf16.msra.mxu1 %v8108_v46  ;;  %v8422_v46 = vld [vmem:[#allocation2 + $0x520] sm:$0xff] }
 0xa6d   :  { %8126 = vmatprep.subr.bf16.mxu1 %v8111_v56  ;;  %v8425_v56 = vld [vmem:[#allocation2 + $0x538] sm:$0xff] }
 0xa70   :  { %8127 = vmatpush1.bf16.msra.mxu1 %v8110_v47  ;;  %v8427_v47 = vld [vmem:[#allocation2 + $0x548] sm:$0xff] }
 0xa71   :  { %8128 = vmatprep.subr.bf16.mxu1 %v8113_v58  ;;  %v8426_v58 = vld [vmem:[#allocation2 + $0x540] sm:$0xff] }
 0xa74   :  { %8129 = vmatpush1.bf16.msra.mxu1 %v8112_v59  ;;  %v8429_v59 = vld [vmem:[#allocation2 + $0x558] sm:$0xff] }
 0xa75   :  { %8130 = vmatprep.subr.bf16.mxu1 %v8115_v15  ;;  %v15309_v50 = vpop.f32.mrb[92].mxu0  ;;  %v8428_v15 = vld [vmem:[#allocation2 + $0x550] sm:$0xff] }
 0xa76   :  { %v12674_v12 = vpop.f32.mrb[93].mxu0 }
 0xa77   :  { %v8731_v16 = vpop.f32.mrb[94].mxu0  ;;  %v8645_v12 = vld [vmem:[#allocation2 + $0x678] sm:$0xff] }
 0xa78   :  { %8131 = vmatpush1.bf16.msra.mxu1 %v8114_v18  ;;  %v12675_v17 = vpop.f32.mrb[95].mxu0  ;;  %v8431_v18 = vld [vmem:[#allocation2 + $0x568] sm:$0xff] }
 0xa79   :  { %8222 = vmatprep.subr.bf16.mxu1 %v8207_v20  ;;  %v8430_v20 = vld [vmem:[#allocation2 + $0x560] sm:$0xff]  ;;  %v8737_v16 = vld [vmem:[#allocation2 + $0x688] sm:$0xff]  ;;  %v8628_v17 = vpack.c.bf16 %v15304_v29, %v15304_v29 }
 0xa7a   :  { %v8744_v29 = vld [vmem:[#allocation2 + $0x6c0] sm:$0xff] }
 0xa7b   :  { %8149 = vmatmul.mubr.bf16.vlgmr.msra.gmra.mrb[44].mxu1 %v8098_v22  ;;  %v8432_v22 = vld [vmem:[#allocation2 + $0x570] sm:$0xff] }
 0xa7c   :  { %8223 = vmatpush1.bf16.msra.mxu1 %v8206_v11  ;;  %8254 = vmatprep.mubr.bf16.mxu1 %v13078_v61 }
 0xa7d   :  { %8224 = vmatprep.subr.bf16.mxu1 %v8209_v1  ;;  %v8416_v1 = vpack.c.bf16 %v15294_v48, %v15294_v48  ;;  %v8530_v48 = vld [vmem:[#allocation2 + $0x5b0] sm:$0xff] }
 0xa80   :  { %8225 = vmatpush1.bf16.msra.mxu1 %v8208_v60  ;;  %v15314_v23 = vpop.f32.mrb[96].mxu0 }
 0xa81   :  { %8226 = vmatprep.subr.bf16.mxu1 %v8211_v62  ;;  %v12682_v11 = vpop.f32.mrb[97].mxu0 }
 0xa82   :  { %v8837_v60 = vpop.f32.mrb[98].mxu0  ;;  %v8842_v11 = vld [vmem:[#allocation2 + $0x700] sm:$0xff] }
 0xa83   :  { %v12683_v62 = vpop.f32.mrb[99].mxu0  ;;  %v8844_v60 = vld [vmem:[#allocation2 + $0x710] sm:$0xff] }
 0xa84   :  { %8227 = vmatpush1.bf16.msra.mxu1 %v8210_v24  ;;  %v8524_v24 = vld [vmem:[#allocation2 + $0x580] sm:$0xff]  ;;  %v8847_v62 = vld [vmem:[#allocation2 + $0x728] sm:$0xff] }
 0xa85   :  { %8228 = vmatprep.subr.bf16.mxu1 %v8213_v25  ;;  %v8527_v25 = vld [vmem:[#allocation2 + $0x598] sm:$0xff] }
 0xa88   :  { %8229 = vmatpush1.bf16.msra.mxu1 %v8212_v43  ;;  %v8526_v43 = vld [vmem:[#allocation2 + $0x590] sm:$0xff] }
 0xa89   :  { %8230 = vmatprep.subr.bf16.mxu1 %v8215_v35  ;;  %v8529_v35 = vld [vmem:[#allocation2 + $0x5a8] sm:$0xff] }
 0xa8c   :  { %8231 = vmatpush1.bf16.msra.mxu1 %v8214_v36  ;;  %v8528_v36 = vld [vmem:[#allocation2 + $0x5a0] sm:$0xff] }
 0xa8d   :  { %8232 = vmatprep.subr.bf16.mxu1 %v8217_v37  ;;  %v8531_v37 = vld [vmem:[#allocation2 + $0x5b8] sm:$0xff] }
 0xa90   :  { %8233 = vmatpush1.bf16.msra.mxu1 %v8216_v38  ;;  %v8533_v38 = vld [vmem:[#allocation2 + $0x5c8] sm:$0xff] }
 0xa91   :  { %8234 = vmatprep.subr.bf16.mxu1 %v8219_v39  ;;  %v8532_v39 = vld [vmem:[#allocation2 + $0x5c0] sm:$0xff] }
 0xa94   :  { %8235 = vmatpush1.bf16.msra.mxu1 %v8218_v2  ;;  %v8535_v2 = vld [vmem:[#allocation2 + $0x5d8] sm:$0xff] }
 0xa95   :  { %8236 = vmatprep.subr.bf16.mxu1 %v8221_v3  ;;  %v8534_v3 = vld [vmem:[#allocation2 + $0x5d0] sm:$0xff] }
 0xa98   :  { %8237 = vmatpush1.bf16.msra.mxu1 %v8220_v27  ;;  %v8537_v27 = vld [vmem:[#allocation2 + $0x5e8] sm:$0xff] }
 0xa99   :  { %8328 = vmatprep.subr.bf16.mxu1 %v8313_v30  ;;  %v8536_v30 = vld [vmem:[#allocation2 + $0x5e0] sm:$0xff] }
 0xa9b   :  { %8255 = vmatmul.mubr.bf16.vlgmr.msra.gmra.mrb[44].mxu1 %v8204_v32 }
 0xa9c   :  { %8329 = vmatpush1.bf16.msra.mxu1 %v8312_v4  ;;  %8360 = vmatprep.mubr.bf16.mxu1 %v13078_v61  ;;  %v8631_v4 = vld [vmem:[#allocation2 + $0x608] sm:$0xff] }
 0xa9d   :  { %8330 = vmatprep.subr.bf16.mxu1 %v8315_v5 }
 0xaa0   :  { %8331 = vmatpush1.bf16.msra.mxu1 %v8314_v52  ;;  %v8522_v52 = vpack.c.bf16 %v15299_v19, %v15299_v19  ;;  %v8639_v19 = vld [vmem:[#allocation2 + $0x648] sm:$0xff] }
 0xaa1   :  { %8332 = vmatprep.subr.bf16.mxu1 %v8317_v41 }
 0xaa4   :  { %8333 = vmatpush1.bf16.msra.mxu1 %v8316_v42  ;;  %v15319_v32 = vpop.f32.mrb[100].mxu0  ;;  %v8630_v42 = vld [vmem:[#allocation2 + $0x600] sm:$0xff] }
 0xaa5   :  { %8334 = vmatprep.subr.bf16.mxu1 %v8319_v7  ;;  %v12690_v34 = vpop.f32.mrb[101].mxu0  ;;  %v8633_v7 = vld [vmem:[#allocation2 + $0x618] sm:$0xff] }
 0xaa6   :  { %v8943_v5 = vpop.f32.mrb[102].mxu0  ;;  %v8953_v34 = vld [vmem:[#allocation2 + $0x7a8] sm:$0xff] }
 0xaa7   :  { %v12691_v41 = vpop.f32.mrb[103].mxu0  ;;  %v8955_v5 = vld [vmem:[#allocation2 + $0x7b8] sm:$0xff] }
 0xaa8   :  { %8335 = vmatpush1.bf16.msra.mxu1 %v8318_v57  ;;  %v8632_v57 = vld [vmem:[#allocation2 + $0x610] sm:$0xff]  ;;  %v8957_v41 = vld [vmem:[#allocation2 + $0x7c8] sm:$0xff] }
 0xaa9   :  { %8336 = vmatprep.subr.bf16.mxu1 %v8321_v8  ;;  %v8635_v8 = vld [vmem:[#allocation2 + $0x628] sm:$0xff] }
 0xaac   :  { %8337 = vmatpush1.bf16.msra.mxu1 %v8320_v44  ;;  %v8634_v44 = vld [vmem:[#allocation2 + $0x620] sm:$0xff] }
 0xaad   :  { %8338 = vmatprep.subr.bf16.mxu1 %v8323_v9  ;;  %v8637_v9 = vld [vmem:[#allocation2 + $0x638] sm:$0xff] }
 0xab0   :  { %8339 = vmatpush1.bf16.msra.mxu1 %v8322_v45  ;;  %v8636_v45 = vld [vmem:[#allocation2 + $0x630] sm:$0xff] }
 0xab1   :  { %8340 = vmatprep.subr.bf16.mxu1 %v8325_v14  ;;  %v8638_v14 = vld [vmem:[#allocation2 + $0x640] sm:$0xff] }
 0xab4   :  { %8341 = vmatpush1.bf16.msra.mxu1 %v8324_v13  ;;  %v8641_v13 = vld [vmem:[#allocation2 + $0x658] sm:$0xff] }
 0xab5   :  { %8342 = vmatprep.subr.bf16.mxu1 %v8327_v49  ;;  %v8640_v49 = vld [vmem:[#allocation2 + $0x650] sm:$0xff] }
 0xab8   :  { %8343 = vmatpush1.bf16.msra.mxu1 %v8326_v10  ;;  %v8643_v10 = vld [vmem:[#allocation2 + $0x668] sm:$0xff] }
 0xab9   :  { %8434 = vmatprep.subr.bf16.mxu1 %v8419_v6  ;;  %v8642_v6 = vld [vmem:[#allocation2 + $0x660] sm:$0xff] }
 0xabb   :  { %8361 = vmatmul.mubr.bf16.vlgmr.msra.gmra.mrb[44].mxu1 %v8310_v51  ;;  %v8644_v51 = vld [vmem:[#allocation2 + $0x670] sm:$0xff] }
 0xabc   :  { %8435 = vmatpush1.bf16.msra.mxu1 %v8418_v53  ;;  %8466 = vmatprep.mubr.bf16.mxu1 %v13078_v61  ;;  %v8736_v53 = vld [vmem:[#allocation2 + $0x680] sm:$0xff] }
 0xabd   :  { %8436 = vmatprep.subr.bf16.mxu1 %v8421_v54  ;;  %v8739_v54 = vld [vmem:[#allocation2 + $0x698] sm:$0xff] }
 0xac0   :  { %8437 = vmatpush1.bf16.msra.mxu1 %v8420_v63  ;;  %v8738_v63 = vld [vmem:[#allocation2 + $0x690] sm:$0xff] }
 0xac1   :  { %8438 = vmatprep.subr.bf16.mxu1 %v8423_v55  ;;  %v8741_v55 = vld [vmem:[#allocation2 + $0x6a8] sm:$0xff] }
 0xac4   :  { %8439 = vmatpush1.bf16.msra.mxu1 %v8422_v46  ;;  %v8740_v46 = vld [vmem:[#allocation2 + $0x6a0] sm:$0xff] }
 0xac5   :  { %8440 = vmatprep.subr.bf16.mxu1 %v8425_v56  ;;  %v8743_v56 = vld [vmem:[#allocation2 + $0x6b8] sm:$0xff] }
 0xac8   :  { %8441 = vmatpush1.bf16.msra.mxu1 %v8424_v40  ;;  %v8742_v40 = vld [vmem:[#allocation2 + $0x6b0] sm:$0xff] }
 0xac9   :  { %8442 = vmatprep.subr.bf16.mxu1 %v8427_v47  ;;  %v8745_v47 = vld [vmem:[#allocation2 + $0x6c8] sm:$0xff] }
 0xacc   :  { %8443 = vmatpush1.bf16.msra.mxu1 %v8426_v58  ;;  %v8747_v58 = vld [vmem:[#allocation2 + $0x6d8] sm:$0xff] }
 0xacd   :  { %8444 = vmatprep.subr.bf16.mxu1 %v8429_v59  ;;  %v8746_v59 = vld [vmem:[#allocation2 + $0x6d0] sm:$0xff] }
 0xad0   :  { %8445 = vmatpush1.bf16.msra.mxu1 %v8428_v15  ;;  %v8749_v15 = vld [vmem:[#allocation2 + $0x6e8] sm:$0xff] }
 0xad1   :  { %8446 = vmatprep.subr.bf16.mxu1 %v8431_v18  ;;  %v8748_v18 = vld [vmem:[#allocation2 + $0x6e0] sm:$0xff] }
 0xad4   :  { %8447 = vmatpush1.bf16.msra.mxu1 %v8430_v20  ;;  %v8751_v20 = vld [vmem:[#allocation2 + $0x6f8] sm:$0xff] }
 0xad5   :  { %8448 = vmatprep.subr.bf16.mxu1 %v8433_v21  ;;  %v8750_v21 = vld [vmem:[#allocation2 + $0x6f0] sm:$0xff] }
 0xad8   :  { %8449 = vmatpush1.bf16.msra.mxu1 %v8432_v22  ;;  %v8843_v22 = vld [vmem:[#allocation2 + $0x708] sm:$0xff] }
 0xad9   :  { %8540 = vmatprep.subr.bf16.mxu1 %v8525_v0  ;;  %v8734_v0 = vpack.c.bf16 %v15309_v50, %v15309_v50  ;;  %v8850_v50 = vld [vmem:[#allocation2 + $0x740] sm:$0xff] }
 0xadb   :  { %8467 = vmatmul.mubr.bf16.vlgmr.msra.gmra.mrb[44].mxu1 %v8416_v1  ;;  %v8845_v1 = vld [vmem:[#allocation2 + $0x718] sm:$0xff] }
 0xadc   :  { %8541 = vmatpush1.bf16.msra.mxu1 %v8524_v24  ;;  %8572 = vmatprep.mubr.bf16.mxu1 %v13078_v61  ;;  %v8846_v24 = vld [vmem:[#allocation2 + $0x720] sm:$0xff] }
 0xadd   :  { %8542 = vmatprep.subr.bf16.mxu1 %v8527_v25  ;;  %v8849_v25 = vld [vmem:[#allocation2 + $0x738] sm:$0xff] }
 0xae0   :  { %8543 = vmatpush1.bf16.msra.mxu1 %v8526_v43  ;;  %v8848_v43 = vld [vmem:[#allocation2 + $0x730] sm:$0xff] }
 0xae1   :  { %8544 = vmatprep.subr.bf16.mxu1 %v8529_v35  ;;  %v8851_v35 = vld [vmem:[#allocation2 + $0x748] sm:$0xff] }
 0xae4   :  { %8545 = vmatpush1.bf16.msra.mxu1 %v8528_v36  ;;  %v8853_v36 = vld [vmem:[#allocation2 + $0x758] sm:$0xff] }
 0xae5   :  { %8546 = vmatprep.subr.bf16.mxu1 %v8531_v37  ;;  %v8852_v37 = vld [vmem:[#allocation2 + $0x750] sm:$0xff] }
 0xae8   :  { %8547 = vmatpush1.bf16.msra.mxu1 %v8530_v48  ;;  %v8855_v48 = vld [vmem:[#allocation2 + $0x768] sm:$0xff] }
 0xae9   :  { %8548 = vmatprep.subr.bf16.mxu1 %v8533_v38  ;;  %v8854_v38 = vld [vmem:[#allocation2 + $0x760] sm:$0xff] }
 0xaec   :  { %8549 = vmatpush1.bf16.msra.mxu1 %v8532_v39  ;;  %v8857_v39 = vld [vmem:[#allocation2 + $0x778] sm:$0xff] }
 0xaed   :  { %8550 = vmatprep.subr.bf16.mxu1 %v8535_v2  ;;  %v8856_v2 = vld [vmem:[#allocation2 + $0x770] sm:$0xff] }
 0xaf0   :  { %8551 = vmatpush1.bf16.msra.mxu1 %v8534_v3  ;;  %v8949_v3 = vld [vmem:[#allocation2 + $0x788] sm:$0xff] }
 0xaf1   :  { %8552 = vmatprep.subr.bf16.mxu1 %v8537_v27  ;;  %v8840_v27 = vpack.c.bf16 %v15314_v23, %v15314_v23  ;;  %v8956_v23 = vld [vmem:[#allocation2 + $0x7c0] sm:$0xff] }
 0xaf4   :  { %8553 = vmatpush1.bf16.msra.mxu1 %v8536_v30  ;;  %v8948_v30 = vld [vmem:[#allocation2 + $0x780] sm:$0xff] }
 0xaf5   :  { %8554 = vmatprep.subr.bf16.mxu1 %v8539_v31  ;;  %v8951_v31 = vld [vmem:[#allocation2 + $0x798] sm:$0xff] }
 0xaf8   :  { %8555 = vmatpush1.bf16.msra.mxu1 %v8538_v33  ;;  %v8950_v33 = vld [vmem:[#allocation2 + $0x790] sm:$0xff] }
 0xaf9   :  { %8646 = vmatprep.subr.bf16.mxu1 %v8631_v4  ;;  %v8952_v4 = vld [vmem:[#allocation2 + $0x7a0] sm:$0xff] }
 0xafb   :  { %8573 = vmatmul.mubr.bf16.vlgmr.msra.gmra.mrb[44].mxu1 %v8522_v52  ;;  %v8954_v52 = vld [vmem:[#allocation2 + $0x7b0] sm:$0xff] }
 0xafc   :  { %8647 = vmatpush1.bf16.msra.mxu1 %v8630_v42  ;;  %8678 = vmatprep.mubr.bf16.mxu1 %v13078_v61  ;;  %v8959_v42 = vld [vmem:[#allocation2 + $0x7d8] sm:$0xff] }
 0xafd   :  { %8648 = vmatprep.subr.bf16.mxu1 %v8633_v7  ;;  %v8958_v7 = vld [vmem:[#allocation2 + $0x7d0] sm:$0xff] }
 0xb00   :  { %8649 = vmatpush1.bf16.msra.mxu1 %v8632_v57  ;;  %v8961_v57 = vld [vmem:[#allocation2 + $0x7e8] sm:$0xff] }
 0xb01   :  { %8650 = vmatprep.subr.bf16.mxu1 %v8635_v8  ;;  %v8960_v8 = vld [vmem:[#allocation2 + $0x7e0] sm:$0xff] }
 0xb04   :  { %8651 = vmatpush1.bf16.msra.mxu1 %v8634_v44  ;;  %v8963_v44 = vld [vmem:[#allocation2 + $0x7f8] sm:$0xff] }
 0xb05   :  { %8652 = vmatprep.subr.bf16.mxu1 %v8637_v9  ;;  %v8962_v9 = vld [vmem:[#allocation2 + $0x7f0] sm:$0xff] }
 0xb08   :  { %8653 = vmatpush1.bf16.msra.mxu1 %v8636_v45  ;;  %v8946_v45 = vpack.c.bf16 %v15319_v32, %v15319_v32 }
 0xb09   :  { %8654 = vmatprep.subr.bf16.mxu1 %v8639_v19 }
 0xb0c   :  { %8655 = vmatpush1.bf16.msra.mxu1 %v8638_v14 }
 0xb0d   :  { %8656 = vmatprep.subr.bf16.mxu1 %v8641_v13 }
 0xb10   :  { %8657 = vmatpush1.bf16.msra.mxu1 %v8640_v49 }
 0xb11   :  { %8658 = vmatprep.subr.bf16.mxu1 %v8643_v10 }
 0xb14   :  { %8659 = vmatpush1.bf16.msra.mxu1 %v8642_v6 }
 0xb15   :  { %8660 = vmatprep.subr.bf16.mxu1 %v8645_v12 }
 0xb18   :  { %8661 = vmatpush1.bf16.msra.mxu1 %v8644_v51 }
 0xb19   :  { %8752 = vmatprep.subr.bf16.mxu1 %v8737_v16 }
 0xb1b   :  { %8679 = vmatmul.mubr.bf16.vlgmr.msra.gmra.mrb[44].mxu1 %v8628_v17 }
 0xb1c   :  { %8753 = vmatpush1.bf16.msra.mxu1 %v8736_v53  ;;  %8784 = vmatprep.mubr.bf16.mxu1 %v13078_v61 }
 0xb1d   :  { %8754 = vmatprep.subr.bf16.mxu1 %v8739_v54 }
 0xb20   :  { %8755 = vmatpush1.bf16.msra.mxu1 %v8738_v63 }
 0xb21   :  { %8756 = vmatprep.subr.bf16.mxu1 %v8741_v55 }
 0xb24   :  { %8757 = vmatpush1.bf16.msra.mxu1 %v8740_v46 }
 0xb25   :  { %8758 = vmatprep.subr.bf16.mxu1 %v8743_v56 }
 0xb28   :  { %8759 = vmatpush1.bf16.msra.mxu1 %v8742_v40 }
 0xb29   :  { %8760 = vmatprep.subr.bf16.mxu1 %v8745_v47 }
 0xb2c   :  { %8761 = vmatpush1.bf16.msra.mxu1 %v8744_v29 }
 0xb2d   :  { %8762 = vmatprep.subr.bf16.mxu1 %v8747_v58 }
 0xb30   :  { %8763 = vmatpush1.bf16.msra.mxu1 %v8746_v59 }
 0xb31   :  { %8764 = vmatprep.subr.bf16.mxu1 %v8749_v15 }
 0xb34   :  { %8765 = vmatpush1.bf16.msra.mxu1 %v8748_v18 }
 0xb35   :  { %8766 = vmatprep.subr.bf16.mxu1 %v8751_v20 }
 0xb38   :  { %8767 = vmatpush1.bf16.msra.mxu1 %v8750_v21 }
 0xb39   :  { %8858 = vmatprep.subr.bf16.mxu1 %v8843_v22 }
 0xb3b   :  { %8785 = vmatmul.mubr.bf16.vlgmr.msra.gmra.mrb[44].mxu1 %v8734_v0 }
 0xb3c   :  { %8859 = vmatpush1.bf16.msra.mxu1 %v8842_v11  ;;  %8890 = vmatprep.mubr.bf16.mxu1 %v13078_v61 }
 0xb3d   :  { %8860 = vmatprep.subr.bf16.mxu1 %v8845_v1 }
 0xb40   :  { %8861 = vmatpush1.bf16.msra.mxu1 %v8844_v60 }
 0xb41   :  { %8862 = vmatprep.subr.bf16.mxu1 %v8847_v62 }
 0xb44   :  { %8863 = vmatpush1.bf16.msra.mxu1 %v8846_v24 }
 0xb45   :  { %8864 = vmatprep.subr.bf16.mxu1 %v8849_v25 }
 0xb48   :  { %8865 = vmatpush1.bf16.msra.mxu1 %v8848_v43 }
 0xb49   :  { %8866 = vmatprep.subr.bf16.mxu1 %v8851_v35 }
 0xb4c   :  { %8867 = vmatpush1.bf16.msra.mxu1 %v8850_v50 }
 0xb4d   :  { %8868 = vmatprep.subr.bf16.mxu1 %v8853_v36 }
 0xb50   :  { %8869 = vmatpush1.bf16.msra.mxu1 %v8852_v37  ;;  %v13079_v37 = vmov 1966171168  }
 0xb51   :  { %8870 = vmatprep.subr.bf16.mxu1 %v8855_v48  ;;  %v9049_v48 = vunpack.c.l.s4 %v13079_v37 }
 0xb54   :  { %8871 = vmatpush1.bf16.msra.mxu1 %v8854_v38  ;;  %v9050_v38 = vunpack.c.0.s8 %v9049_v48 }
 0xb55   :  { %8872 = vmatprep.subr.bf16.mxu1 %v8857_v39 }
 0xb58   :  { %8873 = vmatpush1.bf16.msra.mxu1 %v8856_v2  ;;  %v15336_v2 = vsub.s32 %v9050_v38, %v14368_v26 }
 0xb59   :  { %8964 = vmatprep.subr.bf16.mxu1 %v8949_v3 }
 0xb5b   :  { %8891 = vmatmul.mubr.bf16.vlgmr.msra.gmra.mrb[44].mxu1 %v8840_v27 }
 0xb5c   :  { %8965 = vmatpush1.bf16.msra.mxu1 %v8948_v30  ;;  %8996 = vmatprep.mubr.bf16.mxu1 %v13078_v61 }
 0xb5d   :  { %8966 = vmatprep.subr.bf16.mxu1 %v8951_v31  ;;  %v9007_v31 = vld [vmem:[%s15608_s9] sm:$0x3] }
 0xb60   :  { %8967 = vmatpush1.bf16.msra.mxu1 %v8950_v33 }
 0xb61   :  { %8968 = vmatprep.subr.bf16.mxu1 %v8953_v34  ;;  %v15344_v34 = vsub.s32 1, %v14368_v26 }
 0xb64   :  { %8969 = vmatpush1.bf16.msra.mxu1 %v8952_v4  ;;  %v9008_v4 = vld [vmem:[%s15609_s10] sm:$0x3] }
 0xb65   :  { %8970 = vmatprep.subr.bf16.mxu1 %v8955_v5 }
 0xb68   :  { %8971 = vmatpush1.bf16.msra.mxu1 %v8954_v52 }
 0xb69   :  { %8972 = vmatprep.subr.bf16.mxu1 %v8957_v41 }
 0xb6c   :  { %8973 = vmatpush1.bf16.msra.mxu1 %v8956_v23  ;;  %v9081_v23 = vrot.slane %v9008_v4, %v14374_v28 }
 0xb6d   :  { %8974 = vmatprep.subr.bf16.mxu1 %v8959_v42  ;;  %v9085_v42 = vrot.slane %v9008_v4, %v15344_v34 }
 0xb70   :  { %8975 = vmatpush1.bf16.msra.mxu1 %v8958_v7 }
 0xb71   :  { %8976 = vmatprep.subr.bf16.mxu1 %v8961_v57 }
 0xb74   :  { %8977 = vmatpush1.bf16.msra.mxu1 %v8960_v8 }
 0xb75   :  { %8978 = vmatprep.subr.bf16.mxu1 %v8963_v44 }
 0xb78   :  { %8979 = vmatpush1.bf16.msra.mxu1 %v8962_v9 }
 0xb7b   :  { %8997 = vmatmul.mubr.bf16.vlgmr.msra.gmra.mrb[44].mxu1 %v8946_v45 }
 0xc4e   :  { %v8998_v19 = vpop.f32.mrb[44].mxu1 }
 0xc4f   :  { %v9009_v14 = vrot.slane %v8998_v19, 4  ;;  %v9000_v13 = vpop.f32.mrb[45].mxu1 }
 0xc50   :  { %v9015_v49 = vrot.slane %v9000_v13, 4  ;;  %v9002_v10 = vpop.f32.mrb[46].mxu1 }
 0xc51   :  { %v9010_v6 = vadd.f32 %v9009_v14, %v8998_v19  ;;  %v9003_v12 = vpop.f32.mrb[47].mxu1 }
 0xc52   :  { %v9016_v51 = vadd.f32 %v9015_v49, %v9000_v13 }
 0xc53   :  { %v9011_v16 = vrot.slane %v9010_v6, 2 }
 0xc54   :  { %v9017_v17 = vrot.slane %v9016_v51, 2 }
 0xc55   :  { %v9012_v53 = vadd.f32 %v9011_v16, %v9010_v6 }
 0xc56   :  { %v9018_v54 = vadd.f32 %v9017_v17, %v9016_v51 }
 0xc57   :  { %v9013_v63 = vrot.slane %v9012_v53, 1 }
 0xc58   :  { %v9019_v55 = vrot.slane %v9018_v54, 1 }
 0xc59   :  { %v9014_v46 = vadd.f32 %v9013_v63, %v9012_v53 }
 0xc5a   :  { %v9020_v56 = vadd.f32 %v9019_v55, %v9018_v54 }
 0xc5b   :  { %v9021_v40 = vmul.f32 0.125, %v9014_v46 }
 0xc5c   :  { %v9022_v32 = vmul.f32 0.125, %v9020_v56 }
 0xc5d   :  { %v9023_v47 = vsub.f32 %v8998_v19, %v9021_v40 }
 0xc5e   :  { %v9024_v29 = vsub.f32 %v9000_v13, %v9022_v32 }
 0xc5f   :  { %v9025_v58 = vmul.f32 %v9023_v47, %v9023_v47 }
 0xc60   :  { %v9026_v59 = vmul.f32 %v9024_v29, %v9024_v29 }
 0xc61   :  { %v9027_v15 = vrot.slane %v9025_v58, 4 }
 0xc62   :  { %v9033_v18 = vrot.slane %v9026_v59, 4 }
 0xc63   :  { %v9028_v20 = vadd.f32 %v9027_v15, %v9025_v58 }
 0xc64   :  { %v9034_v21 = vadd.f32 %v9033_v18, %v9026_v59 }
 0xc65   :  { %v9029_v22 = vrot.slane %v9028_v20, 2 }
 0xc66   :  { %v9035_v0 = vrot.slane %v9034_v21, 2 }
 0xc67   :  { %v9030_v11 = vadd.f32 %v9029_v22, %v9028_v20 }
 0xc68   :  { %v9036_v1 = vadd.f32 %v9035_v0, %v9034_v21 }
 0xc69   :  { %v9031_v60 = vrot.slane %v9030_v11, 1 }
 0xc6a   :  { %v9037_v62 = vrot.slane %v9036_v1, 1 }
 0xc6b   :  { %v9032_v24 = vadd.f32 %v9031_v60, %v9030_v11 }
 0xc6c   :  { %v9038_v25 = vadd.f32 %v9037_v62, %v9036_v1 }
 0xc6d   :  { %v9039_v43 = vmul.f32 0.125, %v9032_v24 }
 0xc6e   :  { %v9040_v35 = vmul.f32 0.125, %v9038_v25 }
 0xc6f   :  { %v9041_v50 = vadd.f32 1e-05, %v9039_v43 }
 0xc70   :  { %v9042_v36 = vadd.f32 1e-05, %v9040_v35 }
 0xc71   :  { %13024 = vrsqrt.f32 %v9041_v50 }
 0xc72   :  { %13026 = vrsqrt.f32 %v9042_v36 }
 0xc7b   :  { %v13025_v39 = vpop.eup %13024 }
 0xc7c   :  { %v13027_v3 = vpop.eup %13026 }
 0xc7d   :  { %v9047_v27 = vcombine.low %v13025_v39, %v13027_v3 }
 0xc7f   :  { %v9054_v30 = vrot.slane %v9047_v27, %v15336_v2 }
 0xc81   :  { %v9061_v33 = vrot.slane %v9054_v30, %v15336_v2 }
 0xc83   :  { %v9063_v5 = vmul.f32 %v9061_v33, %v9007_v31 }
 0xc85   :  { %v9068_v52 = vrot.slane %v9063_v5, %v14374_v28  ;;  %v9072_v41 = vrot.slane %v9063_v5, %v15344_v34 }
 0xc87   :  { %v9075_v7 = vmul.f32 %v9068_v52, %v9023_v47  ;;  %v9076_v57 = vmul.f32 %v9072_v41, %v9024_v29 }
 0xc89   :  { %v9088_v8 = vadd.f32 %v9081_v23, %v9075_v7  ;;  %v9089_v44 = vadd.f32 %v9085_v42, %v9076_v57 }
 0xc8b   :  { %v9090_v9 = vmul.f32 0.2, %v9088_v8  ;;  %v9091_v26 = vmul.f32 0.2, %v9089_v44 }
 0xc8d   :  { %v9092_v45 = vmax.f32 %v9088_v8, %v9090_v9  ;;  %v9093_v19 = vmax.f32 %v9089_v44, %v9091_v26 }
 0xc8f   :  { %v9094_v14 = vpack.c.bf16 %v9092_v45, %v9092_v45  ;;  %v15353_v13 = vpack.c.bf16 %v9093_v19, %v9093_v19 }
 0xc90   :  { %13050 = dma.done.wait [#allocation4 + $0x1], 65536 }
 0xc91   :  { %13051 = vsyncadd [#allocation4 + $0x1], 4294901760  ;;  %vm9105_vm3 = vcmask 1043456   ;;  %9144 = vmatprep.mubr.bf16.mxu0 %v13078_v61  ;;  %vm9101_vm4 = vcmask 64512   ;;  %v9100_v10 = vld [vmem:[%s15610_s11] sm:$0x1] }
 0xc92   :  { %11668 = vmatprep.subr.msk.bf16.mxu0 %vm9105_vm3, %v15353_v13  ;;  %v15359_v49 = vsel %vm9105_vm3, %v9094_v14, 0  ;;  %v9237_v6 = vld [vmem:[#allocation3 + $0x108] sm:$0xff]  ;;  %v9236_v12 = vld [vmem:[#allocation3 + $0x100] sm:$0xff]  ;;  %v9239_v51 = vld [vmem:[#allocation3 + $0x118] sm:$0xff]  ;;  %vm11088_vm5 = vcmask 1041408   ;;  %s15622_s0 = sld [smem:[#allocation11_spill]] }
 0xc93   :  { %9113 = vmatpush1.bf16.msra.mxu0 %v15359_v49  ;;  %9268 = vmatprep.subr.bf16.mxu1 %v9237_v6  ;;  %v9238_v16 = vld [vmem:[#allocation3 + $0x110] sm:$0xff]  ;;  %v11670_v17 = vld [vmem:[%s15610_s11 + $0x1] sm:$0x1]  ;;  %v9241_v53 = vld [vmem:[#allocation3 + $0x128] sm:$0xff] }
 0xc94   :  { %11671 = vmatprep.subr.msk.bf16.mxu0 %vm9105_vm3, %v15353_v13  ;;  %9269 = vmatpush1.bf16.msra.mxu1 %v9236_v12  ;;  %v9240_v54 = vld [vmem:[#allocation3 + $0x120] sm:$0xff]  ;;  %v9243_v63 = vld [vmem:[#allocation3 + $0x138] sm:$0xff]  ;;  %v9242_v55 = vld [vmem:[#allocation3 + $0x130] sm:$0xff] }
 0xc95   :  { %9270 = vmatprep.subr.bf16.mxu1 %v9239_v51  ;;  %v11673_v46 = vld [vmem:[%s15610_s11 + $0x2] sm:$0x1]  ;;  %v9245_v56 = vld [vmem:[#allocation3 + $0x148] sm:$0xff]  ;;  %v9247_v32 = vld [vmem:[#allocation3 + $0x158] sm:$0xff] }
 0xc96   :  { %11669 = vmatmul.mubr.msk.bf16.vlgmr.msra.gmra.mrb[104].mxu0 %vm9101_vm4, %v9100_v10  ;;  %v9244_v40 = vld [vmem:[#allocation3 + $0x140] sm:$0xff]  ;;  %v9246_v47 = vld [vmem:[#allocation3 + $0x150] sm:$0xff]  ;;  %v9249_v58 = vld [vmem:[#allocation3 + $0x168] sm:$0xff] }
 0xc97   :  { %9193 = vmatpush1.bf16.msra.mxu0 %v15359_v49  ;;  %9224 = vmatprep.mubr.bf16.mxu0 %v13078_v61  ;;  %v11676_v29 = vld [vmem:[%s15610_s11 + $0x3] sm:$0x1]  ;;  %v9251_v15 = vld [vmem:[#allocation3 + $0x178] sm:$0xff]  ;;  %v9250_v18 = vld [vmem:[#allocation3 + $0x170] sm:$0xff] }
 0xc98   :  { %11674 = vmatprep.subr.msk.bf16.mxu0 %vm9105_vm3, %v15353_v13  ;;  %9271 = vmatpush1.bf16.msra.mxu1 %v9238_v16  ;;  %v9248_v59 = vld [vmem:[#allocation3 + $0x160] sm:$0xff]  ;;  %v9253_v21 = vld [vmem:[#allocation3 + $0x188] sm:$0xff]  ;;  %v9255_v0 = vld [vmem:[#allocation3 + $0x198] sm:$0xff] }
 0xc99   :  { %9272 = vmatprep.subr.bf16.mxu1 %v9241_v53  ;;  %v11679_v20 = vld [vmem:[%s15610_s11 + $0x4] sm:$0x1]  ;;  %v9254_v11 = vld [vmem:[#allocation3 + $0x190] sm:$0xff]  ;;  %v9257_v1 = vld [vmem:[#allocation3 + $0x1a8] sm:$0xff] }
 0xc9a   :  { %v9252_v22 = vld [vmem:[#allocation3 + $0x180] sm:$0xff]  ;;  %v9259_v62 = vld [vmem:[#allocation3 + $0x1b8] sm:$0xff]  ;;  %v9258_v24 = vld [vmem:[#allocation3 + $0x1b0] sm:$0xff] }
 0xc9b   :  { %v9256_v60 = vld [vmem:[#allocation3 + $0x1a0] sm:$0xff]  ;;  %v9261_v25 = vld [vmem:[#allocation3 + $0x1c8] sm:$0xff]  ;;  %v9263_v35 = vld [vmem:[#allocation3 + $0x1d8] sm:$0xff] }
 0xc9c   :  { %9273 = vmatpush1.bf16.msra.mxu1 %v9240_v54  ;;  %v9260_v43 = vld [vmem:[#allocation3 + $0x1c0] sm:$0xff]  ;;  %v9262_v50 = vld [vmem:[#allocation3 + $0x1d0] sm:$0xff]  ;;  %v9265_v36 = vld [vmem:[#allocation3 + $0x1e8] sm:$0xff] }
 0xc9d   :  { %9274 = vmatprep.subr.bf16.mxu1 %v9243_v63  ;;  %v9264_v37 = vld [vmem:[#allocation3 + $0x1e0] sm:$0xff]  ;;  %v9267_v48 = vld [vmem:[#allocation3 + $0x1f8] sm:$0xff]  ;;  %v9266_v38 = vld [vmem:[#allocation3 + $0x1f0] sm:$0xff] }
 0xc9e   :  { %11672 = vmatmul.mubr.msk.bf16.vlgmr.msra.gmra.mrb[108].mxu0 %vm9101_vm4, %v11670_v17  ;;  %v9156_v39 = vld [vmem:[#allocation3 + $0x8] sm:$0xff]  ;;  %v9647_v27 = vld [vmem:[#allocation3 + $0x400] sm:$0xff]  ;;  %v9650_v30 = vld [vmem:[#allocation3 + $0x418] sm:$0xff] }
 0xc9f   :  { %9356 = vmatpush1.bf16.msra.mxu0 %v15359_v49  ;;  %9387 = vmatprep.mubr.bf16.mxu0 %v13078_v61  ;;  %v9648_v3 = vld [vmem:[#allocation3 + $0x408] sm:$0xff]  ;;  %v9649_v31 = vld [vmem:[#allocation3 + $0x410] sm:$0xff]  ;;  %v9651_v4 = vld [vmem:[#allocation3 + $0x420] sm:$0xff] }
 0xca0   :  { %11677 = vmatprep.subr.msk.bf16.mxu0 %vm9105_vm3, %v15353_v13  ;;  %9275 = vmatpush1.bf16.msra.mxu1 %v9242_v55  ;;  %v9652_v33 = vld [vmem:[#allocation3 + $0x428] sm:$0xff]  ;;  %v9654_v5 = vld [vmem:[#allocation3 + $0x438] sm:$0xff]  ;;  %v9653_v52 = vld [vmem:[#allocation3 + $0x430] sm:$0xff] }
 0xca1   :  { %9276 = vmatprep.subr.bf16.mxu1 %v9245_v56  ;;  %v9656_v41 = vld [vmem:[#allocation3 + $0x448] sm:$0xff]  ;;  %v9655_v23 = vld [vmem:[#allocation3 + $0x440] sm:$0xff]  ;;  %v9658_v42 = vld [vmem:[#allocation3 + $0x458] sm:$0xff] }
 0xca2   :  { %v9657_v7 = vld [vmem:[#allocation3 + $0x450] sm:$0xff]  ;;  %v9660_v57 = vld [vmem:[#allocation3 + $0x468] sm:$0xff]  ;;  %v9659_v8 = vld [vmem:[#allocation3 + $0x460] sm:$0xff] }
 0xca3   :  { %v9662_v44 = vld [vmem:[#allocation3 + $0x478] sm:$0xff]  ;;  %v9661_v9 = vld [vmem:[#allocation3 + $0x470] sm:$0xff]  ;;  %v9664_v26 = vld [vmem:[#allocation3 + $0x488] sm:$0xff] }
 0xca4   :  { %9277 = vmatpush1.bf16.msra.mxu1 %v9244_v40  ;;  %v9663_v45 = vld [vmem:[#allocation3 + $0x480] sm:$0xff]  ;;  %v9666_v19 = vld [vmem:[#allocation3 + $0x498] sm:$0xff]  ;;  %v9665_v14 = vld [vmem:[#allocation3 + $0x490] sm:$0xff] }
 0xca5   :  { %9278 = vmatprep.subr.bf16.mxu1 %v9247_v32  ;;  %v9668_v10 = vld [vmem:[#allocation3 + $0x4a8] sm:$0xff]  ;;  %v9667_v6 = vld [vmem:[#allocation3 + $0x4a0] sm:$0xff]  ;;  %v9670_v12 = vld [vmem:[#allocation3 + $0x4b8] sm:$0xff] }
 0xca6   :  { %11675 = vmatmul.mubr.msk.bf16.vlgmr.msra.gmra.mrb[112].mxu0 %vm9101_vm4, %v11673_v46  ;;  %v9669_v51 = vld [vmem:[#allocation3 + $0x4b0] sm:$0xff]  ;;  %v9672_v16 = vld [vmem:[#allocation3 + $0x4c8] sm:$0xff]  ;;  %v9671_v17 = vld [vmem:[#allocation3 + $0x4c0] sm:$0xff] }
 0xca7   :  { %9480 = vmatpush1.bf16.msra.mxu0 %v15359_v49  ;;  %9511 = vmatprep.mubr.bf16.mxu0 %v13078_v61  ;;  %v9674_v53 = vld [vmem:[#allocation3 + $0x4d8] sm:$0xff]  ;;  %v9673_v54 = vld [vmem:[#allocation3 + $0x4d0] sm:$0xff]  ;;  %v9676_v46 = vld [vmem:[#allocation3 + $0x4e8] sm:$0xff] }
 0xca8   :  { %11680 = vmatprep.subr.msk.bf16.mxu0 %vm9105_vm3, %v15353_v13  ;;  %9279 = vmatpush1.bf16.msra.mxu1 %v9246_v47  ;;  %v9675_v40 = vld [vmem:[#allocation3 + $0x4e0] sm:$0xff]  ;;  %v9678_v47 = vld [vmem:[#allocation3 + $0x4f8] sm:$0xff] }
 0xca9   :  { %9280 = vmatprep.subr.bf16.mxu1 %v9249_v58 }
 0xcac   :  { %9281 = vmatpush1.bf16.msra.mxu1 %v9248_v59 }
 0xcad   :  { %9282 = vmatprep.subr.bf16.mxu1 %v9251_v15 }
 0xcae   :  { %11678 = vmatmul.mubr.msk.bf16.vlgmr.msra.gmra.mrb[116].mxu0 %vm9101_vm4, %v11676_v29  ;;  %v9677_v29 = vld [vmem:[#allocation3 + $0x4f0] sm:$0xff] }
 0xcaf   :  { %9604 = vmatpush1.bf16.msra.mxu0 %v15359_v49  ;;  %9635 = vmatprep.mubr.bf16.mxu0 %v13078_v61 }
 0xcb0   :  { %9283 = vmatpush1.bf16.msra.mxu1 %v9250_v18  ;;  %9679 = vmatprep.subr.bf16.mxu0 %v9648_v3  ;;  %v9163_v3 = vld [vmem:[#allocation3 + $0x40] sm:$0xff] }
 0xcb1   :  { %9284 = vmatprep.subr.bf16.mxu1 %v9253_v21 }
 0xcb4   :  { %9285 = vmatpush1.bf16.msra.mxu1 %v9252_v22  ;;  %v9155_v22 = vld [vmem:[#allocation3] sm:$0xff] }
 0xcb5   :  { %9286 = vmatprep.subr.bf16.mxu1 %v9255_v0 }
 0xcb6   :  { %11681 = vmatmul.mubr.msk.bf16.vlgmr.msra.gmra.mrb[120].mxu0 %vm9101_vm4, %v11679_v20 }
 0xcb7   :  { %9680 = vmatpush1.bf16.msra.mxu0 %v9647_v27 }
 0xcb8   :  { %9287 = vmatpush1.bf16.msra.mxu1 %v9254_v11  ;;  %9681 = vmatprep.subr.bf16.mxu0 %v9650_v30  ;;  %v9158_v11 = vld [vmem:[#allocation3 + $0x18] sm:$0xff] }
 0xcb9   :  { %9288 = vmatprep.subr.bf16.mxu1 %v9257_v1  ;;  %v9157_v1 = vld [vmem:[#allocation3 + $0x10] sm:$0xff]  ;;  %v9166_v30 = vld [vmem:[#allocation3 + $0x58] sm:$0xff] }
 0xcbb   :  { %9682 = vmatpush1.bf16.msra.mxu0 %v9649_v31  ;;  %v9165_v31 = vld [vmem:[#allocation3 + $0x50] sm:$0xff] }
 0xcbc   :  { %9289 = vmatpush1.bf16.msra.mxu1 %v9256_v60  ;;  %9683 = vmatprep.subr.bf16.mxu0 %v9652_v33  ;;  %v9160_v60 = vld [vmem:[#allocation3 + $0x28] sm:$0xff] }
 0xcbd   :  { %9290 = vmatprep.subr.bf16.mxu1 %v9259_v62  ;;  %v9168_v33 = vld [vmem:[#allocation3 + $0x68] sm:$0xff] }
 0xcbf   :  { %9684 = vmatpush1.bf16.msra.mxu0 %v9651_v4 }
 0xcc0   :  { %9291 = vmatpush1.bf16.msra.mxu1 %v9258_v24  ;;  %9685 = vmatprep.subr.bf16.mxu0 %v9654_v5 }
 0xcc1   :  { %9292 = vmatprep.subr.bf16.mxu1 %v9261_v25 }
 0xcc3   :  { %9686 = vmatpush1.bf16.msra.mxu0 %v9653_v52 }
 0xcc4   :  { %9293 = vmatpush1.bf16.msra.mxu1 %v9260_v43  ;;  %9687 = vmatprep.subr.bf16.mxu0 %v9656_v41  ;;  %v9159_v43 = vld [vmem:[#allocation3 + $0x20] sm:$0xff] }
 0xcc5   :  { %9294 = vmatprep.subr.bf16.mxu1 %v9263_v35 }
 0xcc7   :  { %9688 = vmatpush1.bf16.msra.mxu0 %v9655_v23 }
 0xcc8   :  { %9295 = vmatpush1.bf16.msra.mxu1 %v9262_v50  ;;  %9689 = vmatprep.subr.bf16.mxu0 %v9658_v42  ;;  %v9162_v50 = vld [vmem:[#allocation3 + $0x38] sm:$0xff]  ;;  %v9167_v42 = vld [vmem:[#allocation3 + $0x60] sm:$0xff] }
 0xcc9   :  { %9296 = vmatprep.subr.bf16.mxu1 %v9265_v36  ;;  %v9161_v36 = vld [vmem:[#allocation3 + $0x30] sm:$0xff] }
 0xccb   :  { %9690 = vmatpush1.bf16.msra.mxu0 %v9657_v7 }
 0xccc   :  { %9297 = vmatpush1.bf16.msra.mxu1 %v9264_v37  ;;  %9691 = vmatprep.subr.bf16.mxu0 %v9660_v57  ;;  %v9164_v37 = vld [vmem:[#allocation3 + $0x48] sm:$0xff]  ;;  %v9170_v57 = vld [vmem:[#allocation3 + $0x78] sm:$0xff] }
 0xccd   :  { %9298 = vmatprep.subr.bf16.mxu1 %v9267_v48 }
 0xccf   :  { %9692 = vmatpush1.bf16.msra.mxu0 %v9659_v8  ;;  %v9169_v8 = vld [vmem:[#allocation3 + $0x70] sm:$0xff] }
 0xcd0   :  { %9299 = vmatpush1.bf16.msra.mxu1 %v9266_v38  ;;  %9693 = vmatprep.subr.bf16.mxu0 %v9662_v44  ;;  %v9172_v44 = vld [vmem:[#allocation3 + $0x88] sm:$0xff] }
 0xcd1   :  { %9309 = vmatprep.subr.bf16.mxu1 %v9156_v39 }
 0xcd3   :  { %9694 = vmatpush1.bf16.msra.mxu0 %v9661_v9  ;;  %v11682_v9 = vld [vmem:[%s15610_s11 + $0x5] sm:$0x1] }
 0xcd4   :  { %9695 = vmatprep.subr.bf16.mxu0 %v9664_v26  ;;  %v9171_v26 = vld [vmem:[#allocation3 + $0x80] sm:$0xff] }
 0xcd7   :  { %9696 = vmatpush1.bf16.msra.mxu0 %v9663_v45  ;;  %v9174_v45 = vld [vmem:[#allocation3 + $0x98] sm:$0xff] }
 0xcd8   :  { %9697 = vmatprep.subr.bf16.mxu0 %v9666_v19  ;;  %v9173_v19 = vld [vmem:[#allocation3 + $0x90] sm:$0xff] }
 0xcdb   :  { %9698 = vmatpush1.bf16.msra.mxu0 %v9665_v14  ;;  %v9176_v14 = vld [vmem:[#allocation3 + $0xa8] sm:$0xff] }
 0xcdc   :  { %9699 = vmatprep.subr.bf16.mxu0 %v9668_v10  ;;  %v9175_v10 = vld [vmem:[#allocation3 + $0xa0] sm:$0xff] }
 0xcdf   :  { %9700 = vmatpush1.bf16.msra.mxu0 %v9667_v6  ;;  %v9178_v6 = vld [vmem:[#allocation3 + $0xb8] sm:$0xff] }
 0xce0   :  { %9701 = vmatprep.subr.bf16.mxu0 %v9670_v12  ;;  %v9177_v12 = vld [vmem:[#allocation3 + $0xb0] sm:$0xff] }
 0xce3   :  { %9702 = vmatpush1.bf16.msra.mxu0 %v9669_v51  ;;  %v9180_v51 = vld [vmem:[#allocation3 + $0xc8] sm:$0xff] }
 0xce4   :  { %9703 = vmatprep.subr.bf16.mxu0 %v9672_v16  ;;  %v9179_v16 = vld [vmem:[#allocation3 + $0xc0] sm:$0xff] }
 0xce7   :  { %9704 = vmatpush1.bf16.msra.mxu0 %v9671_v17  ;;  %v9182_v17 = vld [vmem:[#allocation3 + $0xd8] sm:$0xff] }
 0xce8   :  { %9705 = vmatprep.subr.bf16.mxu0 %v9674_v53  ;;  %v9181_v53 = vld [vmem:[#allocation3 + $0xd0] sm:$0xff] }
 0xceb   :  { %9706 = vmatpush1.bf16.msra.mxu0 %v9673_v54  ;;  %v9184_v54 = vld [vmem:[#allocation3 + $0xe8] sm:$0xff] }
 0xcec   :  { %9707 = vmatprep.subr.bf16.mxu0 %v9676_v46  ;;  %v9186_v46 = vld [vmem:[#allocation3 + $0xf8] sm:$0xff] }
 0xcef   :  { %9708 = vmatpush1.bf16.msra.mxu0 %v9675_v40  ;;  %v9400_v40 = vld [vmem:[#allocation3 + $0x208] sm:$0xff] }
 0xcf0   :  { %9709 = vmatprep.subr.bf16.mxu0 %v9678_v47 }
 0xcf3   :  { %9710 = vmatpush1.bf16.msra.mxu0 %v9677_v29  ;;  %v9399_v29 = vld [vmem:[#allocation3 + $0x200] sm:$0xff] }
 0xcf4   :  { %11683 = vmatprep.subr.msk.bf16.mxu0 %vm9105_vm3, %v15353_v13 }
 0xd69   :  { %v15398_v63 = vpop.f32.mrb[104].mxu0 }
 0xd6a   :  { %v9148_v55 = vpop.f32.mrb[105].mxu0  ;;  %v9153_v47 = vpack.c.bf16 %v15398_v63, %v15398_v63  ;;  %v9407_v63 = vld [vmem:[#allocation3 + $0x240] sm:$0xff] }
 0xd6b   :  { %v9150_v56 = vpop.f32.mrb[106].mxu0  ;;  %v9154_v0 = vpack.c.bf16 %v9148_v55, %v9148_v55  ;;  %v9183_v55 = vld [vmem:[#allocation3 + $0xe0] sm:$0xff] }
 0xd6c   :  { %v9151_v32 = vpop.f32.mrb[107].mxu0  ;;  %v9185_v56 = vld [vmem:[#allocation3 + $0xf0] sm:$0xff] }
 0xd71   :  { %v9226_v58 = vpop.f32.mrb[108].mxu0 }
 0xd72   :  { %v9228_v59 = vpop.f32.mrb[109].mxu0  ;;  %v9233_v20 = vpack.c.bf16 %v9226_v58, %v9226_v58  ;;  %v9402_v58 = vld [vmem:[#allocation3 + $0x218] sm:$0xff] }
 0xd73   :  { %v9230_v15 = vpop.f32.mrb[110].mxu0  ;;  %v9234_v18 = vpack.c.bf16 %v9228_v59, %v9228_v59  ;;  %v9401_v59 = vld [vmem:[#allocation3 + $0x210] sm:$0xff] }
 0xd74   :  { %v9231_v21 = vpop.f32.mrb[111].mxu0  ;;  %v9404_v15 = vld [vmem:[#allocation3 + $0x228] sm:$0xff] }
 0xd75   :  { %9300 = vmatprep.mubr.bf16.mxu1 %v9234_v18  ;;  %v9403_v18 = vld [vmem:[#allocation3 + $0x220] sm:$0xff]  ;;  %v9405_v21 = vld [vmem:[#allocation3 + $0x230] sm:$0xff] }
 0xd76   :  { %9301 = vmatmul.mubr.bf16.vlgmr.msra.gmra.mrb[48].mxu1 %v9233_v20  ;;  %v9406_v20 = vld [vmem:[#allocation3 + $0x238] sm:$0xff] }
 0xd77   :  { %9310 = vmatpush1.bf16.msra.mxu1 %v9155_v22  ;;  %9341 = vmatprep.mubr.bf16.mxu1 %v9154_v0  ;;  %v9408_v22 = vld [vmem:[#allocation3 + $0x248] sm:$0xff]  ;;  %v9410_v0 = vld [vmem:[#allocation3 + $0x258] sm:$0xff] }
 0xd78   :  { %9311 = vmatprep.subr.bf16.mxu1 %v9158_v11  ;;  %v9772_v11 = vld [vmem:[#allocation3 + $0x508] sm:$0xff] }
 0xd79   :  { %v15402_v62 = vpop.f32.mrb[112].mxu0 }
 0xd7a   :  { %v15404_v24 = vpop.f32.mrb[113].mxu0 }
 0xd7b   :  { %9312 = vmatpush1.bf16.msra.mxu1 %v9157_v1  ;;  %v9393_v25 = vpop.f32.mrb[114].mxu0  ;;  %v9397_v32 = vpack.c.bf16 %v15404_v24, %v15404_v24  ;;  %v9771_v1 = vld [vmem:[#allocation3 + $0x500] sm:$0xff]  ;;  %v9409_v24 = vld [vmem:[#allocation3 + $0x250] sm:$0xff] }
 0xd7c   :  { %9313 = vmatprep.subr.bf16.mxu1 %v9160_v60  ;;  %v9394_v35 = vpop.f32.mrb[115].mxu0  ;;  %v9774_v60 = vld [vmem:[#allocation3 + $0x518] sm:$0xff]  ;;  %v9412_v25 = vld [vmem:[#allocation3 + $0x268] sm:$0xff] }
 0xd7d   :  { %v9776_v35 = vld [vmem:[#allocation3 + $0x528] sm:$0xff] }
 0xd7f   :  { %9314 = vmatpush1.bf16.msra.mxu1 %v9159_v43  ;;  %v9773_v43 = vld [vmem:[#allocation3 + $0x510] sm:$0xff] }
 0xd80   :  { %9315 = vmatprep.subr.bf16.mxu1 %v9162_v50  ;;  %v9411_v50 = vld [vmem:[#allocation3 + $0x260] sm:$0xff] }
 0xd81   :  { %v15406_v48 = vpop.f32.mrb[116].mxu0 }
 0xd82   :  { %v15408_v38 = vpop.f32.mrb[117].mxu0 }
 0xd83   :  { %9316 = vmatpush1.bf16.msra.mxu1 %v9161_v36  ;;  %v9517_v39 = vpop.f32.mrb[118].mxu0  ;;  %v9414_v36 = vld [vmem:[#allocation3 + $0x278] sm:$0xff] }
 0xd84   :  { %9317 = vmatprep.subr.bf16.mxu1 %v9164_v37  ;;  %v9518_v27 = vpop.f32.mrb[119].mxu0  ;;  %v9775_v37 = vld [vmem:[#allocation3 + $0x520] sm:$0xff]  ;;  %v9778_v39 = vld [vmem:[#allocation3 + $0x538] sm:$0xff] }
 0xd85   :  { %v9416_v27 = vld [vmem:[#allocation3 + $0x288] sm:$0xff] }
 0xd87   :  { %9318 = vmatpush1.bf16.msra.mxu1 %v9163_v3  ;;  %v9413_v3 = vld [vmem:[#allocation3 + $0x270] sm:$0xff] }
 0xd88   :  { %9319 = vmatprep.subr.bf16.mxu1 %v9166_v30  ;;  %v9777_v30 = vld [vmem:[#allocation3 + $0x530] sm:$0xff] }
 0xd89   :  { %v9637_v4 = vpop.f32.mrb[120].mxu0 }
 0xd8a   :  { %v9644_v5 = vpack.c.bf16 %v9637_v4, %v9637_v4  ;;  %v9639_v52 = vpop.f32.mrb[121].mxu0  ;;  %v9418_v4 = vld [vmem:[#allocation3 + $0x298] sm:$0xff] }
 0xd8b   :  { %9320 = vmatpush1.bf16.msra.mxu1 %v9165_v31  ;;  %v9645_v41 = vpack.c.bf16 %v9639_v52, %v9639_v52  ;;  %v9641_v23 = vpop.f32.mrb[122].mxu0  ;;  %v9780_v31 = vld [vmem:[#allocation3 + $0x548] sm:$0xff]  ;;  %v9782_v52 = vld [vmem:[#allocation3 + $0x558] sm:$0xff] }
 0xd8c   :  { %9321 = vmatprep.subr.bf16.mxu1 %v9168_v33  ;;  %v9642_v7 = vpop.f32.mrb[123].mxu0  ;;  %v9415_v33 = vld [vmem:[#allocation3 + $0x280] sm:$0xff]  ;;  %v9420_v23 = vld [vmem:[#allocation3 + $0x2a8] sm:$0xff] }
 0xd8d   :  { %9711 = vmatprep.mubr.bf16.mxu0 %v9645_v41  ;;  %v9417_v41 = vld [vmem:[#allocation3 + $0x290] sm:$0xff]  ;;  %v9784_v7 = vld [vmem:[#allocation3 + $0x568] sm:$0xff] }
 0xd8e   :  { %9712 = vmatmul.mubr.bf16.vlgmr.msra.gmra.mrb[124].mxu0 %v9644_v5  ;;  %v9779_v5 = vld [vmem:[#allocation3 + $0x540] sm:$0xff] }
 0xd8f   :  { %9322 = vmatpush1.bf16.msra.mxu1 %v9167_v42  ;;  %9728 = vmatpush1.bf16.msra.mxu0 %v15359_v49  ;;  %v9781_v42 = vld [vmem:[#allocation3 + $0x550] sm:$0xff] }
 0xd90   :  { %9323 = vmatprep.subr.bf16.mxu1 %v9170_v57  ;;  %9759 = vmatprep.mubr.bf16.mxu0 %v13078_v61  ;;  %v9419_v57 = vld [vmem:[#allocation3 + $0x2a0] sm:$0xff] }
 0xd91   :  { %9803 = vmatprep.subr.bf16.mxu0 %v9772_v11  ;;  %v9797_v11 = vld [vmem:[#allocation3 + $0x5d0] sm:$0xff] }
 0xd93   :  { %9324 = vmatpush1.bf16.msra.mxu1 %v9169_v8  ;;  %v9422_v8 = vld [vmem:[#allocation3 + $0x2b8] sm:$0xff] }
 0xd94   :  { %9325 = vmatprep.subr.bf16.mxu1 %v9172_v44  ;;  %v9783_v44 = vld [vmem:[#allocation3 + $0x560] sm:$0xff] }
 0xd96   :  { %11684 = vmatmul.mubr.msk.bf16.vlgmr.msra.gmra.mrb[128].mxu0 %vm9101_vm4, %v11682_v9  ;;  %v9786_v9 = vld [vmem:[#allocation3 + $0x578] sm:$0xff] }
 0xd97   :  { %9326 = vmatpush1.bf16.msra.mxu1 %v9171_v26  ;;  %9804 = vmatpush1.bf16.msra.mxu0 %v9771_v1  ;;  %v9421_v26 = vld [vmem:[#allocation3 + $0x2b0] sm:$0xff]  ;;  %v9527_v1 = vld [vmem:[#allocation3 + $0x320] sm:$0xff] }
 0xd98   :  { %9327 = vmatprep.subr.bf16.mxu1 %v9174_v45  ;;  %9805 = vmatprep.subr.bf16.mxu0 %v9774_v60  ;;  %v9424_v45 = vld [vmem:[#allocation3 + $0x2c8] sm:$0xff]  ;;  %v9530_v60 = vld [vmem:[#allocation3 + $0x338] sm:$0xff] }
 0xd9b   :  { %9328 = vmatpush1.bf16.msra.mxu1 %v9173_v19  ;;  %9806 = vmatpush1.bf16.msra.mxu0 %v9773_v43  ;;  %v9785_v19 = vld [vmem:[#allocation3 + $0x570] sm:$0xff]  ;;  %v9532_v43 = vld [vmem:[#allocation3 + $0x348] sm:$0xff] }
 0xd9c   :  { %9329 = vmatprep.subr.bf16.mxu1 %v9176_v14  ;;  %9807 = vmatprep.subr.bf16.mxu0 %v9776_v35  ;;  %v9788_v14 = vld [vmem:[#allocation3 + $0x588] sm:$0xff]  ;;  %v9801_v35 = vld [vmem:[#allocation3 + $0x5f0] sm:$0xff] }
 0xd9f   :  { %9330 = vmatpush1.bf16.msra.mxu1 %v9175_v10  ;;  %9808 = vmatpush1.bf16.msra.mxu0 %v9775_v37  ;;  %v9423_v10 = vld [vmem:[#allocation3 + $0x2c0] sm:$0xff]  ;;  %v9534_v37 = vld [vmem:[#allocation3 + $0x358] sm:$0xff] }
 0xda0   :  { %9331 = vmatprep.subr.bf16.mxu1 %v9178_v6  ;;  %9809 = vmatprep.subr.bf16.mxu0 %v9778_v39  ;;  %v9426_v6 = vld [vmem:[#allocation3 + $0x2d8] sm:$0xff]  ;;  %v9533_v39 = vld [vmem:[#allocation3 + $0x350] sm:$0xff] }
 0xda3   :  { %9332 = vmatpush1.bf16.msra.mxu1 %v9177_v12  ;;  %9810 = vmatpush1.bf16.msra.mxu0 %v9777_v30  ;;  %v9787_v12 = vld [vmem:[#allocation3 + $0x580] sm:$0xff]  ;;  %v9538_v30 = vld [vmem:[#allocation3 + $0x378] sm:$0xff] }
 0xda4   :  { %9333 = vmatprep.subr.bf16.mxu1 %v9180_v51  ;;  %9811 = vmatprep.subr.bf16.mxu0 %v9780_v31  ;;  %v9790_v51 = vld [vmem:[#allocation3 + $0x598] sm:$0xff]  ;;  %v9537_v31 = vld [vmem:[#allocation3 + $0x370] sm:$0xff] }
 0xda7   :  { %9334 = vmatpush1.bf16.msra.mxu1 %v9179_v16  ;;  %9812 = vmatpush1.bf16.msra.mxu0 %v9779_v5  ;;  %v9425_v16 = vld [vmem:[#allocation3 + $0x2d0] sm:$0xff]  ;;  %v9542_v5 = vld [vmem:[#allocation3 + $0x398] sm:$0xff] }
 0xda8   :  { %9335 = vmatprep.subr.bf16.mxu1 %v9182_v17  ;;  %9813 = vmatprep.subr.bf16.mxu0 %v9782_v52  ;;  %v9428_v17 = vld [vmem:[#allocation3 + $0x2e8] sm:$0xff]  ;;  %v9541_v52 = vld [vmem:[#allocation3 + $0x390] sm:$0xff] }
 0xdab   :  { %9336 = vmatpush1.bf16.msra.mxu1 %v9181_v53  ;;  %9814 = vmatpush1.bf16.msra.mxu0 %v9781_v42  ;;  %v9789_v53 = vld [vmem:[#allocation3 + $0x590] sm:$0xff]  ;;  %v9546_v42 = vld [vmem:[#allocation3 + $0x3b8] sm:$0xff] }
 0xdac   :  { %9337 = vmatprep.subr.bf16.mxu1 %v9184_v54  ;;  %9815 = vmatprep.subr.bf16.mxu0 %v9784_v7  ;;  %v9792_v54 = vld [vmem:[#allocation3 + $0x5a8] sm:$0xff]  ;;  %v9545_v7 = vld [vmem:[#allocation3 + $0x3b0] sm:$0xff] }
 0xdaf   :  { %9338 = vmatpush1.bf16.msra.mxu1 %v9183_v55  ;;  %9816 = vmatpush1.bf16.msra.mxu0 %v9783_v44  ;;  %v9427_v55 = vld [vmem:[#allocation3 + $0x2e0] sm:$0xff]  ;;  %v9550_v44 = vld [vmem:[#allocation3 + $0x3d8] sm:$0xff] }
 0xdb0   :  { %9339 = vmatprep.subr.bf16.mxu1 %v9186_v46  ;;  %9817 = vmatprep.subr.bf16.mxu0 %v9786_v9  ;;  %v9430_v46 = vld [vmem:[#allocation3 + $0x2f8] sm:$0xff]  ;;  %v9549_v9 = vld [vmem:[#allocation3 + $0x3d0] sm:$0xff] }
 0xdb3   :  { %9340 = vmatpush1.bf16.msra.mxu1 %v9185_v56  ;;  %9818 = vmatpush1.bf16.msra.mxu0 %v9785_v19  ;;  %v9791_v56 = vld [vmem:[#allocation3 + $0x5a0] sm:$0xff]  ;;  %v9554_v19 = vld [vmem:[#allocation3 + $0x3f8] sm:$0xff] }
 0xdb4   :  { %9431 = vmatprep.subr.bf16.mxu1 %v9400_v40  ;;  %9819 = vmatprep.subr.bf16.mxu0 %v9788_v14  ;;  %v9794_v40 = vld [vmem:[#allocation3 + $0x5b8] sm:$0xff]  ;;  %v9553_v14 = vld [vmem:[#allocation3 + $0x3f0] sm:$0xff] }
 0xdb6   :  { %9342 = vmatmul.mubr.bf16.vlgmr.msra.gmra.mrb[48].mxu1 %v9153_v47  ;;  %v9524_v47 = vld [vmem:[#allocation3 + $0x308] sm:$0xff] }
 0xdb7   :  { %9432 = vmatpush1.bf16.msra.mxu1 %v9399_v29  ;;  %9463 = vmatprep.mubr.bf16.mxu1 %v9397_v32  ;;  %v9429_v32 = vld [vmem:[#allocation3 + $0x2f0] sm:$0xff] }
 0xdb8   :  { %9433 = vmatprep.subr.bf16.mxu1 %v9402_v58  ;;  %9820 = vmatpush1.bf16.msra.mxu0 %v9787_v12  ;;  %v9793_v29 = vld [vmem:[#allocation3 + $0x5b0] sm:$0xff]  ;;  %v9796_v58 = vld [vmem:[#allocation3 + $0x5c8] sm:$0xff] }
 0xdb9   :  { %9821 = vmatprep.subr.bf16.mxu0 %v9790_v51  ;;  %v11691_v12 = vld [vmem:[%s15610_s11 + $0x8] sm:$0x1]  ;;  %v11694_v51 = vld [vmem:[%s15610_s11 + $0x9] sm:$0x1] }
 0xdbb   :  { %9434 = vmatpush1.bf16.msra.mxu1 %v9401_v59  ;;  %v9396_v59 = vpack.c.bf16 %v15402_v62, %v15402_v62  ;;  %v9800_v62 = vld [vmem:[#allocation3 + $0x5e8] sm:$0xff] }
 0xdbc   :  { %9435 = vmatprep.subr.bf16.mxu1 %v9404_v15  ;;  %9822 = vmatpush1.bf16.msra.mxu0 %v9789_v53  ;;  %v9523_v15 = vld [vmem:[#allocation3 + $0x300] sm:$0xff] }
 0xdbd   :  { %9823 = vmatprep.subr.bf16.mxu0 %v9792_v54 }
 0xdbf   :  { %9436 = vmatpush1.bf16.msra.mxu1 %v9403_v18  ;;  %v9521_v18 = vpack.c.bf16 %v15408_v38, %v15408_v38  ;;  %v9799_v38 = vld [vmem:[#allocation3 + $0x5e0] sm:$0xff] }
 0xdc0   :  { %9437 = vmatprep.subr.bf16.mxu1 %v9406_v20  ;;  %9824 = vmatpush1.bf16.msra.mxu0 %v9791_v56  ;;  %v9526_v20 = vld [vmem:[#allocation3 + $0x318] sm:$0xff]  ;;  %v9895_v56 = vld [vmem:[#allocation3 + $0x600] sm:$0xff] }
 0xdc1   :  { %9825 = vmatprep.subr.bf16.mxu0 %v9794_v40  ;;  %v9898_v40 = vld [vmem:[#allocation3 + $0x618] sm:$0xff] }
 0xdc3   :  { %9438 = vmatpush1.bf16.msra.mxu1 %v9405_v21  ;;  %v9795_v21 = vld [vmem:[#allocation3 + $0x5c0] sm:$0xff] }
 0xdc4   :  { %9439 = vmatprep.subr.bf16.mxu1 %v9408_v22  ;;  %9826 = vmatpush1.bf16.msra.mxu0 %v9793_v29  ;;  %v9798_v22 = vld [vmem:[#allocation3 + $0x5d8] sm:$0xff]  ;;  %v9899_v29 = vld [vmem:[#allocation3 + $0x620] sm:$0xff] }
 0xdc5   :  { %9827 = vmatprep.subr.bf16.mxu0 %v9796_v58  ;;  %v9902_v58 = vld [vmem:[#allocation3 + $0x638] sm:$0xff] }
 0xdc7   :  { %9440 = vmatpush1.bf16.msra.mxu1 %v9407_v63  ;;  %v9525_v63 = vld [vmem:[#allocation3 + $0x310] sm:$0xff] }
 0xdc8   :  { %9441 = vmatprep.subr.bf16.mxu1 %v9410_v0  ;;  %9828 = vmatpush1.bf16.msra.mxu0 %v9795_v21  ;;  %v9528_v0 = vld [vmem:[#allocation3 + $0x328] sm:$0xff]  ;;  %v9905_v21 = vld [vmem:[#allocation3 + $0x650] sm:$0xff] }
 0xdc9   :  { %9829 = vmatprep.subr.bf16.mxu0 %v9798_v22  ;;  %v9908_v22 = vld [vmem:[#allocation3 + $0x668] sm:$0xff] }
 0xdcb   :  { %9442 = vmatpush1.bf16.msra.mxu1 %v9409_v24  ;;  %v9802_v24 = vld [vmem:[#allocation3 + $0x5f8] sm:$0xff] }
 0xdcc   :  { %9443 = vmatprep.subr.bf16.mxu1 %v9412_v25  ;;  %9830 = vmatpush1.bf16.msra.mxu0 %v9797_v11  ;;  %v9529_v25 = vld [vmem:[#allocation3 + $0x330] sm:$0xff] }
 0xdcd   :  { %9831 = vmatprep.subr.bf16.mxu0 %v9800_v62  ;;  %v9909_v11 = vld [vmem:[#allocation3 + $0x670] sm:$0xff]  ;;  %v9912_v62 = vld [vmem:[#allocation3 + $0x688] sm:$0xff] }
 0xdcf   :  { %9444 = vmatpush1.bf16.msra.mxu1 %v9411_v50  ;;  %v9896_v50 = vld [vmem:[#allocation3 + $0x608] sm:$0xff] }
 0xdd0   :  { %9445 = vmatprep.subr.bf16.mxu1 %v9414_v36  ;;  %9832 = vmatpush1.bf16.msra.mxu0 %v9799_v38  ;;  %v9531_v36 = vld [vmem:[#allocation3 + $0x340] sm:$0xff]  ;;  %v9913_v38 = vld [vmem:[#allocation3 + $0x690] sm:$0xff] }
 0xdd1   :  { %9833 = vmatprep.subr.bf16.mxu0 %v9802_v24  ;;  %v9916_v24 = vld [vmem:[#allocation3 + $0x6a8] sm:$0xff] }
 0xdd3   :  { %9446 = vmatpush1.bf16.msra.mxu1 %v9413_v3  ;;  %v9536_v3 = vld [vmem:[#allocation3 + $0x368] sm:$0xff] }
 0xdd4   :  { %9447 = vmatprep.subr.bf16.mxu1 %v9416_v27  ;;  %9834 = vmatpush1.bf16.msra.mxu0 %v9801_v35  ;;  %v9535_v27 = vld [vmem:[#allocation3 + $0x360] sm:$0xff]  ;;  %v9917_v35 = vld [vmem:[#allocation3 + $0x6b0] sm:$0xff] }
 0xdd5   :  { %9927 = vmatprep.subr.bf16.mxu0 %v9896_v50  ;;  %v9920_v50 = vld [vmem:[#allocation3 + $0x6c8] sm:$0xff] }
 0xdd7   :  { %9448 = vmatpush1.bf16.msra.mxu1 %v9415_v33  ;;  %v9540_v33 = vld [vmem:[#allocation3 + $0x388] sm:$0xff] }
 0xdd8   :  { %9449 = vmatprep.subr.bf16.mxu1 %v9418_v4  ;;  %v9539_v4 = vld [vmem:[#allocation3 + $0x380] sm:$0xff] }
 0xddb   :  { %9450 = vmatpush1.bf16.msra.mxu1 %v9417_v41  ;;  %v9544_v41 = vld [vmem:[#allocation3 + $0x3a8] sm:$0xff] }
 0xddc   :  { %9451 = vmatprep.subr.bf16.mxu1 %v9420_v23  ;;  %v9543_v23 = vld [vmem:[#allocation3 + $0x3a0] sm:$0xff] }
 0xddf   :  { %9452 = vmatpush1.bf16.msra.mxu1 %v9419_v57  ;;  %v9548_v57 = vld [vmem:[#allocation3 + $0x3c8] sm:$0xff] }
 0xde0   :  { %9453 = vmatprep.subr.bf16.mxu1 %v9422_v8  ;;  %v9547_v8 = vld [vmem:[#allocation3 + $0x3c0] sm:$0xff] }
 0xde3   :  { %9454 = vmatpush1.bf16.msra.mxu1 %v9421_v26  ;;  %v9552_v26 = vld [vmem:[#allocation3 + $0x3e8] sm:$0xff] }
 0xde4   :  { %9455 = vmatprep.subr.bf16.mxu1 %v9424_v45  ;;  %v9551_v45 = vld [vmem:[#allocation3 + $0x3e0] sm:$0xff] }
 0xde7   :  { %9456 = vmatpush1.bf16.msra.mxu1 %v9423_v10  ;;  %v9520_v10 = vpack.c.bf16 %v15406_v48, %v15406_v48  ;;  %v11688_v48 = vld [vmem:[%s15610_s11 + $0x7] sm:$0x1] }
 0xde8   :  { %9457 = vmatprep.subr.bf16.mxu1 %v9426_v6  ;;  %v11685_v6 = vld [vmem:[%s15610_s11 + $0x6] sm:$0x1] }
 0xdeb   :  { %9458 = vmatpush1.bf16.msra.mxu1 %v9425_v16 }
 0xdec   :  { %9459 = vmatprep.subr.bf16.mxu1 %v9428_v17 }
 0xdef   :  { %9460 = vmatpush1.bf16.msra.mxu1 %v9427_v55 }
 0xdf0   :  { %9461 = vmatprep.subr.bf16.mxu1 %v9430_v46 }
 0xdf3   :  { %9462 = vmatpush1.bf16.msra.mxu1 %v9429_v32  ;;  %v9897_v32 = vld [vmem:[#allocation3 + $0x610] sm:$0xff] }
 0xdf4   :  { %9555 = vmatprep.subr.bf16.mxu1 %v9524_v47  ;;  %v9900_v47 = vld [vmem:[#allocation3 + $0x628] sm:$0xff] }
 0xdf6   :  { %9464 = vmatmul.mubr.bf16.vlgmr.msra.gmra.mrb[48].mxu1 %v9396_v59  ;;  %v9901_v59 = vld [vmem:[#allocation3 + $0x630] sm:$0xff] }
 0xdf7   :  { %9556 = vmatpush1.bf16.msra.mxu1 %v9523_v15  ;;  %9587 = vmatprep.mubr.bf16.mxu1 %v9521_v18  ;;  %v9904_v15 = vld [vmem:[#allocation3 + $0x648] sm:$0xff]  ;;  %v9903_v18 = vld [vmem:[#allocation3 + $0x640] sm:$0xff] }
 0xdf8   :  { %9557 = vmatprep.subr.bf16.mxu1 %v9526_v20  ;;  %v9906_v20 = vld [vmem:[#allocation3 + $0x658] sm:$0xff] }
 0xdfb   :  { %9558 = vmatpush1.bf16.msra.mxu1 %v9525_v63  ;;  %v9907_v63 = vld [vmem:[#allocation3 + $0x660] sm:$0xff] }
 0xdfc   :  { %9559 = vmatprep.subr.bf16.mxu1 %v9528_v0  ;;  %v9910_v0 = vld [vmem:[#allocation3 + $0x678] sm:$0xff] }
 0xdff   :  { %9560 = vmatpush1.bf16.msra.mxu1 %v9527_v1  ;;  %v9911_v1 = vld [vmem:[#allocation3 + $0x680] sm:$0xff] }
 0xe00   :  { %9561 = vmatprep.subr.bf16.mxu1 %v9530_v60  ;;  %v9914_v60 = vld [vmem:[#allocation3 + $0x698] sm:$0xff] }
 0xe03   :  { %9562 = vmatpush1.bf16.msra.mxu1 %v9529_v25  ;;  %v9915_v25 = vld [vmem:[#allocation3 + $0x6a0] sm:$0xff] }
 0xe04   :  { %9563 = vmatprep.subr.bf16.mxu1 %v9532_v43  ;;  %v9918_v43 = vld [vmem:[#allocation3 + $0x6b8] sm:$0xff] }
 0xe07   :  { %9564 = vmatpush1.bf16.msra.mxu1 %v9531_v36  ;;  %v9919_v36 = vld [vmem:[#allocation3 + $0x6c0] sm:$0xff] }
 0xe08   :  { %9565 = vmatprep.subr.bf16.mxu1 %v9534_v37  ;;  %v9922_v37 = vld [vmem:[#allocation3 + $0x6d8] sm:$0xff] }
 0xe0b   :  { %9566 = vmatpush1.bf16.msra.mxu1 %v9533_v39  ;;  %v9921_v39 = vld [vmem:[#allocation3 + $0x6d0] sm:$0xff] }
 0xe0c   :  { %9567 = vmatprep.subr.bf16.mxu1 %v9536_v3  ;;  %v9924_v3 = vld [vmem:[#allocation3 + $0x6e8] sm:$0xff] }
 0xe0f   :  { %9568 = vmatpush1.bf16.msra.mxu1 %v9535_v27  ;;  %v9923_v27 = vld [vmem:[#allocation3 + $0x6e0] sm:$0xff] }
 0xe10   :  { %9569 = vmatprep.subr.bf16.mxu1 %v9538_v30  ;;  %v9926_v30 = vld [vmem:[#allocation3 + $0x6f8] sm:$0xff] }
 0xe13   :  { %9570 = vmatpush1.bf16.msra.mxu1 %v9537_v31  ;;  %v9925_v31 = vld [vmem:[#allocation3 + $0x6f0] sm:$0xff] }
 0xe14   :  { %9571 = vmatprep.subr.bf16.mxu1 %v9540_v33  ;;  %v10020_v33 = vld [vmem:[#allocation3 + $0x708] sm:$0xff] }
 0xe17   :  { %9572 = vmatpush1.bf16.msra.mxu1 %v9539_v4  ;;  %v11697_v4 = vld [vmem:[%s15610_s11 + $0xa] sm:$0x1] }
 0xe18   :  { %9573 = vmatprep.subr.bf16.mxu1 %v9542_v5  ;;  %v11700_v5 = vld [vmem:[%s15610_s11 + $0xb] sm:$0x1] }
 0xe1b   :  { %9574 = vmatpush1.bf16.msra.mxu1 %v9541_v52 }
 0xe1c   :  { %9575 = vmatprep.subr.bf16.mxu1 %v9544_v41 }
 0xe1f   :  { %9576 = vmatpush1.bf16.msra.mxu1 %v9543_v23 }
 0xe20   :  { %9577 = vmatprep.subr.bf16.mxu1 %v9546_v42 }
 0xe23   :  { %9578 = vmatpush1.bf16.msra.mxu1 %v9545_v7 }
 0xe24   :  { %9579 = vmatprep.subr.bf16.mxu1 %v9548_v57 }
 0xe27   :  { %9580 = vmatpush1.bf16.msra.mxu1 %v9547_v8 }
 0xe28   :  { %9581 = vmatprep.subr.bf16.mxu1 %v9550_v44 }
 0xe2b   :  { %9582 = vmatpush1.bf16.msra.mxu1 %v9549_v9 }
 0xe2c   :  { %9583 = vmatprep.subr.bf16.mxu1 %v9552_v26 }
 0xe2f   :  { %9584 = vmatpush1.bf16.msra.mxu1 %v9551_v45  ;;  %v10019_v45 = vld [vmem:[#allocation3 + $0x700] sm:$0xff] }
 0xe30   :  { %9585 = vmatprep.subr.bf16.mxu1 %v9554_v19  ;;  %v10022_v19 = vld [vmem:[#allocation3 + $0x718] sm:$0xff] }
 0xe33   :  { %9586 = vmatpush1.bf16.msra.mxu1 %v9553_v14  ;;  %v10021_v14 = vld [vmem:[#allocation3 + $0x710] sm:$0xff] }
 0xe34   :  { %11686 = vmatprep.subr.msk.bf16.mxu1 %vm9105_vm3, %v15353_v13 }
 0xe36   :  { %9588 = vmatmul.mubr.bf16.vlgmr.msra.gmra.mrb[48].mxu1 %v9520_v10  ;;  %v10024_v10 = vld [vmem:[#allocation3 + $0x728] sm:$0xff] }
 0xe37   :  { %9852 = vmatpush1.bf16.msra.mxu1 %v15359_v49  ;;  %9883 = vmatprep.mubr.bf16.mxu1 %v13078_v61 }
 0xe38   :  { %11689 = vmatprep.subr.msk.bf16.mxu1 %vm9105_vm3, %v15353_v13 }
 0xe3e   :  { %11687 = vmatmul.mubr.msk.bf16.vlgmr.msra.gmra.mrb[52].mxu1 %vm9101_vm4, %v11685_v6 }
 0xe3f   :  { %9976 = vmatpush1.bf16.msra.mxu1 %v15359_v49  ;;  %10007 = vmatprep.mubr.bf16.mxu1 %v13078_v61 }
 0xe40   :  { %11692 = vmatprep.subr.msk.bf16.mxu1 %vm9105_vm3, %v15353_v13 }
 0xe46   :  { %11690 = vmatmul.mubr.msk.bf16.vlgmr.msra.gmra.mrb[56].mxu1 %vm9101_vm4, %v11688_v48 }
 0xe47   :  { %10100 = vmatpush1.bf16.msra.mxu1 %v15359_v49  ;;  %10131 = vmatprep.mubr.bf16.mxu1 %v13078_v61 }
 0xe48   :  { %11695 = vmatprep.subr.msk.bf16.mxu1 %vm9105_vm3, %v15353_v13 }
 0xe4e   :  { %11693 = vmatmul.mubr.msk.bf16.vlgmr.msra.gmra.mrb[60].mxu1 %vm9101_vm4, %v11691_v12 }
 0xe4f   :  { %10224 = vmatpush1.bf16.msra.mxu1 %v15359_v49  ;;  %10255 = vmatprep.mubr.bf16.mxu1 %v13078_v61 }
 0xe50   :  { %11698 = vmatprep.subr.msk.bf16.mxu1 %vm9105_vm3, %v15353_v13 }
 0xe56   :  { %11696 = vmatmul.mubr.msk.bf16.vlgmr.msra.gmra.mrb[64].mxu1 %vm9101_vm4, %v11694_v51 }
 0xe57   :  { %10348 = vmatpush1.bf16.msra.mxu1 %v15359_v49  ;;  %10379 = vmatprep.mubr.bf16.mxu1 %v13078_v61 }
 0xe58   :  { %11701 = vmatprep.subr.msk.bf16.mxu1 %vm9105_vm3, %v15353_v13 }
 0xe5e   :  { %11699 = vmatmul.mubr.msk.bf16.vlgmr.msra.gmra.mrb[68].mxu1 %vm9101_vm4, %v11697_v4 }
 0xe5f   :  { %10472 = vmatpush1.bf16.msra.mxu1 %v15359_v49  ;;  %10503 = vmatprep.mubr.bf16.mxu1 %v13078_v61 }
 0xe60   :  { %11704 = vmatprep.subr.msk.bf16.mxu1 %vm9105_vm3, %v15353_v13 }
 0xe66   :  { %11702 = vmatmul.mubr.msk.bf16.vlgmr.msra.gmra.mrb[72].mxu1 %vm9101_vm4, %v11700_v5 }
 0xe67   :  { %10596 = vmatpush1.bf16.msra.mxu1 %v15359_v49  ;;  %10627 = vmatprep.mubr.bf16.mxu1 %v13078_v61 }
 0xe68   :  { %11707 = vmatprep.subr.msk.bf16.mxu1 %vm9105_vm3, %v15353_v13 }
 0xe69   :  { %v9761_v16 = vpop.f32.mrb[128].mxu0 }
 0xe6a   :  { %v9768_v17 = vpack.c.bf16 %v9761_v16, %v9761_v16  ;;  %v9763_v53 = vpop.f32.mrb[129].mxu0  ;;  %v10023_v16 = vld [vmem:[#allocation3 + $0x720] sm:$0xff] }
 0xe6b   :  { %v9769_v54 = vpack.c.bf16 %v9763_v53, %v9763_v53  ;;  %v9765_v55 = vpop.f32.mrb[130].mxu0  ;;  %v10026_v53 = vld [vmem:[#allocation3 + $0x738] sm:$0xff] }
 0xe6c   :  { %v9766_v46 = vpop.f32.mrb[131].mxu0  ;;  %v10028_v55 = vld [vmem:[#allocation3 + $0x748] sm:$0xff] }
 0xe6d   :  { %9835 = vmatprep.mubr.bf16.mxu0 %v9769_v54  ;;  %v10025_v54 = vld [vmem:[#allocation3 + $0x730] sm:$0xff] }
 0xe6e   :  { %9836 = vmatmul.mubr.bf16.vlgmr.msra.gmra.mrb[124].mxu0 %v9768_v17 }
 0xe6f   :  { %9928 = vmatpush1.bf16.msra.mxu0 %v9895_v56 }
 0xe70   :  { %9929 = vmatprep.subr.bf16.mxu0 %v9898_v40 }
 0xe73   :  { %9930 = vmatpush1.bf16.msra.mxu0 %v9897_v32  ;;  %v10027_v32 = vld [vmem:[#allocation3 + $0x740] sm:$0xff] }
 0xe74   :  { %9931 = vmatprep.subr.bf16.mxu0 %v9900_v47 }
 0xe77   :  { %9932 = vmatpush1.bf16.msra.mxu0 %v9899_v29  ;;  %v10030_v29 = vld [vmem:[#allocation3 + $0x758] sm:$0xff] }
 0xe78   :  { %9933 = vmatprep.subr.bf16.mxu0 %v9902_v58  ;;  %v10029_v58 = vld [vmem:[#allocation3 + $0x750] sm:$0xff] }
 0xe7b   :  { %9934 = vmatpush1.bf16.msra.mxu0 %v9901_v59  ;;  %v10032_v59 = vld [vmem:[#allocation3 + $0x768] sm:$0xff] }
 0xe7c   :  { %9935 = vmatprep.subr.bf16.mxu0 %v9904_v15  ;;  %v10031_v15 = vld [vmem:[#allocation3 + $0x760] sm:$0xff] }
 0xe7f   :  { %9936 = vmatpush1.bf16.msra.mxu0 %v9903_v18  ;;  %v10034_v18 = vld [vmem:[#allocation3 + $0x778] sm:$0xff] }
 0xe80   :  { %9937 = vmatprep.subr.bf16.mxu0 %v9906_v20  ;;  %v10033_v20 = vld [vmem:[#allocation3 + $0x770] sm:$0xff] }
 0xe83   :  { %9938 = vmatpush1.bf16.msra.mxu0 %v9905_v21  ;;  %v10036_v21 = vld [vmem:[#allocation3 + $0x788] sm:$0xff] }
 0xe84   :  { %9939 = vmatprep.subr.bf16.mxu0 %v9908_v22  ;;  %v10035_v22 = vld [vmem:[#allocation3 + $0x780] sm:$0xff] }
 0xe87   :  { %9940 = vmatpush1.bf16.msra.mxu0 %v9907_v63  ;;  %v10038_v63 = vld [vmem:[#allocation3 + $0x798] sm:$0xff] }
 0xe88   :  { %9941 = vmatprep.subr.bf16.mxu0 %v9910_v0  ;;  %v10037_v0 = vld [vmem:[#allocation3 + $0x790] sm:$0xff] }
 0xe8b   :  { %9942 = vmatpush1.bf16.msra.mxu0 %v9909_v11  ;;  %v10040_v11 = vld [vmem:[#allocation3 + $0x7a8] sm:$0xff] }
 0xe8c   :  { %9943 = vmatprep.subr.bf16.mxu0 %v9912_v62  ;;  %v11703_v62 = vld [vmem:[%s15610_s11 + $0xc] sm:$0x1] }
 0xe8d   :  { %11705 = vmatmul.mubr.msk.bf16.vlgmr.msra.gmra.mrb[76].mxu1 %vm9101_vm4, %v11703_v62 }
 0xe8e   :  { %10720 = vmatpush1.bf16.msra.mxu1 %v15359_v49  ;;  %10751 = vmatprep.mubr.bf16.mxu1 %v13078_v61 }
 0xe8f   :  { %9944 = vmatpush1.bf16.msra.mxu0 %v9911_v1  ;;  %v10039_v1 = vld [vmem:[#allocation3 + $0x7a0] sm:$0xff]  ;;  %11710 = vmatprep.subr.msk.bf16.mxu1 %vm9105_vm3, %v15353_v13 }
 0xe90   :  { %9945 = vmatprep.subr.bf16.mxu0 %v9914_v60  ;;  %v10042_v60 = vld [vmem:[#allocation3 + $0x7b8] sm:$0xff] }
 0xe93   :  { %9946 = vmatpush1.bf16.msra.mxu0 %v9913_v38  ;;  %v10041_v38 = vld [vmem:[#allocation3 + $0x7b0] sm:$0xff] }
 0xe94   :  { %9947 = vmatprep.subr.bf16.mxu0 %v9916_v24  ;;  %v10044_v24 = vld [vmem:[#allocation3 + $0x7c8] sm:$0xff] }
 0xe97   :  { %9948 = vmatpush1.bf16.msra.mxu0 %v9915_v25  ;;  %v10043_v25 = vld [vmem:[#allocation3 + $0x7c0] sm:$0xff] }
 0xe98   :  { %9949 = vmatprep.subr.bf16.mxu0 %v9918_v43  ;;  %v10046_v43 = vld [vmem:[#allocation3 + $0x7d8] sm:$0xff] }
 0xe9b   :  { %9950 = vmatpush1.bf16.msra.mxu0 %v9917_v35  ;;  %v10045_v35 = vld [vmem:[#allocation3 + $0x7d0] sm:$0xff] }
 0xe9c   :  { %9951 = vmatprep.subr.bf16.mxu0 %v9920_v50  ;;  %v10048_v50 = vld [vmem:[#allocation3 + $0x7e8] sm:$0xff] }
 0xe9f   :  { %9952 = vmatpush1.bf16.msra.mxu0 %v9919_v36  ;;  %v10047_v36 = vld [vmem:[#allocation3 + $0x7e0] sm:$0xff] }
 0xea0   :  { %9953 = vmatprep.subr.bf16.mxu0 %v9922_v37  ;;  %v10050_v37 = vld [vmem:[#allocation3 + $0x7f8] sm:$0xff] }
 0xea3   :  { %9954 = vmatpush1.bf16.msra.mxu0 %v9921_v39 }
 0xea4   :  { %9955 = vmatprep.subr.bf16.mxu0 %v9924_v3  ;;  %v10049_v3 = vld [vmem:[#allocation3 + $0x7f0] sm:$0xff] }
 0xea7   :  { %9956 = vmatpush1.bf16.msra.mxu0 %v9923_v27 }
 0xea8   :  { %9957 = vmatprep.subr.bf16.mxu0 %v9926_v30  ;;  %v10144_v30 = vld [vmem:[#allocation3 + $0x808] sm:$0xff] }
 0xeab   :  { %9958 = vmatpush1.bf16.msra.mxu0 %v9925_v31 }
 0xeac   :  { %10051 = vmatprep.subr.bf16.mxu0 %v10020_v33 }
 0xf09   :  { %v15480_v52 = vpop.f32.mrb[48].mxu1 }
 0xf0a   :  { %v15482_v41 = vpop.f32.mrb[49].mxu1 }
 0xf0b   :  { %v9593_v23 = vpop.f32.mrb[50].mxu1 }
 0xf0c   :  { %v9594_v42 = vpop.f32.mrb[51].mxu1  ;;  %v10143_v23 = vld [vmem:[#allocation3 + $0x800] sm:$0xff] }
 0xf0d   :  { %v10146_v42 = vld [vmem:[#allocation3 + $0x818] sm:$0xff] }
 0xf11   :  { %v9885_v7 = vpop.f32.mrb[52].mxu1 }
 0xf12   :  { %v9887_v57 = vpop.f32.mrb[53].mxu1  ;;  %v9892_v9 = vpack.c.bf16 %v9885_v7, %v9885_v7  ;;  %v10145_v7 = vld [vmem:[#allocation3 + $0x810] sm:$0xff] }
 0xf13   :  { %v9893_v8 = vpack.c.bf16 %v9887_v57, %v9887_v57  ;;  %v9889_v44 = vpop.f32.mrb[54].mxu1  ;;  %v10148_v57 = vld [vmem:[#allocation3 + $0x828] sm:$0xff] }
 0xf14   :  { %v9890_v26 = vpop.f32.mrb[55].mxu1  ;;  %v10150_v44 = vld [vmem:[#allocation3 + $0x838] sm:$0xff] }
 0xf15   :  { %9959 = vmatprep.mubr.bf16.mxu0 %v9893_v8  ;;  %v10147_v8 = vld [vmem:[#allocation3 + $0x820] sm:$0xff]  ;;  %v10152_v26 = vld [vmem:[#allocation3 + $0x848] sm:$0xff] }
 0xf16   :  { %9960 = vmatmul.mubr.bf16.vlgmr.msra.gmra.mrb[124].mxu0 %v9892_v9  ;;  %v10149_v9 = vld [vmem:[#allocation3 + $0x830] sm:$0xff] }
 0xf17   :  { %10052 = vmatpush1.bf16.msra.mxu0 %v10019_v45  ;;  %v10151_v45 = vld [vmem:[#allocation3 + $0x840] sm:$0xff] }
 0xf18   :  { %10053 = vmatprep.subr.bf16.mxu0 %v10022_v19  ;;  %v10154_v19 = vld [vmem:[#allocation3 + $0x858] sm:$0xff] }
 0xf19   :  { %v15484_v6 = vpop.f32.mrb[56].mxu1 }
 0xf1a   :  { %v10011_v48 = vpop.f32.mrb[57].mxu1  ;;  %v10016_v33 = vpack.c.bf16 %v15484_v6, %v15484_v6  ;;  %v10155_v6 = vld [vmem:[#allocation3 + $0x860] sm:$0xff] }
 0xf1b   :  { %10054 = vmatpush1.bf16.msra.mxu0 %v10021_v14  ;;  %v10017_v12 = vpack.c.bf16 %v10011_v48, %v10011_v48  ;;  %v10013_v51 = vpop.f32.mrb[58].mxu1  ;;  %v10153_v14 = vld [vmem:[#allocation3 + $0x850] sm:$0xff]  ;;  %v10158_v48 = vld [vmem:[#allocation3 + $0x878] sm:$0xff] }
 0xf1c   :  { %10055 = vmatprep.subr.bf16.mxu0 %v10024_v10  ;;  %v10014_v17 = vpop.f32.mrb[59].mxu1  ;;  %v10156_v10 = vld [vmem:[#allocation3 + $0x868] sm:$0xff] }
 0xf1d   :  { %10083 = vmatprep.mubr.bf16.mxu0 %v10017_v12  ;;  %v10157_v12 = vld [vmem:[#allocation3 + $0x870] sm:$0xff]  ;;  %v10160_v51 = vld [vmem:[#allocation3 + $0x888] sm:$0xff]  ;;  %v10162_v17 = vld [vmem:[#allocation3 + $0x898] sm:$0xff] }
 0xf1f   :  { %10056 = vmatpush1.bf16.msra.mxu0 %v10023_v16  ;;  %v10159_v16 = vld [vmem:[#allocation3 + $0x880] sm:$0xff] }
 0xf20   :  { %10057 = vmatprep.subr.bf16.mxu0 %v10026_v53  ;;  %v10161_v53 = vld [vmem:[#allocation3 + $0x890] sm:$0xff] }
 0xf21   :  { %v15486_v46 = vpop.f32.mrb[60].mxu1 }
 0xf22   :  { %v15488_v56 = vpop.f32.mrb[61].mxu1 }
 0xf23   :  { %10058 = vmatpush1.bf16.msra.mxu0 %v10025_v54  ;;  %v10137_v40 = vpop.f32.mrb[62].mxu1  ;;  %v10141_v5 = vpack.c.bf16 %v15488_v56, %v15488_v56  ;;  %v10164_v54 = vld [vmem:[#allocation3 + $0x8a8] sm:$0xff]  ;;  %v10163_v56 = vld [vmem:[#allocation3 + $0x8a0] sm:$0xff] }
 0xf24   :  { %10059 = vmatprep.subr.bf16.mxu0 %v10028_v55  ;;  %v10138_v47 = vpop.f32.mrb[63].mxu1  ;;  %v11706_v55 = vld [vmem:[%s15610_s11 + $0xd] sm:$0x1]  ;;  %v10166_v40 = vld [vmem:[#allocation3 + $0x8b8] sm:$0xff] }
 0xf25   :  { %11708 = vmatmul.mubr.msk.bf16.vlgmr.msra.gmra.mrb[80].mxu1 %vm9101_vm4, %v11706_v55  ;;  %v10168_v47 = vld [vmem:[#allocation3 + $0x8c8] sm:$0xff]  ;;  %v10391_v55 = vld [vmem:[#allocation3 + $0xa00] sm:$0xff] }
 0xf26   :  { %10844 = vmatpush1.bf16.msra.mxu1 %v15359_v49  ;;  %10875 = vmatprep.mubr.bf16.mxu1 %v13078_v61 }
 0xf27   :  { %10060 = vmatpush1.bf16.msra.mxu0 %v10027_v32  ;;  %11713 = vmatprep.subr.msk.bf16.mxu1 %vm9105_vm3, %v15353_v13  ;;  %v10165_v32 = vld [vmem:[#allocation3 + $0x8b0] sm:$0xff] }
 0xf28   :  { %10061 = vmatprep.subr.bf16.mxu0 %v10030_v29  ;;  %v10167_v29 = vld [vmem:[#allocation3 + $0x8c0] sm:$0xff]  ;;  %v10173_v13 = vld [vmem:[#allocation3 + $0x8f0] sm:$0xff] }
 0xf29   :  { %v15498_v39 = vpop.f32.mrb[64].mxu1 }
 0xf2a   :  { %v15500_v27 = vpop.f32.mrb[65].mxu1 }
 0xf2b   :  { %10062 = vmatpush1.bf16.msra.mxu0 %v10029_v58  ;;  %v10261_v31 = vpop.f32.mrb[66].mxu1  ;;  %v10170_v58 = vld [vmem:[#allocation3 + $0x8d8] sm:$0xff] }
 0xf2c   :  { %10063 = vmatprep.subr.bf16.mxu0 %v10032_v59  ;;  %v10262_v4 = vpop.f32.mrb[67].mxu1  ;;  %v10169_v59 = vld [vmem:[#allocation3 + $0x8d0] sm:$0xff]  ;;  %v10282_v31 = vld [vmem:[#allocation3 + $0x978] sm:$0xff] }
 0xf2d   :  { %v10284_v4 = vld [vmem:[#allocation3 + $0x988] sm:$0xff] }
 0xf2f   :  { %10064 = vmatpush1.bf16.msra.mxu0 %v10031_v15  ;;  %v10172_v15 = vld [vmem:[#allocation3 + $0x8e8] sm:$0xff] }
 0xf30   :  { %10065 = vmatprep.subr.bf16.mxu0 %v10034_v18  ;;  %v10171_v18 = vld [vmem:[#allocation3 + $0x8e0] sm:$0xff] }
 0xf33   :  { %10066 = vmatpush1.bf16.msra.mxu0 %v10033_v20  ;;  %v10174_v20 = vld [vmem:[#allocation3 + $0x8f8] sm:$0xff] }
 0xf34   :  { %10067 = vmatprep.subr.bf16.mxu0 %v10036_v21  ;;  %v15514_v21 = vpop.f32.mrb[68].mxu1 }
 0xf37   :  { %10068 = vmatpush1.bf16.msra.mxu0 %v10035_v22  ;;  %v15516_v22 = vpop.f32.mrb[69].mxu1 }
 0xf38   :  { %10069 = vmatprep.subr.bf16.mxu0 %v10038_v63  ;;  %v10268_v63 = vld [vmem:[#allocation3 + $0x908] sm:$0xff] }
 0xf3b   :  { %10070 = vmatpush1.bf16.msra.mxu0 %v10037_v0  ;;  %v10385_v0 = vpop.f32.mrb[70].mxu1 }
 0xf3c   :  { %10071 = vmatprep.subr.bf16.mxu0 %v10040_v11  ;;  %v10140_v11 = vpack.c.bf16 %v15486_v46, %v15486_v46  ;;  %v10386_v62 = vpop.f32.mrb[71].mxu1  ;;  %v10273_v46 = vld [vmem:[#allocation3 + $0x930] sm:$0xff]  ;;  %v10408_v0 = vld [vmem:[#allocation3 + $0xa88] sm:$0xff] }
 0xf3d   :  { %v10410_v62 = vld [vmem:[#allocation3 + $0xa98] sm:$0xff] }
 0xf3f   :  { %10072 = vmatpush1.bf16.msra.mxu0 %v10039_v1  ;;  %v10265_v1 = vpack.c.bf16 %v15500_v27, %v15500_v27  ;;  %v10280_v27 = vld [vmem:[#allocation3 + $0x968] sm:$0xff] }
 0xf40   :  { %10073 = vmatprep.subr.bf16.mxu0 %v10042_v60  ;;  %v10267_v60 = vld [vmem:[#allocation3 + $0x900] sm:$0xff] }
 0xf43   :  { %10074 = vmatpush1.bf16.msra.mxu0 %v10041_v38  ;;  %v10270_v38 = vld [vmem:[#allocation3 + $0x918] sm:$0xff] }
 0xf44   :  { %10075 = vmatprep.subr.bf16.mxu0 %v10044_v24  ;;  %v10269_v24 = vld [vmem:[#allocation3 + $0x910] sm:$0xff] }
 0xf47   :  { %10076 = vmatpush1.bf16.msra.mxu0 %v10043_v25  ;;  %v10272_v25 = vld [vmem:[#allocation3 + $0x928] sm:$0xff] }
 0xf48   :  { %10077 = vmatprep.subr.bf16.mxu0 %v10046_v43  ;;  %v10271_v43 = vld [vmem:[#allocation3 + $0x920] sm:$0xff] }
 0xf4b   :  { %10078 = vmatpush1.bf16.msra.mxu0 %v10045_v35  ;;  %v10274_v35 = vld [vmem:[#allocation3 + $0x938] sm:$0xff] }
 0xf4c   :  { %10079 = vmatprep.subr.bf16.mxu0 %v10048_v50  ;;  %v10276_v50 = vld [vmem:[#allocation3 + $0x948] sm:$0xff] }
 0xf4f   :  { %10080 = vmatpush1.bf16.msra.mxu0 %v10047_v36  ;;  %v10275_v36 = vld [vmem:[#allocation3 + $0x940] sm:$0xff] }
 0xf50   :  { %10081 = vmatprep.subr.bf16.mxu0 %v10050_v37  ;;  %v10278_v37 = vld [vmem:[#allocation3 + $0x958] sm:$0xff] }
 0xf53   :  { %10082 = vmatpush1.bf16.msra.mxu0 %v10049_v3  ;;  %v10277_v3 = vld [vmem:[#allocation3 + $0x950] sm:$0xff] }
 0xf54   :  { %10175 = vmatprep.subr.bf16.mxu0 %v10144_v30  ;;  %v10279_v30 = vld [vmem:[#allocation3 + $0x960] sm:$0xff] }
 0xf56   :  { %10084 = vmatmul.mubr.bf16.vlgmr.msra.gmra.mrb[124].mxu0 %v10016_v33  ;;  %v10281_v33 = vld [vmem:[#allocation3 + $0x970] sm:$0xff] }
 0xf57   :  { %10176 = vmatpush1.bf16.msra.mxu0 %v10143_v23  ;;  %10207 = vmatprep.mubr.bf16.mxu0 %v10141_v5  ;;  %v10283_v5 = vld [vmem:[#allocation3 + $0x980] sm:$0xff]  ;;  %v10286_v23 = vld [vmem:[#allocation3 + $0x998] sm:$0xff] }
 0xf58   :  { %10177 = vmatprep.subr.bf16.mxu0 %v10146_v42  ;;  %v10285_v42 = vld [vmem:[#allocation3 + $0x990] sm:$0xff] }
 0xf5b   :  { %10178 = vmatpush1.bf16.msra.mxu0 %v10145_v7  ;;  %v10288_v7 = vld [vmem:[#allocation3 + $0x9a8] sm:$0xff] }
 0xf5c   :  { %10179 = vmatprep.subr.bf16.mxu0 %v10148_v57  ;;  %v11709_v57 = vld [vmem:[%s15610_s11 + $0xe] sm:$0x1] }
 0xf5d   :  { %11711 = vmatmul.mubr.msk.bf16.vlgmr.msra.gmra.mrb[84].mxu1 %vm9101_vm4, %v11709_v57  ;;  %v10515_v57 = vld [vmem:[#allocation3 + $0xb00] sm:$0xff] }
 0xf5e   :  { %10968 = vmatpush1.bf16.msra.mxu1 %v15359_v49  ;;  %10999 = vmatprep.mubr.bf16.mxu1 %v13078_v61  ;;  %v15528_v49 = vpop.f32.mrb[72].mxu1  ;;  %v10297_v61 = vld [vmem:[#allocation3 + $0x9f0] sm:$0xff] }
 0xf5f   :  { %10180 = vmatpush1.bf16.msra.mxu0 %v10147_v8  ;;  %v10287_v8 = vld [vmem:[#allocation3 + $0x9a0] sm:$0xff] }
 0xf60   :  { %10181 = vmatprep.subr.bf16.mxu0 %v10150_v44  ;;  %v10290_v44 = vld [vmem:[#allocation3 + $0x9b8] sm:$0xff] }
 0xf63   :  { %10182 = vmatpush1.bf16.msra.mxu0 %v10149_v9  ;;  %v10289_v9 = vld [vmem:[#allocation3 + $0x9b0] sm:$0xff] }
 0xf64   :  { %10183 = vmatprep.subr.bf16.mxu0 %v10152_v26  ;;  %v10292_v26 = vld [vmem:[#allocation3 + $0x9c8] sm:$0xff] }
 0xf67   :  { %10184 = vmatpush1.bf16.msra.mxu0 %v10151_v45  ;;  %v10291_v45 = vld [vmem:[#allocation3 + $0x9c0] sm:$0xff] }
 0xf68   :  { %10185 = vmatprep.subr.bf16.mxu0 %v10154_v19  ;;  %v10294_v19 = vld [vmem:[#allocation3 + $0x9d8] sm:$0xff] }
 0xf6b   :  { %10186 = vmatpush1.bf16.msra.mxu0 %v10153_v14  ;;  %v10293_v14 = vld [vmem:[#allocation3 + $0x9d0] sm:$0xff] }
 0xf6c   :  { %10187 = vmatprep.subr.bf16.mxu0 %v10156_v10  ;;  %v10296_v10 = vld [vmem:[#allocation3 + $0x9e8] sm:$0xff] }
 0xf6f   :  { %10188 = vmatpush1.bf16.msra.mxu0 %v10155_v6  ;;  %v10295_v6 = vld [vmem:[#allocation3 + $0x9e0] sm:$0xff] }
 0xf70   :  { %10189 = vmatprep.subr.bf16.mxu0 %v10158_v48  ;;  %v10298_v48 = vld [vmem:[#allocation3 + $0x9f8] sm:$0xff] }
 0xf73   :  { %10190 = vmatpush1.bf16.msra.mxu0 %v10157_v12  ;;  %v15530_v12 = vpop.f32.mrb[73].mxu1 }
 0xf74   :  { %10191 = vmatprep.subr.bf16.mxu0 %v10160_v51  ;;  %v10392_v51 = vld [vmem:[#allocation3 + $0xa08] sm:$0xff] }
 0xf77   :  { %10192 = vmatpush1.bf16.msra.mxu0 %v10159_v16  ;;  %v10509_v16 = vpop.f32.mrb[74].mxu1 }
 0xf78   :  { %10193 = vmatprep.subr.bf16.mxu0 %v10162_v17  ;;  %v10264_v17 = vpack.c.bf16 %v15498_v39, %v15498_v39  ;;  %v10397_v39 = vld [vmem:[#allocation3 + $0xa30] sm:$0xff]  ;;  %v10532_v16 = vld [vmem:[#allocation3 + $0xb88] sm:$0xff] }
 0xf7b   :  { %10194 = vmatpush1.bf16.msra.mxu0 %v10161_v53  ;;  %v10510_v53 = vpop.f32.mrb[75].mxu1 }
 0xf7c   :  { %10195 = vmatprep.subr.bf16.mxu0 %v10164_v54  ;;  %v10389_v54 = vpack.c.bf16 %v15516_v22, %v15516_v22  ;;  %v10406_v22 = vld [vmem:[#allocation3 + $0xa78] sm:$0xff] }
 0xf7d   :  { %v10534_v53 = vld [vmem:[#allocation3 + $0xb98] sm:$0xff] }
 0xf7f   :  { %10196 = vmatpush1.bf16.msra.mxu0 %v10163_v56  ;;  %v10394_v56 = vld [vmem:[#allocation3 + $0xa18] sm:$0xff] }
 0xf80   :  { %10197 = vmatprep.subr.bf16.mxu0 %v10166_v40  ;;  %v10393_v40 = vld [vmem:[#allocation3 + $0xa10] sm:$0xff] }
 0xf83   :  { %10198 = vmatpush1.bf16.msra.mxu0 %v10165_v32  ;;  %v10396_v32 = vld [vmem:[#allocation3 + $0xa28] sm:$0xff] }
 0xf84   :  { %10199 = vmatprep.subr.bf16.mxu0 %v10168_v47  ;;  %v10395_v47 = vld [vmem:[#allocation3 + $0xa20] sm:$0xff] }
 0xf87   :  { %10200 = vmatpush1.bf16.msra.mxu0 %v10167_v29  ;;  %v10398_v29 = vld [vmem:[#allocation3 + $0xa38] sm:$0xff] }
 0xf88   :  { %10201 = vmatprep.subr.bf16.mxu0 %v10170_v58  ;;  %v10400_v58 = vld [vmem:[#allocation3 + $0xa48] sm:$0xff] }
 0xf8b   :  { %10202 = vmatpush1.bf16.msra.mxu0 %v10169_v59  ;;  %v10399_v59 = vld [vmem:[#allocation3 + $0xa40] sm:$0xff] }
 0xf8c   :  { %10203 = vmatprep.subr.bf16.mxu0 %v10172_v15  ;;  %v10402_v15 = vld [vmem:[#allocation3 + $0xa58] sm:$0xff] }
 0xf8f   :  { %10204 = vmatpush1.bf16.msra.mxu0 %v10171_v18  ;;  %v10401_v18 = vld [vmem:[#allocation3 + $0xa50] sm:$0xff] }
 0xf90   :  { %10205 = vmatprep.subr.bf16.mxu0 %v10174_v20  ;;  %v10404_v20 = vld [vmem:[#allocation3 + $0xa68] sm:$0xff] }
 0xf93   :  { %10206 = vmatpush1.bf16.msra.mxu0 %v10173_v13  ;;  %v10403_v13 = vld [vmem:[#allocation3 + $0xa60] sm:$0xff] }
 0xf94   :  { %10299 = vmatprep.subr.bf16.mxu0 %v10268_v63  ;;  %v10405_v63 = vld [vmem:[#allocation3 + $0xa70] sm:$0xff] }
 0xf96   :  { %10208 = vmatmul.mubr.bf16.vlgmr.msra.gmra.mrb[124].mxu0 %v10140_v11  ;;  %v10407_v11 = vld [vmem:[#allocation3 + $0xa80] sm:$0xff] }
 0xf97   :  { %10300 = vmatpush1.bf16.msra.mxu0 %v10267_v60  ;;  %10331 = vmatprep.mubr.bf16.mxu0 %v10265_v1  ;;  %v10409_v1 = vld [vmem:[#allocation3 + $0xa90] sm:$0xff]  ;;  %v10412_v60 = vld [vmem:[#allocation3 + $0xaa8] sm:$0xff] }
 0xf98   :  { %10301 = vmatprep.subr.bf16.mxu0 %v10270_v38  ;;  %v11712_v38 = vld [vmem:[%s15610_s11 + $0xf] sm:$0x1] }
 0xf99   :  { %11714 = vmatmul.mubr.msk.bf16.vlgmr.msra.gmra.mrb[88].mxu1 %vm9101_vm4, %v11712_v38  ;;  %v10642_v38 = vld [vmem:[#allocation3 + $0xc18] sm:$0xff] }
 0xf9b   :  { %10302 = vmatpush1.bf16.msra.mxu0 %v10269_v24  ;;  %v10411_v24 = vld [vmem:[#allocation3 + $0xaa0] sm:$0xff] }
 0xf9c   :  { %10303 = vmatprep.subr.bf16.mxu0 %v10272_v25  ;;  %v10414_v25 = vld [vmem:[#allocation3 + $0xab8] sm:$0xff] }
 0xf9f   :  { %10304 = vmatpush1.bf16.msra.mxu0 %v10271_v43  ;;  %v10413_v43 = vld [vmem:[#allocation3 + $0xab0] sm:$0xff] }
 0xfa0   :  { %10305 = vmatprep.subr.bf16.mxu0 %v10274_v35  ;;  %v10416_v35 = vld [vmem:[#allocation3 + $0xac8] sm:$0xff] }
 0xfa3   :  { %10306 = vmatpush1.bf16.msra.mxu0 %v10273_v46  ;;  %v10415_v46 = vld [vmem:[#allocation3 + $0xac0] sm:$0xff] }
 0xfa4   :  { %10307 = vmatprep.subr.bf16.mxu0 %v10276_v50  ;;  %v10418_v50 = vld [vmem:[#allocation3 + $0xad8] sm:$0xff] }
 0xfa7   :  { %10308 = vmatpush1.bf16.msra.mxu0 %v10275_v36  ;;  %v10417_v36 = vld [vmem:[#allocation3 + $0xad0] sm:$0xff] }
 0xfa8   :  { %10309 = vmatprep.subr.bf16.mxu0 %v10278_v37  ;;  %v10420_v37 = vld [vmem:[#allocation3 + $0xae8] sm:$0xff] }
 0xfab   :  { %10310 = vmatpush1.bf16.msra.mxu0 %v10277_v3  ;;  %v10419_v3 = vld [vmem:[#allocation3 + $0xae0] sm:$0xff] }
 0xfac   :  { %10311 = vmatprep.subr.bf16.mxu0 %v10280_v27  ;;  %v10422_v27 = vld [vmem:[#allocation3 + $0xaf8] sm:$0xff] }
 0xfaf   :  { %10312 = vmatpush1.bf16.msra.mxu0 %v10279_v30  ;;  %v15540_v30 = vpop.f32.mrb[76].mxu1 }
 0xfb0   :  { %10313 = vmatprep.subr.bf16.mxu0 %v10282_v31  ;;  %v10421_v31 = vld [vmem:[#allocation3 + $0xaf0] sm:$0xff] }
 0xfb3   :  { %10314 = vmatpush1.bf16.msra.mxu0 %v10281_v33  ;;  %v15542_v33 = vpop.f32.mrb[77].mxu1 }
 0xfb4   :  { %10315 = vmatprep.subr.bf16.mxu0 %v10284_v4  ;;  %v10516_v4 = vld [vmem:[#allocation3 + $0xb08] sm:$0xff] }
 0xfb7   :  { %10316 = vmatpush1.bf16.msra.mxu0 %v10283_v5  ;;  %v10633_v5 = vpop.f32.mrb[78].mxu1 }
 0xfb8   :  { %10317 = vmatprep.subr.bf16.mxu0 %v10286_v23  ;;  %v10388_v23 = vpack.c.bf16 %v15514_v21, %v15514_v21  ;;  %v10521_v21 = vld [vmem:[#allocation3 + $0xb30] sm:$0xff]  ;;  %v10655_v5 = vld [vmem:[#allocation3 + $0xc80] sm:$0xff] }
 0xfbb   :  { %10318 = vmatpush1.bf16.msra.mxu0 %v10285_v42  ;;  %v10634_v42 = vpop.f32.mrb[79].mxu1 }
 0xfbc   :  { %10319 = vmatprep.subr.bf16.mxu0 %v10288_v7  ;;  %v10513_v7 = vpack.c.bf16 %v15530_v12, %v15530_v12  ;;  %v10530_v12 = vld [vmem:[#allocation3 + $0xb78] sm:$0xff]  ;;  %v10657_v42 = vld [vmem:[#allocation3 + $0xc90] sm:$0xff] }
 0xfbf   :  { %10320 = vmatpush1.bf16.msra.mxu0 %v10287_v8  ;;  %v10518_v8 = vld [vmem:[#allocation3 + $0xb18] sm:$0xff] }
 0xfc0   :  { %10321 = vmatprep.subr.bf16.mxu0 %v10290_v44  ;;  %v10517_v44 = vld [vmem:[#allocation3 + $0xb10] sm:$0xff] }
 0xfc3   :  { %10322 = vmatpush1.bf16.msra.mxu0 %v10289_v9  ;;  %v10520_v9 = vld [vmem:[#allocation3 + $0xb28] sm:$0xff] }
 0xfc4   :  { %10323 = vmatprep.subr.bf16.mxu0 %v10292_v26  ;;  %v10519_v26 = vld [vmem:[#allocation3 + $0xb20] sm:$0xff] }
 0xfc7   :  { %10324 = vmatpush1.bf16.msra.mxu0 %v10291_v45  ;;  %v10522_v45 = vld [vmem:[#allocation3 + $0xb38] sm:$0xff] }
 0xfc8   :  { %10325 = vmatprep.subr.bf16.mxu0 %v10294_v19  ;;  %v10524_v19 = vld [vmem:[#allocation3 + $0xb48] sm:$0xff] }
 0xfcb   :  { %10326 = vmatpush1.bf16.msra.mxu0 %v10293_v14  ;;  %v10523_v14 = vld [vmem:[#allocation3 + $0xb40] sm:$0xff] }
 0xfcc   :  { %10327 = vmatprep.subr.bf16.mxu0 %v10296_v10  ;;  %v10526_v10 = vld [vmem:[#allocation3 + $0xb58] sm:$0xff] }
 0xfcf   :  { %10328 = vmatpush1.bf16.msra.mxu0 %v10295_v6  ;;  %v10525_v6 = vld [vmem:[#allocation3 + $0xb50] sm:$0xff] }
 0xfd0   :  { %10329 = vmatprep.subr.bf16.mxu0 %v10298_v48  ;;  %v10528_v48 = vld [vmem:[#allocation3 + $0xb68] sm:$0xff] }
 0xfd3   :  { %10330 = vmatpush1.bf16.msra.mxu0 %v10297_v61  ;;  %v10527_v61 = vld [vmem:[#allocation3 + $0xb60] sm:$0xff] }
 0xfd4   :  { %10423 = vmatprep.subr.bf16.mxu0 %v10392_v51  ;;  %v10529_v51 = vld [vmem:[#allocation3 + $0xb70] sm:$0xff] }
 0xfd6   :  { %10332 = vmatmul.mubr.bf16.vlgmr.msra.gmra.mrb[124].mxu0 %v10264_v17  ;;  %v10531_v17 = vld [vmem:[#allocation3 + $0xb80] sm:$0xff] }
 0xfd7   :  { %10424 = vmatpush1.bf16.msra.mxu0 %v10391_v55  ;;  %10455 = vmatprep.mubr.bf16.mxu0 %v10389_v54  ;;  %v10533_v54 = vld [vmem:[#allocation3 + $0xb90] sm:$0xff]  ;;  %v10536_v55 = vld [vmem:[#allocation3 + $0xba8] sm:$0xff] }
 0xfd8   :  { %10425 = vmatprep.subr.bf16.mxu0 %v10394_v56  ;;  %v10535_v56 = vld [vmem:[#allocation3 + $0xba0] sm:$0xff] }
 0xfdb   :  { %10426 = vmatpush1.bf16.msra.mxu0 %v10393_v40  ;;  %v10538_v40 = vld [vmem:[#allocation3 + $0xbb8] sm:$0xff] }
 0xfdc   :  { %10427 = vmatprep.subr.bf16.mxu0 %v10396_v32  ;;  %v10537_v32 = vld [vmem:[#allocation3 + $0xbb0] sm:$0xff] }
 0xfdf   :  { %10428 = vmatpush1.bf16.msra.mxu0 %v10395_v47  ;;  %v10540_v47 = vld [vmem:[#allocation3 + $0xbc8] sm:$0xff] }
 0xfe0   :  { %10429 = vmatprep.subr.bf16.mxu0 %v10398_v29  ;;  %v10539_v29 = vld [vmem:[#allocation3 + $0xbc0] sm:$0xff] }
 0xfe3   :  { %10430 = vmatpush1.bf16.msra.mxu0 %v10397_v39  ;;  %v10542_v39 = vld [vmem:[#allocation3 + $0xbd8] sm:$0xff] }
 0xfe4   :  { %10431 = vmatprep.subr.bf16.mxu0 %v10400_v58  ;;  %v10541_v58 = vld [vmem:[#allocation3 + $0xbd0] sm:$0xff] }
 0xfe7   :  { %10432 = vmatpush1.bf16.msra.mxu0 %v10399_v59  ;;  %v10544_v59 = vld [vmem:[#allocation3 + $0xbe8] sm:$0xff] }
 0xfe8   :  { %10433 = vmatprep.subr.bf16.mxu0 %v10402_v15  ;;  %v10543_v15 = vld [vmem:[#allocation3 + $0xbe0] sm:$0xff] }
 0xfeb   :  { %10434 = vmatpush1.bf16.msra.mxu0 %v10401_v18  ;;  %v10546_v18 = vld [vmem:[#allocation3 + $0xbf8] sm:$0xff] }
 0xfec   :  { %10435 = vmatprep.subr.bf16.mxu0 %v10404_v20 }
 0xfef   :  { %10436 = vmatpush1.bf16.msra.mxu0 %v10403_v13  ;;  %v10545_v13 = vld [vmem:[#allocation3 + $0xbf0] sm:$0xff] }
 0xff0   :  { %10437 = vmatprep.subr.bf16.mxu0 %v10406_v22 }
 0xff3   :  { %10438 = vmatpush1.bf16.msra.mxu0 %v10405_v63  ;;  %v10640_v63 = vld [vmem:[#allocation3 + $0xc08] sm:$0xff] }
 0xff4   :  { %10439 = vmatprep.subr.bf16.mxu0 %v10408_v0 }
 0xff7   :  { %10440 = vmatpush1.bf16.msra.mxu0 %v10407_v11  ;;  %v10512_v11 = vpack.c.bf16 %v15528_v49, %v15528_v49  ;;  %v10645_v49 = vld [vmem:[#allocation3 + $0xc30] sm:$0xff] }
 0xff8   :  { %10441 = vmatprep.subr.bf16.mxu0 %v10410_v62  ;;  %v15548_v20 = vpop.f32.mrb[80].mxu1 }
 0xff9   :  { %v15550_v22 = vpop.f32.mrb[81].mxu1 }
 0xffa   :  { %v10757_v0 = vpop.f32.mrb[82].mxu1 }
 0xffb   :  { %10442 = vmatpush1.bf16.msra.mxu0 %v10409_v1  ;;  %v10758_v62 = vpop.f32.mrb[83].mxu1  ;;  %v10637_v1 = vpack.c.bf16 %v15542_v33, %v15542_v33  ;;  %v10653_v33 = vld [vmem:[#allocation3 + $0xc70] sm:$0xff]  ;;  %v10779_v0 = vld [vmem:[#allocation3 + $0xd80] sm:$0xff] }
 0xffc   :  { %10443 = vmatprep.subr.bf16.mxu0 %v10412_v60  ;;  %v10639_v60 = vld [vmem:[#allocation3 + $0xc00] sm:$0xff]  ;;  %v10781_v62 = vld [vmem:[#allocation3 + $0xd90] sm:$0xff] }
 0xfff   :  { %10444 = vmatpush1.bf16.msra.mxu0 %v10411_v24  ;;  %v10641_v24 = vld [vmem:[#allocation3 + $0xc10] sm:$0xff] }
0x1000   :  { %10445 = vmatprep.subr.bf16.mxu0 %v10414_v25  ;;  %v10644_v25 = vld [vmem:[#allocation3 + $0xc28] sm:$0xff] }
0x1003   :  { %10446 = vmatpush1.bf16.msra.mxu0 %v10413_v43  ;;  %v10643_v43 = vld [vmem:[#allocation3 + $0xc20] sm:$0xff] }
0x1004   :  { %10447 = vmatprep.subr.bf16.mxu0 %v10416_v35  ;;  %v10646_v35 = vld [vmem:[#allocation3 + $0xc38] sm:$0xff] }
0x1007   :  { %10448 = vmatpush1.bf16.msra.mxu0 %v10415_v46  ;;  %v10648_v46 = vld [vmem:[#allocation3 + $0xc48] sm:$0xff] }
0x1008   :  { %10449 = vmatprep.subr.bf16.mxu0 %v10418_v50  ;;  %v10647_v50 = vld [vmem:[#allocation3 + $0xc40] sm:$0xff] }
0x100b   :  { %10450 = vmatpush1.bf16.msra.mxu0 %v10417_v36  ;;  %v10650_v36 = vld [vmem:[#allocation3 + $0xc58] sm:$0xff] }
0x100c   :  { %10451 = vmatprep.subr.bf16.mxu0 %v10420_v37  ;;  %v10649_v37 = vld [vmem:[#allocation3 + $0xc50] sm:$0xff] }
0x100f   :  { %10452 = vmatpush1.bf16.msra.mxu0 %v10419_v3  ;;  %v10652_v3 = vld [vmem:[#allocation3 + $0xc68] sm:$0xff] }
0x1010   :  { %10453 = vmatprep.subr.bf16.mxu0 %v10422_v27  ;;  %v10651_v27 = vld [vmem:[#allocation3 + $0xc60] sm:$0xff] }
0x1013   :  { %10454 = vmatpush1.bf16.msra.mxu0 %v10421_v31  ;;  %v10654_v31 = vld [vmem:[#allocation3 + $0xc78] sm:$0xff] }
0x1014   :  { %10547 = vmatprep.subr.bf16.mxu0 %v10516_v4  ;;  %v10656_v4 = vld [vmem:[#allocation3 + $0xc88] sm:$0xff] }
0x1016   :  { %10456 = vmatmul.mubr.bf16.vlgmr.msra.gmra.mrb[124].mxu0 %v10388_v23  ;;  %v10658_v23 = vld [vmem:[#allocation3 + $0xc98] sm:$0xff] }
0x1017   :  { %10548 = vmatpush1.bf16.msra.mxu0 %v10515_v57  ;;  %10579 = vmatprep.mubr.bf16.mxu0 %v10513_v7  ;;  %v10660_v7 = vld [vmem:[#allocation3 + $0xca8] sm:$0xff]  ;;  %v10659_v57 = vld [vmem:[#allocation3 + $0xca0] sm:$0xff] }
0x1018   :  { %10549 = vmatprep.subr.bf16.mxu0 %v10518_v8  ;;  %v10662_v8 = vld [vmem:[#allocation3 + $0xcb8] sm:$0xff] }
0x101b   :  { %10550 = vmatpush1.bf16.msra.mxu0 %v10517_v44  ;;  %v10661_v44 = vld [vmem:[#allocation3 + $0xcb0] sm:$0xff] }
0x101c   :  { %10551 = vmatprep.subr.bf16.mxu0 %v10520_v9  ;;  %v10664_v9 = vld [vmem:[#allocation3 + $0xcc8] sm:$0xff] }
0x101f   :  { %10552 = vmatpush1.bf16.msra.mxu0 %v10519_v26  ;;  %v10663_v26 = vld [vmem:[#allocation3 + $0xcc0] sm:$0xff] }
0x1020   :  { %10553 = vmatprep.subr.bf16.mxu0 %v10522_v45  ;;  %v10666_v45 = vld [vmem:[#allocation3 + $0xcd8] sm:$0xff] }
0x1023   :  { %10554 = vmatpush1.bf16.msra.mxu0 %v10521_v21  ;;  %v10665_v21 = vld [vmem:[#allocation3 + $0xcd0] sm:$0xff] }
0x1024   :  { %10555 = vmatprep.subr.bf16.mxu0 %v10524_v19  ;;  %v10668_v19 = vld [vmem:[#allocation3 + $0xce8] sm:$0xff] }
0x1027   :  { %10556 = vmatpush1.bf16.msra.mxu0 %v10523_v14  ;;  %v10667_v14 = vld [vmem:[#allocation3 + $0xce0] sm:$0xff] }
0x1028   :  { %10557 = vmatprep.subr.bf16.mxu0 %v10526_v10  ;;  %v10670_v10 = vld [vmem:[#allocation3 + $0xcf8] sm:$0xff] }
0x102b   :  { %10558 = vmatpush1.bf16.msra.mxu0 %v10525_v6 }
0x102c   :  { %10559 = vmatprep.subr.bf16.mxu0 %v10528_v48  ;;  %v10669_v48 = vld [vmem:[#allocation3 + $0xcf0] sm:$0xff] }
0x102f   :  { %10560 = vmatpush1.bf16.msra.mxu0 %v10527_v61 }
0x1030   :  { %10561 = vmatprep.subr.bf16.mxu0 %v10530_v12  ;;  %v15556_v6 = vpop.f32.mrb[84].mxu1  ;;  %v10764_v12 = vld [vmem:[#allocation3 + $0xd08] sm:$0xff] }
0x1031   :  { %v15558_v61 = vpop.f32.mrb[85].mxu1 }
0x1033   :  { %10562 = vmatpush1.bf16.msra.mxu0 %v10529_v51  ;;  %v10881_v51 = vpop.f32.mrb[86].mxu1 }
0x1034   :  { %10563 = vmatprep.subr.bf16.mxu0 %v10532_v16  ;;  %v10636_v16 = vpack.c.bf16 %v15540_v30, %v15540_v30  ;;  %v10769_v30 = vld [vmem:[#allocation3 + $0xd30] sm:$0xff]  ;;  %v10903_v51 = vld [vmem:[#allocation3 + $0xe80] sm:$0xff] }
0x1037   :  { %10564 = vmatpush1.bf16.msra.mxu0 %v10531_v17  ;;  %v10882_v17 = vpop.f32.mrb[87].mxu1 }
0x1038   :  { %10565 = vmatprep.subr.bf16.mxu0 %v10534_v53  ;;  %v10761_v53 = vpack.c.bf16 %v15550_v22, %v15550_v22  ;;  %v10777_v22 = vld [vmem:[#allocation3 + $0xd70] sm:$0xff] }
0x1039   :  { %v10905_v17 = vld [vmem:[#allocation3 + $0xe90] sm:$0xff] }
0x103b   :  { %10566 = vmatpush1.bf16.msra.mxu0 %v10533_v54  ;;  %v10763_v54 = vld [vmem:[#allocation3 + $0xd00] sm:$0xff] }
0x103c   :  { %10567 = vmatprep.subr.bf16.mxu0 %v10536_v55  ;;  %v10766_v55 = vld [vmem:[#allocation3 + $0xd18] sm:$0xff] }
0x103f   :  { %10568 = vmatpush1.bf16.msra.mxu0 %v10535_v56  ;;  %v10765_v56 = vld [vmem:[#allocation3 + $0xd10] sm:$0xff] }
0x1040   :  { %10569 = vmatprep.subr.bf16.mxu0 %v10538_v40  ;;  %v10768_v40 = vld [vmem:[#allocation3 + $0xd28] sm:$0xff] }
0x1043   :  { %10570 = vmatpush1.bf16.msra.mxu0 %v10537_v32  ;;  %v10767_v32 = vld [vmem:[#allocation3 + $0xd20] sm:$0xff] }
0x1044   :  { %10571 = vmatprep.subr.bf16.mxu0 %v10540_v47  ;;  %v10770_v47 = vld [vmem:[#allocation3 + $0xd38] sm:$0xff] }
0x1047   :  { %10572 = vmatpush1.bf16.msra.mxu0 %v10539_v29  ;;  %v10772_v29 = vld [vmem:[#allocation3 + $0xd48] sm:$0xff] }
0x1048   :  { %10573 = vmatprep.subr.bf16.mxu0 %v10542_v39  ;;  %v10771_v39 = vld [vmem:[#allocation3 + $0xd40] sm:$0xff] }
0x104b   :  { %10574 = vmatpush1.bf16.msra.mxu0 %v10541_v58  ;;  %v10774_v58 = vld [vmem:[#allocation3 + $0xd58] sm:$0xff] }
0x104c   :  { %10575 = vmatprep.subr.bf16.mxu0 %v10544_v59  ;;  %v10773_v59 = vld [vmem:[#allocation3 + $0xd50] sm:$0xff] }
0x104f   :  { %10576 = vmatpush1.bf16.msra.mxu0 %v10543_v15  ;;  %v10776_v15 = vld [vmem:[#allocation3 + $0xd68] sm:$0xff] }
0x1050   :  { %10577 = vmatprep.subr.bf16.mxu0 %v10546_v18  ;;  %v10775_v18 = vld [vmem:[#allocation3 + $0xd60] sm:$0xff] }
0x1053   :  { %10578 = vmatpush1.bf16.msra.mxu0 %v10545_v13  ;;  %v10778_v13 = vld [vmem:[#allocation3 + $0xd78] sm:$0xff] }
0x1054   :  { %10671 = vmatprep.subr.bf16.mxu0 %v10640_v63  ;;  %v10780_v63 = vld [vmem:[#allocation3 + $0xd88] sm:$0xff] }
0x1056   :  { %10580 = vmatmul.mubr.bf16.vlgmr.msra.gmra.mrb[124].mxu0 %v10512_v11  ;;  %v10782_v11 = vld [vmem:[#allocation3 + $0xd98] sm:$0xff] }
0x1057   :  { %10672 = vmatpush1.bf16.msra.mxu0 %v10639_v60  ;;  %10703 = vmatprep.mubr.bf16.mxu0 %v10637_v1  ;;  %v10784_v1 = vld [vmem:[#allocation3 + $0xda8] sm:$0xff]  ;;  %v10783_v60 = vld [vmem:[#allocation3 + $0xda0] sm:$0xff] }
0x1058   :  { %10673 = vmatprep.subr.bf16.mxu0 %v10642_v38  ;;  %v10786_v38 = vld [vmem:[#allocation3 + $0xdb8] sm:$0xff] }
0x105b   :  { %10674 = vmatpush1.bf16.msra.mxu0 %v10641_v24  ;;  %v10785_v24 = vld [vmem:[#allocation3 + $0xdb0] sm:$0xff] }
0x105c   :  { %10675 = vmatprep.subr.bf16.mxu0 %v10644_v25  ;;  %v10788_v25 = vld [vmem:[#allocation3 + $0xdc8] sm:$0xff] }
0x105f   :  { %10676 = vmatpush1.bf16.msra.mxu0 %v10643_v43  ;;  %v10787_v43 = vld [vmem:[#allocation3 + $0xdc0] sm:$0xff] }
0x1060   :  { %10677 = vmatprep.subr.bf16.mxu0 %v10646_v35  ;;  %v10790_v35 = vld [vmem:[#allocation3 + $0xdd8] sm:$0xff] }
0x1063   :  { %10678 = vmatpush1.bf16.msra.mxu0 %v10645_v49  ;;  %v10789_v49 = vld [vmem:[#allocation3 + $0xdd0] sm:$0xff] }
0x1064   :  { %10679 = vmatprep.subr.bf16.mxu0 %v10648_v46  ;;  %v10792_v46 = vld [vmem:[#allocation3 + $0xde8] sm:$0xff] }
0x1067   :  { %10680 = vmatpush1.bf16.msra.mxu0 %v10647_v50  ;;  %v10791_v50 = vld [vmem:[#allocation3 + $0xde0] sm:$0xff] }
0x1068   :  { %10681 = vmatprep.subr.bf16.mxu0 %v10650_v36  ;;  %v10794_v36 = vld [vmem:[#allocation3 + $0xdf8] sm:$0xff] }
0x106b   :  { %10682 = vmatpush1.bf16.msra.mxu0 %v10649_v37 }
0x106c   :  { %10683 = vmatprep.subr.bf16.mxu0 %v10652_v3  ;;  %v15564_v37 = vpop.f32.mrb[88].mxu1 }
0x106d   :  { %v15566_v3 = vpop.f32.mrb[89].mxu1 }
0x106f   :  { %10684 = vmatpush1.bf16.msra.mxu0 %v10651_v27  ;;  %v10793_v27 = vld [vmem:[#allocation3 + $0xdf0] sm:$0xff] }
0x1070   :  { %10685 = vmatprep.subr.bf16.mxu0 %v10654_v31  ;;  %v11005_v31 = vpop.f32.mrb[90].mxu1 }
0x1071   :  { %v11032_v31 = vld [vmem:[#allocation3 + $0xfa8] sm:$0xff] }
0x1073   :  { %10686 = vmatpush1.bf16.msra.mxu0 %v10653_v33  ;;  %v10888_v33 = vld [vmem:[#allocation3 + $0xe08] sm:$0xff] }
0x1074   :  { %10687 = vmatprep.subr.bf16.mxu0 %v10656_v4  ;;  %v11006_v4 = vpop.f32.mrb[91].mxu1 }
0x1075   :  { %v11034_v4 = vld [vmem:[#allocation3 + $0xfb8] sm:$0xff] }
0x1077   :  { %10688 = vmatpush1.bf16.msra.mxu0 %v10655_v5  ;;  %v10760_v5 = vpack.c.bf16 %v15548_v20, %v15548_v20  ;;  %v10893_v20 = vld [vmem:[#allocation3 + $0xe30] sm:$0xff] }
0x1078   :  { %10689 = vmatprep.subr.bf16.mxu0 %v10658_v23  ;;  %v10885_v23 = vpack.c.bf16 %v15558_v61, %v15558_v61  ;;  %v10901_v61 = vld [vmem:[#allocation3 + $0xe70] sm:$0xff] }
0x107b   :  { %10690 = vmatpush1.bf16.msra.mxu0 %v10657_v42  ;;  %v10887_v42 = vld [vmem:[#allocation3 + $0xe00] sm:$0xff] }
0x107c   :  { %10691 = vmatprep.subr.bf16.mxu0 %v10660_v7  ;;  %v10890_v7 = vld [vmem:[#allocation3 + $0xe18] sm:$0xff] }
0x107f   :  { %10692 = vmatpush1.bf16.msra.mxu0 %v10659_v57  ;;  %v10889_v57 = vld [vmem:[#allocation3 + $0xe10] sm:$0xff] }
0x1080   :  { %10693 = vmatprep.subr.bf16.mxu0 %v10662_v8  ;;  %v10892_v8 = vld [vmem:[#allocation3 + $0xe28] sm:$0xff] }
0x1083   :  { %10694 = vmatpush1.bf16.msra.mxu0 %v10661_v44  ;;  %v10891_v44 = vld [vmem:[#allocation3 + $0xe20] sm:$0xff] }
0x1084   :  { %10695 = vmatprep.subr.bf16.mxu0 %v10664_v9  ;;  %v10894_v9 = vld [vmem:[#allocation3 + $0xe38] sm:$0xff] }
0x1087   :  { %10696 = vmatpush1.bf16.msra.mxu0 %v10663_v26  ;;  %v10896_v26 = vld [vmem:[#allocation3 + $0xe48] sm:$0xff] }
0x1088   :  { %10697 = vmatprep.subr.bf16.mxu0 %v10666_v45  ;;  %v10895_v45 = vld [vmem:[#allocation3 + $0xe40] sm:$0xff] }
0x108b   :  { %10698 = vmatpush1.bf16.msra.mxu0 %v10665_v21  ;;  %v10898_v21 = vld [vmem:[#allocation3 + $0xe58] sm:$0xff] }
0x108c   :  { %10699 = vmatprep.subr.bf16.mxu0 %v10668_v19  ;;  %v10897_v19 = vld [vmem:[#allocation3 + $0xe50] sm:$0xff] }
0x108f   :  { %10700 = vmatpush1.bf16.msra.mxu0 %v10667_v14  ;;  %v10900_v14 = vld [vmem:[#allocation3 + $0xe68] sm:$0xff] }
0x1090   :  { %10701 = vmatprep.subr.bf16.mxu0 %v10670_v10  ;;  %v10899_v10 = vld [vmem:[#allocation3 + $0xe60] sm:$0xff] }
0x1093   :  { %10702 = vmatpush1.bf16.msra.mxu0 %v10669_v48  ;;  %v10902_v48 = vld [vmem:[#allocation3 + $0xe78] sm:$0xff] }
0x1094   :  { %10795 = vmatprep.subr.bf16.mxu0 %v10764_v12  ;;  %v10904_v12 = vld [vmem:[#allocation3 + $0xe88] sm:$0xff] }
0x1096   :  { %10704 = vmatmul.mubr.bf16.vlgmr.msra.gmra.mrb[124].mxu0 %v10636_v16  ;;  %v10906_v16 = vld [vmem:[#allocation3 + $0xe98] sm:$0xff] }
0x1097   :  { %10796 = vmatpush1.bf16.msra.mxu0 %v10763_v54  ;;  %10827 = vmatprep.mubr.bf16.mxu0 %v10761_v53  ;;  %v10908_v53 = vld [vmem:[#allocation3 + $0xea8] sm:$0xff]  ;;  %v10907_v54 = vld [vmem:[#allocation3 + $0xea0] sm:$0xff] }
0x1098   :  { %10797 = vmatprep.subr.bf16.mxu0 %v10766_v55  ;;  %v10910_v55 = vld [vmem:[#allocation3 + $0xeb8] sm:$0xff] }
0x109b   :  { %10798 = vmatpush1.bf16.msra.mxu0 %v10765_v56  ;;  %v10909_v56 = vld [vmem:[#allocation3 + $0xeb0] sm:$0xff] }
0x109c   :  { %10799 = vmatprep.subr.bf16.mxu0 %v10768_v40  ;;  %v10912_v40 = vld [vmem:[#allocation3 + $0xec8] sm:$0xff] }
0x109f   :  { %10800 = vmatpush1.bf16.msra.mxu0 %v10767_v32  ;;  %v10911_v32 = vld [vmem:[#allocation3 + $0xec0] sm:$0xff] }
0x10a0   :  { %10801 = vmatprep.subr.bf16.mxu0 %v10770_v47  ;;  %v10914_v47 = vld [vmem:[#allocation3 + $0xed8] sm:$0xff] }
0x10a3   :  { %10802 = vmatpush1.bf16.msra.mxu0 %v10769_v30  ;;  %v10913_v30 = vld [vmem:[#allocation3 + $0xed0] sm:$0xff] }
0x10a4   :  { %10803 = vmatprep.subr.bf16.mxu0 %v10772_v29  ;;  %v10916_v29 = vld [vmem:[#allocation3 + $0xee8] sm:$0xff] }
0x10a7   :  { %10804 = vmatpush1.bf16.msra.mxu0 %v10771_v39  ;;  %v10915_v39 = vld [vmem:[#allocation3 + $0xee0] sm:$0xff] }
0x10a8   :  { %10805 = vmatprep.subr.bf16.mxu0 %v10774_v58  ;;  %v10918_v58 = vld [vmem:[#allocation3 + $0xef8] sm:$0xff] }
0x10ab   :  { %10806 = vmatpush1.bf16.msra.mxu0 %v10773_v59  ;;  %v10917_v59 = vld [vmem:[#allocation3 + $0xef0] sm:$0xff] }
0x10ac   :  { %10807 = vmatprep.subr.bf16.mxu0 %v10776_v15  ;;  %v11012_v15 = vld [vmem:[#allocation3 + $0xf08] sm:$0xff] }
0x10af   :  { %10808 = vmatpush1.bf16.msra.mxu0 %v10775_v18  ;;  %v10884_v18 = vpack.c.bf16 %v15556_v6, %v15556_v6  ;;  %v11017_v6 = vld [vmem:[#allocation3 + $0xf30] sm:$0xff] }
0x10b0   :  { %10809 = vmatprep.subr.bf16.mxu0 %v10778_v13  ;;  %v11009_v13 = vpack.c.bf16 %v15566_v3, %v15566_v3  ;;  %v11030_v3 = vld [vmem:[#allocation3 + $0xf98] sm:$0xff] }
0x10b3   :  { %10810 = vmatpush1.bf16.msra.mxu0 %v10777_v22  ;;  %v11011_v22 = vld [vmem:[#allocation3 + $0xf00] sm:$0xff] }
0x10b4   :  { %10811 = vmatprep.subr.bf16.mxu0 %v10780_v63  ;;  %v11014_v63 = vld [vmem:[#allocation3 + $0xf18] sm:$0xff] }
0x10b7   :  { %10812 = vmatpush1.bf16.msra.mxu0 %v10779_v0  ;;  %v11013_v0 = vld [vmem:[#allocation3 + $0xf10] sm:$0xff] }
0x10b8   :  { %10813 = vmatprep.subr.bf16.mxu0 %v10782_v11  ;;  %v11016_v11 = vld [vmem:[#allocation3 + $0xf28] sm:$0xff] }
0x10bb   :  { %10814 = vmatpush1.bf16.msra.mxu0 %v10781_v62  ;;  %v11015_v62 = vld [vmem:[#allocation3 + $0xf20] sm:$0xff] }
0x10bc   :  { %10815 = vmatprep.subr.bf16.mxu0 %v10784_v1  ;;  %v11018_v1 = vld [vmem:[#allocation3 + $0xf38] sm:$0xff] }
0x10bf   :  { %10816 = vmatpush1.bf16.msra.mxu0 %v10783_v60  ;;  %v11020_v60 = vld [vmem:[#allocation3 + $0xf48] sm:$0xff] }
0x10c0   :  { %10817 = vmatprep.subr.bf16.mxu0 %v10786_v38  ;;  %v11019_v38 = vld [vmem:[#allocation3 + $0xf40] sm:$0xff] }
0x10c3   :  { %10818 = vmatpush1.bf16.msra.mxu0 %v10785_v24  ;;  %v11022_v24 = vld [vmem:[#allocation3 + $0xf58] sm:$0xff] }
0x10c4   :  { %10819 = vmatprep.subr.bf16.mxu0 %v10788_v25  ;;  %v11021_v25 = vld [vmem:[#allocation3 + $0xf50] sm:$0xff] }
0x10c7   :  { %10820 = vmatpush1.bf16.msra.mxu0 %v10787_v43  ;;  %v11024_v43 = vld [vmem:[#allocation3 + $0xf68] sm:$0xff] }
0x10c8   :  { %10821 = vmatprep.subr.bf16.mxu0 %v10790_v35  ;;  %v11023_v35 = vld [vmem:[#allocation3 + $0xf60] sm:$0xff] }
0x10cb   :  { %10822 = vmatpush1.bf16.msra.mxu0 %v10789_v49  ;;  %v11026_v49 = vld [vmem:[#allocation3 + $0xf78] sm:$0xff] }
0x10cc   :  { %10823 = vmatprep.subr.bf16.mxu0 %v10792_v46  ;;  %v11025_v46 = vld [vmem:[#allocation3 + $0xf70] sm:$0xff] }
0x10cf   :  { %10824 = vmatpush1.bf16.msra.mxu0 %v10791_v50  ;;  %v11028_v50 = vld [vmem:[#allocation3 + $0xf88] sm:$0xff] }
0x10d0   :  { %10825 = vmatprep.subr.bf16.mxu0 %v10794_v36  ;;  %v11027_v36 = vld [vmem:[#allocation3 + $0xf80] sm:$0xff] }
0x10d3   :  { %10826 = vmatpush1.bf16.msra.mxu0 %v10793_v27  ;;  %v11029_v27 = vld [vmem:[#allocation3 + $0xf90] sm:$0xff] }
0x10d4   :  { %10919 = vmatprep.subr.bf16.mxu0 %v10888_v33  ;;  %v11031_v33 = vld [vmem:[#allocation3 + $0xfa0] sm:$0xff] }
0x10d6   :  { %10828 = vmatmul.mubr.bf16.vlgmr.msra.gmra.mrb[124].mxu0 %v10760_v5  ;;  %v11033_v5 = vld [vmem:[#allocation3 + $0xfb0] sm:$0xff] }
0x10d7   :  { %10920 = vmatpush1.bf16.msra.mxu0 %v10887_v42  ;;  %10951 = vmatprep.mubr.bf16.mxu0 %v10885_v23  ;;  %v11036_v23 = vld [vmem:[#allocation3 + $0xfc8] sm:$0xff]  ;;  %v11035_v42 = vld [vmem:[#allocation3 + $0xfc0] sm:$0xff] }
0x10d8   :  { %10921 = vmatprep.subr.bf16.mxu0 %v10890_v7  ;;  %v11038_v7 = vld [vmem:[#allocation3 + $0xfd8] sm:$0xff] }
0x10db   :  { %10922 = vmatpush1.bf16.msra.mxu0 %v10889_v57  ;;  %v11037_v57 = vld [vmem:[#allocation3 + $0xfd0] sm:$0xff] }
0x10dc   :  { %10923 = vmatprep.subr.bf16.mxu0 %v10892_v8  ;;  %v11040_v8 = vld [vmem:[#allocation3 + $0xfe8] sm:$0xff] }
0x10df   :  { %10924 = vmatpush1.bf16.msra.mxu0 %v10891_v44  ;;  %v11039_v44 = vld [vmem:[#allocation3 + $0xfe0] sm:$0xff] }
0x10e0   :  { %10925 = vmatprep.subr.bf16.mxu0 %v10894_v9  ;;  %v11042_v9 = vld [vmem:[#allocation3 + $0xff8] sm:$0xff] }
0x10e3   :  { %10926 = vmatpush1.bf16.msra.mxu0 %v10893_v20  ;;  %v11041_v20 = vld [vmem:[#allocation3 + $0xff0] sm:$0xff] }
0x10e4   :  { %10927 = vmatprep.subr.bf16.mxu0 %v10896_v26  ;;  %v11008_v26 = vpack.c.bf16 %v15564_v37, %v15564_v37 }
0x10e7   :  { %10928 = vmatpush1.bf16.msra.mxu0 %v10895_v45 }
0x10e8   :  { %10929 = vmatprep.subr.bf16.mxu0 %v10898_v21 }
0x10eb   :  { %10930 = vmatpush1.bf16.msra.mxu0 %v10897_v19 }
0x10ec   :  { %10931 = vmatprep.subr.bf16.mxu0 %v10900_v14 }
0x10ef   :  { %10932 = vmatpush1.bf16.msra.mxu0 %v10899_v10 }
0x10f0   :  { %10933 = vmatprep.subr.bf16.mxu0 %v10902_v48 }
0x10f3   :  { %10934 = vmatpush1.bf16.msra.mxu0 %v10901_v61 }
0x10f4   :  { %10935 = vmatprep.subr.bf16.mxu0 %v10904_v12 }
0x10f7   :  { %10936 = vmatpush1.bf16.msra.mxu0 %v10903_v51 }
0x10f8   :  { %10937 = vmatprep.subr.bf16.mxu0 %v10906_v16 }
0x10fb   :  { %10938 = vmatpush1.bf16.msra.mxu0 %v10905_v17 }
0x10fc   :  { %10939 = vmatprep.subr.bf16.mxu0 %v10908_v53 }
0x10ff   :  { %10940 = vmatpush1.bf16.msra.mxu0 %v10907_v54 }
0x1100   :  { %10941 = vmatprep.subr.bf16.mxu0 %v10910_v55 }
0x1103   :  { %10942 = vmatpush1.bf16.msra.mxu0 %v10909_v56 }
0x1104   :  { %10943 = vmatprep.subr.bf16.mxu0 %v10912_v40 }
0x1107   :  { %10944 = vmatpush1.bf16.msra.mxu0 %v10911_v32 }
0x1108   :  { %10945 = vmatprep.subr.bf16.mxu0 %v10914_v47 }
0x110b   :  { %10946 = vmatpush1.bf16.msra.mxu0 %v10913_v30 }
0x110c   :  { %10947 = vmatprep.subr.bf16.mxu0 %v10916_v29 }
0x110f   :  { %10948 = vmatpush1.bf16.msra.mxu0 %v10915_v39 }
0x1110   :  { %10949 = vmatprep.subr.bf16.mxu0 %v10918_v58 }
0x1113   :  { %10950 = vmatpush1.bf16.msra.mxu0 %v10917_v59 }
0x1114   :  { %11043 = vmatprep.subr.bf16.mxu0 %v11012_v15 }
0x1116   :  { %10952 = vmatmul.mubr.bf16.vlgmr.msra.gmra.mrb[124].mxu0 %v10884_v18 }
0x1117   :  { %11044 = vmatpush1.bf16.msra.mxu0 %v11011_v22  ;;  %11075 = vmatprep.mubr.bf16.mxu0 %v11009_v13 }
0x1118   :  { %11045 = vmatprep.subr.bf16.mxu0 %v11014_v63 }
0x111b   :  { %11046 = vmatpush1.bf16.msra.mxu0 %v11013_v0 }
0x111c   :  { %11047 = vmatprep.subr.bf16.mxu0 %v11016_v11 }
0x111f   :  { %11048 = vmatpush1.bf16.msra.mxu0 %v11015_v62 }
0x1120   :  { %11049 = vmatprep.subr.bf16.mxu0 %v11018_v1 }
0x1123   :  { %11050 = vmatpush1.bf16.msra.mxu0 %v11017_v6 }
0x1124   :  { %11051 = vmatprep.subr.bf16.mxu0 %v11020_v60 }
0x1127   :  { %11052 = vmatpush1.bf16.msra.mxu0 %v11019_v38 }
0x1128   :  { %11053 = vmatprep.subr.bf16.mxu0 %v11022_v24 }
0x112b   :  { %11054 = vmatpush1.bf16.msra.mxu0 %v11021_v25 }
0x112c   :  { %11055 = vmatprep.subr.bf16.mxu0 %v11024_v43 }
0x112f   :  { %11056 = vmatpush1.bf16.msra.mxu0 %v11023_v35 }
0x1130   :  { %11057 = vmatprep.subr.bf16.mxu0 %v11026_v49 }
0x1133   :  { %11058 = vmatpush1.bf16.msra.mxu0 %v11025_v46 }
0x1134   :  { %11059 = vmatprep.subr.bf16.mxu0 %v11028_v50 }
0x1137   :  { %11060 = vmatpush1.bf16.msra.mxu0 %v11027_v36 }
0x1138   :  { %11061 = vmatprep.subr.bf16.mxu0 %v11030_v3 }
0x113b   :  { %11062 = vmatpush1.bf16.msra.mxu0 %v11029_v27 }
0x113c   :  { %11063 = vmatprep.subr.bf16.mxu0 %v11032_v31  ;;  %v11086_v31 = vld [vmem:[%s15611_s12] sm:$0x3] }
0x113f   :  { %11064 = vmatpush1.bf16.msra.mxu0 %v11031_v33 }
0x1140   :  { %11065 = vmatprep.subr.bf16.mxu0 %v11034_v4  ;;  %v11087_v4 = vld [vmem:[%s15612_s13] sm:$0x3] }
0x1143   :  { %11066 = vmatpush1.bf16.msra.mxu0 %v11033_v5 }
0x1144   :  { %11067 = vmatprep.subr.bf16.mxu0 %v11036_v23 }
0x1147   :  { %11068 = vmatpush1.bf16.msra.mxu0 %v11035_v42 }
0x1148   :  { %11069 = vmatprep.subr.bf16.mxu0 %v11038_v7  ;;  %v11165_v7 = vrot.slane %v11087_v4, %v14374_v28 }
0x114b   :  { %11070 = vmatpush1.bf16.msra.mxu0 %v11037_v57  ;;  %v11169_v57 = vrot.slane %v11087_v4, %v15344_v34 }
0x114c   :  { %11071 = vmatprep.subr.bf16.mxu0 %v11040_v8 }
0x114f   :  { %11072 = vmatpush1.bf16.msra.mxu0 %v11039_v44 }
0x1150   :  { %11073 = vmatprep.subr.bf16.mxu0 %v11042_v9 }
0x1153   :  { %11074 = vmatpush1.bf16.msra.mxu0 %v11041_v20 }
0x1156   :  { %11076 = vmatmul.mubr.bf16.vlgmr.msra.gmra.mrb[124].mxu0 %v11008_v26 }
0x1229   :  { %v11077_v45 = vpop.f32.mrb[124].mxu0 }
0x122a   :  { %v12692_v21 = vadd.f32 %v11077_v45, %v15480_v52  ;;  %v11079_v19 = vpop.f32.mrb[125].mxu0 }
0x122b   :  { %v12693_v14 = vadd.f32 %v11079_v19, %v15482_v41  ;;  %v11081_v10 = vpop.f32.mrb[126].mxu0 }
0x122c   :  { %v11089_v48 = vsel %vm11088_vm5, %v12692_v21, 0.0  ;;  %v11082_v61 = vpop.f32.mrb[127].mxu0 }
0x122d   :  { %v11090_v12 = vrot.slane %v11089_v48, 4  ;;  %v11096_v51 = vsel %vm11088_vm5, %v12693_v14, 0.0 }
0x122e   :  { %v11097_v16 = vrot.slane %v11096_v51, 4 }
0x122f   :  { %v11091_v17 = vadd.f32 %v11090_v12, %v11089_v48 }
0x1230   :  { %v11098_v53 = vadd.f32 %v11097_v16, %v11096_v51 }
0x1231   :  { %v11092_v54 = vrot.slane %v11091_v17, 2 }
0x1232   :  { %v11099_v37 = vrot.slane %v11098_v53, 2 }
0x1233   :  { %v11093_v55 = vadd.f32 %v11092_v54, %v11091_v17 }
0x1234   :  { %v11100_v56 = vadd.f32 %v11099_v37, %v11098_v53 }
0x1235   :  { %v11094_v40 = vrot.slane %v11093_v55, 1 }
0x1236   :  { %v11101_v32 = vrot.slane %v11100_v56, 1 }
0x1237   :  { %v11095_v52 = vadd.f32 %v11094_v40, %v11093_v55 }
0x1238   :  { %v11102_v47 = vadd.f32 %v11101_v32, %v11100_v56 }
0x1239   :  { %v11103_v30 = vmul.f32 0.5, %v11095_v52 }
0x123a   :  { %v11104_v41 = vmul.f32 0.5, %v11102_v47 }
0x123b   :  { %v11105_v29 = vsub.f32 %v12692_v21, %v11103_v30 }
0x123c   :  { %v11106_v39 = vsub.f32 %v12693_v14, %v11104_v41 }
0x123d   :  { %v11107_v58 = vmul.f32 %v11105_v29, %v11105_v29 }
0x123e   :  { %v11108_v59 = vmul.f32 %v11106_v39, %v11106_v39 }
0x123f   :  { %v11109_v15 = vsel %vm11088_vm5, %v11107_v58, 0.0 }
0x1240   :  { %v11110_v18 = vrot.slane %v11109_v15, 4  ;;  %v11116_v13 = vsel %vm11088_vm5, %v11108_v59, 0.0 }
0x1241   :  { %v11117_v22 = vrot.slane %v11116_v13, 4 }
0x1242   :  { %v11111_v63 = vadd.f32 %v11110_v18, %v11109_v15 }
0x1243   :  { %v11118_v0 = vadd.f32 %v11117_v22, %v11116_v13 }
0x1244   :  { %v11112_v11 = vrot.slane %v11111_v63, 2 }
0x1245   :  { %v11119_v62 = vrot.slane %v11118_v0, 2 }
0x1246   :  { %v11113_v1 = vadd.f32 %v11112_v11, %v11111_v63 }
0x1247   :  { %v11120_v6 = vadd.f32 %v11119_v62, %v11118_v0 }
0x1248   :  { %v11114_v60 = vrot.slane %v11113_v1, 1 }
0x1249   :  { %v11121_v38 = vrot.slane %v11120_v6, 1 }
0x124a   :  { %v11115_v24 = vadd.f32 %v11114_v60, %v11113_v1 }
0x124b   :  { %v11122_v25 = vadd.f32 %v11121_v38, %v11120_v6 }
0x124c   :  { %v11123_v43 = vmul.f32 0.5, %v11115_v24 }
0x124d   :  { %v11124_v35 = vmul.f32 0.5, %v11122_v25 }
0x124e   :  { %v11125_v49 = vadd.f32 1e-05, %v11123_v43 }
0x124f   :  { %v11126_v46 = vadd.f32 1e-05, %v11124_v35 }
0x1250   :  { %13028 = vrsqrt.f32 %v11125_v49 }
0x1251   :  { %13030 = vrsqrt.f32 %v11126_v46 }
0x125a   :  { %v13029_v50 = vpop.eup %13028 }
0x125b   :  { %v13031_v36 = vpop.eup %13030 }
0x125c   :  { %v11131_v3 = vcombine.low %v13029_v50, %v13031_v36 }
0x125e   :  { %v11138_v27 = vrot.slane %v11131_v3, %v15336_v2 }
0x1260   :  { %v11145_v33 = vrot.slane %v11138_v27, %v15336_v2 }
0x1262   :  { %v11147_v5 = vmul.f32 %v11145_v33, %v11086_v31 }
0x1264   :  { %v11152_v23 = vrot.slane %v11147_v5, %v14374_v28  ;;  %v11156_v42 = vrot.slane %v11147_v5, %v15344_v34 }
0x1266   :  { %v11159_v8 = vmul.f32 %v11152_v23, %v11105_v29  ;;  %v11160_v44 = vmul.f32 %v11156_v42, %v11106_v39 }
0x1268   :  { %v11172_v9 = vadd.f32 %v11165_v7, %v11159_v8  ;;  %v11173_v20 = vadd.f32 %v11169_v57, %v11160_v44 }
0x126a   :  { %v11174_v26 = vmul.f32 0.2, %v11172_v9  ;;  %v11175_v45 = vmul.f32 0.2, %v11173_v20 }
0x126c   :  { %v11176_v2 = vmax.f32 %v11172_v9, %v11174_v26  ;;  %v11177_v21 = vmax.f32 %v11173_v20, %v11175_v45 }
0x126e   :  { %v11180_v19 = vcombine.low %v11176_v2, %v11177_v21 }
0x1270   :  { %11715 = vst.sshfl [vmem:[%s15622_s0] sm:$0x33 pattern:$0x76325410] %v11180_v19 }
0x1271   :  { %11194 = vsyncmov [#allocation4] }
0x1274   :  { %s11195_s17 = vpop.sfrf %11194 }
0x1275   :  { %p11716_p2 = scmp.ne.s32.totalorder %s11195_s17, 0 }
0x1277   :  { %11199 = shalt.err (%p11716_p2)  }
0x1278   :  { %11201 = vsyncmov [#allocation4 + $0x1] }
0x127b   :  { %s11202_s18 = vpop.sfrf %11201 }
0x127c   :  { %p11717_p3 = scmp.ne.s32.totalorder %s11202_s18, 0 }
0x127e   :  { %11206 = shalt.err (%p11717_p3)  }

</bundles_post_ra>
